<compile_context>
chip_gen: v6e
topology: v6e:2x2x1
jax: 0.10.0
libtpu: 0.0.40
codegen_flags: <defaults>
</compile_context>

<pallas_src>
import numpy as np
import jax
import jax.numpy as jnp
from jax.experimental import pallas as pl
from jax.experimental.pallas import tpu as pltpu

WIN_SIZE = 11
WIN_SIGMA = 1.5
_LANES = 128
_MAX_PLANES_PER_STEP = 32       # unroll cap for the per-plane epilogue
_VMEM_BUDGET = 8 << 20          # target bytes of in-kernel f32 temporaries
_VMEM_LIMIT = 48 << 20          # scoped-VMEM cap, below v7x's 64 MiB physical


def _gaussian_window_1d(win_size=WIN_SIZE, sigma=WIN_SIGMA):
    coords = np.arange(win_size, dtype=np.float64) - win_size // 2
    g = np.exp(-(coords ** 2) / (2.0 * sigma ** 2))
    return g / g.sum()


def _band_matrices(H, W):
    """Banded matrices implementing the separable 'valid' Gaussian filter.

    Horizontal pass:  X (R, W)   @ Bh (W, Wo)  -> (R, Wo)
    Vertical pass:    Bv (Ho, H) @ T (H, Wo)   -> (Ho, Wo)
    """
    w = _gaussian_window_1d()
    Ho, Wo = H - WIN_SIZE + 1, W - WIN_SIZE + 1
    bh = np.zeros((W, Wo), np.float32)
    bv = np.zeros((Ho, H), np.float32)
    for l in range(WIN_SIZE):
        for j in range(Wo):
            bh[l + j, j] = w[l]
        for i in range(Ho):
            bv[i, i + l] = w[l]
    return jnp.asarray(bh), jnp.asarray(bv)


def _make_ssim_kernel(bnc, H, W, data_range):
    Ho, Wo = H - WIN_SIZE + 1, W - WIN_SIZE + 1
    C1 = (0.01 * data_range) ** 2
    C2 = (0.03 * data_range) ** 2
    HIGHEST = jax.lax.Precision.HIGHEST

    def kernel(x_ref, y_ref, bh_ref, bv_ref, out_ref):
        # (bnc, H, W) -> (bnc*H, W); cast to f32 inside the kernel.
        x = x_ref[...].astype(jnp.float32).reshape(bnc * H, W)
        y = y_ref[...].astype(jnp.float32).reshape(bnc * H, W)
        bh = bh_ref[...]
        bv = bv_ref[...]

        # Stack all five filter inputs along sublanes; the horizontal Gaussian
        # pass for every map of every plane is a single MXU matmul (Bh pushed
        # to the MXU weight registers once).
        stacked = jnp.concatenate([x, y, x * x, y * y, x * y], axis=0)
        tmp = jnp.dot(stacked, bh, precision=HIGHEST,
                      preferred_element_type=jnp.float32)
        # tmp: (5*bnc*H, Wo); map m, plane p occupies rows [(m*bnc+p)*H, +H).

        sub = jax.lax.broadcasted_iota(jnp.int32, (8, _LANES), 0)
        lane = jax.lax.broadcasted_iota(jnp.int32, (8, _LANES), 1)
        acc = jnp.zeros((8, _LANES), jnp.float32)

        for p in range(bnc):
            def vfilt(m, _p=p):
                r0 = (m * bnc + _p) * H
                return jnp.dot(bv, tmp[r0:r0 + H, :], precision=HIGHEST,
                               preferred_element_type=jnp.float32)

            mu1, mu2 = vfilt(0), vfilt(1)
            e_xx, e_yy, e_xy = vfilt(2), vfilt(3), vfilt(4)

            mu1_sq = mu1 * mu1
            mu2_sq = mu2 * mu2
            mu12 = mu1 * mu2
            sigma1_sq = e_xx - mu1_sq
            sigma2_sq = e_yy - mu2_sq
            sigma12 = e_xy - mu12

            num = (2.0 * mu12 + C1) * (2.0 * sigma12 + C2)
            den = (mu1_sq + mu2_sq + C1) * (sigma1_sq + sigma2_sq + C2)
            ssim_map = num * pl.reciprocal(den)          # full-precision EUP

            s = jnp.sum(ssim_map).reshape(1, 1)          # per-plane partial sum
            mask = jnp.logical_and(sub == 0, lane == p)
            acc = acc + jnp.where(mask, s, 0.0)

        out_ref[...] = acc.reshape(1, 8, _LANES)

    return kernel


def _pick_block_planes(NC, H, W):
    """Planes processed per grid step: big enough to amortize per-step
    overhead, small enough that ~16 plane-sized f32 temporaries fit the VMEM
    budget; prefer a divisor of NC so the wrapper never has to pad."""
    cap = int(max(1, min(NC, _MAX_PLANES_PER_STEP,
                         _VMEM_BUDGET // (16 * H * W * 4))))
    bnc_div = max(d for d in range(1, cap + 1) if NC % d == 0)
    # Use the divisor unless it would more than double the grid-step count.
    if pl.cdiv(NC, bnc_div) <= 2 * pl.cdiv(NC, cap):
        return bnc_div
    return cap


def ssim_loss(img1, img2, data_range=1.0, size_average=True):
    """1 - SSIM(img1, img2). Inputs NCHW. Returns f32 scalar (size_average=True)
    or f32 vector of shape (N,) (size_average=False)."""
    assert img1.shape == img2.shape
    N, C, H, W = img1.shape
    assert H >= WIN_SIZE and W >= WIN_SIZE, "spatial dims must be >= 11"
    NC = N * C
    Ho, Wo = H - WIN_SIZE + 1, W - WIN_SIZE + 1

    bnc = _pick_block_planes(NC, H, W)
    num_blocks = pl.cdiv(NC, bnc)
    NCp = num_blocks * bnc

    x = img1.reshape(NC, H, W)
    y = img2.reshape(NC, H, W)
    if NCp != NC:  # only when no reasonable divisor of NC exists
        pad = ((0, NCp - NC), (0, 0), (0, 0))
        x = jnp.pad(x, pad)
        y = jnp.pad(y, pad)

    bh, bv = _band_matrices(H, W)
    kernel = _make_ssim_kernel(bnc, H, W, data_range)

    # TODO(synk): for very large planes (bnc==1 still too big for v7x's 64 MiB
    # VMEM) add row tiling with a (WIN_SIZE-1)-row halo per spatial tile.
    out = pl.pallas_call(
        kernel,
        out_shape=jax.ShapeDtypeStruct((num_blocks, 8, _LANES), jnp.float32),
        grid_spec=pltpu.PrefetchScalarGridSpec(
            num_scalar_prefetch=0,
            grid=(num_blocks,),
            in_specs=[
                pl.BlockSpec((bnc, H, W), lambda i: (i, 0, 0)),
                pl.BlockSpec((bnc, H, W), lambda i: (i, 0, 0)),
                pl.BlockSpec((W, Wo), lambda i: (0, 0)),
                pl.BlockSpec((Ho, H), lambda i: (0, 0)),
            ],
            out_specs=pl.BlockSpec((1, 8, _LANES), lambda i: (i, 0, 0)),
        ),
        compiler_params=pltpu.CompilerParams(
            dimension_semantics=("parallel",),
            vmem_limit_bytes=_VMEM_LIMIT),
    )(x, y, bh, bv)

    # Plane p of block b has its SSIM-map sum at out[b, 0, p].
    plane_sums = out[:, 0, :bnc].reshape(NCp)[:NC]

    if size_average:
        mean_ssim = jnp.sum(plane_sums) / float(NC * Ho * Wo)
        return (1.0 - mean_ssim).astype(jnp.float32)
    per_image_ssim = plane_sums.reshape(N, C).mean(axis=1) / float(Ho * Wo)
    return (1.0 - per_image_ssim).astype(jnp.float32)


def _ssim_loss_ref(img1, img2, data_range=1.0):
    """Pure-JAX reference (same separable Gaussian, valid conv) for checking."""
    w = jnp.asarray(_gaussian_window_1d(), dtype=jnp.float32)
    N, C, H, W = img1.shape
    Ho, Wo = H - WIN_SIZE + 1, W - WIN_SIZE + 1

    def gfilt(x):  # x: (NC, H, W)
        tmp = sum(w[l] * x[:, :, l:l + Wo] for l in range(WIN_SIZE))
        out = sum(w[k] * tmp[:, k:k + Ho, :] for k in range(WIN_SIZE))
        return out

    x = img1.reshape(N * C, H, W).astype(jnp.float32)
    y = img2.reshape(N * C, H, W).astype(jnp.float32)
    C1 = (0.01 * data_range) ** 2
    C2 = (0.03 * data_range) ** 2
    mu1, mu2 = gfilt(x), gfilt(y)
    s1 = gfilt(x * x) - mu1 * mu1
    s2 = gfilt(y * y) - mu2 * mu2
    s12 = gfilt(x * y) - mu1 * mu2
    ssim_map = ((2 * mu1 * mu2 + C1) * (2 * s12 + C2)) / (
        (mu1 * mu1 + mu2 * mu2 + C1) * (s1 + s2 + C2))
    return (1.0 - jnp.mean(ssim_map)).astype(jnp.float32)


if __name__ == "__main__":
    key = jax.random.PRNGKey(0)
    k1, k2 = jax.random.split(key)
    # Small shapes consistent with the module: NCHW, spatial >= window (11).
    img1 = jax.random.uniform(k1, (2, 4, 16, 16), dtype=jnp.float32)
    img2 = jax.random.uniform(k2, (2, 4, 16, 16), dtype=jnp.float32)

    loss = ssim_loss(img1, img2, data_range=1.0, size_average=True)
    loss = jax.block_until_ready(loss)

    ref = jax.block_until_ready(_ssim_loss_ref(img1, img2, data_range=1.0))
    assert loss.dtype == jnp.float32
    assert np.allclose(np.asarray(loss), np.asarray(ref), atol=1e-5, rtol=1e-5)

    print("KERNEL_OK")
</pallas_src>

<mosaic_0001>
module attributes {stable_mosaic.version = 11 : i64} {
  func.func @kernel(%arg0: i32, %arg1: memref<8x16x16xf32, #tpu.memory_space<vmem>>, %arg2: memref<8x16x16xf32, #tpu.memory_space<vmem>>, %arg3: memref<16x6xf32, #tpu.memory_space<vmem>>, %arg4: memref<6x16xf32, #tpu.memory_space<vmem>>, %arg5: memref<1x8x128xf32, #tpu.memory_space<vmem>>) attributes {dimension_semantics = [#tpu.dimension_semantics<parallel>], iteration_bounds = array<i64: 1>, scalar_prefetch = 0 : i64, scratch_operands = 0 : i64, tpu.core_type = #tpu.core_type<tc>, window_params = [{transform_indices = @transform_0, window_bounds = array<i64: 8, 16, 16>}, {transform_indices = @transform_1, window_bounds = array<i64: 8, 16, 16>}, {pipeline_mode = #tpu.pipeline_mode<synchronous>, transform_indices = @transform_2, window_bounds = array<i64: 16, 6>}, {pipeline_mode = #tpu.pipeline_mode<synchronous>, transform_indices = @transform_3, window_bounds = array<i64: 6, 16>}, {transform_indices = @transform_4, window_bounds = array<i64: 1, 8, 128>}]} {
    %c0 = arith.constant 0 : index
    %c0_0 = arith.constant 0 : index
    %c0_1 = arith.constant 0 : index
    %0 = vector.load %arg1[%c0, %c0_0, %c0_1] : memref<8x16x16xf32, #tpu.memory_space<vmem>>, vector<8x16x16xf32>
    %1 = vector.shape_cast %0 : vector<8x16x16xf32> to vector<128x16xf32>
    %c0_2 = arith.constant 0 : index
    %c0_3 = arith.constant 0 : index
    %c0_4 = arith.constant 0 : index
    %2 = vector.load %arg2[%c0_2, %c0_3, %c0_4] : memref<8x16x16xf32, #tpu.memory_space<vmem>>, vector<8x16x16xf32>
    %3 = vector.shape_cast %2 : vector<8x16x16xf32> to vector<128x16xf32>
    %c0_5 = arith.constant 0 : index
    %c0_6 = arith.constant 0 : index
    %4 = vector.load %arg3[%c0_5, %c0_6] : memref<16x6xf32, #tpu.memory_space<vmem>>, vector<16x6xf32>
    %c0_7 = arith.constant 0 : index
    %c0_8 = arith.constant 0 : index
    %5 = vector.load %arg4[%c0_7, %c0_8] : memref<6x16xf32, #tpu.memory_space<vmem>>, vector<6x16xf32>
    %6 = arith.mulf %1, %1 : vector<128x16xf32>
    %7 = arith.mulf %3, %3 : vector<128x16xf32>
    %8 = arith.mulf %1, %3 : vector<128x16xf32>
    %9 = tpu.concatenate %1, %3, %6, %7, %8 in 0 : vector<128x16xf32>, vector<128x16xf32>, vector<128x16xf32>, vector<128x16xf32>, vector<128x16xf32> -> vector<640x16xf32>
    %cst = arith.constant dense<0.000000e+00> : vector<640x6xf32>
    %10 = tpu.matmul %9, %4, %cst {dimension_numbers = #tpu.dot_dimension_numbers<[1], [0], [0], [1], [0, 0, 1, 1], [], []>, precision = #tpu.contract_precision<fp32>} : vector<640x16xf32>, vector<16x6xf32>, vector<640x6xf32> -> vector<640x6xf32>
    %11 = tpu.iota {dimensions = array<i32: 0>} : vector<8x128xi32>
    %12 = tpu.iota {dimensions = array<i32: 1>} : vector<8x128xi32>
    %cst_9 = arith.constant 0.000000e+00 : f32
    %13 = vector.broadcast %cst_9 : f32 to vector<8x128xf32>
    %14 = vector.extract_strided_slice %10 {offsets = [0, 0], sizes = [16, 6], strides = [1, 1]} : vector<640x6xf32> to vector<16x6xf32>
    %cst_10 = arith.constant dense<0.000000e+00> : vector<6x6xf32>
    %15 = tpu.matmul %5, %14, %cst_10 {dimension_numbers = #tpu.dot_dimension_numbers<[1], [0], [0], [1], [0, 0, 1, 1], [], []>, precision = #tpu.contract_precision<fp32>} : vector<6x16xf32>, vector<16x6xf32>, vector<6x6xf32> -> vector<6x6xf32>
    %16 = vector.extract_strided_slice %10 {offsets = [128, 0], sizes = [16, 6], strides = [1, 1]} : vector<640x6xf32> to vector<16x6xf32>
    %cst_11 = arith.constant dense<0.000000e+00> : vector<6x6xf32>
    %17 = tpu.matmul %5, %16, %cst_11 {dimension_numbers = #tpu.dot_dimension_numbers<[1], [0], [0], [1], [0, 0, 1, 1], [], []>, precision = #tpu.contract_precision<fp32>} : vector<6x16xf32>, vector<16x6xf32>, vector<6x6xf32> -> vector<6x6xf32>
    %18 = vector.extract_strided_slice %10 {offsets = [256, 0], sizes = [16, 6], strides = [1, 1]} : vector<640x6xf32> to vector<16x6xf32>
    %cst_12 = arith.constant dense<0.000000e+00> : vector<6x6xf32>
    %19 = tpu.matmul %5, %18, %cst_12 {dimension_numbers = #tpu.dot_dimension_numbers<[1], [0], [0], [1], [0, 0, 1, 1], [], []>, precision = #tpu.contract_precision<fp32>} : vector<6x16xf32>, vector<16x6xf32>, vector<6x6xf32> -> vector<6x6xf32>
    %20 = vector.extract_strided_slice %10 {offsets = [384, 0], sizes = [16, 6], strides = [1, 1]} : vector<640x6xf32> to vector<16x6xf32>
    %cst_13 = arith.constant dense<0.000000e+00> : vector<6x6xf32>
    %21 = tpu.matmul %5, %20, %cst_13 {dimension_numbers = #tpu.dot_dimension_numbers<[1], [0], [0], [1], [0, 0, 1, 1], [], []>, precision = #tpu.contract_precision<fp32>} : vector<6x16xf32>, vector<16x6xf32>, vector<6x6xf32> -> vector<6x6xf32>
    %22 = vector.extract_strided_slice %10 {offsets = [512, 0], sizes = [16, 6], strides = [1, 1]} : vector<640x6xf32> to vector<16x6xf32>
    %cst_14 = arith.constant dense<0.000000e+00> : vector<6x6xf32>
    %23 = tpu.matmul %5, %22, %cst_14 {dimension_numbers = #tpu.dot_dimension_numbers<[1], [0], [0], [1], [0, 0, 1, 1], [], []>, precision = #tpu.contract_precision<fp32>} : vector<6x16xf32>, vector<16x6xf32>, vector<6x6xf32> -> vector<6x6xf32>
    %24 = arith.mulf %15, %15 : vector<6x6xf32>
    %25 = arith.mulf %17, %17 : vector<6x6xf32>
    %26 = arith.mulf %15, %17 : vector<6x6xf32>
    %27 = arith.subf %19, %24 : vector<6x6xf32>
    %28 = arith.subf %21, %25 : vector<6x6xf32>
    %29 = arith.subf %23, %26 : vector<6x6xf32>
    %cst_15 = arith.constant 2.000000e+00 : f32
    %30 = vector.broadcast %cst_15 : f32 to vector<6x6xf32>
    %31 = arith.mulf %30, %26 : vector<6x6xf32>
    %cst_16 = arith.constant 9.99999974E-5 : f32
    %32 = vector.broadcast %cst_16 : f32 to vector<6x6xf32>
    %33 = arith.addf %31, %32 : vector<6x6xf32>
    %cst_17 = arith.constant 2.000000e+00 : f32
    %34 = vector.broadcast %cst_17 : f32 to vector<6x6xf32>
    %35 = arith.mulf %34, %29 : vector<6x6xf32>
    %cst_18 = arith.constant 8.99999984E-4 : f32
    %36 = vector.broadcast %cst_18 : f32 to vector<6x6xf32>
    %37 = arith.addf %35, %36 : vector<6x6xf32>
    %38 = arith.mulf %33, %37 : vector<6x6xf32>
    %39 = arith.addf %24, %25 : vector<6x6xf32>
    %cst_19 = arith.constant 9.99999974E-5 : f32
    %40 = vector.broadcast %cst_19 : f32 to vector<6x6xf32>
    %41 = arith.addf %39, %40 : vector<6x6xf32>
    %42 = arith.addf %27, %28 : vector<6x6xf32>
    %cst_20 = arith.constant 8.99999984E-4 : f32
    %43 = vector.broadcast %cst_20 : f32 to vector<6x6xf32>
    %44 = arith.addf %42, %43 : vector<6x6xf32>
    %45 = arith.mulf %41, %44 : vector<6x6xf32>
    %46 = tpu.reciprocal %45 : vector<6x6xf32> -> vector<6x6xf32>
    %47 = arith.mulf %38, %46 : vector<6x6xf32>
    %48 = vector.shape_cast %47 : vector<6x6xf32> to vector<1x6x6xf32>
    %cst_21 = arith.constant dense<0.000000e+00> : vector<1xf32>
    %49 = vector.multi_reduction <add>, %48, %cst_21 [1, 2] : vector<1x6x6xf32> to vector<1xf32>
    %50 = vector.shape_cast %49 : vector<1xf32> to vector<1x1x1xf32>
    %51 = vector.extract %50[0, 0, 0] : f32 from vector<1x1x1xf32>
    %52 = vector.broadcast %51 : f32 to vector<1x1xf32>
    %c0_i32 = arith.constant 0 : i32
    %53 = vector.broadcast %c0_i32 : i32 to vector<8x128xi32>
    %54 = arith.cmpi eq, %11, %53 : vector<8x128xi32>
    %c0_i32_22 = arith.constant 0 : i32
    %55 = vector.broadcast %c0_i32_22 : i32 to vector<8x128xi32>
    %56 = arith.cmpi eq, %12, %55 : vector<8x128xi32>
    %57 = arith.andi %54, %56 : vector<8x128xi1>
    %cst_23 = arith.constant 0.000000e+00 : f32
    %58 = vector.shape_cast %52 : vector<1x1xf32> to vector<1x1xf32>
    %59 = vector.broadcast %58 : vector<1x1xf32> to vector<8x128xf32>
    %60 = vector.broadcast %cst_23 : f32 to vector<8x128xf32>
    %61 = arith.select %57, %59, %60 : vector<8x128xi1>, vector<8x128xf32>
    %62 = arith.addf %13, %61 : vector<8x128xf32>
    %63 = vector.extract_strided_slice %10 {offsets = [16, 0], sizes = [16, 6], strides = [1, 1]} : vector<640x6xf32> to vector<16x6xf32>
    %cst_24 = arith.constant dense<0.000000e+00> : vector<6x6xf32>
    %64 = tpu.matmul %5, %63, %cst_24 {dimension_numbers = #tpu.dot_dimension_numbers<[1], [0], [0], [1], [0, 0, 1, 1], [], []>, precision = #tpu.contract_precision<fp32>} : vector<6x16xf32>, vector<16x6xf32>, vector<6x6xf32> -> vector<6x6xf32>
    %65 = vector.extract_strided_slice %10 {offsets = [144, 0], sizes = [16, 6], strides = [1, 1]} : vector<640x6xf32> to vector<16x6xf32>
    %cst_25 = arith.constant dense<0.000000e+00> : vector<6x6xf32>
    %66 = tpu.matmul %5, %65, %cst_25 {dimension_numbers = #tpu.dot_dimension_numbers<[1], [0], [0], [1], [0, 0, 1, 1], [], []>, precision = #tpu.contract_precision<fp32>} : vector<6x16xf32>, vector<16x6xf32>, vector<6x6xf32> -> vector<6x6xf32>
    %67 = vector.extract_strided_slice %10 {offsets = [272, 0], sizes = [16, 6], strides = [1, 1]} : vector<640x6xf32> to vector<16x6xf32>
    %cst_26 = arith.constant dense<0.000000e+00> : vector<6x6xf32>
    %68 = tpu.matmul %5, %67, %cst_26 {dimension_numbers = #tpu.dot_dimension_numbers<[1], [0], [0], [1], [0, 0, 1, 1], [], []>, precision = #tpu.contract_precision<fp32>} : vector<6x16xf32>, vector<16x6xf32>, vector<6x6xf32> -> vector<6x6xf32>
    %69 = vector.extract_strided_slice %10 {offsets = [400, 0], sizes = [16, 6], strides = [1, 1]} : vector<640x6xf32> to vector<16x6xf32>
    %cst_27 = arith.constant dense<0.000000e+00> : vector<6x6xf32>
    %70 = tpu.matmul %5, %69, %cst_27 {dimension_numbers = #tpu.dot_dimension_numbers<[1], [0], [0], [1], [0, 0, 1, 1], [], []>, precision = #tpu.contract_precision<fp32>} : vector<6x16xf32>, vector<16x6xf32>, vector<6x6xf32> -> vector<6x6xf32>
    %71 = vector.extract_strided_slice %10 {offsets = [528, 0], sizes = [16, 6], strides = [1, 1]} : vector<640x6xf32> to vector<16x6xf32>
    %cst_28 = arith.constant dense<0.000000e+00> : vector<6x6xf32>
    %72 = tpu.matmul %5, %71, %cst_28 {dimension_numbers = #tpu.dot_dimension_numbers<[1], [0], [0], [1], [0, 0, 1, 1], [], []>, precision = #tpu.contract_precision<fp32>} : vector<6x16xf32>, vector<16x6xf32>, vector<6x6xf32> -> vector<6x6xf32>
    %73 = arith.mulf %64, %64 : vector<6x6xf32>
    %74 = arith.mulf %66, %66 : vector<6x6xf32>
    %75 = arith.mulf %64, %66 : vector<6x6xf32>
    %76 = arith.subf %68, %73 : vector<6x6xf32>
    %77 = arith.subf %70, %74 : vector<6x6xf32>
    %78 = arith.subf %72, %75 : vector<6x6xf32>
    %cst_29 = arith.constant 2.000000e+00 : f32
    %79 = vector.broadcast %cst_29 : f32 to vector<6x6xf32>
    %80 = arith.mulf %79, %75 : vector<6x6xf32>
    %cst_30 = arith.constant 9.99999974E-5 : f32
    %81 = vector.broadcast %cst_30 : f32 to vector<6x6xf32>
    %82 = arith.addf %80, %81 : vector<6x6xf32>
    %cst_31 = arith.constant 2.000000e+00 : f32
    %83 = vector.broadcast %cst_31 : f32 to vector<6x6xf32>
    %84 = arith.mulf %83, %78 : vector<6x6xf32>
    %cst_32 = arith.constant 8.99999984E-4 : f32
    %85 = vector.broadcast %cst_32 : f32 to vector<6x6xf32>
    %86 = arith.addf %84, %85 : vector<6x6xf32>
    %87 = arith.mulf %82, %86 : vector<6x6xf32>
    %88 = arith.addf %73, %74 : vector<6x6xf32>
    %cst_33 = arith.constant 9.99999974E-5 : f32
    %89 = vector.broadcast %cst_33 : f32 to vector<6x6xf32>
    %90 = arith.addf %88, %89 : vector<6x6xf32>
    %91 = arith.addf %76, %77 : vector<6x6xf32>
    %cst_34 = arith.constant 8.99999984E-4 : f32
    %92 = vector.broadcast %cst_34 : f32 to vector<6x6xf32>
    %93 = arith.addf %91, %92 : vector<6x6xf32>
    %94 = arith.mulf %90, %93 : vector<6x6xf32>
    %95 = tpu.reciprocal %94 : vector<6x6xf32> -> vector<6x6xf32>
    %96 = arith.mulf %87, %95 : vector<6x6xf32>
    %97 = vector.shape_cast %96 : vector<6x6xf32> to vector<1x6x6xf32>
    %cst_35 = arith.constant dense<0.000000e+00> : vector<1xf32>
    %98 = vector.multi_reduction <add>, %97, %cst_35 [1, 2] : vector<1x6x6xf32> to vector<1xf32>
    %99 = vector.shape_cast %98 : vector<1xf32> to vector<1x1x1xf32>
    %100 = vector.extract %99[0, 0, 0] : f32 from vector<1x1x1xf32>
    %101 = vector.broadcast %100 : f32 to vector<1x1xf32>
    %c0_i32_36 = arith.constant 0 : i32
    %102 = vector.broadcast %c0_i32_36 : i32 to vector<8x128xi32>
    %103 = arith.cmpi eq, %11, %102 : vector<8x128xi32>
    %c1_i32 = arith.constant 1 : i32
    %104 = vector.broadcast %c1_i32 : i32 to vector<8x128xi32>
    %105 = arith.cmpi eq, %12, %104 : vector<8x128xi32>
    %106 = arith.andi %103, %105 : vector<8x128xi1>
    %cst_37 = arith.constant 0.000000e+00 : f32
    %107 = vector.shape_cast %101 : vector<1x1xf32> to vector<1x1xf32>
    %108 = vector.broadcast %107 : vector<1x1xf32> to vector<8x128xf32>
    %109 = vector.broadcast %cst_37 : f32 to vector<8x128xf32>
    %110 = arith.select %106, %108, %109 : vector<8x128xi1>, vector<8x128xf32>
    %111 = arith.addf %62, %110 : vector<8x128xf32>
    %112 = vector.extract_strided_slice %10 {offsets = [32, 0], sizes = [16, 6], strides = [1, 1]} : vector<640x6xf32> to vector<16x6xf32>
    %cst_38 = arith.constant dense<0.000000e+00> : vector<6x6xf32>
    %113 = tpu.matmul %5, %112, %cst_38 {dimension_numbers = #tpu.dot_dimension_numbers<[1], [0], [0], [1], [0, 0, 1, 1], [], []>, precision = #tpu.contract_precision<fp32>} : vector<6x16xf32>, vector<16x6xf32>, vector<6x6xf32> -> vector<6x6xf32>
    %114 = vector.extract_strided_slice %10 {offsets = [160, 0], sizes = [16, 6], strides = [1, 1]} : vector<640x6xf32> to vector<16x6xf32>
    %cst_39 = arith.constant dense<0.000000e+00> : vector<6x6xf32>
    %115 = tpu.matmul %5, %114, %cst_39 {dimension_numbers = #tpu.dot_dimension_numbers<[1], [0], [0], [1], [0, 0, 1, 1], [], []>, precision = #tpu.contract_precision<fp32>} : vector<6x16xf32>, vector<16x6xf32>, vector<6x6xf32> -> vector<6x6xf32>
    %116 = vector.extract_strided_slice %10 {offsets = [288, 0], sizes = [16, 6], strides = [1, 1]} : vector<640x6xf32> to vector<16x6xf32>
    %cst_40 = arith.constant dense<0.000000e+00> : vector<6x6xf32>
    %117 = tpu.matmul %5, %116, %cst_40 {dimension_numbers = #tpu.dot_dimension_numbers<[1], [0], [0], [1], [0, 0, 1, 1], [], []>, precision = #tpu.contract_precision<fp32>} : vector<6x16xf32>, vector<16x6xf32>, vector<6x6xf32> -> vector<6x6xf32>
    %118 = vector.extract_strided_slice %10 {offsets = [416, 0], sizes = [16, 6], strides = [1, 1]} : vector<640x6xf32> to vector<16x6xf32>
    %cst_41 = arith.constant dense<0.000000e+00> : vector<6x6xf32>
    %119 = tpu.matmul %5, %118, %cst_41 {dimension_numbers = #tpu.dot_dimension_numbers<[1], [0], [0], [1], [0, 0, 1, 1], [], []>, precision = #tpu.contract_precision<fp32>} : vector<6x16xf32>, vector<16x6xf32>, vector<6x6xf32> -> vector<6x6xf32>
    %120 = vector.extract_strided_slice %10 {offsets = [544, 0], sizes = [16, 6], strides = [1, 1]} : vector<640x6xf32> to vector<16x6xf32>
    %cst_42 = arith.constant dense<0.000000e+00> : vector<6x6xf32>
    %121 = tpu.matmul %5, %120, %cst_42 {dimension_numbers = #tpu.dot_dimension_numbers<[1], [0], [0], [1], [0, 0, 1, 1], [], []>, precision = #tpu.contract_precision<fp32>} : vector<6x16xf32>, vector<16x6xf32>, vector<6x6xf32> -> vector<6x6xf32>
    %122 = arith.mulf %113, %113 : vector<6x6xf32>
    %123 = arith.mulf %115, %115 : vector<6x6xf32>
    %124 = arith.mulf %113, %115 : vector<6x6xf32>
    %125 = arith.subf %117, %122 : vector<6x6xf32>
    %126 = arith.subf %119, %123 : vector<6x6xf32>
    %127 = arith.subf %121, %124 : vector<6x6xf32>
    %cst_43 = arith.constant 2.000000e+00 : f32
    %128 = vector.broadcast %cst_43 : f32 to vector<6x6xf32>
    %129 = arith.mulf %128, %124 : vector<6x6xf32>
    %cst_44 = arith.constant 9.99999974E-5 : f32
    %130 = vector.broadcast %cst_44 : f32 to vector<6x6xf32>
    %131 = arith.addf %129, %130 : vector<6x6xf32>
    %cst_45 = arith.constant 2.000000e+00 : f32
    %132 = vector.broadcast %cst_45 : f32 to vector<6x6xf32>
    %133 = arith.mulf %132, %127 : vector<6x6xf32>
    %cst_46 = arith.constant 8.99999984E-4 : f32
    %134 = vector.broadcast %cst_46 : f32 to vector<6x6xf32>
    %135 = arith.addf %133, %134 : vector<6x6xf32>
    %136 = arith.mulf %131, %135 : vector<6x6xf32>
    %137 = arith.addf %122, %123 : vector<6x6xf32>
    %cst_47 = arith.constant 9.99999974E-5 : f32
    %138 = vector.broadcast %cst_47 : f32 to vector<6x6xf32>
    %139 = arith.addf %137, %138 : vector<6x6xf32>
    %140 = arith.addf %125, %126 : vector<6x6xf32>
    %cst_48 = arith.constant 8.99999984E-4 : f32
    %141 = vector.broadcast %cst_48 : f32 to vector<6x6xf32>
    %142 = arith.addf %140, %141 : vector<6x6xf32>
    %143 = arith.mulf %139, %142 : vector<6x6xf32>
    %144 = tpu.reciprocal %143 : vector<6x6xf32> -> vector<6x6xf32>
    %145 = arith.mulf %136, %144 : vector<6x6xf32>
    %146 = vector.shape_cast %145 : vector<6x6xf32> to vector<1x6x6xf32>
    %cst_49 = arith.constant dense<0.000000e+00> : vector<1xf32>
    %147 = vector.multi_reduction <add>, %146, %cst_49 [1, 2] : vector<1x6x6xf32> to vector<1xf32>
    %148 = vector.shape_cast %147 : vector<1xf32> to vector<1x1x1xf32>
    %149 = vector.extract %148[0, 0, 0] : f32 from vector<1x1x1xf32>
    %150 = vector.broadcast %149 : f32 to vector<1x1xf32>
    %c0_i32_50 = arith.constant 0 : i32
    %151 = vector.broadcast %c0_i32_50 : i32 to vector<8x128xi32>
    %152 = arith.cmpi eq, %11, %151 : vector<8x128xi32>
    %c2_i32 = arith.constant 2 : i32
    %153 = vector.broadcast %c2_i32 : i32 to vector<8x128xi32>
    %154 = arith.cmpi eq, %12, %153 : vector<8x128xi32>
    %155 = arith.andi %152, %154 : vector<8x128xi1>
    %cst_51 = arith.constant 0.000000e+00 : f32
    %156 = vector.shape_cast %150 : vector<1x1xf32> to vector<1x1xf32>
    %157 = vector.broadcast %156 : vector<1x1xf32> to vector<8x128xf32>
    %158 = vector.broadcast %cst_51 : f32 to vector<8x128xf32>
    %159 = arith.select %155, %157, %158 : vector<8x128xi1>, vector<8x128xf32>
    %160 = arith.addf %111, %159 : vector<8x128xf32>
    %161 = vector.extract_strided_slice %10 {offsets = [48, 0], sizes = [16, 6], strides = [1, 1]} : vector<640x6xf32> to vector<16x6xf32>
    %cst_52 = arith.constant dense<0.000000e+00> : vector<6x6xf32>
    %162 = tpu.matmul %5, %161, %cst_52 {dimension_numbers = #tpu.dot_dimension_numbers<[1], [0], [0], [1], [0, 0, 1, 1], [], []>, precision = #tpu.contract_precision<fp32>} : vector<6x16xf32>, vector<16x6xf32>, vector<6x6xf32> -> vector<6x6xf32>
    %163 = vector.extract_strided_slice %10 {offsets = [176, 0], sizes = [16, 6], strides = [1, 1]} : vector<640x6xf32> to vector<16x6xf32>
    %cst_53 = arith.constant dense<0.000000e+00> : vector<6x6xf32>
    %164 = tpu.matmul %5, %163, %cst_53 {dimension_numbers = #tpu.dot_dimension_numbers<[1], [0], [0], [1], [0, 0, 1, 1], [], []>, precision = #tpu.contract_precision<fp32>} : vector<6x16xf32>, vector<16x6xf32>, vector<6x6xf32> -> vector<6x6xf32>
    %165 = vector.extract_strided_slice %10 {offsets = [304, 0], sizes = [16, 6], strides = [1, 1]} : vector<640x6xf32> to vector<16x6xf32>
    %cst_54 = arith.constant dense<0.000000e+00> : vector<6x6xf32>
    %166 = tpu.matmul %5, %165, %cst_54 {dimension_numbers = #tpu.dot_dimension_numbers<[1], [0], [0], [1], [0, 0, 1, 1], [], []>, precision = #tpu.contract_precision<fp32>} : vector<6x16xf32>, vector<16x6xf32>, vector<6x6xf32> -> vector<6x6xf32>
    %167 = vector.extract_strided_slice %10 {offsets = [432, 0], sizes = [16, 6], strides = [1, 1]} : vector<640x6xf32> to vector<16x6xf32>
    %cst_55 = arith.constant dense<0.000000e+00> : vector<6x6xf32>
    %168 = tpu.matmul %5, %167, %cst_55 {dimension_numbers = #tpu.dot_dimension_numbers<[1], [0], [0], [1], [0, 0, 1, 1], [], []>, precision = #tpu.contract_precision<fp32>} : vector<6x16xf32>, vector<16x6xf32>, vector<6x6xf32> -> vector<6x6xf32>
    %169 = vector.extract_strided_slice %10 {offsets = [560, 0], sizes = [16, 6], strides = [1, 1]} : vector<640x6xf32> to vector<16x6xf32>
    %cst_56 = arith.constant dense<0.000000e+00> : vector<6x6xf32>
    %170 = tpu.matmul %5, %169, %cst_56 {dimension_numbers = #tpu.dot_dimension_numbers<[1], [0], [0], [1], [0, 0, 1, 1], [], []>, precision = #tpu.contract_precision<fp32>} : vector<6x16xf32>, vector<16x6xf32>, vector<6x6xf32> -> vector<6x6xf32>
    %171 = arith.mulf %162, %162 : vector<6x6xf32>
    %172 = arith.mulf %164, %164 : vector<6x6xf32>
    %173 = arith.mulf %162, %164 : vector<6x6xf32>
    %174 = arith.subf %166, %171 : vector<6x6xf32>
    %175 = arith.subf %168, %172 : vector<6x6xf32>
    %176 = arith.subf %170, %173 : vector<6x6xf32>
    %cst_57 = arith.constant 2.000000e+00 : f32
    %177 = vector.broadcast %cst_57 : f32 to vector<6x6xf32>
    %178 = arith.mulf %177, %173 : vector<6x6xf32>
    %cst_58 = arith.constant 9.99999974E-5 : f32
    %179 = vector.broadcast %cst_58 : f32 to vector<6x6xf32>
    %180 = arith.addf %178, %179 : vector<6x6xf32>
    %cst_59 = arith.constant 2.000000e+00 : f32
    %181 = vector.broadcast %cst_59 : f32 to vector<6x6xf32>
    %182 = arith.mulf %181, %176 : vector<6x6xf32>
    %cst_60 = arith.constant 8.99999984E-4 : f32
    %183 = vector.broadcast %cst_60 : f32 to vector<6x6xf32>
    %184 = arith.addf %182, %183 : vector<6x6xf32>
    %185 = arith.mulf %180, %184 : vector<6x6xf32>
    %186 = arith.addf %171, %172 : vector<6x6xf32>
    %cst_61 = arith.constant 9.99999974E-5 : f32
    %187 = vector.broadcast %cst_61 : f32 to vector<6x6xf32>
    %188 = arith.addf %186, %187 : vector<6x6xf32>
    %189 = arith.addf %174, %175 : vector<6x6xf32>
    %cst_62 = arith.constant 8.99999984E-4 : f32
    %190 = vector.broadcast %cst_62 : f32 to vector<6x6xf32>
    %191 = arith.addf %189, %190 : vector<6x6xf32>
    %192 = arith.mulf %188, %191 : vector<6x6xf32>
    %193 = tpu.reciprocal %192 : vector<6x6xf32> -> vector<6x6xf32>
    %194 = arith.mulf %185, %193 : vector<6x6xf32>
    %195 = vector.shape_cast %194 : vector<6x6xf32> to vector<1x6x6xf32>
    %cst_63 = arith.constant dense<0.000000e+00> : vector<1xf32>
    %196 = vector.multi_reduction <add>, %195, %cst_63 [1, 2] : vector<1x6x6xf32> to vector<1xf32>
    %197 = vector.shape_cast %196 : vector<1xf32> to vector<1x1x1xf32>
    %198 = vector.extract %197[0, 0, 0] : f32 from vector<1x1x1xf32>
    %199 = vector.broadcast %198 : f32 to vector<1x1xf32>
    %c0_i32_64 = arith.constant 0 : i32
    %200 = vector.broadcast %c0_i32_64 : i32 to vector<8x128xi32>
    %201 = arith.cmpi eq, %11, %200 : vector<8x128xi32>
    %c3_i32 = arith.constant 3 : i32
    %202 = vector.broadcast %c3_i32 : i32 to vector<8x128xi32>
    %203 = arith.cmpi eq, %12, %202 : vector<8x128xi32>
    %204 = arith.andi %201, %203 : vector<8x128xi1>
    %cst_65 = arith.constant 0.000000e+00 : f32
    %205 = vector.shape_cast %199 : vector<1x1xf32> to vector<1x1xf32>
    %206 = vector.broadcast %205 : vector<1x1xf32> to vector<8x128xf32>
    %207 = vector.broadcast %cst_65 : f32 to vector<8x128xf32>
    %208 = arith.select %204, %206, %207 : vector<8x128xi1>, vector<8x128xf32>
    %209 = arith.addf %160, %208 : vector<8x128xf32>
    %210 = vector.extract_strided_slice %10 {offsets = [64, 0], sizes = [16, 6], strides = [1, 1]} : vector<640x6xf32> to vector<16x6xf32>
    %cst_66 = arith.constant dense<0.000000e+00> : vector<6x6xf32>
    %211 = tpu.matmul %5, %210, %cst_66 {dimension_numbers = #tpu.dot_dimension_numbers<[1], [0], [0], [1], [0, 0, 1, 1], [], []>, precision = #tpu.contract_precision<fp32>} : vector<6x16xf32>, vector<16x6xf32>, vector<6x6xf32> -> vector<6x6xf32>
    %212 = vector.extract_strided_slice %10 {offsets = [192, 0], sizes = [16, 6], strides = [1, 1]} : vector<640x6xf32> to vector<16x6xf32>
    %cst_67 = arith.constant dense<0.000000e+00> : vector<6x6xf32>
    %213 = tpu.matmul %5, %212, %cst_67 {dimension_numbers = #tpu.dot_dimension_numbers<[1], [0], [0], [1], [0, 0, 1, 1], [], []>, precision = #tpu.contract_precision<fp32>} : vector<6x16xf32>, vector<16x6xf32>, vector<6x6xf32> -> vector<6x6xf32>
    %214 = vector.extract_strided_slice %10 {offsets = [320, 0], sizes = [16, 6], strides = [1, 1]} : vector<640x6xf32> to vector<16x6xf32>
    %cst_68 = arith.constant dense<0.000000e+00> : vector<6x6xf32>
    %215 = tpu.matmul %5, %214, %cst_68 {dimension_numbers = #tpu.dot_dimension_numbers<[1], [0], [0], [1], [0, 0, 1, 1], [], []>, precision = #tpu.contract_precision<fp32>} : vector<6x16xf32>, vector<16x6xf32>, vector<6x6xf32> -> vector<6x6xf32>
    %216 = vector.extract_strided_slice %10 {offsets = [448, 0], sizes = [16, 6], strides = [1, 1]} : vector<640x6xf32> to vector<16x6xf32>
    %cst_69 = arith.constant dense<0.000000e+00> : vector<6x6xf32>
    %217 = tpu.matmul %5, %216, %cst_69 {dimension_numbers = #tpu.dot_dimension_numbers<[1], [0], [0], [1], [0, 0, 1, 1], [], []>, precision = #tpu.contract_precision<fp32>} : vector<6x16xf32>, vector<16x6xf32>, vector<6x6xf32> -> vector<6x6xf32>
    %218 = vector.extract_strided_slice %10 {offsets = [576, 0], sizes = [16, 6], strides = [1, 1]} : vector<640x6xf32> to vector<16x6xf32>
    %cst_70 = arith.constant dense<0.000000e+00> : vector<6x6xf32>
    %219 = tpu.matmul %5, %218, %cst_70 {dimension_numbers = #tpu.dot_dimension_numbers<[1], [0], [0], [1], [0, 0, 1, 1], [], []>, precision = #tpu.contract_precision<fp32>} : vector<6x16xf32>, vector<16x6xf32>, vector<6x6xf32> -> vector<6x6xf32>
    %220 = arith.mulf %211, %211 : vector<6x6xf32>
    %221 = arith.mulf %213, %213 : vector<6x6xf32>
    %222 = arith.mulf %211, %213 : vector<6x6xf32>
    %223 = arith.subf %215, %220 : vector<6x6xf32>
    %224 = arith.subf %217, %221 : vector<6x6xf32>
    %225 = arith.subf %219, %222 : vector<6x6xf32>
    %cst_71 = arith.constant 2.000000e+00 : f32
    %226 = vector.broadcast %cst_71 : f32 to vector<6x6xf32>
    %227 = arith.mulf %226, %222 : vector<6x6xf32>
    %cst_72 = arith.constant 9.99999974E-5 : f32
    %228 = vector.broadcast %cst_72 : f32 to vector<6x6xf32>
    %229 = arith.addf %227, %228 : vector<6x6xf32>
    %cst_73 = arith.constant 2.000000e+00 : f32
    %230 = vector.broadcast %cst_73 : f32 to vector<6x6xf32>
    %231 = arith.mulf %230, %225 : vector<6x6xf32>
    %cst_74 = arith.constant 8.99999984E-4 : f32
    %232 = vector.broadcast %cst_74 : f32 to vector<6x6xf32>
    %233 = arith.addf %231, %232 : vector<6x6xf32>
    %234 = arith.mulf %229, %233 : vector<6x6xf32>
    %235 = arith.addf %220, %221 : vector<6x6xf32>
    %cst_75 = arith.constant 9.99999974E-5 : f32
    %236 = vector.broadcast %cst_75 : f32 to vector<6x6xf32>
    %237 = arith.addf %235, %236 : vector<6x6xf32>
    %238 = arith.addf %223, %224 : vector<6x6xf32>
    %cst_76 = arith.constant 8.99999984E-4 : f32
    %239 = vector.broadcast %cst_76 : f32 to vector<6x6xf32>
    %240 = arith.addf %238, %239 : vector<6x6xf32>
    %241 = arith.mulf %237, %240 : vector<6x6xf32>
    %242 = tpu.reciprocal %241 : vector<6x6xf32> -> vector<6x6xf32>
    %243 = arith.mulf %234, %242 : vector<6x6xf32>
    %244 = vector.shape_cast %243 : vector<6x6xf32> to vector<1x6x6xf32>
    %cst_77 = arith.constant dense<0.000000e+00> : vector<1xf32>
    %245 = vector.multi_reduction <add>, %244, %cst_77 [1, 2] : vector<1x6x6xf32> to vector<1xf32>
    %246 = vector.shape_cast %245 : vector<1xf32> to vector<1x1x1xf32>
    %247 = vector.extract %246[0, 0, 0] : f32 from vector<1x1x1xf32>
    %248 = vector.broadcast %247 : f32 to vector<1x1xf32>
    %c0_i32_78 = arith.constant 0 : i32
    %249 = vector.broadcast %c0_i32_78 : i32 to vector<8x128xi32>
    %250 = arith.cmpi eq, %11, %249 : vector<8x128xi32>
    %c4_i32 = arith.constant 4 : i32
    %251 = vector.broadcast %c4_i32 : i32 to vector<8x128xi32>
    %252 = arith.cmpi eq, %12, %251 : vector<8x128xi32>
    %253 = arith.andi %250, %252 : vector<8x128xi1>
    %cst_79 = arith.constant 0.000000e+00 : f32
    %254 = vector.shape_cast %248 : vector<1x1xf32> to vector<1x1xf32>
    %255 = vector.broadcast %254 : vector<1x1xf32> to vector<8x128xf32>
    %256 = vector.broadcast %cst_79 : f32 to vector<8x128xf32>
    %257 = arith.select %253, %255, %256 : vector<8x128xi1>, vector<8x128xf32>
    %258 = arith.addf %209, %257 : vector<8x128xf32>
    %259 = vector.extract_strided_slice %10 {offsets = [80, 0], sizes = [16, 6], strides = [1, 1]} : vector<640x6xf32> to vector<16x6xf32>
    %cst_80 = arith.constant dense<0.000000e+00> : vector<6x6xf32>
    %260 = tpu.matmul %5, %259, %cst_80 {dimension_numbers = #tpu.dot_dimension_numbers<[1], [0], [0], [1], [0, 0, 1, 1], [], []>, precision = #tpu.contract_precision<fp32>} : vector<6x16xf32>, vector<16x6xf32>, vector<6x6xf32> -> vector<6x6xf32>
    %261 = vector.extract_strided_slice %10 {offsets = [208, 0], sizes = [16, 6], strides = [1, 1]} : vector<640x6xf32> to vector<16x6xf32>
    %cst_81 = arith.constant dense<0.000000e+00> : vector<6x6xf32>
    %262 = tpu.matmul %5, %261, %cst_81 {dimension_numbers = #tpu.dot_dimension_numbers<[1], [0], [0], [1], [0, 0, 1, 1], [], []>, precision = #tpu.contract_precision<fp32>} : vector<6x16xf32>, vector<16x6xf32>, vector<6x6xf32> -> vector<6x6xf32>
    %263 = vector.extract_strided_slice %10 {offsets = [336, 0], sizes = [16, 6], strides = [1, 1]} : vector<640x6xf32> to vector<16x6xf32>
    %cst_82 = arith.constant dense<0.000000e+00> : vector<6x6xf32>
    %264 = tpu.matmul %5, %263, %cst_82 {dimension_numbers = #tpu.dot_dimension_numbers<[1], [0], [0], [1], [0, 0, 1, 1], [], []>, precision = #tpu.contract_precision<fp32>} : vector<6x16xf32>, vector<16x6xf32>, vector<6x6xf32> -> vector<6x6xf32>
    %265 = vector.extract_strided_slice %10 {offsets = [464, 0], sizes = [16, 6], strides = [1, 1]} : vector<640x6xf32> to vector<16x6xf32>
    %cst_83 = arith.constant dense<0.000000e+00> : vector<6x6xf32>
    %266 = tpu.matmul %5, %265, %cst_83 {dimension_numbers = #tpu.dot_dimension_numbers<[1], [0], [0], [1], [0, 0, 1, 1], [], []>, precision = #tpu.contract_precision<fp32>} : vector<6x16xf32>, vector<16x6xf32>, vector<6x6xf32> -> vector<6x6xf32>
    %267 = vector.extract_strided_slice %10 {offsets = [592, 0], sizes = [16, 6], strides = [1, 1]} : vector<640x6xf32> to vector<16x6xf32>
    %cst_84 = arith.constant dense<0.000000e+00> : vector<6x6xf32>
    %268 = tpu.matmul %5, %267, %cst_84 {dimension_numbers = #tpu.dot_dimension_numbers<[1], [0], [0], [1], [0, 0, 1, 1], [], []>, precision = #tpu.contract_precision<fp32>} : vector<6x16xf32>, vector<16x6xf32>, vector<6x6xf32> -> vector<6x6xf32>
    %269 = arith.mulf %260, %260 : vector<6x6xf32>
    %270 = arith.mulf %262, %262 : vector<6x6xf32>
    %271 = arith.mulf %260, %262 : vector<6x6xf32>
    %272 = arith.subf %264, %269 : vector<6x6xf32>
    %273 = arith.subf %266, %270 : vector<6x6xf32>
    %274 = arith.subf %268, %271 : vector<6x6xf32>
    %cst_85 = arith.constant 2.000000e+00 : f32
    %275 = vector.broadcast %cst_85 : f32 to vector<6x6xf32>
    %276 = arith.mulf %275, %271 : vector<6x6xf32>
    %cst_86 = arith.constant 9.99999974E-5 : f32
    %277 = vector.broadcast %cst_86 : f32 to vector<6x6xf32>
    %278 = arith.addf %276, %277 : vector<6x6xf32>
    %cst_87 = arith.constant 2.000000e+00 : f32
    %279 = vector.broadcast %cst_87 : f32 to vector<6x6xf32>
    %280 = arith.mulf %279, %274 : vector<6x6xf32>
    %cst_88 = arith.constant 8.99999984E-4 : f32
    %281 = vector.broadcast %cst_88 : f32 to vector<6x6xf32>
    %282 = arith.addf %280, %281 : vector<6x6xf32>
    %283 = arith.mulf %278, %282 : vector<6x6xf32>
    %284 = arith.addf %269, %270 : vector<6x6xf32>
    %cst_89 = arith.constant 9.99999974E-5 : f32
    %285 = vector.broadcast %cst_89 : f32 to vector<6x6xf32>
    %286 = arith.addf %284, %285 : vector<6x6xf32>
    %287 = arith.addf %272, %273 : vector<6x6xf32>
    %cst_90 = arith.constant 8.99999984E-4 : f32
    %288 = vector.broadcast %cst_90 : f32 to vector<6x6xf32>
    %289 = arith.addf %287, %288 : vector<6x6xf32>
    %290 = arith.mulf %286, %289 : vector<6x6xf32>
    %291 = tpu.reciprocal %290 : vector<6x6xf32> -> vector<6x6xf32>
    %292 = arith.mulf %283, %291 : vector<6x6xf32>
    %293 = vector.shape_cast %292 : vector<6x6xf32> to vector<1x6x6xf32>
    %cst_91 = arith.constant dense<0.000000e+00> : vector<1xf32>
    %294 = vector.multi_reduction <add>, %293, %cst_91 [1, 2] : vector<1x6x6xf32> to vector<1xf32>
    %295 = vector.shape_cast %294 : vector<1xf32> to vector<1x1x1xf32>
    %296 = vector.extract %295[0, 0, 0] : f32 from vector<1x1x1xf32>
    %297 = vector.broadcast %296 : f32 to vector<1x1xf32>
    %c0_i32_92 = arith.constant 0 : i32
    %298 = vector.broadcast %c0_i32_92 : i32 to vector<8x128xi32>
    %299 = arith.cmpi eq, %11, %298 : vector<8x128xi32>
    %c5_i32 = arith.constant 5 : i32
    %300 = vector.broadcast %c5_i32 : i32 to vector<8x128xi32>
    %301 = arith.cmpi eq, %12, %300 : vector<8x128xi32>
    %302 = arith.andi %299, %301 : vector<8x128xi1>
    %cst_93 = arith.constant 0.000000e+00 : f32
    %303 = vector.shape_cast %297 : vector<1x1xf32> to vector<1x1xf32>
    %304 = vector.broadcast %303 : vector<1x1xf32> to vector<8x128xf32>
    %305 = vector.broadcast %cst_93 : f32 to vector<8x128xf32>
    %306 = arith.select %302, %304, %305 : vector<8x128xi1>, vector<8x128xf32>
    %307 = arith.addf %258, %306 : vector<8x128xf32>
    %308 = vector.extract_strided_slice %10 {offsets = [96, 0], sizes = [16, 6], strides = [1, 1]} : vector<640x6xf32> to vector<16x6xf32>
    %cst_94 = arith.constant dense<0.000000e+00> : vector<6x6xf32>
    %309 = tpu.matmul %5, %308, %cst_94 {dimension_numbers = #tpu.dot_dimension_numbers<[1], [0], [0], [1], [0, 0, 1, 1], [], []>, precision = #tpu.contract_precision<fp32>} : vector<6x16xf32>, vector<16x6xf32>, vector<6x6xf32> -> vector<6x6xf32>
    %310 = vector.extract_strided_slice %10 {offsets = [224, 0], sizes = [16, 6], strides = [1, 1]} : vector<640x6xf32> to vector<16x6xf32>
    %cst_95 = arith.constant dense<0.000000e+00> : vector<6x6xf32>
    %311 = tpu.matmul %5, %310, %cst_95 {dimension_numbers = #tpu.dot_dimension_numbers<[1], [0], [0], [1], [0, 0, 1, 1], [], []>, precision = #tpu.contract_precision<fp32>} : vector<6x16xf32>, vector<16x6xf32>, vector<6x6xf32> -> vector<6x6xf32>
    %312 = vector.extract_strided_slice %10 {offsets = [352, 0], sizes = [16, 6], strides = [1, 1]} : vector<640x6xf32> to vector<16x6xf32>
    %cst_96 = arith.constant dense<0.000000e+00> : vector<6x6xf32>
    %313 = tpu.matmul %5, %312, %cst_96 {dimension_numbers = #tpu.dot_dimension_numbers<[1], [0], [0], [1], [0, 0, 1, 1], [], []>, precision = #tpu.contract_precision<fp32>} : vector<6x16xf32>, vector<16x6xf32>, vector<6x6xf32> -> vector<6x6xf32>
    %314 = vector.extract_strided_slice %10 {offsets = [480, 0], sizes = [16, 6], strides = [1, 1]} : vector<640x6xf32> to vector<16x6xf32>
    %cst_97 = arith.constant dense<0.000000e+00> : vector<6x6xf32>
    %315 = tpu.matmul %5, %314, %cst_97 {dimension_numbers = #tpu.dot_dimension_numbers<[1], [0], [0], [1], [0, 0, 1, 1], [], []>, precision = #tpu.contract_precision<fp32>} : vector<6x16xf32>, vector<16x6xf32>, vector<6x6xf32> -> vector<6x6xf32>
    %316 = vector.extract_strided_slice %10 {offsets = [608, 0], sizes = [16, 6], strides = [1, 1]} : vector<640x6xf32> to vector<16x6xf32>
    %cst_98 = arith.constant dense<0.000000e+00> : vector<6x6xf32>
    %317 = tpu.matmul %5, %316, %cst_98 {dimension_numbers = #tpu.dot_dimension_numbers<[1], [0], [0], [1], [0, 0, 1, 1], [], []>, precision = #tpu.contract_precision<fp32>} : vector<6x16xf32>, vector<16x6xf32>, vector<6x6xf32> -> vector<6x6xf32>
    %318 = arith.mulf %309, %309 : vector<6x6xf32>
    %319 = arith.mulf %311, %311 : vector<6x6xf32>
    %320 = arith.mulf %309, %311 : vector<6x6xf32>
    %321 = arith.subf %313, %318 : vector<6x6xf32>
    %322 = arith.subf %315, %319 : vector<6x6xf32>
    %323 = arith.subf %317, %320 : vector<6x6xf32>
    %cst_99 = arith.constant 2.000000e+00 : f32
    %324 = vector.broadcast %cst_99 : f32 to vector<6x6xf32>
    %325 = arith.mulf %324, %320 : vector<6x6xf32>
    %cst_100 = arith.constant 9.99999974E-5 : f32
    %326 = vector.broadcast %cst_100 : f32 to vector<6x6xf32>
    %327 = arith.addf %325, %326 : vector<6x6xf32>
    %cst_101 = arith.constant 2.000000e+00 : f32
    %328 = vector.broadcast %cst_101 : f32 to vector<6x6xf32>
    %329 = arith.mulf %328, %323 : vector<6x6xf32>
    %cst_102 = arith.constant 8.99999984E-4 : f32
    %330 = vector.broadcast %cst_102 : f32 to vector<6x6xf32>
    %331 = arith.addf %329, %330 : vector<6x6xf32>
    %332 = arith.mulf %327, %331 : vector<6x6xf32>
    %333 = arith.addf %318, %319 : vector<6x6xf32>
    %cst_103 = arith.constant 9.99999974E-5 : f32
    %334 = vector.broadcast %cst_103 : f32 to vector<6x6xf32>
    %335 = arith.addf %333, %334 : vector<6x6xf32>
    %336 = arith.addf %321, %322 : vector<6x6xf32>
    %cst_104 = arith.constant 8.99999984E-4 : f32
    %337 = vector.broadcast %cst_104 : f32 to vector<6x6xf32>
    %338 = arith.addf %336, %337 : vector<6x6xf32>
    %339 = arith.mulf %335, %338 : vector<6x6xf32>
    %340 = tpu.reciprocal %339 : vector<6x6xf32> -> vector<6x6xf32>
    %341 = arith.mulf %332, %340 : vector<6x6xf32>
    %342 = vector.shape_cast %341 : vector<6x6xf32> to vector<1x6x6xf32>
    %cst_105 = arith.constant dense<0.000000e+00> : vector<1xf32>
    %343 = vector.multi_reduction <add>, %342, %cst_105 [1, 2] : vector<1x6x6xf32> to vector<1xf32>
    %344 = vector.shape_cast %343 : vector<1xf32> to vector<1x1x1xf32>
    %345 = vector.extract %344[0, 0, 0] : f32 from vector<1x1x1xf32>
    %346 = vector.broadcast %345 : f32 to vector<1x1xf32>
    %c0_i32_106 = arith.constant 0 : i32
    %347 = vector.broadcast %c0_i32_106 : i32 to vector<8x128xi32>
    %348 = arith.cmpi eq, %11, %347 : vector<8x128xi32>
    %c6_i32 = arith.constant 6 : i32
    %349 = vector.broadcast %c6_i32 : i32 to vector<8x128xi32>
    %350 = arith.cmpi eq, %12, %349 : vector<8x128xi32>
    %351 = arith.andi %348, %350 : vector<8x128xi1>
    %cst_107 = arith.constant 0.000000e+00 : f32
    %352 = vector.shape_cast %346 : vector<1x1xf32> to vector<1x1xf32>
    %353 = vector.broadcast %352 : vector<1x1xf32> to vector<8x128xf32>
    %354 = vector.broadcast %cst_107 : f32 to vector<8x128xf32>
    %355 = arith.select %351, %353, %354 : vector<8x128xi1>, vector<8x128xf32>
    %356 = arith.addf %307, %355 : vector<8x128xf32>
    %357 = vector.extract_strided_slice %10 {offsets = [112, 0], sizes = [16, 6], strides = [1, 1]} : vector<640x6xf32> to vector<16x6xf32>
    %cst_108 = arith.constant dense<0.000000e+00> : vector<6x6xf32>
    %358 = tpu.matmul %5, %357, %cst_108 {dimension_numbers = #tpu.dot_dimension_numbers<[1], [0], [0], [1], [0, 0, 1, 1], [], []>, precision = #tpu.contract_precision<fp32>} : vector<6x16xf32>, vector<16x6xf32>, vector<6x6xf32> -> vector<6x6xf32>
    %359 = vector.extract_strided_slice %10 {offsets = [240, 0], sizes = [16, 6], strides = [1, 1]} : vector<640x6xf32> to vector<16x6xf32>
    %cst_109 = arith.constant dense<0.000000e+00> : vector<6x6xf32>
    %360 = tpu.matmul %5, %359, %cst_109 {dimension_numbers = #tpu.dot_dimension_numbers<[1], [0], [0], [1], [0, 0, 1, 1], [], []>, precision = #tpu.contract_precision<fp32>} : vector<6x16xf32>, vector<16x6xf32>, vector<6x6xf32> -> vector<6x6xf32>
    %361 = vector.extract_strided_slice %10 {offsets = [368, 0], sizes = [16, 6], strides = [1, 1]} : vector<640x6xf32> to vector<16x6xf32>
    %cst_110 = arith.constant dense<0.000000e+00> : vector<6x6xf32>
    %362 = tpu.matmul %5, %361, %cst_110 {dimension_numbers = #tpu.dot_dimension_numbers<[1], [0], [0], [1], [0, 0, 1, 1], [], []>, precision = #tpu.contract_precision<fp32>} : vector<6x16xf32>, vector<16x6xf32>, vector<6x6xf32> -> vector<6x6xf32>
    %363 = vector.extract_strided_slice %10 {offsets = [496, 0], sizes = [16, 6], strides = [1, 1]} : vector<640x6xf32> to vector<16x6xf32>
    %cst_111 = arith.constant dense<0.000000e+00> : vector<6x6xf32>
    %364 = tpu.matmul %5, %363, %cst_111 {dimension_numbers = #tpu.dot_dimension_numbers<[1], [0], [0], [1], [0, 0, 1, 1], [], []>, precision = #tpu.contract_precision<fp32>} : vector<6x16xf32>, vector<16x6xf32>, vector<6x6xf32> -> vector<6x6xf32>
    %365 = vector.extract_strided_slice %10 {offsets = [624, 0], sizes = [16, 6], strides = [1, 1]} : vector<640x6xf32> to vector<16x6xf32>
    %cst_112 = arith.constant dense<0.000000e+00> : vector<6x6xf32>
    %366 = tpu.matmul %5, %365, %cst_112 {dimension_numbers = #tpu.dot_dimension_numbers<[1], [0], [0], [1], [0, 0, 1, 1], [], []>, precision = #tpu.contract_precision<fp32>} : vector<6x16xf32>, vector<16x6xf32>, vector<6x6xf32> -> vector<6x6xf32>
    %367 = arith.mulf %358, %358 : vector<6x6xf32>
    %368 = arith.mulf %360, %360 : vector<6x6xf32>
    %369 = arith.mulf %358, %360 : vector<6x6xf32>
    %370 = arith.subf %362, %367 : vector<6x6xf32>
    %371 = arith.subf %364, %368 : vector<6x6xf32>
    %372 = arith.subf %366, %369 : vector<6x6xf32>
    %cst_113 = arith.constant 2.000000e+00 : f32
    %373 = vector.broadcast %cst_113 : f32 to vector<6x6xf32>
    %374 = arith.mulf %373, %369 : vector<6x6xf32>
    %cst_114 = arith.constant 9.99999974E-5 : f32
    %375 = vector.broadcast %cst_114 : f32 to vector<6x6xf32>
    %376 = arith.addf %374, %375 : vector<6x6xf32>
    %cst_115 = arith.constant 2.000000e+00 : f32
    %377 = vector.broadcast %cst_115 : f32 to vector<6x6xf32>
    %378 = arith.mulf %377, %372 : vector<6x6xf32>
    %cst_116 = arith.constant 8.99999984E-4 : f32
    %379 = vector.broadcast %cst_116 : f32 to vector<6x6xf32>
    %380 = arith.addf %378, %379 : vector<6x6xf32>
    %381 = arith.mulf %376, %380 : vector<6x6xf32>
    %382 = arith.addf %367, %368 : vector<6x6xf32>
    %cst_117 = arith.constant 9.99999974E-5 : f32
    %383 = vector.broadcast %cst_117 : f32 to vector<6x6xf32>
    %384 = arith.addf %382, %383 : vector<6x6xf32>
    %385 = arith.addf %370, %371 : vector<6x6xf32>
    %cst_118 = arith.constant 8.99999984E-4 : f32
    %386 = vector.broadcast %cst_118 : f32 to vector<6x6xf32>
    %387 = arith.addf %385, %386 : vector<6x6xf32>
    %388 = arith.mulf %384, %387 : vector<6x6xf32>
    %389 = tpu.reciprocal %388 : vector<6x6xf32> -> vector<6x6xf32>
    %390 = arith.mulf %381, %389 : vector<6x6xf32>
    %391 = vector.shape_cast %390 : vector<6x6xf32> to vector<1x6x6xf32>
    %cst_119 = arith.constant dense<0.000000e+00> : vector<1xf32>
    %392 = vector.multi_reduction <add>, %391, %cst_119 [1, 2] : vector<1x6x6xf32> to vector<1xf32>
    %393 = vector.shape_cast %392 : vector<1xf32> to vector<1x1x1xf32>
    %394 = vector.extract %393[0, 0, 0] : f32 from vector<1x1x1xf32>
    %395 = vector.broadcast %394 : f32 to vector<1x1xf32>
    %c0_i32_120 = arith.constant 0 : i32
    %396 = vector.broadcast %c0_i32_120 : i32 to vector<8x128xi32>
    %397 = arith.cmpi eq, %11, %396 : vector<8x128xi32>
    %c7_i32 = arith.constant 7 : i32
    %398 = vector.broadcast %c7_i32 : i32 to vector<8x128xi32>
    %399 = arith.cmpi eq, %12, %398 : vector<8x128xi32>
    %400 = arith.andi %397, %399 : vector<8x128xi1>
    %cst_121 = arith.constant 0.000000e+00 : f32
    %401 = vector.shape_cast %395 : vector<1x1xf32> to vector<1x1xf32>
    %402 = vector.broadcast %401 : vector<1x1xf32> to vector<8x128xf32>
    %403 = vector.broadcast %cst_121 : f32 to vector<8x128xf32>
    %404 = arith.select %400, %402, %403 : vector<8x128xi1>, vector<8x128xf32>
    %405 = arith.addf %356, %404 : vector<8x128xf32>
    %406 = vector.shape_cast %405 : vector<8x128xf32> to vector<1x8x128xf32>
    %c0_122 = arith.constant 0 : index
    %c0_123 = arith.constant 0 : index
    %c0_124 = arith.constant 0 : index
    %407 = vector.load %arg5[%c0_122, %c0_123, %c0_124] : memref<1x8x128xf32, #tpu.memory_space<vmem>>, vector<1x8x128xf32>
    tpu.vector_store %arg5[%c0_122, %c0_123, %c0_124], %406 {strides = array<i32>} : memref<1x8x128xf32, #tpu.memory_space<vmem>>, vector<1x8x128xf32>,
    return
  }
  func.func @transform_0(%arg0: i32) -> (i32, i32, i32) {
    %c0_i32 = arith.constant 0 : i32
    %c0_i32_0 = arith.constant 0 : i32
    %c0_i32_1 = arith.constant 0 : i32
    return %arg0, %c0_i32, %c0_i32_0 : i32, i32, i32
  }
  func.func @transform_1(%arg0: i32) -> (i32, i32, i32) {
    %c0_i32 = arith.constant 0 : i32
    %c0_i32_0 = arith.constant 0 : i32
    %c0_i32_1 = arith.constant 0 : i32
    return %arg0, %c0_i32, %c0_i32_0 : i32, i32, i32
  }
  func.func @transform_2(%arg0: i32) -> (i32, i32) {
    %c0_i32 = arith.constant 0 : i32
    %c0_i32_0 = arith.constant 0 : i32
    %c0_i32_1 = arith.constant 0 : i32
    return %c0_i32, %c0_i32_0 : i32, i32
  }
  func.func @transform_3(%arg0: i32) -> (i32, i32) {
    %c0_i32 = arith.constant 0 : i32
    %c0_i32_0 = arith.constant 0 : i32
    %c0_i32_1 = arith.constant 0 : i32
    return %c0_i32, %c0_i32_0 : i32, i32
  }
  func.func @transform_4(%arg0: i32) -> (i32, i32, i32) {
    %c0_i32 = arith.constant 0 : i32
    %c0_i32_0 = arith.constant 0 : i32
    %c0_i32_1 = arith.constant 0 : i32
    return %arg0, %c0_i32, %c0_i32_0 : i32, i32, i32
  }
}

</mosaic_0001>

<bundles_post_ra>
// kernel: tpu_custom_call.1
= control target key start
LH: loop header
LB: loop body
LE: loop exit
PB: predicated region body
PF: predicated region fallthrough
CT: control target
= control target key end

     0   :  { %9 = vsyncpa [#allocation3], 0  ;;  %s31066_s0 = inlined_call_operand.hbm [shape: f32[8,16,16], index: 0, kind: input, shape index: {}]   ;;  %s31067_s1 = inlined_call_operand.hbm [shape: f32[8,16,16], index: 1, kind: input, shape index: {}]   ;;  %s31068_s2 = inlined_call_operand.vmem [shape: f32[16,6], index: 2, kind: input, shape index: {}]   ;;  %s31069_s3 = inlined_call_operand.vmem [shape: f32[6,16], index: 3, kind: input, shape index: {}]   ;;  %s31070_s4 = inlined_call_operand.hbm [shape: f32[1,8,128], index: 4, kind: output, shape index: {}]  }
   0x1   :  { %10 = vsyncpa [#allocation6], 0 }
   0x2   :  { %11 = vsyncpa [#allocation4], 0  ;;  %s26633_s15 = smov [#allocation2]  }
   0x3   :  { %s17_s16 = sshll.u32 %s26633_s15, 4  ;;  %s18_s16 = int_to_ptr.vmem [resolvable:$true] %s17_s16 }
   0x4   :  { %s26575_s17 = scalar_lea.vmem %s18_s16, 2048  ;;  %p26580_p1 = scmp.lt.s32.totalorder %s18_s16, %s18_s16 }
   0x5   :  { %p26576_p0 = scmp.ne.s32.totalorder %s18_s16, %s26575_s17  ;;  %p26581_p2 = scmp.lt.s32.totalorder %s26575_s17, %s26575_s17 }
   0x7   :  { %p26582_p3 = por %p26581_p2, %p26580_p1 }
   0x9   :  { %p26583_p4 = pnand %p26582_p3, %p26576_p0 }
   0xb   :  { %26586 = shalt.err (!%p26583_p4)
}
   0xc   :  { %s26634_s18 = smov 128   ;;  %s26635_s19 = smov 8  }
   0xd   :  { %23 = dma.hbm_to_vmem [thread:$0]  %s31066_s0, 2048, %s18_s16, [#allocation3], %s26634_s18, %s26634_s18, %s26635_s19  }
   0xe   :  { %s26636_s22 = smov [#allocation5]  }
   0xf   :  { %s29_s23 = sshll.u32 %s26636_s22, 4  ;;  %s30_s23 = int_to_ptr.vmem [resolvable:$true] %s29_s23 }
  0x10   :  { %s26595_s24 = scalar_lea.vmem %s30_s23, 2048  ;;  %p26600_p6 = scmp.lt.s32.totalorder %s30_s23, %s30_s23 }
  0x11   :  { %p26596_p5 = scmp.ne.s32.totalorder %s30_s23, %s26595_s24  ;;  %p26601_p7 = scmp.lt.s32.totalorder %s26595_s24, %s26595_s24 }
  0x13   :  { %p26602_p8 = por %p26601_p7, %p26600_p6 }
  0x15   :  { %p26603_p9 = pnand %p26602_p8, %p26596_p5 }
  0x17   :  { %26606 = shalt.err (!%p26603_p9)
}
  0x18   :  { %35 = dma.hbm_to_vmem [thread:$0]  %s31067_s1, 2048, %s30_s23, [#allocation6], %s26634_s18, %s26634_s18, %s26635_s19  }
  0x19   :  { %26627 = dma.done.wait [#allocation3], 2048  }
  0x1a   :  { %26628 = vsyncadd [#allocation3], 4294965248 }
  0x1b   :  { %26629 = dma.done.wait [#allocation6], 2048  }
  0x1c   :  { %26630 = vsyncadd [#allocation6], 4294965248  ;;  %vm129_vm0 = vcmask 130048   ;;  %v79_v0 = vld [vmem:[%s31068_s2 + $0x8] sm:$0xff]  ;;  %v78_v1 = vld [vmem:[%s31068_s2] sm:$0xff]  ;;  %vm26638_vm1 = vmmov 0  }
  0x1d   :  { %v26677_v2 = vld [vmem:[#allocation2] sm:$0xff]  ;;  %v26679_v3 = vand.u32 4294901760, %v79_v0  ;;  %v26681_v4 = vand.u32 4294901760, %v78_v1  ;;  %v26685_v6 = vld [vmem:[#allocation2 + $0x8] sm:$0xff]  ;;  %v26687_v7 = vld [vmem:[#allocation2 + $0x10] sm:$0xff]  ;;  %vm6546_vm2 = vcmask 46080  }
  0x1e   :  { %v131_v5 = vsel %vm129_vm0, %v26677_v2, 0  ;;  %v134_v9 = vsel %vm129_vm0, %v26685_v6, 0  ;;  %v137_v10 = vsel %vm129_vm0, %v26687_v7, 0  ;;  %v26695_v11 = vld [vmem:[#allocation2 + $0x18] sm:$0xff]  ;;  %v26697_v12 = vld [vmem:[#allocation2 + $0x20] sm:$0xff]  ;;  %v26699_v13 = vld [vmem:[#allocation2 + $0x28] sm:$0xff] }
  0x1f   :  { %31375 = vst [vmem:[#allocation11_spill] sm:$0xff] %v26679_v3  ;;  %31376 = vst [vmem:[#allocation12_spill] sm:$0xff] %v26681_v4  ;;  %v26689_v8 = vand.u32 4294901760, %v131_v5  ;;  %24088 = vmatprep.subr.mxu0 %v26679_v3  ;;  %v26703_v14 = vsub.f32 %v79_v0, %v26679_v3  ;;  %v26705_v15 = vand.u32 4294901760, %v134_v9  ;;  %v26708_v16 = vsub.f32 %v78_v1, %v26681_v4  ;;  %v26763_v38 = vld [vmem:[#allocation2 + $0x30] sm:$0xff]  ;;  %v26765_v39 = vld [vmem:[#allocation2 + $0x38] sm:$0xff] }
  0x20   :  { %v26710_v17 = vand.u32 4294901760, %v137_v10  ;;  %24089 = vmatpush3.msra.mxu0 %v26679_v3  ;;  %v140_v19 = vsel %vm129_vm0, %v26695_v11, 0  ;;  %v143_v20 = vsel %vm129_vm0, %v26697_v12, 0  ;;  %v146_v21 = vsel %vm129_vm0, %v26699_v13, 0  ;;  %v26773_v44 = vld [vmem:[#allocation2 + $0x40] sm:$0xff]  ;;  %v26778_v49 = vld [vmem:[#allocation2 + $0x48] sm:$0xff] }
  0x21   :  { %31377 = vst [vmem:[#allocation13_spill] sm:$0xff] %v26689_v8  ;;  %31378 = vst [vmem:[#allocation14_spill] sm:$0xff] %v26705_v15  ;;  %v26714_v18 = vsub.f32 %v131_v5, %v26689_v8  ;;  %24216 = vmatprep.mubr.f32.mxu1 %v26689_v8  ;;  %24090 = vmatprep.subr.mxu0 %v26681_v4  ;;  %v26725_v22 = vand.u32 4294901760, %v26703_v14  ;;  %v26728_v23 = vsub.f32 %v134_v9, %v26705_v15  ;;  %v26780_v50 = vld [vmem:[#allocation2 + $0x50] sm:$0xff]  ;;  %v26797_v59 = vld [vmem:[#allocation2 + $0x58] sm:$0xff]  ;;  %s26639_s11 = smov [#allocation7]  }
  0x22   :  { %31379 = vst [vmem:[#allocation15_spill] sm:$0xff] %v26710_v17  ;;  %v26731_v24 = vand.u32 4294901760, %v26708_v16  ;;  %v26734_v25 = vsub.f32 %v137_v10, %v26710_v17  ;;  %24091 = vmatpush3.msra.mxu0 %v26681_v4  ;;  %v26738_v27 = vand.u32 4294901760, %v140_v19  ;;  %v26740_v28 = vand.u32 4294901760, %v143_v20  ;;  %v26807_v0 = vld [vmem:[#allocation2 + $0x60] sm:$0xff]  ;;  %v26809_v1 = vld [vmem:[#allocation2 + $0x68] sm:$0xff] }
  0x23   :  { %31380 = vst [vmem:[#allocation16_spill] sm:$0xff] %v26714_v18  ;;  %31381 = vst [vmem:[#allocation17_spill] sm:$0xff] %v26725_v22  ;;  %v31081_v26 = vand.u32 4294901760, %v26714_v18  ;;  %v26742_v29 = vand.u32 4294901760, %v146_v21  ;;  %v1269_v30 = vsub.f32 %v26703_v14, %v26725_v22  ;;  %v31080_v31 = vand.u32 4294901760, %v26728_v23  ;;  %24336 = vmatprep.subr.mxu0 %v26703_v14  ;;  %s22866_s12 = sshll.u32 %s26639_s11, 4  ;;  %s22867_s12 = int_to_ptr.vmem [resolvable:$true] %s22866_s12 }
  0x24   :  { %31382 = vst [vmem:[#allocation18_spill] sm:$0xff] %v26728_v23  ;;  %31383 = vst [vmem:[#allocation19_spill] sm:$0xff] %v26731_v24  ;;  %v1276_v32 = vsub.f32 %v26708_v16, %v26731_v24  ;;  %v31079_v33 = vand.u32 4294901760, %v26734_v25  ;;  %v26755_v35 = vsub.f32 %v140_v19, %v26738_v27  ;;  %v26758_v36 = vsub.f32 %v143_v20, %v26740_v28  ;;  %s26607_s13 = scalar_lea.vmem %s22867_s12, 128  ;;  %p26612_p11 = scmp.lt.s32.totalorder %s22867_s12, %s22867_s12 }
  0x25   :  { %31384 = vst [vmem:[#allocation20_spill] sm:$0xff] %v26734_v25  ;;  %31385 = vst [vmem:[#allocation21_spill] sm:$0xff] %v26738_v27  ;;  %v440_v34 = vsub.f32 %v26714_v18, %v31081_v26  ;;  %v26761_v37 = vsub.f32 %v146_v21, %v26742_v29  ;;  %v1270_v40 = vand.u32 4294901760, %v1269_v30  ;;  %v450_v41 = vsub.f32 %v26728_v23, %v31080_v31  ;;  %p26608_p10 = scmp.ne.s32.totalorder %s22867_s12, %s26607_s13  ;;  %p26613_p12 = scmp.lt.s32.totalorder %s26607_s13, %s26607_s13 }
  0x26   :  { %31386 = vst [vmem:[#allocation22_spill] sm:$0xff] %v26740_v28  ;;  %31387 = vst [vmem:[#allocation23_spill] sm:$0xff] %v26742_v29  ;;  %v1277_v42 = vand.u32 4294901760, %v1276_v32  ;;  %v460_v43 = vsub.f32 %v26734_v25, %v31079_v33  ;;  %v31078_v46 = vand.u32 4294901760, %v26755_v35  ;;  %v31076_v47 = vand.u32 4294901760, %v26758_v36 }
  0x27   :  { %31388 = vst [vmem:[#allocation24_spill] sm:$0xff] %v26755_v35  ;;  %31389 = vst [vmem:[#allocation25_spill] sm:$0xff] %v26758_v36  ;;  %v441_v45 = vand.u32 4294901760, %v440_v34  ;;  %v31073_v48 = vand.u32 4294901760, %v26761_v37  ;;  %24212 = vmatprep.subr.mxu1 %v1270_v40  ;;  %v451_v51 = vand.u32 4294901760, %v450_v41  ;;  %v149_v53 = vsel %vm129_vm0, %v26763_v38, 0  ;;  %p26614_p13 = por %p26613_p12, %p26612_p11 }
  0x28   :  { %31390 = vst [vmem:[#allocation26_spill] sm:$0xff] %v26761_v37  ;;  %v461_v52 = vand.u32 4294901760, %v460_v43  ;;  %v152_v54 = vsel %vm129_vm0, %v26765_v39, 0  ;;  %24213 = vmatpush3.msra.mxu1 %v1270_v40  ;;  %v470_v55 = vsub.f32 %v26755_v35, %v31078_v46  ;;  %v480_v56 = vsub.f32 %v26758_v36, %v31076_v47  ;;  %v26895_v47 = vld [vmem:[#allocation5 + $0x8] sm:$0xff] }
  0x29   :  { %24092 = vmatprep.mubr.f32.mxu0 %v441_v45  ;;  %v490_v57 = vsub.f32 %v26761_v37, %v31073_v48  ;;  %v26795_v58 = vand.u32 4294901760, %v149_v53  ;;  %24214 = vmatprep.subr.mxu1 %v1277_v42  ;;  %v26799_v60 = vand.u32 4294901760, %v152_v54  ;;  %v155_v61 = vsel %vm129_vm0, %v26773_v44, 0  ;;  %v26993_v37 = vld [vmem:[#allocation5 + $0x40] sm:$0xff]  ;;  %p26615_p0 = pnand %p26614_p13, %p26608_p10 }
  0x2a   :  { %24093 = vmatmul.mubr.f32.vlgmr.msra.gmra.mxu0 %v451_v51  ;;  %v158_v62 = vsel %vm129_vm0, %v26778_v49, 0  ;;  %v161_v63 = vsel %vm129_vm0, %v26780_v50, 0  ;;  %24215 = vmatpush3.msra.mxu1 %v1277_v42  ;;  %v471_v5 = vand.u32 4294901760, %v470_v55  ;;  %v481_v9 = vand.u32 4294901760, %v480_v56 }
  0x2b   :  { %31391 = vst [vmem:[#allocation27_spill] sm:$0xff] %v26795_v58  ;;  %31392 = vst [vmem:[#allocation28_spill] sm:$0xff] %v26799_v60  ;;  %24095 = vmatprep.mubr.f32.mxu0 %v461_v52  ;;  %v491_v10 = vand.u32 4294901760, %v490_v57  ;;  %v26812_v19 = vsub.f32 %v149_v53, %v26795_v58  ;;  %24217 = vmatmul.mubr.f32.vlgmr.msra.gmra.mxu1 %v26705_v15  ;;  %v26816_v20 = vsub.f32 %v152_v54, %v26799_v60 }
  0x2c   :  { %v26818_v21 = vand.u32 4294901760, %v155_v61  ;;  %v26820_v30 = vand.u32 4294901760, %v158_v62  ;;  %v26822_v32 = vand.u32 4294901760, %v161_v63  ;;  %24337 = vmatpush3.msra.mxu0 %v26703_v14  ;;  %24219 = vmatprep.mubr.f32.mxu1 %v26710_v17  ;;  %v164_v40 = vsel %vm129_vm0, %v26797_v59, 0 }
  0x2d   :  { %31393 = vst [vmem:[#allocation29_spill] sm:$0xff] %v26812_v19  ;;  %31394 = vst [vmem:[#allocation30_spill] sm:$0xff] %v26816_v20  ;;  %v31071_v34 = vand.u32 4294901760, %v26812_v19  ;;  %v167_v41 = vsel %vm129_vm0, %v26807_v0, 0  ;;  %v170_v42 = vsel %vm129_vm0, %v26809_v1, 0  ;;  %24460 = vmatprep.subr.mxu1 %v26679_v3  ;;  %v31072_v43 = vand.u32 4294901760, %v26816_v20  ;;  %24338 = vmatprep.subr.mxu0 %v26708_v16 }
  0x2e   :  { %31395 = vst [vmem:[#allocation31_spill] sm:$0xff] %v26818_v21  ;;  %31396 = vst [vmem:[#allocation32_spill] sm:$0xff] %v26820_v30  ;;  %24096 = vmatmul.mubr.f32.gmra.mxu0 %v471_v5  ;;  %v26836_v14 = vsub.f32 %v155_v61, %v26818_v21  ;;  %v26839_v45 = vsub.f32 %v158_v62, %v26820_v30  ;;  %v26842_v51 = vsub.f32 %v161_v63, %v26822_v32  ;;  %v26862_v63 = vld [vmem:[#allocation2 + $0x70] sm:$0xff] }
  0x2f   :  { %31397 = vst [vmem:[#allocation33_spill] sm:$0xff] %v26822_v32  ;;  %24461 = vmatpush3.msra.mxu1 %v26679_v3  ;;  %24098 = vmatprep.mubr.f32.mxu0 %v481_v9  ;;  %v500_v52 = vsub.f32 %v26812_v19, %v31071_v34  ;;  %v26848_v53 = vand.u32 4294901760, %v164_v40  ;;  %v26850_v54 = vand.u32 4294901760, %v167_v41  ;;  %v26852_v55 = vand.u32 4294901760, %v170_v42 }
  0x30   :  { %31398 = vst [vmem:[#allocation34_spill] sm:$0xff] %v26836_v14  ;;  %31399 = vst [vmem:[#allocation35_spill] sm:$0xff] %v26839_v45  ;;  %24220 = vmatmul.mubr.f32.gmra.mxu1 %v26738_v27  ;;  %v510_v56 = vsub.f32 %v26816_v20, %v31072_v43  ;;  %v31074_v57 = vand.u32 4294901760, %v26836_v14  ;;  %v31075_v61 = vand.u32 4294901760, %v26839_v45  ;;  %v31077_v62 = vand.u32 4294901760, %v26842_v51  ;;  %24339 = vmatpush3.msra.mxu0 %v26708_v16  ;;  %v26969_v20 = vld [vmem:[#allocation5 + $0x30] sm:$0xff] }
  0x31   :  { %31400 = vst [vmem:[#allocation36_spill] sm:$0xff] %v26842_v51  ;;  %31401 = vst [vmem:[#allocation37_spill] sm:$0xff] %v26848_v53  ;;  %24222 = vmatprep.mubr.f32.mxu1 %v26740_v28  ;;  %v501_v5 = vand.u32 4294901760, %v500_v52  ;;  %v26867_v9 = vsub.f32 %v164_v40, %v26848_v53  ;;  %v26870_v34 = vsub.f32 %v167_v41, %v26850_v54  ;;  %24462 = vmatprep.subr.mxu1 %v26681_v4  ;;  %v26885_v41 = vld [vmem:[#allocation2 + $0x78] sm:$0xff] }
  0x32   :  { %31402 = vst [vmem:[#allocation38_spill] sm:$0xff] %v26850_v54  ;;  %31403 = vst [vmem:[#allocation39_spill] sm:$0xff] %v26852_v55  ;;  %v26873_v43 = vsub.f32 %v170_v42, %v26852_v55  ;;  %24099 = vmatmul.mubr.f32.gmra.mxu0 %v491_v10  ;;  %v511_v48 = vand.u32 4294901760, %v510_v56  ;;  %v520_v16 = vsub.f32 %v26836_v14, %v31074_v57  ;;  %24463 = vmatpush3.msra.mxu1 %v26681_v4  ;;  %v26888_v42 = vld [vmem:[#allocation5] sm:$0xff] }
  0x33   :  { %31404 = vst [vmem:[#allocation40_spill] sm:$0xff] %v26867_v9  ;;  %31405 = vst [vmem:[#allocation41_spill] sm:$0xff] %v26870_v34  ;;  %v530_v52 = vsub.f32 %v26839_v45, %v31075_v61  ;;  %v540_v40 = vsub.f32 %v26842_v51, %v31077_v62  ;;  %24101 = vmatprep.mubr.f32.mxu0 %v501_v5  ;;  %v31084_v10 = vand.u32 4294901760, %v26867_v9  ;;  %v31087_v56 = vand.u32 4294901760, %v26870_v34 }
  0x34   :  { %31406 = vst [vmem:[#allocation42_spill] sm:$0xff] %v26873_v43  ;;  %v173_v61 = vsel %vm129_vm0, %v26862_v63, 0  ;;  %24584 = vmatprep.subr.mxu0 %v26725_v22  ;;  %24223 = vmatmul.mubr.f32.gmra.mxu1 %v26742_v29  ;;  %v521_v62 = vand.u32 4294901760, %v520_v16  ;;  %v176_v57 = vsel %vm129_vm0, %v26885_v41, 0  ;;  %v26911_v16 = vld [vmem:[#allocation5 + $0x10] sm:$0xff] }
  0x35   :  { %v531_v46 = vand.u32 4294901760, %v530_v52  ;;  %v26899_v33 = vand.u32 4294901760, %v173_v61  ;;  %24708 = vmatprep.subr.mxu1 %v26679_v3  ;;  %24225 = vmatprep.mubr.f32.mxu1 %v26795_v58  ;;  %v541_v5 = vand.u32 4294901760, %v540_v40  ;;  %v550_v31 = vsub.f32 %v26867_v9, %v31084_v10  ;;  %v26922_v58 = vld [vmem:[#allocation5 + $0x18] sm:$0xff] }
  0x36   :  { %v560_v26 = vsub.f32 %v26870_v34, %v31087_v56  ;;  %24102 = vmatmul.mubr.f32.gmra.mxu0 %v511_v48  ;;  %v26916_v29 = vand.u32 4294901760, %v176_v57  ;;  %v179_v40 = vsel %vm129_vm0, %v26888_v42, 0  ;;  %v182_v10 = vsel %vm129_vm0, %v26895_v47, 0  ;;  %v26924_v56 = vld [vmem:[#allocation5 + $0x20] sm:$0xff] }
  0x37   :  { %31407 = vst [vmem:[#allocation43_spill] sm:$0xff] %v26899_v33  ;;  %v26914_v52 = vsub.f32 %v173_v61, %v26899_v33  ;;  %24104 = vmatprep.mubr.f32.mxu0 %v521_v62  ;;  %v551_v28 = vand.u32 4294901760, %v550_v31  ;;  %v31410_v48 = vand.u32 4294901760, %v26873_v43  ;;  %v26929_v17 = vand.u32 4294901760, %v179_v40  ;;  %v26940_v31 = vld [vmem:[#allocation5 + $0x28] sm:$0xff] }
  0x38   :  { %31409 = vst [vmem:[#allocation45_spill] sm:$0xff] %v26916_v29  ;;  %v561_v27 = vand.u32 4294901760, %v560_v26  ;;  %24226 = vmatmul.mubr.f32.gmra.mxu1 %v26799_v60  ;;  %v26934_v8 = vsub.f32 %v176_v57, %v26916_v29  ;;  %v26936_v34 = vand.u32 4294901760, %v182_v10  ;;  %v185_v62 = vsel %vm129_vm0, %v26911_v16, 0 }
  0x39   :  { %31408 = vst [vmem:[#allocation44_spill] sm:$0xff] %v26914_v52  ;;  %v570_v61 = vsub.f32 %v26873_v43, %v31410_v48  ;;  %31411 = vst [vmem:[#allocation46_spill] sm:$0xff] %v26929_v17  ;;  %24228 = vmatprep.mubr.f32.mxu1 %v26818_v21  ;;  %v26944_v26 = vsub.f32 %v179_v40, %v26929_v17  ;;  %v26946_v48 = vand.u32 4294901760, %v185_v62  ;;  %v188_v15 = vsel %vm129_vm0, %v26922_v58, 0 }
  0x3a   :  { %31412 = vst [vmem:[#allocation47_spill] sm:$0xff] %v26934_v8  ;;  %31413 = vst [vmem:[#allocation48_spill] sm:$0xff] %v26936_v34  ;;  %v191_v57 = vsel %vm129_vm0, %v26924_v56, 0  ;;  %24105 = vmatmul.mubr.f32.gmra.mxu0 %v531_v46  ;;  %v31416_v60 = vand.u32 4294901760, %v26914_v52  ;;  %v31124_v9 = vand.u32 4294901760, %v26934_v8  ;;  %v26957_v21 = vsub.f32 %v182_v10, %v26936_v34 }
  0x3b   :  { %31414 = vst [vmem:[#allocation49_spill] sm:$0xff] %v26944_v26  ;;  %31415 = vst [vmem:[#allocation50_spill] sm:$0xff] %v26946_v48  ;;  %v26959_v40 = vand.u32 4294901760, %v188_v15  ;;  %24107 = vmatprep.mubr.f32.mxu0 %v541_v5  ;;  %v26963_v45 = vsub.f32 %v185_v62, %v26946_v48  ;;  %v26965_v14 = vand.u32 4294901760, %v191_v57  ;;  %v194_v46 = vsel %vm129_vm0, %v26940_v31, 0  ;;  %v26981_v62 = vld [vmem:[#allocation5 + $0x38] sm:$0xff] }
  0x3c   :  { %v580_v43 = vsub.f32 %v26914_v52, %v31416_v60  ;;  %31417 = vst [vmem:[#allocation51_spill] sm:$0xff] %v26957_v21  ;;  %24229 = vmatmul.mubr.f32.gmra.mxu1 %v26820_v30  ;;  %v590_v60 = vsub.f32 %v26934_v8, %v31124_v9  ;;  %v26979_v5 = vand.u32 4294901760, %v194_v46  ;;  %v571_v51 = vand.u32 4294901760, %v570_v61  ;;  %v27000_v61 = vld [vmem:[#allocation5 + $0x48] sm:$0xff]  ;;  %v27009_v30 = vld [vmem:[#allocation5 + $0x50] sm:$0xff] }
  0x3d   :  { %31418 = vst [vmem:[#allocation52_spill] sm:$0xff] %v26959_v40  ;;  %31419 = vst [vmem:[#allocation53_spill] sm:$0xff] %v26963_v45  ;;  %24231 = vmatprep.mubr.f32.mxu1 %v26822_v32  ;;  %v26977_v10 = vsub.f32 %v188_v15, %v26959_v40  ;;  %v31423_v52 = vand.u32 4294901760, %v26944_v26  ;;  %v197_v32 = vsel %vm129_vm0, %v26969_v20, 0  ;;  %v26991_v8 = vsub.f32 %v191_v57, %v26965_v14 }
  0x3e   :  { %31420 = vst [vmem:[#allocation54_spill] sm:$0xff] %v26965_v14  ;;  %31422 = vst [vmem:[#allocation56_spill] sm:$0xff] %v26979_v5  ;;  %24108 = vmatmul.mubr.f32.gmra.mxu0 %v551_v28  ;;  %v581_v9 = vand.u32 4294901760, %v580_v43  ;;  %v26996_v28 = vand.u32 4294901760, %v197_v32  ;;  %v27005_v15 = vsub.f32 %v194_v46, %v26979_v5  ;;  %v27019_v43 = vld [vmem:[#allocation5 + $0x58] sm:$0xff]  ;;  %v31430_v46 = vand.u32 4294901760, %v26963_v45 }
  0x3f   :  { %31421 = vst [vmem:[#allocation55_spill] sm:$0xff] %v26977_v10  ;;  %v600_v19 = vsub.f32 %v26944_v26, %v31423_v52  ;;  %24110 = vmatprep.mubr.f32.mxu0 %v561_v27  ;;  %31424 = vst [vmem:[#allocation57_spill] sm:$0xff] %v26991_v8  ;;  %v200_v52 = vsel %vm129_vm0, %v26981_v62, 0  ;;  %v591_v27 = vand.u32 4294901760, %v590_v60  ;;  %v31428_v26 = vand.u32 4294901760, %v26957_v21 }
  0x40   :  { %24232 = vmatmul.mubr.f32.gmra.mxu1 %v26848_v53  ;;  %31425 = vst [vmem:[#allocation58_spill] sm:$0xff] %v26996_v28  ;;  %31426 = vst [vmem:[#allocation59_spill] sm:$0xff] %v27005_v15  ;;  %v27007_v57 = vand.u32 4294901760, %v200_v52  ;;  %v27015_v4 = vsub.f32 %v197_v32, %v26996_v28  ;;  %v203_v60 = vsel %vm129_vm0, %v26993_v37, 0  ;;  %v209_v32 = vsel %vm129_vm0, %v27009_v30, 0 }
  0x41   :  { %24234 = vmatprep.mubr.f32.mxu1 %v26850_v54  ;;  %v601_v53 = vand.u32 4294901760, %v600_v19  ;;  %v610_v36 = vsub.f32 %v26957_v21, %v31428_v26  ;;  %v620_v54 = vsub.f32 %v26963_v45, %v31430_v46  ;;  %v27025_v19 = vand.u32 4294901760, %v203_v60  ;;  %v27029_v21 = vld [vmem:[#allocation5 + $0x60] sm:$0xff] }
  0x42   :  { %31427 = vst [vmem:[#allocation60_spill] sm:$0xff] %v27007_v57  ;;  %24111 = vmatmul.mubr.f32.gmra.mxu0 %v571_v51  ;;  %31429 = vst [vmem:[#allocation61_spill] sm:$0xff] %v27015_v4  ;;  %v206_v26 = vsel %vm129_vm0, %v27000_v61, 0  ;;  %v27040_v45 = vsub.f32 %v200_v52, %v27007_v57  ;;  %v212_v35 = vsel %vm129_vm0, %v27019_v43, 0 }
  0x43   :  { %24113 = vmatprep.mubr.f32.mxu0 %v581_v9  ;;  %31431 = vst [vmem:[#allocation62_spill] sm:$0xff] %v27025_v19  ;;  %v31432_v9 = vand.u32 4294901760, %v26977_v10  ;;  %v611_v3 = vand.u32 4294901760, %v610_v36  ;;  %v27045_v24 = vand.u32 4294901760, %v206_v26  ;;  %v621_v22 = vand.u32 4294901760, %v620_v54  ;;  %v27059_v36 = vld [vmem:[#allocation5 + $0x70] sm:$0xff] }
  0x44   :  { %24235 = vmatmul.mubr.f32.gmra.mxu1 %v26852_v55  ;;  %v27053_v52 = vsub.f32 %v203_v60, %v27025_v19  ;;  %31436 = vst [vmem:[#allocation65_spill] sm:$0xff] %v27059_v36  ;;  %v27062_v55 = vand.u32 4294901760, %v212_v35  ;;  %v31439_v54 = vand.u32 4294901760, %v27005_v15 }
  0x45   :  { %24237 = vmatprep.mubr.f32.mxu1 %v26899_v33  ;;  %v630_v46 = vsub.f32 %v26977_v10, %v31432_v9  ;;  %31433 = vst [vmem:[#allocation63_spill] sm:$0xff] %v27045_v24  ;;  %v215_v33 = vsel %vm129_vm0, %v27029_v21, 0  ;;  %v31434_v9 = vand.u32 4294901760, %v26991_v8  ;;  %v27055_v10 = vand.u32 4294901760, %v209_v32 }
  0x46   :  { %24114 = vmatmul.mubr.f32.gmra.mxu0 %v591_v27  ;;  %v27057_v27 = vld [vmem:[#allocation5 + $0x68] sm:$0xff]  ;;  %31437 = vst [vmem:[#allocation66_spill] sm:$0xff] %v27062_v55  ;;  %v27064_v25 = vand.u32 4294901760, %v215_v33  ;;  %v650_v60 = vsub.f32 %v27005_v15, %v31439_v54 }
  0x47   :  { %24116 = vmatprep.mubr.f32.mxu0 %v601_v53  ;;  %v640_v51 = vsub.f32 %v26991_v8, %v31434_v9  ;;  %31435 = vst [vmem:[#allocation64_spill] sm:$0xff] %v27055_v10  ;;  %v631_v53 = vand.u32 4294901760, %v630_v46  ;;  %v31440_v8 = vand.u32 4294901760, %v27015_v4  ;;  %v218_v18 = vsel %vm129_vm0, %v27057_v27, 0 }
  0x48   :  { %24238 = vmatmul.mubr.f32.gmra.mxu1 %v26916_v29  ;;  %31438 = vst [vmem:[#allocation67_spill] sm:$0xff] %v27064_v25  ;;  %v27075_v29 = vsub.f32 %v206_v26, %v27045_v24  ;;  %v221_v46 = vsel %vm129_vm0, %v27059_v36, 0  ;;  %v27083_v9 = vsub.f32 %v209_v32, %v27055_v10  ;;  %v27092_v26 = vsub.f32 %v215_v33, %v27064_v25 }
  0x49   :  { %24240 = vmatprep.mubr.f32.mxu1 %v26929_v17  ;;  %v660_v23 = vsub.f32 %v27015_v4, %v31440_v8  ;;  %v641_v17 = vand.u32 4294901760, %v640_v51  ;;  %v27089_v8 = vsub.f32 %v212_v35, %v27062_v55  ;;  %v27094_v4 = vld [vmem:[#allocation5 + $0x78] sm:$0xff]  ;;  %v27099_v51 = vand.u32 4294901760, %v221_v46 }
  0x4a   :  { %24117 = vmatmul.mubr.f32.gmra.mxu0 %v611_v3  ;;  %v81_v3 = vmul.f32 %v26677_v2, %v26677_v2  ;;  %v651_v32 = vand.u32 4294901760, %v650_v60  ;;  %v31444_v2 = vand.u32 4294901760, %v27040_v45  ;;  %v31181_v35 = vand.u32 4294901760, %v27075_v29 }
  0x4b   :  { %24119 = vmatprep.mubr.f32.mxu0 %v621_v22  ;;  %31441 = vst [vmem:[#allocation68_spill] sm:$0xff] %v27089_v8  ;;  %v27097_v22 = vand.u32 4294901760, %v218_v18  ;;  %31443 = vst [vmem:[#allocation70_spill] sm:$0xff] %v27099_v51  ;;  %v661_v54 = vand.u32 4294901760, %v660_v23  ;;  %v31445_v33 = vand.u32 4294901760, %v27053_v52  ;;  %v224_v36 = vsel %vm129_vm0, %v27094_v4, 0 }
  0x4c   :  { %24241 = vmatmul.mubr.f32.gmra.mxu1 %v26936_v34  ;;  %v670_v34 = vsub.f32 %v27040_v45, %v31444_v2  ;;  %v83_v2 = vmul.f32 %v26687_v7, %v26687_v7  ;;  %v27131_v60 = vand.u32 4294901760, %v224_v36 }
  0x4d   :  { %24243 = vmatprep.mubr.f32.mxu1 %v26946_v48  ;;  %31442 = vst [vmem:[#allocation69_spill] sm:$0xff] %v27097_v22  ;;  %v680_v15 = vsub.f32 %v27053_v52, %v31445_v33  ;;  %v27121_v33 = vsub.f32 %v218_v18, %v27097_v22  ;;  %v27124_v48 = vsub.f32 %v221_v46, %v27099_v51 }
  0x4e   :  { %24120 = vmatmul.mubr.f32.gmra.mxu0 %v631_v53  ;;  %v82_v53 = vmul.f32 %v26685_v6, %v26685_v6  ;;  %v84_v6 = vmul.f32 %v26695_v11, %v26695_v11  ;;  %v671_v23 = vand.u32 4294901760, %v670_v34  ;;  %31447 = vst [vmem:[#allocation72_spill] sm:$0xff] %v27131_v60  ;;  %v31450_v11 = vand.u32 4294901760, %v27089_v8 }
  0x4f   :  { %24122 = vmatprep.mubr.f32.mxu0 %v641_v17  ;;  %v227_v17 = vsel %vm129_vm0, %v81_v3, 0  ;;  %31446 = vst [vmem:[#allocation71_spill] sm:$0xff] %v27124_v48  ;;  %v690_v3 = vsub.f32 %v27075_v29, %v31181_v35  ;;  %v681_v7 = vand.u32 4294901760, %v680_v15  ;;  %v233_v15 = vsel %vm129_vm0, %v83_v2, 0 }
  0x50   :  { %24244 = vmatmul.mubr.f32.gmra.mxu1 %v26959_v40  ;;  %v27136_v40 = vand.u32 4294901760, %v227_v17  ;;  %v230_v46 = vsel %vm129_vm0, %v82_v53, 0  ;;  %v710_v34 = vsub.f32 %v27089_v8, %v31450_v11  ;;  %v86_v11 = vmul.f32 %v26699_v13, %v26699_v13 }
  0x51   :  { %24246 = vmatprep.mubr.f32.mxu1 %v26965_v14  ;;  %v31448_v14 = vand.u32 4294901760, %v27083_v9  ;;  %v691_v8 = vand.u32 4294901760, %v690_v3  ;;  %v27158_v2 = vand.u32 4294901760, %v230_v46  ;;  %v27165_v53 = vand.u32 4294901760, %v233_v15 }
  0x52   :  { %24123 = vmatmul.mubr.f32.gmra.mxu0 %v651_v32  ;;  %31449 = vst [vmem:[#allocation73_spill] sm:$0xff] %v27136_v40  ;;  %v31451_v32 = vand.u32 4294901760, %v27092_v26  ;;  %v711_v13 = vand.u32 4294901760, %v710_v34  ;;  %v31455_v3 = vand.u32 4294901760, %v27121_v33 }
  0x53   :  { %24125 = vmatprep.mubr.f32.mxu0 %v661_v54  ;;  %v700_v18 = vsub.f32 %v27083_v9, %v31448_v14  ;;  %v85_v54 = vmul.f32 %v26697_v12, %v26697_v12  ;;  %31452 = vst [vmem:[#allocation74_spill] sm:$0xff] %v27158_v2  ;;  %v87_v12 = vmul.f32 %v26763_v38, %v26763_v38  ;;  %31453 = vst [vmem:[#allocation75_spill] sm:$0xff] %v27165_v53 }
  0x54   :  { %24247 = vmatmul.mubr.f32.gmra.mxu1 %v26979_v5  ;;  %v720_v35 = vsub.f32 %v27092_v26, %v31451_v32  ;;  %v236_v5 = vsel %vm129_vm0, %v84_v6, 0  ;;  %v27156_v32 = vsub.f32 %v224_v36, %v27131_v60  ;;  %v27163_v14 = vsub.f32 %v227_v17, %v27136_v40 }
  0x55   :  { %24249 = vmatprep.mubr.f32.mxu1 %v26996_v28  ;;  %v701_v28 = vand.u32 4294901760, %v700_v18  ;;  %v239_v36 = vsel %vm129_vm0, %v85_v54, 0  ;;  %v730_v38 = vsub.f32 %v27121_v33, %v31455_v3  ;;  %v242_v18 = vsel %vm129_vm0, %v86_v11, 0 }
  0x56   :  { %24126 = vmatmul.mubr.f32.gmra.mxu0 %v671_v23  ;;  %v27168_v23 = vand.u32 4294901760, %v236_v5  ;;  %v721_v6 = vand.u32 4294901760, %v720_v35  ;;  %v31198_v34 = vand.u32 4294901760, %v27156_v32  ;;  %v245_v54 = vsel %vm129_vm0, %v87_v12, 0 }
  0x57   :  { %24128 = vmatprep.mubr.f32.mxu0 %v681_v7  ;;  %v31456_v7 = vand.u32 4294901760, %v27124_v48  ;;  %v88_v35 = vmul.f32 %v26765_v39, %v26765_v39  ;;  %v27198_v11 = vand.u32 4294901760, %v242_v18  ;;  %v731_v39 = vand.u32 4294901760, %v730_v38 }
  0x58   :  { %24250 = vmatmul.mubr.f32.gmra.mxu1 %v27007_v57  ;;  %31454 = vst [vmem:[#allocation76_spill] sm:$0xff] %v27168_v23  ;;  %v27181_v57 = vsub.f32 %v230_v46, %v27158_v2  ;;  %v27196_v46 = vsub.f32 %v236_v5, %v27168_v23 }
  0x59   :  { %24252 = vmatprep.mubr.f32.mxu1 %v27025_v19  ;;  %v740_v17 = vsub.f32 %v27124_v48, %v31456_v7  ;;  %v27188_v19 = vsub.f32 %v233_v15, %v27165_v53  ;;  %v27190_v7 = vand.u32 4294901760, %v239_v36  ;;  %31458 = vst [vmem:[#allocation78_spill] sm:$0xff] %v27198_v11  ;;  %v90_v15 = vmul.f32 %v26778_v49, %v26778_v49 }
  0x5a   :  { %24129 = vmatmul.mubr.f32.gmra.mxu0 %v691_v8  ;;  %v89_v8 = vmul.f32 %v26773_v44, %v26773_v44  ;;  %v750_v44 = vsub.f32 %v27156_v32, %v31198_v34  ;;  %v31202_v3 = vand.u32 4294901760, %v27181_v57  ;;  %v248_v5 = vsel %vm129_vm0, %v88_v35, 0 }
  0x5b   :  { %24131 = vmatprep.mubr.f32.mxu0 %v701_v28  ;;  %31457 = vst [vmem:[#allocation77_spill] sm:$0xff] %v27190_v7  ;;  %v27201_v28 = vand.u32 4294901760, %v245_v54  ;;  %v741_v12 = vand.u32 4294901760, %v740_v17  ;;  %v27215_v48 = vsub.f32 %v239_v36, %v27190_v7  ;;  %v27221_v17 = vsub.f32 %v242_v18, %v27198_v11 }
  0x5c   :  { %24253 = vmatmul.mubr.f32.gmra.mxu1 %v27045_v24  ;;  %v31460_v24 = vand.u32 4294901760, %v27163_v14  ;;  %v251_v49 = vsel %vm129_vm0, %v89_v8, 0  ;;  %v27229_v35 = vand.u32 4294901760, %v248_v5  ;;  %v254_v36 = vsel %vm129_vm0, %v90_v15, 0 }
  0x5d   :  { %24255 = vmatprep.mubr.f32.mxu1 %v27055_v10  ;;  %31459 = vst [vmem:[#allocation79_spill] sm:$0xff] %v27201_v28  ;;  %v31201_v10 = vand.u32 4294901760, %v27188_v19  ;;  %v92_v8 = vmul.f32 %v26797_v59, %v26797_v59  ;;  %v751_v34 = vand.u32 4294901760, %v750_v44  ;;  %v770_v18 = vsub.f32 %v27181_v57, %v31202_v3 }
  0x5e   :  { %24132 = vmatmul.mubr.f32.gmra.mxu0 %v711_v13  ;;  %v760_v38 = vsub.f32 %v27163_v14, %v31460_v24  ;;  %v27227_v24 = vsub.f32 %v245_v54, %v27201_v28  ;;  %31462 = vst [vmem:[#allocation81_spill] sm:$0xff] %v27229_v35  ;;  %v27237_v13 = vand.u32 4294901760, %v251_v49  ;;  %v31464_v59 = vand.u32 4294901760, %v27196_v46 }
  0x5f   :  { %24134 = vmatprep.mubr.f32.mxu0 %v721_v6  ;;  %v91_v6 = vmul.f32 %v26780_v50, %v26780_v50  ;;  %v780_v54 = vsub.f32 %v27188_v19, %v31201_v10  ;;  %v27247_v15 = vand.u32 4294901760, %v254_v36  ;;  %v27256_v3 = vsub.f32 %v248_v5, %v27229_v35 }
  0x60   :  { %24256 = vmatmul.mubr.f32.gmra.mxu1 %v27062_v55  ;;  %31461 = vst [vmem:[#allocation80_spill] sm:$0xff] %v27227_v24  ;;  %31463 = vst [vmem:[#allocation82_spill] sm:$0xff] %v27237_v13  ;;  %v761_v50 = vand.u32 4294901760, %v760_v38  ;;  %v95_v5 = vmul.f32 %v26862_v63, %v26862_v63 }
  0x61   :  { %24258 = vmatprep.mubr.f32.mxu1 %v27064_v25  ;;  %31465 = vst [vmem:[#allocation83_spill] sm:$0xff] %v27247_v15  ;;  %v257_v44 = vsel %vm129_vm0, %v91_v6, 0  ;;  %31466 = vst [vmem:[#allocation84_spill] sm:$0xff] %v27256_v3  ;;  %v260_v25 = vsel %vm129_vm0, %v92_v8, 0  ;;  %v94_v6 = vmul.f32 %v26809_v1, %v26809_v1 }
  0x62   :  { %24135 = vmatmul.mubr.f32.gmra.mxu0 %v731_v39  ;;  %v790_v39 = vsub.f32 %v27196_v46, %v31464_v59  ;;  %v771_v59 = vand.u32 4294901760, %v770_v18  ;;  %v27267_v10 = vand.u32 4294901760, %v257_v44  ;;  %v31472_v18 = vand.u32 4294901760, %v27221_v17 }
  0x63   :  { %24137 = vmatprep.mubr.f32.mxu0 %v741_v12  ;;  %v93_v12 = vmul.f32 %v26807_v0, %v26807_v0  ;;  %v781_v0 = vand.u32 4294901760, %v780_v54  ;;  %v31215_v54 = vand.u32 4294901760, %v27256_v3 }
  0x64   :  { %24259 = vmatmul.mubr.f32.gmra.mxu1 %v27097_v22  ;;  %v27260_v22 = vsub.f32 %v251_v49, %v27237_v13  ;;  %31469 = vst [vmem:[#allocation86_spill] sm:$0xff] %v27267_v10  ;;  %v27275_v49 = vand.u32 4294901760, %v260_v25  ;;  %v791_v8 = vand.u32 4294901760, %v790_v39  ;;  %v97_v39 = vmul.f32 %v26888_v42, %v26888_v42 }
  0x65   :  { %24261 = vmatprep.mubr.f32.mxu1 %v27099_v51  ;;  %v31468_v51 = vand.u32 4294901760, %v27215_v48  ;;  %v263_v1 = vsel %vm129_vm0, %v93_v12, 0  ;;  %v96_v12 = vmul.f32 %v26885_v41, %v26885_v41 }
  0x66   :  { %24138 = vmatmul.mubr.f32.gmra.mxu0 %v751_v34  ;;  %31467 = vst [vmem:[#allocation85_spill] sm:$0xff] %v27260_v22  ;;  %v27273_v34 = vsub.f32 %v254_v36, %v27247_v15  ;;  %31471 = vst [vmem:[#allocation88_spill] sm:$0xff] %v27275_v49  ;;  %v27295_v55 = vand.u32 4294901760, %v263_v1 }
  0x67   :  { %24140 = vmatprep.mubr.f32.mxu0 %v761_v50  ;;  %v800_v38 = vsub.f32 %v27215_v48, %v31468_v51  ;;  %v810_v51 = vsub.f32 %v27221_v17, %v31472_v18  ;;  %v31473_v50 = vand.u32 4294901760, %v27227_v24  ;;  %v27293_v18 = vsub.f32 %v257_v44, %v27267_v10 }
  0x68   :  { %24262 = vmatmul.mubr.f32.gmra.mxu1 %v27131_v60  ;;  %31470 = vst [vmem:[#allocation87_spill] sm:$0xff] %v27273_v34  ;;  %v266_v60 = vsel %vm129_vm0, %v94_v6, 0  ;;  %31475 = vst [vmem:[#allocation90_spill] sm:$0xff] %v27295_v55  ;;  %v27301_v6 = vsub.f32 %v260_v25, %v27275_v49  ;;  %v830_v44 = vsub.f32 %v27256_v3, %v31215_v54  ;;  %v272_v25 = vsel %vm129_vm0, %v96_v12, 0 }
  0x69   :  { %24264 = vmatprep.mubr.f32.mxu1 %v27136_v40  ;;  %v820_v63 = vsub.f32 %v27227_v24, %v31473_v50  ;;  %v801_v40 = vand.u32 4294901760, %v800_v38  ;;  %31474 = vst [vmem:[#allocation89_spill] sm:$0xff] %v27293_v18  ;;  %v269_v50 = vsel %vm129_vm0, %v95_v5, 0  ;;  %v811_v41 = vand.u32 4294901760, %v810_v51 }
  0x6a   :  { %24141 = vmatmul.mubr.f32.gmra.mxu0 %v771_v59  ;;  %31476 = vst [vmem:[#allocation91_spill] sm:$0xff] %v27301_v6  ;;  %v27307_v38 = vand.u32 4294901760, %v266_v60  ;;  %v275_v59 = vsel %vm129_vm0, %v97_v39, 0  ;;  %v98_v54 = vmul.f32 %v26895_v47, %v26895_v47 }
  0x6b   :  { %24143 = vmatprep.mubr.f32.mxu0 %v781_v0  ;;  %v821_v36 = vand.u32 4294901760, %v820_v63  ;;  %v31478_v0 = vand.u32 4294901760, %v27260_v22  ;;  %v27318_v63 = vsub.f32 %v263_v1, %v27295_v55  ;;  %v27333_v1 = vand.u32 4294901760, %v272_v25 }
  0x6c   :  { %24265 = vmatmul.mubr.f32.gmra.mxu1 %v27158_v2  ;;  %31477 = vst [vmem:[#allocation92_spill] sm:$0xff] %v27307_v38  ;;  %v27312_v2 = vand.u32 4294901760, %v269_v50  ;;  %v27335_v51 = vand.u32 4294901760, %v275_v59 }
  0x6d   :  { %24267 = vmatprep.mubr.f32.mxu1 %v27165_v53  ;;  %v840_v5 = vsub.f32 %v27260_v22, %v31478_v0  ;;  %31480 = vst [vmem:[#allocation94_spill] sm:$0xff] %v27318_v63  ;;  %v31481_v0 = vand.u32 4294901760, %v27273_v34  ;;  %31483 = vst [vmem:[#allocation96_spill] sm:$0xff] %v27333_v1  ;;  %v100_v53 = vmul.f32 %v26922_v58, %v26922_v58 }
  0x6e   :  { %24144 = vmatmul.mubr.f32.gmra.mxu0 %v791_v8  ;;  %31479 = vst [vmem:[#allocation93_spill] sm:$0xff] %v27312_v2  ;;  %v99_v8 = vmul.f32 %v26911_v16, %v26911_v16  ;;  %31484 = vst [vmem:[#allocation97_spill] sm:$0xff] %v27335_v51  ;;  %v27340_v3 = vsub.f32 %v269_v50, %v27312_v2 }
  0x6f   :  { %24146 = vmatprep.mubr.f32.mxu0 %v801_v40  ;;  %v850_v12 = vsub.f32 %v27273_v34, %v31481_v0  ;;  %v27331_v40 = vsub.f32 %v266_v60, %v27307_v38  ;;  %v841_v22 = vand.u32 4294901760, %v840_v5  ;;  %v31486_v0 = vand.u32 4294901760, %v27293_v18 }
  0x70   :  { %24268 = vmatmul.mubr.f32.gmra.mxu1 %v27168_v23  ;;  %v831_v23 = vand.u32 4294901760, %v830_v44  ;;  %31485 = vst [vmem:[#allocation98_spill] sm:$0xff] %v27340_v3  ;;  %v281_v34 = vsel %vm129_vm0, %v99_v8, 0  ;;  %v27357_v5 = vsub.f32 %v272_v25, %v27333_v1  ;;  %v284_v8 = vsel %vm129_vm0, %v100_v53, 0 }
  0x71   :  { %24270 = vmatprep.mubr.f32.mxu1 %v27190_v7  ;;  %31482 = vst [vmem:[#allocation95_spill] sm:$0xff] %v27331_v40  ;;  %v860_v39 = vsub.f32 %v27293_v18, %v31486_v0  ;;  %v278_v7 = vsel %vm129_vm0, %v98_v54, 0  ;;  %v851_v24 = vand.u32 4294901760, %v850_v12  ;;  %v27360_v54 = vsub.f32 %v275_v59, %v27335_v51 }
  0x72   :  { %24147 = vmatmul.mubr.f32.gmra.mxu0 %v811_v41  ;;  %v31487_v41 = vand.u32 4294901760, %v27301_v6  ;;  %31488 = vst [vmem:[#allocation99_spill] sm:$0xff] %v27357_v5  ;;  %v27364_v0 = vand.u32 4294901760, %v278_v7  ;;  %v102_v60 = vmul.f32 %v26940_v31, %v26940_v31  ;;  %v31492_v25 = vand.u32 4294901760, %v27318_v63 }
  0x73   :  { %24149 = vmatprep.mubr.f32.mxu0 %v821_v36  ;;  %v101_v36 = vmul.f32 %v26924_v56, %v26924_v56  ;;  %31489 = vst [vmem:[#allocation100_spill] sm:$0xff] %v27360_v54  ;;  %v861_v50 = vand.u32 4294901760, %v860_v39  ;;  %v27374_v59 = vand.u32 4294901760, %v284_v8  ;;  %v31248_v39 = vand.u32 4294901760, %v27357_v5 }
  0x74   :  { %24271 = vmatmul.mubr.f32.gmra.mxu1 %v27198_v11  ;;  %v870_v44 = vsub.f32 %v27301_v6, %v31487_v41  ;;  %31490 = vst [vmem:[#allocation101_spill] sm:$0xff] %v27364_v0  ;;  %v27366_v41 = vand.u32 4294901760, %v281_v34  ;;  %v31494_v11 = vand.u32 4294901760, %v27331_v40 }
  0x75   :  { %24273 = vmatprep.mubr.f32.mxu1 %v27201_v28  ;;  %v880_v28 = vsub.f32 %v27318_v63, %v31492_v25  ;;  %31493 = vst [vmem:[#allocation103_spill] sm:$0xff] %v27374_v59  ;;  %v287_v53 = vsel %vm129_vm0, %v101_v36, 0  ;;  %v27389_v36 = vsub.f32 %v278_v7, %v27364_v0  ;;  %v104_v25 = vmul.f32 %v26981_v62, %v26981_v62 }
  0x76   :  { %24150 = vmatmul.mubr.f32.gmra.mxu0 %v831_v23  ;;  %31491 = vst [vmem:[#allocation102_spill] sm:$0xff] %v27366_v41  ;;  %v103_v23 = vmul.f32 %v26969_v20, %v26969_v20  ;;  %v871_v12 = vand.u32 4294901760, %v870_v44  ;;  %v27392_v6 = vsub.f32 %v281_v34, %v27366_v41  ;;  %v290_v44 = vsel %vm129_vm0, %v102_v60, 0 }
  0x77   :  { %24152 = vmatprep.mubr.f32.mxu0 %v841_v22  ;;  %v890_v22 = vsub.f32 %v27331_v40, %v31494_v11  ;;  %31496 = vst [vmem:[#allocation104_spill] sm:$0xff] %v27389_v36  ;;  %v27395_v11 = vand.u32 4294901760, %v287_v53  ;;  %v31500_v60 = vand.u32 4294901760, %v27360_v54 }
  0x78   :  { %24274 = vmatmul.mubr.f32.gmra.mxu1 %v27229_v35  ;;  %v31495_v35 = vand.u32 4294901760, %v27340_v3  ;;  %31497 = vst [vmem:[#allocation105_spill] sm:$0xff] %v27392_v6  ;;  %v293_v7 = vsel %vm129_vm0, %v103_v23, 0  ;;  %v108_v23 = vmul.f32 %v27019_v43, %v27019_v43 }
  0x79   :  { %24276 = vmatprep.mubr.f32.mxu1 %v27237_v13  ;;  %v881_v13 = vand.u32 4294901760, %v880_v28  ;;  %31498 = vst [vmem:[#allocation106_spill] sm:$0xff] %v27395_v11  ;;  %v891_v34 = vand.u32 4294901760, %v890_v22  ;;  %v910_v28 = vsub.f32 %v27357_v5, %v31248_v39  ;;  %v27420_v22 = vsub.f32 %v287_v53, %v27395_v11 }
  0x7a   :  { %24153 = vmatmul.mubr.f32.gmra.mxu0 %v851_v24  ;;  %v900_v63 = vsub.f32 %v27340_v3, %v31495_v35  ;;  %v27401_v24 = vsub.f32 %v284_v8, %v27374_v59  ;;  %v105_v35 = vmul.f32 %v26993_v37, %v26993_v37  ;;  %v27422_v39 = vand.u32 4294901760, %v293_v7 }
  0x7b   :  { %24155 = vmatprep.mubr.f32.mxu0 %v861_v50  ;;  %v920_v50 = vsub.f32 %v27360_v54, %v31500_v60  ;;  %31502 = vst [vmem:[#allocation109_spill] sm:$0xff] %v27420_v22  ;;  %v296_v5 = vsel %vm129_vm0, %v104_v25, 0  ;;  %v107_v60 = vmul.f32 %v27009_v30, %v27009_v30  ;;  %v911_v3 = vand.u32 4294901760, %v910_v28 }
  0x7c   :  { %24277 = vmatmul.mubr.f32.gmra.mxu1 %v27247_v15  ;;  %31499 = vst [vmem:[#allocation107_spill] sm:$0xff] %v27401_v24  ;;  %v27413_v15 = vand.u32 4294901760, %v290_v44  ;;  %v901_v8 = vand.u32 4294901760, %v900_v63  ;;  %31503 = vst [vmem:[#allocation110_spill] sm:$0xff] %v27422_v39  ;;  %v31505_v25 = vand.u32 4294901760, %v27389_v36 }
  0x7d   :  { %24279 = vmatprep.mubr.f32.mxu1 %v27267_v10  ;;  %v106_v10 = vmul.f32 %v27000_v61, %v27000_v61 }
  0x7e   :  { %31501 = vst [vmem:[#allocation108_spill] sm:$0xff] %v27413_v15  ;;  %24156 = vmatmul.mubr.f32.gmra.mxu0 %v871_v12  ;;  %v299_v12 = vsel %vm129_vm0, %v105_v35, 0  ;;  %v27432_v53 = vsub.f32 %v290_v44, %v27413_v15  ;;  %v930_v54 = vsub.f32 %v27389_v36, %v31505_v25  ;;  %v27442_v35 = vand.u32 4294901760, %v296_v5 }
  0x7f   :  { %24158 = vmatprep.mubr.f32.mxu0 %v881_v13  ;;  %v921_v13 = vand.u32 4294901760, %v920_v50  ;;  %v302_v28 = vsel %vm129_vm0, %v106_v10, 0  ;;  %v27447_v50 = vsub.f32 %v293_v7, %v27422_v39  ;;  %v31510_v25 = vand.u32 4294901760, %v27401_v24 }
  0x80   :  { %24280 = vmatmul.mubr.f32.gmra.mxu1 %v27275_v49  ;;  %31504 = vst [vmem:[#allocation111_spill] sm:$0xff] %v27432_v53  ;;  %v31506_v49 = vand.u32 4294901760, %v27392_v6  ;;  %31507 = vst [vmem:[#allocation112_spill] sm:$0xff] %v27442_v35  ;;  %v308_v7 = vsel %vm129_vm0, %v108_v23, 0  ;;  %v931_v44 = vand.u32 4294901760, %v930_v54  ;;  %v31514_v10 = vand.u32 4294901760, %v27420_v22 }
  0x81   :  { %24282 = vmatprep.mubr.f32.mxu1 %v27295_v55  ;;  %31508 = vst [vmem:[#allocation113_spill] sm:$0xff] %v27447_v50  ;;  %v27449_v55 = vand.u32 4294901760, %v299_v12 }
  0x82   :  { %24159 = vmatmul.mubr.f32.gmra.mxu0 %v891_v34  ;;  %v940_v63 = vsub.f32 %v27392_v6, %v31506_v49  ;;  %v305_v34 = vsel %vm129_vm0, %v107_v60, 0  ;;  %v950_v49 = vsub.f32 %v27401_v24, %v31510_v25  ;;  %v109_v6 = vmul.f32 %v27029_v21, %v27029_v21  ;;  %v31513_v24 = vld [vmem:[#allocation65_spill] sm:$0xff] }
  0x83   :  { %24161 = vmatprep.mubr.f32.mxu0 %v901_v8  ;;  %31509 = vst [vmem:[#allocation114_spill] sm:$0xff] %v27449_v55  ;;  %v27460_v8 = vand.u32 4294901760, %v302_v28  ;;  %v110_v60 = vmul.f32 %v27057_v27, %v27057_v27  ;;  %v27468_v25 = vand.u32 4294901760, %v305_v34  ;;  %v111_v36 = vmul.f32 %v31513_v24, %v31513_v24 }
  0x84   :  { %24283 = vmatmul.mubr.f32.gmra.mxu1 %v27307_v38  ;;  %v27466_v38 = vsub.f32 %v296_v5, %v27442_v35  ;;  %v960_v40 = vsub.f32 %v27420_v22, %v31514_v10  ;;  %v27477_v18 = vsub.f32 %v299_v12, %v27449_v55  ;;  %v311_v5 = vsel %vm129_vm0, %v109_v6, 0 }
  0x85   :  { %24285 = vmatprep.mubr.f32.mxu1 %v27312_v2  ;;  %31511 = vst [vmem:[#allocation115_spill] sm:$0xff] %v27460_v8  ;;  %31512 = vst [vmem:[#allocation116_spill] sm:$0xff] %v27468_v25  ;;  %v941_v2 = vand.u32 4294901760, %v940_v63  ;;  %v951_v54 = vand.u32 4294901760, %v950_v49  ;;  %v31516_v63 = vand.u32 4294901760, %v27432_v53  ;;  %v27488_v10 = vsub.f32 %v302_v28, %v27460_v8 }
  0x86   :  { %24162 = vmatmul.mubr.f32.gmra.mxu0 %v911_v3  ;;  %v27480_v3 = vand.u32 4294901760, %v308_v7  ;;  %v314_v23 = vsel %vm129_vm0, %v110_v60, 0  ;;  %v317_v6 = vsel %vm129_vm0, %v111_v36, 0  ;;  %v112_v49 = vmul.f32 %v27094_v4, %v27094_v4 }
  0x87   :  { %24164 = vmatprep.mubr.f32.mxu0 %v921_v13  ;;  %v970_v13 = vsub.f32 %v27432_v53, %v31516_v63  ;;  %31517 = vst [vmem:[#allocation117_spill] sm:$0xff] %v27488_v10  ;;  %v31518_v63 = vand.u32 4294901760, %v27447_v50  ;;  %v27502_v60 = vand.u32 4294901760, %v311_v5  ;;  %v31522_v53 = vand.u32 4294901760, %v27466_v38 }
  0x88   :  { %24286 = vmatmul.mubr.f32.gmra.mxu1 %v27333_v1  ;;  %31515 = vst [vmem:[#allocation65_spill] sm:$0xff] %v27480_v3  ;;  %v27493_v1 = vsub.f32 %v305_v34, %v27468_v25  ;;  %v27507_v36 = vsub.f32 %v308_v7, %v27480_v3  ;;  %v27509_v34 = vand.u32 4294901760, %v314_v23  ;;  %v26552_v7 = vld [vmem:[#allocation2 + $0x8] sm:$0xff] }
  0x89   :  { %24288 = vmatprep.mubr.f32.mxu1 %v27335_v51  ;;  %v961_v51 = vand.u32 4294901760, %v960_v40  ;;  %v980_v28 = vsub.f32 %v27447_v50, %v31518_v63  ;;  %31519 = vst [vmem:[#allocation118_spill] sm:$0xff] %v27502_v60  ;;  %v27513_v63 = vand.u32 4294901760, %v317_v6  ;;  %v990_v50 = vsub.f32 %v27466_v38, %v31522_v53 }
  0x8a   :  { %24165 = vmatmul.mubr.f32.gmra.mxu0 %v931_v44  ;;  %v26551_v44 = vld [vmem:[#allocation2] sm:$0xff]  ;;  %31520 = vst [vmem:[#allocation119_spill] sm:$0xff] %v27509_v34 }
  0x8b   :  { %24167 = vmatprep.mubr.f32.mxu0 %v941_v2  ;;  %v113_v12 = vmul.f32 %v26551_v44, %v26888_v42  ;;  %v971_v2 = vand.u32 4294901760, %v970_v13  ;;  %31521 = vst [vmem:[#allocation120_spill] sm:$0xff] %v27513_v63  ;;  %v320_v44 = vsel %vm129_vm0, %v112_v49, 0  ;;  %v981_v22 = vand.u32 4294901760, %v980_v28  ;;  %v26553_v42 = vld [vmem:[#allocation2 + $0x10] sm:$0xff] }
  0x8c   :  { %24289 = vmatmul.mubr.f32.gmra.mxu1 %v27364_v0  ;;  %v114_v0 = vmul.f32 %v26552_v7, %v26895_v47  ;;  %v31523_v13 = vand.u32 4294901760, %v27477_v18  ;;  %v115_v47 = vmul.f32 %v26553_v42, %v26911_v16  ;;  %v27541_v7 = vand.u32 4294901760, %v320_v44  ;;  %v26554_v16 = vld [vmem:[#allocation2 + $0x18] sm:$0xff] }
  0x8d   :  { %24291 = vmatprep.mubr.f32.mxu1 %v27366_v41  ;;  %v27525_v41 = vsub.f32 %v311_v5, %v27502_v60  ;;  %v323_v49 = vsel %vm129_vm0, %v113_v12, 0  ;;  %v27539_v5 = vsub.f32 %v317_v6, %v27513_v63  ;;  %v116_v42 = vmul.f32 %v26554_v16, %v26922_v58  ;;  %v26555_v6 = vld [vmem:[#allocation2 + $0x20] sm:$0xff] }
  0x8e   :  { %24168 = vmatmul.mubr.f32.gmra.mxu0 %v951_v54  ;;  %v1000_v40 = vsub.f32 %v27477_v18, %v31523_v13  ;;  %v27530_v54 = vsub.f32 %v314_v23, %v27509_v34  ;;  %31525 = vst [vmem:[#allocation121_spill] sm:$0xff] %v27541_v7  ;;  %v991_v13 = vand.u32 4294901760, %v990_v50  ;;  %v31526_v23 = vand.u32 4294901760, %v27493_v1 }
  0x8f   :  { %24170 = vmatprep.mubr.f32.mxu0 %v961_v51  ;;  %v31524_v51 = vand.u32 4294901760, %v27488_v10  ;;  %v326_v53 = vsel %vm129_vm0, %v114_v0, 0  ;;  %v31528_v50 = vand.u32 4294901760, %v27507_v36  ;;  %v26557_v0 = vld [vmem:[#allocation2 + $0x30] sm:$0xff] }
  0x90   :  { %24292 = vmatmul.mubr.f32.gmra.mxu1 %v27374_v59  ;;  %v1020_v12 = vsub.f32 %v27493_v1, %v31526_v23  ;;  %v27549_v59 = vand.u32 4294901760, %v323_v49  ;;  %v329_v23 = vsel %vm129_vm0, %v115_v47, 0  ;;  %v27563_v16 = vand.u32 4294901760, %v326_v53 }
  0x91   :  { %24294 = vmatprep.mubr.f32.mxu1 %v27395_v11  ;;  %v1010_v28 = vsub.f32 %v27488_v10, %v31524_v51  ;;  %v1001_v11 = vand.u32 4294901760, %v1000_v40  ;;  %v117_v10 = vmul.f32 %v26555_v6, %v26924_v56  ;;  %v27561_v40 = vsub.f32 %v320_v44, %v27541_v7  ;;  %v26556_v51 = vld [vmem:[#allocation2 + $0x28] sm:$0xff] }
  0x92   :  { %24171 = vmatmul.mubr.f32.gmra.mxu0 %v971_v2  ;;  %31527 = vst [vmem:[#allocation122_spill] sm:$0xff] %v27549_v59  ;;  %v1030_v2 = vsub.f32 %v27507_v36, %v31528_v50  ;;  %31529 = vst [vmem:[#allocation123_spill] sm:$0xff] %v27563_v16  ;;  %v1021_v56 = vand.u32 4294901760, %v1020_v12  ;;  %v332_v6 = vsel %vm129_vm0, %v116_v42, 0  ;;  %v118_v50 = vmul.f32 %v26556_v51, %v26940_v31 }
  0x93   :  { %24173 = vmatprep.mubr.f32.mxu0 %v981_v22  ;;  %v1011_v58 = vand.u32 4294901760, %v1010_v28  ;;  %v119_v47 = vmul.f32 %v26557_v0, %v26969_v20  ;;  %v31530_v28 = vand.u32 4294901760, %v27525_v41  ;;  %v27572_v44 = vsub.f32 %v323_v49, %v27549_v59 }
  0x94   :  { %24295 = vmatmul.mubr.f32.gmra.mxu1 %v27413_v15  ;;  %v1031_v12 = vand.u32 4294901760, %v1030_v2  ;;  %v31532_v31 = vand.u32 4294901760, %v27530_v54  ;;  %v31533_v20 = vand.u32 4294901760, %v27539_v5  ;;  %v27587_v51 = vsub.f32 %v326_v53, %v27563_v16  ;;  %v26559_v53 = vld [vmem:[#allocation2 + $0x40] sm:$0xff] }
  0x95   :  { %24297 = vmatprep.mubr.f32.mxu1 %v27422_v39  ;;  %v1040_v22 = vsub.f32 %v27525_v41, %v31530_v28  ;;  %v27574_v39 = vand.u32 4294901760, %v329_v23  ;;  %v27589_v0 = vand.u32 4294901760, %v332_v6  ;;  %v338_v2 = vsel %vm129_vm0, %v118_v50, 0 }
  0x96   :  { %24174 = vmatmul.mubr.f32.gmra.mxu0 %v991_v13  ;;  %v335_v13 = vsel %vm129_vm0, %v117_v10, 0  ;;  %v1050_v42 = vsub.f32 %v27530_v54, %v31532_v31  ;;  %v341_v28 = vsel %vm129_vm0, %v119_v47, 0  ;;  %v26558_v31 = vld [vmem:[#allocation2 + $0x38] sm:$0xff]  ;;  %v121_v15 = vmul.f32 %v26559_v53, %v26993_v37  ;;  %v26560_v53 = vld [vmem:[#allocation2 + $0x48] sm:$0xff] }
  0x97   :  { %24176 = vmatprep.mubr.f32.mxu0 %v1001_v11  ;;  %31531 = vst [vmem:[#allocation124_spill] sm:$0xff] %v27574_v39  ;;  %v1060_v11 = vsub.f32 %v27539_v5, %v31533_v20  ;;  %31534 = vst [vmem:[#allocation125_spill] sm:$0xff] %v27589_v0  ;;  %v27591_v10 = vand.u32 4294901760, %v335_v13  ;;  %v31301_v20 = vand.u32 4294901760, %v27572_v44  ;;  %v27598_v49 = vsub.f32 %v329_v23, %v27574_v39 }
  0x98   :  { %24298 = vmatmul.mubr.f32.gmra.mxu1 %v27442_v35  ;;  %v1041_v35 = vand.u32 4294901760, %v1040_v22  ;;  %v27604_v47 = vsub.f32 %v332_v6, %v27589_v0  ;;  %v27608_v22 = vand.u32 4294901760, %v341_v28  ;;  %v31538_v23 = vand.u32 4294901760, %v27561_v40 }
  0x99   :  { %24300 = vmatprep.mubr.f32.mxu1 %v27449_v55  ;;  %31535 = vst [vmem:[#allocation126_spill] sm:$0xff] %v27591_v10  ;;  %v120_v55 = vmul.f32 %v26558_v31, %v26981_v62  ;;  %v1061_v50 = vand.u32 4294901760, %v1060_v11  ;;  %v27606_v62 = vand.u32 4294901760, %v338_v2  ;;  %v31304_v37 = vand.u32 4294901760, %v27587_v51 }
  0x9a   :  { %24177 = vmatmul.mubr.f32.gmra.mxu0 %v1011_v58  ;;  %v1051_v58 = vand.u32 4294901760, %v1050_v42  ;;  %31537 = vst [vmem:[#allocation128_spill] sm:$0xff] %v27608_v22  ;;  %v27615_v31 = vsub.f32 %v335_v13, %v27591_v10  ;;  %v1080_v6 = vsub.f32 %v27572_v44, %v31301_v20  ;;  %v27632_v20 = vsub.f32 %v341_v28, %v27608_v22 }
  0x9b   :  { %24179 = vmatprep.mubr.f32.mxu0 %v1021_v56  ;;  %31536 = vst [vmem:[#allocation127_spill] sm:$0xff] %v27606_v62  ;;  %v1070_v56 = vsub.f32 %v27561_v40, %v31538_v23  ;;  %v344_v42 = vsel %vm129_vm0, %v120_v55, 0  ;;  %v26561_v23 = vld [vmem:[#allocation2 + $0x50] sm:$0xff] }
  0x9c   :  { %24301 = vmatmul.mubr.f32.gmra.mxu1 %v27460_v8  ;;  %v123_v13 = vmul.f32 %v26561_v23, %v27009_v30  ;;  %v27634_v11 = vand.u32 4294901760, %v344_v42  ;;  %v1081_v23 = vand.u32 4294901760, %v1080_v6 }
  0x9d   :  { %24303 = vmatprep.mubr.f32.mxu1 %v27468_v25  ;;  %v122_v25 = vmul.f32 %v26560_v53, %v27000_v61  ;;  %v1090_v61 = vsub.f32 %v27587_v51, %v31304_v37  ;;  %v26563_v37 = vld [vmem:[#allocation2 + $0x60] sm:$0xff] }
  0x9e   :  { %24180 = vmatmul.mubr.f32.gmra.mxu0 %v1031_v12  ;;  %v347_v12 = vsel %vm129_vm0, %v121_v15, 0  ;;  %31539 = vst [vmem:[#allocation129_spill] sm:$0xff] %v27634_v11  ;;  %v1071_v15 = vand.u32 4294901760, %v1070_v56  ;;  %v353_v56 = vsel %vm129_vm0, %v123_v13, 0  ;;  %v125_v30 = vmul.f32 %v26563_v37, %v27029_v21 }
  0x9f   :  { %24182 = vmatprep.mubr.f32.mxu0 %v1041_v35  ;;  %v27629_v35 = vsub.f32 %v338_v2, %v27606_v62  ;;  %v27640_v53 = vand.u32 4294901760, %v347_v12  ;;  %v31541_v2 = vand.u32 4294901760, %v27598_v49  ;;  %v350_v28 = vsel %vm129_vm0, %v122_v25, 0 }
  0xa0   :  { %24304 = vmatmul.mubr.f32.gmra.mxu1 %v27480_v3  ;;  %v27657_v3 = vsub.f32 %v344_v42, %v27634_v11  ;;  %v27665_v37 = vand.u32 4294901760, %v350_v28 }
  0xa1   :  { %24306 = vmatprep.mubr.f32.mxu1 %v27502_v60  ;;  %31540 = vst [vmem:[#allocation130_spill] sm:$0xff] %v27640_v53  ;;  %v1100_v55 = vsub.f32 %v27598_v49, %v31541_v2  ;;  %v26562_v60 = vld [vmem:[#allocation2 + $0x58] sm:$0xff]  ;;  %v27663_v21 = vsub.f32 %v347_v12, %v27640_v53  ;;  %v26564_v2 = vld [vmem:[#allocation2 + $0x68] sm:$0xff] }
  0xa2   :  { %24183 = vmatmul.mubr.f32.gmra.mxu0 %v1051_v58  ;;  %v124_v58 = vmul.f32 %v26562_v60, %v27019_v43  ;;  %v1091_v43 = vand.u32 4294901760, %v1090_v61  ;;  %v31543_v60 = vand.u32 4294901760, %v27615_v31  ;;  %31544 = vst [vmem:[#allocation131_spill] sm:$0xff] %v27665_v37  ;;  %v126_v42 = vmul.f32 %v26564_v2, %v27057_v27  ;;  %v26565_v61 = vld [vmem:[#allocation2 + $0x70] sm:$0xff] }
  0xa3   :  { %24185 = vmatprep.mubr.f32.mxu0 %v1061_v50  ;;  %v31542_v50 = vand.u32 4294901760, %v27604_v47 }
  0xa4   :  { %24307 = vmatmul.mubr.f32.gmra.mxu1 %v27509_v34  ;;  %v1120_v13 = vsub.f32 %v27615_v31, %v31543_v60  ;;  %v356_v25 = vsel %vm129_vm0, %v124_v58, 0  ;;  %v127_v60 = vmul.f32 %v26565_v61, %v31513_v24  ;;  %v31547_v34 = vand.u32 4294901760, %v27632_v20 }
  0xa5   :  { %24309 = vmatprep.mubr.f32.mxu1 %v27513_v63  ;;  %v1110_v6 = vsub.f32 %v27604_v47, %v31542_v50  ;;  %v1101_v50 = vand.u32 4294901760, %v1100_v55  ;;  %v27667_v63 = vand.u32 4294901760, %v353_v56  ;;  %v27686_v24 = vand.u32 4294901760, %v356_v25 }
  0xa6   :  { %24186 = vmatmul.mubr.f32.gmra.mxu0 %v1071_v15  ;;  %v359_v15 = vsel %vm129_vm0, %v125_v30, 0  ;;  %v1140_v58 = vsub.f32 %v27632_v20, %v31547_v34  ;;  %v1121_v2 = vand.u32 4294901760, %v1120_v13  ;;  %v31315_v30 = vand.u32 4294901760, %v27663_v21  ;;  %v26566_v34 = vld [vmem:[#allocation2 + $0x78] sm:$0xff] }
  0xa7   :  { %24188 = vmatprep.mubr.f32.mxu0 %v1081_v23  ;;  %31545 = vst [vmem:[#allocation132_spill] sm:$0xff] %v27667_v63  ;;  %v1111_v12 = vand.u32 4294901760, %v1110_v6  ;;  %v31546_v23 = vand.u32 4294901760, %v27629_v35  ;;  %31548 = vst [vmem:[#allocation133_spill] sm:$0xff] %v27686_v24  ;;  %v27689_v6 = vsub.f32 %v353_v56, %v27667_v63  ;;  %v27691_v61 = vand.u32 4294901760, %v359_v15 }
  0xa8   :  { %24310 = vmatmul.mubr.f32.gmra.mxu1 %v27541_v7  ;;  %v27684_v7 = vsub.f32 %v350_v28, %v27665_v37  ;;  %v128_v27 = vmul.f32 %v26566_v34, %v27094_v4  ;;  %v1141_v13 = vand.u32 4294901760, %v1140_v58  ;;  %v27706_v4 = vsub.f32 %v356_v25, %v27686_v24 }
  0xa9   :  { %24312 = vmatprep.mubr.f32.mxu1 %v27549_v59  ;;  %v1130_v55 = vsub.f32 %v27629_v35, %v31546_v23  ;;  %31549 = vst [vmem:[#allocation134_spill] sm:$0xff] %v27691_v61  ;;  %v362_v23 = vsel %vm129_vm0, %v126_v42, 0  ;;  %v1160_v42 = vsub.f32 %v27663_v21, %v31315_v30 }
  0xaa   :  { %24189 = vmatmul.mubr.f32.gmra.mxu0 %v1091_v43  ;;  %v365_v43 = vsel %vm129_vm0, %v127_v60, 0  ;;  %v31318_v59 = vand.u32 4294901760, %v27684_v7  ;;  %v27708_v34 = vand.u32 4294901760, %v362_v23 }
  0xab   :  { %24191 = vmatprep.mubr.f32.mxu0 %v1101_v50  ;;  %v1131_v28 = vand.u32 4294901760, %v1130_v55  ;;  %v31550_v50 = vand.u32 4294901760, %v27657_v3  ;;  %v27712_v55 = vsub.f32 %v359_v15, %v27691_v61  ;;  %v27714_v58 = vand.u32 4294901760, %v365_v43 }
  0xac   :  { %24313 = vmatmul.mubr.f32.gmra.mxu1 %v27563_v16  ;;  %31551 = vst [vmem:[#allocation135_spill] sm:$0xff] %v27708_v34  ;;  %v1170_v25 = vsub.f32 %v27684_v7, %v31318_v59  ;;  %v27724_v30 = vsub.f32 %v362_v23, %v27708_v34  ;;  %v1161_v60 = vand.u32 4294901760, %v1160_v42 }
  0xad   :  { %24315 = vmatprep.mubr.f32.mxu1 %v27574_v39  ;;  %v1150_v56 = vsub.f32 %v27657_v3, %v31550_v50  ;;  %31552 = vst [vmem:[#allocation136_spill] sm:$0xff] %v27714_v58 }
  0xae   :  { %24192 = vmatmul.mubr.f32.gmra.mxu0 %v1111_v12  ;;  %v368_v12 = vsel %vm129_vm0, %v128_v27, 0  ;;  %v31554_v27 = vand.u32 4294901760, %v27689_v6  ;;  %v1171_v23 = vand.u32 4294901760, %v1170_v25  ;;  %v31324_v42 = vand.u32 4294901760, %v27724_v30 }
  0xaf   :  { %24194 = vmatprep.mubr.f32.mxu0 %v1121_v2  ;;  %v1151_v50 = vand.u32 4294901760, %v1150_v56  ;;  %v31325_v2 = vand.u32 4294901760, %v27706_v4  ;;  %v27726_v15 = vand.u32 4294901760, %v368_v12  ;;  %v31321_v56 = vand.u32 4294901760, %v27712_v55 }
  0xb0   :  { %24316 = vmatmul.mubr.f32.gmra.mxu1 %v27589_v0  ;;  %v1180_v0 = vsub.f32 %v27689_v6, %v31554_v27  ;;  %v1210_v25 = vsub.f32 %v27724_v30, %v31324_v42 }
  0xb1   :  { %24318 = vmatprep.mubr.f32.mxu1 %v27591_v10  ;;  %31553 = vst [vmem:[#allocation137_spill] sm:$0xff] %v27726_v15  ;;  %v27742_v59 = vsub.f32 %v368_v12, %v27726_v15 }
  0xb2   :  { %24195 = vmatmul.mubr.f32.gmra.mxu0 %v1131_v28  ;;  %v27733_v28 = vsub.f32 %v365_v43, %v27714_v58  ;;  %v1181_v27 = vand.u32 4294901760, %v1180_v0  ;;  %v1200_v43 = vsub.f32 %v27712_v55, %v31321_v56  ;;  %v1211_v56 = vand.u32 4294901760, %v1210_v25  ;;  %v31557_v25 = vld [vmem:[#allocation18_spill] sm:$0xff] }
  0xb3   :  { %24197 = vmatprep.mubr.f32.mxu0 %v1141_v13  ;;  %v1190_v13 = vsub.f32 %v27706_v4, %v31325_v2  ;;  %v31322_v12 = vand.u32 4294901760, %v27742_v59  ;;  %v31597_v2 = vld [vmem:[#allocation55_spill] sm:$0xff] }
  0xb4   :  { %24319 = vmatmul.mubr.f32.gmra.mxu1 %v27606_v62  ;;  %v31323_v62 = vand.u32 4294901760, %v27733_v28  ;;  %v1201_v0 = vand.u32 4294901760, %v1200_v43  ;;  %v31555_v43 = vld [vmem:[#allocation16_spill] sm:$0xff] }
  0xb5   :  { %24321 = vmatprep.mubr.f32.mxu1 %v27608_v22 }
  0xb6   :  { %24198 = vmatmul.mubr.f32.gmra.mxu0 %v1151_v50  ;;  %v1191_v50 = vand.u32 4294901760, %v1190_v13 }
  0xb7   :  { %24200 = vmatprep.mubr.f32.mxu0 %v1161_v60  ;;  %v1220_v60 = vsub.f32 %v27733_v28, %v31323_v62  ;;  %v31573_v62 = vld [vmem:[#allocation30_spill] sm:$0xff] }
  0xb8   :  { %24322 = vmatmul.mubr.f32.gmra.mxu1 %v27634_v11 }
  0xb9   :  { %24324 = vmatprep.mubr.f32.mxu1 %v27640_v53  ;;  %v1221_v13 = vand.u32 4294901760, %v1220_v60  ;;  %v31559_v60 = vld [vmem:[#allocation17_spill] sm:$0xff]  ;;  %v31622_v53 = vand.u32 4294901760, %v27221_v17 }
  0xba   :  { %24201 = vmatmul.mubr.f32.gmra.mxu0 %v1171_v23  ;;  %v1230_v23 = vsub.f32 %v27742_v59, %v31322_v12  ;;  %v31564_v12 = vld [vmem:[#allocation24_spill] sm:$0xff] }
  0xbb   :  { %24203 = vmatprep.mubr.f32.mxu0 %v1181_v27 }
  0xbc   :  { %24325 = vmatmul.mubr.f32.gmra.mxu1 %v27665_v37  ;;  %v1231_v27 = vand.u32 4294901760, %v1230_v23  ;;  %v31561_v23 = vld [vmem:[#allocation19_spill] sm:$0xff]  ;;  %v31613_v37 = vand.u32 4294901760, %v27121_v33 }
  0xbd   :  { %24327 = vmatprep.mubr.f32.mxu1 %v27667_v63 }
  0xbe   :  { %24204 = vmatmul.mubr.f32.gmra.mxu0 %v1191_v50  ;;  %v31556_v50 = vand.u32 4294901760, %v31555_v43 }
  0xbf   :  { %24206 = vmatprep.mubr.f32.mxu0 %v1201_v0  ;;  %v31558_v0 = vld [vmem:[#allocation20_spill] sm:$0xff] }
  0xc0   :  { %24328 = vmatmul.mubr.f32.gmra.mxu1 %v27686_v24 }
  0xc1   :  { %24330 = vmatprep.mubr.f32.mxu1 %v27691_v61 }
  0xc2   :  { %24207 = vmatmul.mubr.f32.gmra.mxu0 %v1211_v56  ;;  %v31560_v56 = vand.u32 4294901760, %v31557_v25 }
  0xc3   :  { %24209 = vmatprep.mubr.f32.mxu0 %v1221_v13  ;;  %v31562_v13 = vand.u32 4294901760, %v31558_v0 }
  0xc4   :  { %24331 = vmatmul.mubr.f32.gmra.mxu1 %v27708_v34  ;;  %v31599_v34 = vand.u32 4294901760, %v31597_v2 }
  0xc5   :  { %24333 = vmatprep.mubr.f32.mxu1 %v27714_v58 }
  0xc6   :  { %24210 = vmatmul.mubr.f32.gmra.mxu0 %v1231_v27  ;;  %v31563_v27 = vld [vmem:[#allocation11_spill] sm:$0xff] }
  0xc7   :  { %24340 = vmatprep.mubr.f32.mxu0 %v31555_v43  ;;  %v31565_v43 = vld [vmem:[#allocation12_spill] sm:$0xff] }
  0xc8   :  { %24334 = vmatmul.mubr.f32.gmra.mxu1 %v27726_v15 }
  0xc9   :  { %24464 = vmatprep.mubr.f32.mxu1 %v31556_v50  ;;  %v31566_v50 = vld [vmem:[#allocation25_spill] sm:$0xff] }
  0xca   :  { %24341 = vmatmul.mubr.f32.vlgmr.msra.gmra.mxu0 %v31557_v25  ;;  %v31568_v25 = vand.u32 4294901760, %v31566_v50 }
  0xcb   :  { %24343 = vmatprep.mubr.f32.mxu0 %v31558_v0  ;;  %24585 = vmatpush3.msra.mxu0 %v31559_v60  ;;  %v31567_v60 = vand.u32 4294901760, %v31564_v12  ;;  %v31569_v0 = vld [vmem:[#allocation26_spill] sm:$0xff] }
  0xcc   :  { %24465 = vmatmul.mubr.f32.vlgmr.msra.gmra.mxu1 %v31560_v56  ;;  %24586 = vmatprep.subr.mxu0 %v31561_v23  ;;  %v31570_v56 = vld [vmem:[#allocation29_spill] sm:$0xff] }
  0xcd   :  { %24467 = vmatprep.mubr.f32.mxu1 %v31562_v13  ;;  %24709 = vmatpush3.msra.mxu1 %v31563_v27  ;;  %v31571_v13 = vand.u32 4294901760, %v31569_v0  ;;  %v31572_v27 = vand.u32 4294901760, %v31570_v56 }
  0xce   :  { %24344 = vmatmul.mubr.f32.gmra.mxu0 %v31564_v12  ;;  %24710 = vmatprep.subr.mxu1 %v31565_v43  ;;  %v31575_v12 = vand.u32 4294901760, %v31573_v62 }
  0xcf   :  { %24346 = vmatprep.mubr.f32.mxu0 %v31566_v50  ;;  %24587 = vmatpush3.msra.mxu0 %v31561_v23  ;;  %v31574_v23 = vld [vmem:[#allocation34_spill] sm:$0xff] }
  0xd0   :  { %24468 = vmatmul.mubr.f32.gmra.mxu1 %v31567_v60  ;;  %v31576_v50 = vand.u32 4294901760, %v31574_v23  ;;  %v31578_v60 = vld [vmem:[#allocation36_spill] sm:$0xff] }
  0xd1   :  { %24470 = vmatprep.mubr.f32.mxu1 %v31568_v25  ;;  %24711 = vmatpush3.msra.mxu1 %v31565_v43  ;;  %v31577_v43 = vld [vmem:[#allocation35_spill] sm:$0xff] }
  0xd2   :  { %24347 = vmatmul.mubr.f32.gmra.mxu0 %v31569_v0  ;;  %v31579_v25 = vand.u32 4294901760, %v31577_v43  ;;  %v31580_v0 = vand.u32 4294901760, %v31578_v60 }
  0xd3   :  { %24349 = vmatprep.mubr.f32.mxu0 %v31570_v56  ;;  %v31581_v56 = vld [vmem:[#allocation40_spill] sm:$0xff] }
  0xd4   :  { %24471 = vmatmul.mubr.f32.gmra.mxu1 %v31571_v13  ;;  %v31582_v13 = vld [vmem:[#allocation41_spill] sm:$0xff] }
  0xd5   :  { %24473 = vmatprep.mubr.f32.mxu1 %v31572_v27  ;;  %v31584_v27 = vand.u32 4294901760, %v31582_v13 }
  0xd6   :  { %24350 = vmatmul.mubr.f32.gmra.mxu0 %v31573_v62  ;;  %v31583_v62 = vand.u32 4294901760, %v31581_v56 }
  0xd7   :  { %24352 = vmatprep.mubr.f32.mxu0 %v31574_v23  ;;  %v31585_v23 = vld [vmem:[#allocation42_spill] sm:$0xff] }
  0xd8   :  { %24474 = vmatmul.mubr.f32.gmra.mxu1 %v31575_v12  ;;  %v31586_v12 = vld [vmem:[#allocation44_spill] sm:$0xff] }
  0xd9   :  { %24476 = vmatprep.mubr.f32.mxu1 %v31576_v50  ;;  %v31587_v50 = vand.u32 4294901760, %v31585_v23 }
  0xda   :  { %24353 = vmatmul.mubr.f32.gmra.mxu0 %v31577_v43  ;;  %v31588_v43 = vand.u32 4294901760, %v31586_v12 }
  0xdb   :  { %24355 = vmatprep.mubr.f32.mxu0 %v31578_v60  ;;  %v31589_v60 = vld [vmem:[#allocation47_spill] sm:$0xff] }
  0xdc   :  { %24477 = vmatmul.mubr.f32.gmra.mxu1 %v31579_v25  ;;  %v31590_v25 = vld [vmem:[#allocation49_spill] sm:$0xff] }
  0xdd   :  { %24479 = vmatprep.mubr.f32.mxu1 %v31580_v0  ;;  %v31591_v0 = vand.u32 4294901760, %v31589_v60 }
  0xde   :  { %24356 = vmatmul.mubr.f32.gmra.mxu0 %v31581_v56  ;;  %v31592_v56 = vand.u32 4294901760, %v31590_v25 }
  0xdf   :  { %24358 = vmatprep.mubr.f32.mxu0 %v31582_v13 }
  0xe0   :  { %24480 = vmatmul.mubr.f32.gmra.mxu1 %v31583_v62  ;;  %v31593_v62 = vld [vmem:[#allocation51_spill] sm:$0xff] }
  0xe1   :  { %24482 = vmatprep.mubr.f32.mxu1 %v31584_v27  ;;  %v31594_v27 = vld [vmem:[#allocation53_spill] sm:$0xff] }
  0xe2   :  { %24359 = vmatmul.mubr.f32.gmra.mxu0 %v31585_v23  ;;  %v31596_v42 = vand.u32 4294901760, %v31594_v27 }
  0xe3   :  { %24361 = vmatprep.mubr.f32.mxu0 %v31586_v12  ;;  %v31595_v12 = vand.u32 4294901760, %v31593_v62 }
  0xe4   :  { %24483 = vmatmul.mubr.f32.gmra.mxu1 %v31587_v50 }
  0xe5   :  { %24485 = vmatprep.mubr.f32.mxu1 %v31588_v43 }
  0xe6   :  { %24362 = vmatmul.mubr.f32.gmra.mxu0 %v31589_v60 }
  0xe7   :  { %24364 = vmatprep.mubr.f32.mxu0 %v31590_v25 }
  0xe8   :  { %24486 = vmatmul.mubr.f32.gmra.mxu1 %v31591_v0 }
  0xe9   :  { %24488 = vmatprep.mubr.f32.mxu1 %v31592_v56  ;;  %v31598_v56 = vld [vmem:[#allocation57_spill] sm:$0xff] }
  0xea   :  { %v24094_v13 = vpop.f32.mrf.mxu0  ;;  %24365 = vmatmul.mubr.f32.gmra.mxu0 %v31593_v62 }
  0xeb   :  { %24367 = vmatprep.mubr.f32.mxu0 %v31594_v27  ;;  %v24218_v50 = vpop.f32.mrf.mxu1 }
  0xec   :  { %v443_v23 = vpop.f32.mrf.mxu0  ;;  %24489 = vmatmul.mubr.f32.gmra.mxu1 %v31595_v12  ;;  %v27828_v43 = vadd.f32 %v24218_v50, %v24094_v13  ;;  %v31600_v13 = vand.u32 4294901760, %v31598_v56  ;;  %v31601_v50 = vld [vmem:[#allocation59_spill] sm:$0xff] }
  0xed   :  { %24491 = vmatprep.mubr.f32.mxu1 %v31596_v42  ;;  %v1314_v0 = vpop.f32.mrf.mxu1  ;;  %v31603_v24 = vand.u32 4294901760, %v31601_v50 }
  0xee   :  { %v24097_v60 = vpop.f32.mrf.mxu0  ;;  %24368 = vmatmul.mubr.f32.gmra.mxu0 %v31597_v2  ;;  %v27833_v25 = vadd.f32 %v1314_v0, %v443_v23  ;;  %v31602_v23 = vld [vmem:[#allocation61_spill] sm:$0xff] }
  0xef   :  { %24370 = vmatprep.mubr.f32.mxu0 %v31598_v56 }
  0xf0   :  { %v463_v15 = vpop.f32.mrf.mxu0  ;;  %v24221_v58 = vpop.f32.mrf.mxu1  ;;  %24492 = vmatmul.mubr.f32.gmra.mxu1 %v31599_v34  ;;  %v31604_v34 = vand.u32 4294901760, %v31602_v23 }
  0xf1   :  { %v27838_v62 = vadd.f32 %v24221_v58, %v24097_v60  ;;  %24494 = vmatprep.mubr.f32.mxu1 %v31600_v13 }
  0xf2   :  { %v24100_v27 = vpop.f32.mrf.mxu0  ;;  %v1326_v42 = vpop.f32.mrf.mxu1  ;;  %24371 = vmatmul.mubr.f32.gmra.mxu0 %v31601_v50 }
  0xf3   :  { %v27843_v12 = vadd.f32 %v1326_v42, %v463_v15  ;;  %24373 = vmatprep.mubr.f32.mxu0 %v31602_v23  ;;  %v31605_v42 = vand.u32 4294901760, %v27040_v45 }
  0xf4   :  { %v483_v0 = vpop.f32.mrf.mxu0  ;;  %v24224_v61 = vpop.f32.mrf.mxu1  ;;  %24495 = vmatmul.mubr.f32.gmra.mxu1 %v31603_v24  ;;  %v31606_v24 = vand.u32 4294901760, %v27053_v52 }
  0xf5   :  { %v27848_v2 = vadd.f32 %v24224_v61, %v24100_v27  ;;  %24497 = vmatprep.mubr.f32.mxu1 %v31604_v34 }
  0xf6   :  { %v24103_v58 = vpop.f32.mrf.mxu0  ;;  %v1338_v60 = vpop.f32.mrf.mxu1  ;;  %24374 = vmatmul.mubr.f32.gmra.mxu0 %v27040_v45 }
  0xf7   :  { %v27853_v56 = vadd.f32 %v1338_v60, %v483_v0  ;;  %24376 = vmatprep.mubr.f32.mxu0 %v27053_v52  ;;  %v31607_v60 = vand.u32 4294901760, %v27075_v29 }
  0xf8   :  { %v503_v15 = vpop.f32.mrf.mxu0  ;;  %v24227_v13 = vpop.f32.mrf.mxu1  ;;  %24498 = vmatmul.mubr.f32.gmra.mxu1 %v31605_v42  ;;  %v31609_v42 = vld [vmem:[#allocation68_spill] sm:$0xff] }
  0xf9   :  { %v27858_v50 = vadd.f32 %v24227_v13, %v24103_v58  ;;  %24500 = vmatprep.mubr.f32.mxu1 %v31606_v24  ;;  %v31608_v58 = vand.u32 4294901760, %v27083_v9  ;;  %v31610_v63 = vand.u32 4294901760, %v31609_v42 }
  0xfa   :  { %v24106_v61 = vpop.f32.mrf.mxu0  ;;  %v1350_v27 = vpop.f32.mrf.mxu1  ;;  %24377 = vmatmul.mubr.f32.gmra.mxu0 %v27075_v29 }
  0xfb   :  { %v27863_v23 = vadd.f32 %v1350_v27, %v503_v15  ;;  %24379 = vmatprep.mubr.f32.mxu0 %v27083_v9 }
  0xfc   :  { %v523_v0 = vpop.f32.mrf.mxu0  ;;  %v24230_v34 = vpop.f32.mrf.mxu1  ;;  %24501 = vmatmul.mubr.f32.gmra.mxu1 %v31607_v60 }
  0xfd   :  { %v27868_v45 = vadd.f32 %v24230_v34, %v24106_v61  ;;  %24503 = vmatprep.mubr.f32.mxu1 %v31608_v58  ;;  %v31611_v61 = vand.u32 4294901760, %v27092_v26 }
  0xfe   :  { %v24109_v52 = vpop.f32.mrf.mxu0  ;;  %v1362_v13 = vpop.f32.mrf.mxu1  ;;  %24380 = vmatmul.mubr.f32.gmra.mxu0 %v31609_v42 }
  0xff   :  { %v27873_v24 = vadd.f32 %v1362_v13, %v523_v0  ;;  %24382 = vmatprep.mubr.f32.mxu0 %v27092_v26  ;;  %v31612_v0 = vld [vmem:[#allocation71_spill] sm:$0xff] }
 0x100   :  { %v543_v15 = vpop.f32.mrf.mxu0  ;;  %v24233_v27 = vpop.f32.mrf.mxu1  ;;  %24504 = vmatmul.mubr.f32.gmra.mxu1 %v31610_v63  ;;  %v31614_v63 = vand.u32 4294901760, %v31612_v0 }
 0x101   :  { %v27878_v29 = vadd.f32 %v24233_v27, %v24109_v52  ;;  %24506 = vmatprep.mubr.f32.mxu1 %v31611_v61 }
 0x102   :  { %v24112_v9 = vpop.f32.mrf.mxu0  ;;  %v1374_v34 = vpop.f32.mrf.mxu1  ;;  %24383 = vmatmul.mubr.f32.gmra.mxu0 %v27121_v33 }
 0x103   :  { %v27883_v60 = vadd.f32 %v1374_v34, %v543_v15  ;;  %24385 = vmatprep.mubr.f32.mxu0 %v31612_v0  ;;  %v31615_v34 = vand.u32 4294901760, %v27156_v32 }
 0x104   :  { %v563_v58 = vpop.f32.mrf.mxu0  ;;  %v24236_v13 = vpop.f32.mrf.mxu1  ;;  %24507 = vmatmul.mubr.f32.gmra.mxu1 %v31613_v37  ;;  %v31616_v37 = vand.u32 4294901760, %v27163_v14 }
 0x105   :  { %v27888_v42 = vadd.f32 %v24236_v13, %v24112_v9  ;;  %24509 = vmatprep.mubr.f32.mxu1 %v31614_v63 }
 0x106   :  { %v24115_v26 = vpop.f32.mrf.mxu0  ;;  %v1386_v52 = vpop.f32.mrf.mxu1  ;;  %24386 = vmatmul.mubr.f32.gmra.mxu0 %v27156_v32 }
 0x107   :  { %v27893_v27 = vadd.f32 %v1386_v52, %v563_v58  ;;  %24388 = vmatprep.mubr.f32.mxu0 %v27163_v14  ;;  %v31617_v52 = vand.u32 4294901760, %v27181_v57 }
 0x108   :  { %v583_v15 = vpop.f32.mrf.mxu0  ;;  %v24239_v61 = vpop.f32.mrf.mxu1  ;;  %24510 = vmatmul.mubr.f32.gmra.mxu1 %v31615_v34 }
 0x109   :  { %v27898_v33 = vadd.f32 %v24239_v61, %v24115_v26  ;;  %24512 = vmatprep.mubr.f32.mxu1 %v31616_v37  ;;  %v31618_v26 = vand.u32 4294901760, %v27188_v19 }
 0x10a   :  { %v24118_v9 = vpop.f32.mrf.mxu0  ;;  %v1398_v0 = vpop.f32.mrf.mxu1  ;;  %24389 = vmatmul.mubr.f32.gmra.mxu0 %v27181_v57 }
 0x10b   :  { %v27903_v13 = vadd.f32 %v1398_v0, %v583_v15  ;;  %24391 = vmatprep.mubr.f32.mxu0 %v27188_v19  ;;  %v31619_v0 = vand.u32 4294901760, %v27196_v46 }
 0x10c   :  { %v603_v58 = vpop.f32.mrf.mxu0  ;;  %v24242_v63 = vpop.f32.mrf.mxu1  ;;  %24513 = vmatmul.mubr.f32.gmra.mxu1 %v31617_v52 }
 0x10d   :  { %v27908_v32 = vadd.f32 %v24242_v63, %v24118_v9  ;;  %24515 = vmatprep.mubr.f32.mxu1 %v31618_v26  ;;  %v31620_v9 = vand.u32 4294901760, %v27215_v48 }
 0x10e   :  { %v24121_v14 = vpop.f32.mrf.mxu0  ;;  %v1410_v61 = vpop.f32.mrf.mxu1  ;;  %24392 = vmatmul.mubr.f32.gmra.mxu0 %v27196_v46 }
 0x10f   :  { %v27913_v34 = vadd.f32 %v1410_v61, %v603_v58  ;;  %24394 = vmatprep.mubr.f32.mxu0 %v27215_v48  ;;  %v31621_v58 = vld [vmem:[#allocation80_spill] sm:$0xff] }
 0x110   :  { %v623_v15 = vpop.f32.mrf.mxu0  ;;  %v24245_v37 = vpop.f32.mrf.mxu1  ;;  %24516 = vmatmul.mubr.f32.gmra.mxu1 %v31619_v0  ;;  %v31624_v0 = vld [vmem:[#allocation84_spill] sm:$0xff] }
 0x111   :  { %v27918_v57 = vadd.f32 %v24245_v37, %v24121_v14  ;;  %24518 = vmatprep.mubr.f32.mxu1 %v31620_v9  ;;  %v31623_v14 = vand.u32 4294901760, %v31621_v58  ;;  %v31626_v22 = vand.u32 4294901760, %v31624_v0 }
 0x112   :  { %v24124_v19 = vpop.f32.mrf.mxu0  ;;  %v1422_v63 = vpop.f32.mrf.mxu1  ;;  %24395 = vmatmul.mubr.f32.gmra.mxu0 %v27221_v17 }
 0x113   :  { %v27923_v52 = vadd.f32 %v1422_v63, %v623_v15  ;;  %24397 = vmatprep.mubr.f32.mxu0 %v31621_v58  ;;  %v31625_v15 = vld [vmem:[#allocation85_spill] sm:$0xff] }
 0x114   :  { %v643_v26 = vpop.f32.mrf.mxu0  ;;  %v24248_v61 = vpop.f32.mrf.mxu1  ;;  %24519 = vmatmul.mubr.f32.gmra.mxu1 %v31622_v53  ;;  %v31627_v53 = vand.u32 4294901760, %v31625_v15 }
 0x115   :  { %v27928_v46 = vadd.f32 %v24248_v61, %v24124_v19  ;;  %24521 = vmatprep.mubr.f32.mxu1 %v31623_v14  ;;  %v31628_v61 = vld [vmem:[#allocation87_spill] sm:$0xff] }
 0x116   :  { %v24127_v48 = vpop.f32.mrf.mxu0  ;;  %v1434_v37 = vpop.f32.mrf.mxu1  ;;  %24398 = vmatmul.mubr.f32.gmra.mxu0 %v31624_v0  ;;  %v31630_v39 = vand.u32 4294901760, %v31628_v61 }
 0x117   :  { %v27933_v9 = vadd.f32 %v1434_v37, %v643_v26  ;;  %24400 = vmatprep.mubr.f32.mxu0 %v31625_v15  ;;  %v31629_v26 = vld [vmem:[#allocation89_spill] sm:$0xff]  ;;  %v31633_v15 = vld [vmem:[#allocation91_spill] sm:$0xff] }
 0x118   :  { %v663_v63 = vpop.f32.mrf.mxu0  ;;  %v24251_v11 = vpop.f32.mrf.mxu1  ;;  %24522 = vmatmul.mubr.f32.gmra.mxu1 %v31626_v22  ;;  %v31632_v22 = vand.u32 4294901760, %v31629_v26  ;;  %v31636_v8 = vand.u32 4294901760, %v31633_v15 }
 0x119   :  { %v27938_v17 = vadd.f32 %v24251_v11, %v24127_v48  ;;  %24524 = vmatprep.mubr.f32.mxu1 %v31627_v53 }
 0x11a   :  { %v24130_v19 = vpop.f32.mrf.mxu0  ;;  %v1446_v58 = vpop.f32.mrf.mxu1  ;;  %24401 = vmatmul.mubr.f32.gmra.mxu0 %v31628_v61 }
 0x11b   :  { %v27943_v14 = vadd.f32 %v1446_v58, %v663_v63  ;;  %24403 = vmatprep.mubr.f32.mxu0 %v31629_v26  ;;  %v31635_v63 = vld [vmem:[#allocation94_spill] sm:$0xff]  ;;  %v31639_v26 = vld [vmem:[#allocation95_spill] sm:$0xff] }
 0x11c   :  { %v683_v37 = vpop.f32.mrf.mxu0  ;;  %v24254_v10 = vpop.f32.mrf.mxu1  ;;  %24525 = vmatmul.mubr.f32.gmra.mxu1 %v31630_v39  ;;  %v31638_v39 = vand.u32 4294901760, %v31635_v63 }
 0x11d   :  { %v27948_v0 = vadd.f32 %v24254_v10, %v24130_v19  ;;  %24527 = vmatprep.mubr.f32.mxu1 %v31632_v22 }
 0x11e   :  { %v24133_v11 = vpop.f32.mrf.mxu0  ;;  %v1458_v48 = vpop.f32.mrf.mxu1  ;;  %24404 = vmatmul.mubr.f32.gmra.mxu0 %v31633_v15 }
 0x11f   :  { %31631 = vst [vmem:[#allocation16_spill] sm:$0xff] %v27948_v0  ;;  %v27953_v53 = vadd.f32 %v1458_v48, %v683_v37  ;;  %24406 = vmatprep.mubr.f32.mxu0 %v31635_v63  ;;  %v31641_v37 = vld [vmem:[#allocation98_spill] sm:$0xff]  ;;  %v31642_v0 = vand.u32 4294901760, %v31639_v26  ;;  %v31645_v63 = vld [vmem:[#allocation99_spill] sm:$0xff] }
 0x120   :  { %v703_v58 = vpop.f32.mrf.mxu0  ;;  %v24257_v16 = vpop.f32.mrf.mxu1  ;;  %24528 = vmatmul.mubr.f32.gmra.mxu1 %v31636_v8  ;;  %v31644_v8 = vand.u32 4294901760, %v31641_v37 }
 0x121   :  { %31634 = vst [vmem:[#allocation18_spill] sm:$0xff] %v27953_v53  ;;  %v27958_v61 = vadd.f32 %v24257_v16, %v24133_v11  ;;  %24530 = vmatprep.mubr.f32.mxu1 %v31638_v39 }
 0x122   :  { %v24136_v10 = vpop.f32.mrf.mxu0  ;;  %v1470_v19 = vpop.f32.mrf.mxu1  ;;  %24407 = vmatmul.mubr.f32.gmra.mxu0 %v31639_v26 }
 0x123   :  { %31637 = vst [vmem:[#allocation20_spill] sm:$0xff] %v27958_v61  ;;  %v27963_v22 = vadd.f32 %v1470_v19, %v703_v58  ;;  %24409 = vmatprep.mubr.f32.mxu0 %v31641_v37  ;;  %v31647_v58 = vld [vmem:[#allocation100_spill] sm:$0xff]  ;;  %v31648_v61 = vand.u32 4294901760, %v31645_v63 }
 0x124   :  { %v723_v48 = vpop.f32.mrf.mxu0  ;;  %v24260_v53 = vpop.f32.mrf.mxu1  ;;  %24531 = vmatmul.mubr.f32.gmra.mxu1 %v31642_v0  ;;  %v31650_v0 = vand.u32 4294901760, %v31647_v58  ;;  %v31651_v37 = vld [vmem:[#allocation104_spill] sm:$0xff] }
 0x125   :  { %31640 = vst [vmem:[#allocation17_spill] sm:$0xff] %v27963_v22  ;;  %v27968_v15 = vadd.f32 %v24260_v53, %v24136_v10  ;;  %24533 = vmatprep.mubr.f32.mxu1 %v31644_v8 }
 0x126   :  { %v24139_v16 = vpop.f32.mrf.mxu0  ;;  %v1482_v11 = vpop.f32.mrf.mxu1  ;;  %24410 = vmatmul.mubr.f32.gmra.mxu0 %v31645_v63 }
 0x127   :  { %31643 = vst [vmem:[#allocation19_spill] sm:$0xff] %v27968_v15  ;;  %v27973_v39 = vadd.f32 %v1482_v11, %v723_v48  ;;  %24412 = vmatprep.mubr.f32.mxu0 %v31647_v58  ;;  %v31653_v48 = vld [vmem:[#allocation105_spill] sm:$0xff]  ;;  %v31654_v15 = vand.u32 4294901760, %v31651_v37  ;;  %v31657_v58 = vld [vmem:[#allocation107_spill] sm:$0xff] }
 0x128   :  { %v743_v19 = vpop.f32.mrf.mxu0  ;;  %v24263_v22 = vpop.f32.mrf.mxu1  ;;  %24534 = vmatmul.mubr.f32.gmra.mxu1 %v31648_v61  ;;  %v31656_v61 = vand.u32 4294901760, %v31653_v48 }
 0x129   :  { %31646 = vst [vmem:[#allocation11_spill] sm:$0xff] %v27973_v39  ;;  %v27978_v26 = vadd.f32 %v24263_v22, %v24139_v16  ;;  %24536 = vmatprep.mubr.f32.mxu1 %v31650_v0 }
 0x12a   :  { %v24142_v53 = vpop.f32.mrf.mxu0  ;;  %v1494_v10 = vpop.f32.mrf.mxu1  ;;  %24413 = vmatmul.mubr.f32.gmra.mxu0 %v31651_v37 }
 0x12b   :  { %31649 = vst [vmem:[#allocation24_spill] sm:$0xff] %v27978_v26  ;;  %v27983_v8 = vadd.f32 %v1494_v10, %v743_v19  ;;  %24415 = vmatprep.mubr.f32.mxu0 %v31653_v48  ;;  %v31659_v19 = vld [vmem:[#allocation109_spill] sm:$0xff]  ;;  %v31660_v26 = vand.u32 4294901760, %v31657_v58  ;;  %v31662_v48 = vld [vmem:[#allocation111_spill] sm:$0xff] }
 0x12c   :  { %v763_v11 = vpop.f32.mrf.mxu0  ;;  %v24266_v39 = vpop.f32.mrf.mxu1  ;;  %24537 = vmatmul.mubr.f32.gmra.mxu1 %v31654_v15  ;;  %v31661_v15 = vand.u32 4294901760, %v31659_v19 }
 0x12d   :  { %31652 = vst [vmem:[#allocation12_spill] sm:$0xff] %v27983_v8  ;;  %v27988_v63 = vadd.f32 %v24266_v39, %v24142_v53  ;;  %24539 = vmatprep.mubr.f32.mxu1 %v31656_v61 }
 0x12e   :  { %v24145_v22 = vpop.f32.mrf.mxu0  ;;  %v1506_v16 = vpop.f32.mrf.mxu1  ;;  %24416 = vmatmul.mubr.f32.gmra.mxu0 %v31657_v58 }
 0x12f   :  { %31655 = vst [vmem:[#allocation25_spill] sm:$0xff] %v27988_v63  ;;  %v27993_v0 = vadd.f32 %v1506_v16, %v763_v11  ;;  %24418 = vmatprep.mubr.f32.mxu0 %v31659_v19  ;;  %v31663_v11 = vld [vmem:[#allocation113_spill] sm:$0xff]  ;;  %v31664_v63 = vand.u32 4294901760, %v31662_v48 }
 0x130   :  { %v783_v10 = vpop.f32.mrf.mxu0  ;;  %v24269_v8 = vpop.f32.mrf.mxu1  ;;  %24540 = vmatmul.mubr.f32.gmra.mxu1 %v31660_v26  ;;  %v31665_v26 = vand.u32 4294901760, %v31663_v11 }
 0x131   :  { %31658 = vst [vmem:[#allocation26_spill] sm:$0xff] %v27993_v0  ;;  %v27998_v37 = vadd.f32 %v24269_v8, %v24145_v22  ;;  %24542 = vmatprep.mubr.f32.mxu1 %v31661_v15 }
 0x132   :  { %v24148_v39 = vpop.f32.mrf.mxu0  ;;  %v1518_v53 = vpop.f32.mrf.mxu1  ;;  %24419 = vmatmul.mubr.f32.gmra.mxu0 %v31662_v48 }
 0x133   :  { %v28003_v61 = vadd.f32 %v1518_v53, %v783_v10  ;;  %24421 = vmatprep.mubr.f32.mxu0 %v31663_v11  ;;  %v31667_v53 = vand.u32 4294901760, %v27466_v38  ;;  %v31669_v11 = vld [vmem:[#allocation117_spill] sm:$0xff] }
 0x134   :  { %v803_v16 = vpop.f32.mrf.mxu0  ;;  %v24272_v0 = vpop.f32.mrf.mxu1  ;;  %24543 = vmatmul.mubr.f32.gmra.mxu1 %v31664_v63  ;;  %v31668_v63 = vand.u32 4294901760, %v27477_v18 }
 0x135   :  { %v28008_v58 = vadd.f32 %v24272_v0, %v24148_v39  ;;  %24545 = vmatprep.mubr.f32.mxu1 %v31665_v26 }
 0x136   :  { %v24151_v8 = vpop.f32.mrf.mxu0  ;;  %v1530_v22 = vpop.f32.mrf.mxu1  ;;  %24422 = vmatmul.mubr.f32.gmra.mxu0 %v27466_v38 }
 0x137   :  { %v28013_v19 = vadd.f32 %v1530_v22, %v803_v16  ;;  %24424 = vmatprep.mubr.f32.mxu0 %v27477_v18 }
 0x138   :  { %v823_v10 = vpop.f32.mrf.mxu0  ;;  %v24275_v15 = vpop.f32.mrf.mxu1  ;;  %24546 = vmatmul.mubr.f32.gmra.mxu1 %v31667_v53 }
 0x139   :  { %31666 = vst [vmem:[#allocation29_spill] sm:$0xff] %v28013_v19  ;;  %v28018_v48 = vadd.f32 %v24275_v15, %v24151_v8  ;;  %24548 = vmatprep.mubr.f32.mxu1 %v31668_v63  ;;  %v31670_v19 = vand.u32 4294901760, %v31669_v11  ;;  %v31671_v8 = vand.u32 4294901760, %v27493_v1 }
 0x13a   :  { %v24154_v0 = vpop.f32.mrf.mxu0  ;;  %v1542_v39 = vpop.f32.mrf.mxu1  ;;  %24425 = vmatmul.mubr.f32.gmra.mxu0 %v31669_v11 }
 0x13b   :  { %v28023_v26 = vadd.f32 %v1542_v39, %v823_v10  ;;  %24427 = vmatprep.mubr.f32.mxu0 %v27493_v1  ;;  %v31672_v39 = vand.u32 4294901760, %v27507_v36 }
 0x13c   :  { %v843_v16 = vpop.f32.mrf.mxu0  ;;  %v24278_v22 = vpop.f32.mrf.mxu1  ;;  %24549 = vmatmul.mubr.f32.gmra.mxu1 %v31670_v19  ;;  %v31673_v19 = vand.u32 4294901760, %v27525_v41 }
 0x13d   :  { %v28028_v38 = vadd.f32 %v24278_v22, %v24154_v0  ;;  %24551 = vmatprep.mubr.f32.mxu1 %v31671_v8 }
 0x13e   :  { %v24157_v18 = vpop.f32.mrf.mxu0  ;;  %v1554_v15 = vpop.f32.mrf.mxu1  ;;  %24428 = vmatmul.mubr.f32.gmra.mxu0 %v27507_v36 }
 0x13f   :  { %v28033_v53 = vadd.f32 %v1554_v15, %v843_v16  ;;  %24430 = vmatprep.mubr.f32.mxu0 %v27525_v41  ;;  %v31674_v15 = vand.u32 4294901760, %v27530_v54 }
 0x140   :  { %v863_v10 = vpop.f32.mrf.mxu0  ;;  %v24281_v63 = vpop.f32.mrf.mxu1  ;;  %24552 = vmatmul.mubr.f32.gmra.mxu1 %v31672_v39 }
 0x141   :  { %v28038_v11 = vadd.f32 %v24281_v63, %v24157_v18  ;;  %24554 = vmatprep.mubr.f32.mxu1 %v31673_v19  ;;  %v31675_v18 = vand.u32 4294901760, %v27539_v5 }
 0x142   :  { %v24160_v1 = vpop.f32.mrf.mxu0  ;;  %v1566_v0 = vpop.f32.mrf.mxu1  ;;  %24431 = vmatmul.mubr.f32.gmra.mxu0 %v27530_v54 }
 0x143   :  { %v28043_v22 = vadd.f32 %v1566_v0, %v863_v10  ;;  %24433 = vmatprep.mubr.f32.mxu0 %v27539_v5  ;;  %v31676_v0 = vand.u32 4294901760, %v27561_v40 }
 0x144   :  { %v883_v16 = vpop.f32.mrf.mxu0  ;;  %v24284_v8 = vpop.f32.mrf.mxu1  ;;  %24555 = vmatmul.mubr.f32.gmra.mxu1 %v31674_v15 }
 0x145   :  { %v28048_v36 = vadd.f32 %v24284_v8, %v24160_v1  ;;  %24557 = vmatprep.mubr.f32.mxu1 %v31675_v18  ;;  %v31677_v1 = vand.u32 4294901760, %v27572_v44 }
 0x146   :  { %v24163_v41 = vpop.f32.mrf.mxu0  ;;  %v1578_v63 = vpop.f32.mrf.mxu1  ;;  %24434 = vmatmul.mubr.f32.gmra.mxu0 %v27561_v40 }
 0x147   :  { %v28053_v39 = vadd.f32 %v1578_v63, %v883_v16  ;;  %24436 = vmatprep.mubr.f32.mxu0 %v27572_v44  ;;  %v31678_v63 = vand.u32 4294901760, %v27587_v51 }
 0x148   :  { %v903_v10 = vpop.f32.mrf.mxu0  ;;  %v24287_v19 = vpop.f32.mrf.mxu1  ;;  %24558 = vmatmul.mubr.f32.gmra.mxu1 %v31676_v0 }
 0x149   :  { %v28058_v54 = vadd.f32 %v24287_v19, %v24163_v41  ;;  %24560 = vmatprep.mubr.f32.mxu1 %v31677_v1  ;;  %v31679_v41 = vand.u32 4294901760, %v27598_v49 }
 0x14a   :  { %v24166_v5 = vpop.f32.mrf.mxu0  ;;  %v1590_v8 = vpop.f32.mrf.mxu1  ;;  %24437 = vmatmul.mubr.f32.gmra.mxu0 %v27587_v51 }
 0x14b   :  { %v28063_v15 = vadd.f32 %v1590_v8, %v903_v10  ;;  %24439 = vmatprep.mubr.f32.mxu0 %v27598_v49  ;;  %v31681_v8 = vand.u32 4294901760, %v27604_v47 }
 0x14c   :  { %v923_v16 = vpop.f32.mrf.mxu0  ;;  %v24290_v18 = vpop.f32.mrf.mxu1  ;;  %24561 = vmatmul.mubr.f32.gmra.mxu1 %v31678_v63 }
 0x14d   :  { %v28068_v40 = vadd.f32 %v24290_v18, %v24166_v5  ;;  %24563 = vmatprep.mubr.f32.mxu1 %v31679_v41  ;;  %v31682_v5 = vand.u32 4294901760, %v27615_v31 }
 0x14e   :  { %v24169_v44 = vpop.f32.mrf.mxu0  ;;  %v1602_v19 = vpop.f32.mrf.mxu1  ;;  %24440 = vmatmul.mubr.f32.gmra.mxu0 %v27604_v47 }
 0x14f   :  { %v28073_v0 = vadd.f32 %v1602_v19, %v923_v16  ;;  %24442 = vmatprep.mubr.f32.mxu0 %v27615_v31  ;;  %v31684_v19 = vand.u32 4294901760, %v27629_v35 }
 0x150   :  { %v943_v10 = vpop.f32.mrf.mxu0  ;;  %v24293_v1 = vpop.f32.mrf.mxu1  ;;  %24564 = vmatmul.mubr.f32.gmra.mxu1 %v31681_v8 }
 0x151   :  { %31680 = vst [vmem:[#allocation30_spill] sm:$0xff] %v28073_v0  ;;  %v28078_v51 = vadd.f32 %v24293_v1, %v24169_v44  ;;  %24566 = vmatprep.mubr.f32.mxu1 %v31682_v5  ;;  %v31685_v44 = vand.u32 4294901760, %v27632_v20  ;;  %v31722_v0 = vld [vmem:[#allocation43_spill] sm:$0xff] }
 0x152   :  { %v24172_v49 = vpop.f32.mrf.mxu0  ;;  %v1614_v18 = vpop.f32.mrf.mxu1  ;;  %24443 = vmatmul.mubr.f32.gmra.mxu0 %v27629_v35 }
 0x153   :  { %v28083_v63 = vadd.f32 %v1614_v18, %v943_v10  ;;  %24445 = vmatprep.mubr.f32.mxu0 %v27632_v20  ;;  %v31687_v18 = vand.u32 4294901760, %v27657_v3 }
 0x154   :  { %v963_v16 = vpop.f32.mrf.mxu0  ;;  %v24296_v41 = vpop.f32.mrf.mxu1  ;;  %24567 = vmatmul.mubr.f32.gmra.mxu1 %v31684_v19 }
 0x155   :  { %31683 = vst [vmem:[#allocation34_spill] sm:$0xff] %v28083_v63  ;;  %v28088_v47 = vadd.f32 %v24296_v41, %v24172_v49  ;;  %24569 = vmatprep.mubr.f32.mxu1 %v31685_v44  ;;  %v31688_v49 = vand.u32 4294901760, %v27663_v21  ;;  %v31715_v63 = vld [vmem:[#allocation33_spill] sm:$0xff] }
 0x156   :  { %v24175_v31 = vpop.f32.mrf.mxu0  ;;  %v1626_v1 = vpop.f32.mrf.mxu1  ;;  %24446 = vmatmul.mubr.f32.gmra.mxu0 %v27657_v3 }
 0x157   :  { %v28093_v8 = vadd.f32 %v1626_v1, %v963_v16  ;;  %24448 = vmatprep.mubr.f32.mxu0 %v27663_v21  ;;  %v31690_v1 = vand.u32 4294901760, %v27684_v7 }
 0x158   :  { %v983_v10 = vpop.f32.mrf.mxu0  ;;  %v24299_v5 = vpop.f32.mrf.mxu1  ;;  %24570 = vmatmul.mubr.f32.gmra.mxu1 %v31687_v18 }
 0x159   :  { %31686 = vst [vmem:[#allocation35_spill] sm:$0xff] %v28093_v8  ;;  %v28098_v35 = vadd.f32 %v24299_v5, %v24175_v31  ;;  %24572 = vmatprep.mubr.f32.mxu1 %v31688_v49  ;;  %v31691_v31 = vand.u32 4294901760, %v27689_v6  ;;  %v31712_v8 = vld [vmem:[#allocation31_spill] sm:$0xff] }
 0x15a   :  { %v24178_v20 = vpop.f32.mrf.mxu0  ;;  %v1638_v41 = vpop.f32.mrf.mxu1  ;;  %24449 = vmatmul.mubr.f32.gmra.mxu0 %v27684_v7 }
 0x15b   :  { %v28103_v19 = vadd.f32 %v1638_v41, %v983_v10  ;;  %24451 = vmatprep.mubr.f32.mxu0 %v27689_v6  ;;  %v31693_v41 = vand.u32 4294901760, %v27706_v4 }
 0x15c   :  { %v1003_v16 = vpop.f32.mrf.mxu0  ;;  %v24302_v44 = vpop.f32.mrf.mxu1  ;;  %24573 = vmatmul.mubr.f32.gmra.mxu1 %v31690_v1 }
 0x15d   :  { %31689 = vst [vmem:[#allocation36_spill] sm:$0xff] %v28103_v19  ;;  %v28108_v3 = vadd.f32 %v24302_v44, %v24178_v20  ;;  %24575 = vmatprep.mubr.f32.mxu1 %v31691_v31  ;;  %v31694_v20 = vand.u32 4294901760, %v27712_v55 }
 0x15e   :  { %v24181_v21 = vpop.f32.mrf.mxu0  ;;  %v1650_v5 = vpop.f32.mrf.mxu1  ;;  %24452 = vmatmul.mubr.f32.gmra.mxu0 %v27706_v4 }
 0x15f   :  { %v28113_v18 = vadd.f32 %v1650_v5, %v1003_v16  ;;  %24454 = vmatprep.mubr.f32.mxu0 %v27712_v55  ;;  %v31696_v5 = vand.u32 4294901760, %v27724_v30 }
 0x160   :  { %v1023_v10 = vpop.f32.mrf.mxu0  ;;  %v24305_v49 = vpop.f32.mrf.mxu1  ;;  %24576 = vmatmul.mubr.f32.gmra.mxu1 %v31693_v41 }
 0x161   :  { %31692 = vst [vmem:[#allocation40_spill] sm:$0xff] %v28113_v18  ;;  %v28118_v7 = vadd.f32 %v24305_v49, %v24181_v21  ;;  %24578 = vmatprep.mubr.f32.mxu1 %v31694_v20  ;;  %v31697_v21 = vand.u32 4294901760, %v27733_v28  ;;  %v31709_v18 = vld [vmem:[#allocation27_spill] sm:$0xff] }
 0x162   :  { %v24184_v6 = vpop.f32.mrf.mxu0  ;;  %v1662_v44 = vpop.f32.mrf.mxu1  ;;  %24455 = vmatmul.mubr.f32.gmra.mxu0 %v27724_v30 }
 0x163   :  { %v28123_v1 = vadd.f32 %v1662_v44, %v1023_v10  ;;  %24457 = vmatprep.mubr.f32.mxu0 %v27733_v28  ;;  %v31699_v10 = vld [vmem:[#allocation13_spill] sm:$0xff] }
 0x164   :  { %v1043_v16 = vpop.f32.mrf.mxu0  ;;  %v24308_v31 = vpop.f32.mrf.mxu1  ;;  %24579 = vmatmul.mubr.f32.gmra.mxu1 %v31696_v5 }
 0x165   :  { %31695 = vst [vmem:[#allocation41_spill] sm:$0xff] %v28123_v1  ;;  %v28128_v4 = vadd.f32 %v24308_v31, %v24184_v6  ;;  %24581 = vmatprep.mubr.f32.mxu1 %v31697_v21  ;;  %v31700_v1 = vand.u32 4294901760, %v27742_v59  ;;  %v31701_v31 = vld [vmem:[#allocation14_spill] sm:$0xff]  ;;  %v31703_v21 = vld [vmem:[#allocation15_spill] sm:$0xff] }
 0x166   :  { %v24187_v55 = vpop.f32.mrf.mxu0  ;;  %v1674_v49 = vpop.f32.mrf.mxu1  ;;  %24458 = vmatmul.mubr.f32.gmra.mxu0 %v27742_v59 }
 0x167   :  { %v28133_v41 = vadd.f32 %v1674_v49, %v1043_v16  ;;  %24588 = vmatprep.mubr.f32.mxu0 %v31699_v10 }
 0x168   :  { %v1063_v20 = vpop.f32.mrf.mxu0  ;;  %v24311_v44 = vpop.f32.mrf.mxu1  ;;  %24582 = vmatmul.mubr.f32.gmra.mxu1 %v31700_v1 }
 0x169   :  { %31698 = vst [vmem:[#allocation42_spill] sm:$0xff] %v28133_v41  ;;  %v28138_v30 = vadd.f32 %v24311_v44, %v24187_v55  ;;  %24712 = vmatprep.mubr.f32.mxu1 %v31699_v10  ;;  %v31704_v55 = vld [vmem:[#allocation21_spill] sm:$0xff]  ;;  %v31706_v44 = vld [vmem:[#allocation22_spill] sm:$0xff] }
 0x16a   :  { %v24190_v6 = vpop.f32.mrf.mxu0  ;;  %v1686_v28 = vpop.f32.mrf.mxu1  ;;  %24589 = vmatmul.mubr.f32.vlgmr.msra.gmra.mxu0 %v31701_v31 }
 0x16b   :  { %v28142_v5 = vadd.f32 %v1686_v28, %v1063_v20  ;;  %24591 = vmatprep.mubr.f32.mxu0 %v31703_v21 }
 0x16c   :  { %v1083_v16 = vpop.f32.mrf.mxu0  ;;  %v24314_v49 = vpop.f32.mrf.mxu1  ;;  %24713 = vmatmul.mubr.f32.vlgmr.msra.gmra.mxu1 %v31701_v31 }
 0x16d   :  { %31702 = vst [vmem:[#allocation44_spill] sm:$0xff] %v28142_v5  ;;  %v28146_v41 = vadd.f32 %v24314_v49, %v24190_v6  ;;  %24715 = vmatprep.mubr.f32.mxu1 %v31703_v21  ;;  %v31707_v49 = vld [vmem:[#allocation23_spill] sm:$0xff] }
 0x16e   :  { %v24193_v59 = vpop.f32.mrf.mxu0  ;;  %v1698_v1 = vpop.f32.mrf.mxu1  ;;  %24592 = vmatmul.mubr.f32.gmra.mxu0 %v31704_v55 }
 0x16f   :  { %v28150_v10 = vadd.f32 %v1698_v1, %v1083_v16  ;;  %24594 = vmatprep.mubr.f32.mxu0 %v31706_v44 }
 0x170   :  { %v1103_v20 = vpop.f32.mrf.mxu0  ;;  %v24317_v28 = vpop.f32.mrf.mxu1  ;;  %24716 = vmatmul.mubr.f32.gmra.mxu1 %v31704_v55 }
 0x171   :  { %31705 = vst [vmem:[#allocation47_spill] sm:$0xff] %v28150_v10  ;;  %v28154_v5 = vadd.f32 %v24317_v28, %v24193_v59  ;;  %24718 = vmatprep.mubr.f32.mxu1 %v31706_v44  ;;  %v31710_v28 = vld [vmem:[#allocation28_spill] sm:$0xff]  ;;  %v31718_v10 = vld [vmem:[#allocation38_spill] sm:$0xff] }
 0x172   :  { %v24196_v6 = vpop.f32.mrf.mxu0  ;;  %v1710_v31 = vpop.f32.mrf.mxu1  ;;  %24595 = vmatmul.mubr.f32.gmra.mxu0 %v31707_v49 }
 0x173   :  { %v28158_v21 = vadd.f32 %v1710_v31, %v1103_v20  ;;  %24597 = vmatprep.mubr.f32.mxu0 %v31709_v18 }
 0x174   :  { %v1123_v16 = vpop.f32.mrf.mxu0  ;;  %v24320_v1 = vpop.f32.mrf.mxu1  ;;  %24719 = vmatmul.mubr.f32.gmra.mxu1 %v31707_v49 }
 0x175   :  { %31708 = vst [vmem:[#allocation49_spill] sm:$0xff] %v28158_v21  ;;  %v28162_v19 = vadd.f32 %v24320_v1, %v24196_v6  ;;  %24721 = vmatprep.mubr.f32.mxu1 %v31709_v18  ;;  %v31713_v1 = vld [vmem:[#allocation32_spill] sm:$0xff] }
 0x176   :  { %v24199_v59 = vpop.f32.mrf.mxu0  ;;  %v1722_v55 = vpop.f32.mrf.mxu1  ;;  %24598 = vmatmul.mubr.f32.gmra.mxu0 %v31710_v28 }
 0x177   :  { %v28166_v44 = vadd.f32 %v1722_v55, %v1123_v16  ;;  %24600 = vmatprep.mubr.f32.mxu0 %v31712_v8 }
 0x178   :  { %v1143_v20 = vpop.f32.mrf.mxu0  ;;  %v24323_v31 = vpop.f32.mrf.mxu1  ;;  %24722 = vmatmul.mubr.f32.gmra.mxu1 %v31710_v28 }
 0x179   :  { %31711 = vst [vmem:[#allocation51_spill] sm:$0xff] %v28166_v44  ;;  %v28170_v21 = vadd.f32 %v24323_v31, %v24199_v59  ;;  %24724 = vmatprep.mubr.f32.mxu1 %v31712_v8  ;;  %v31716_v31 = vld [vmem:[#allocation37_spill] sm:$0xff] }
 0x17a   :  { %v24202_v6 = vpop.f32.mrf.mxu0  ;;  %v1734_v49 = vpop.f32.mrf.mxu1  ;;  %24601 = vmatmul.mubr.f32.gmra.mxu0 %v31713_v1 }
 0x17b   :  { %v28174_v18 = vadd.f32 %v1734_v49, %v1143_v20  ;;  %24603 = vmatprep.mubr.f32.mxu0 %v31715_v63 }
 0x17c   :  { %v1163_v16 = vpop.f32.mrf.mxu0  ;;  %v24326_v55 = vpop.f32.mrf.mxu1  ;;  %24725 = vmatmul.mubr.f32.gmra.mxu1 %v31713_v1 }
 0x17d   :  { %31714 = vst [vmem:[#allocation53_spill] sm:$0xff] %v28174_v18  ;;  %v28178_v44 = vadd.f32 %v24326_v55, %v24202_v6  ;;  %24727 = vmatprep.mubr.f32.mxu1 %v31715_v63  ;;  %v31720_v55 = vld [vmem:[#allocation39_spill] sm:$0xff] }
 0x17e   :  { %v24205_v59 = vpop.f32.mrf.mxu0  ;;  %v1746_v28 = vpop.f32.mrf.mxu1  ;;  %24604 = vmatmul.mubr.f32.gmra.mxu0 %v31716_v31 }
 0x17f   :  { %v28182_v8 = vadd.f32 %v1746_v28, %v1163_v16  ;;  %24606 = vmatprep.mubr.f32.mxu0 %v31718_v10 }
 0x180   :  { %v1183_v20 = vpop.f32.mrf.mxu0  ;;  %v24329_v49 = vpop.f32.mrf.mxu1  ;;  %24728 = vmatmul.mubr.f32.gmra.mxu1 %v31716_v31 }
 0x181   :  { %31717 = vst [vmem:[#allocation55_spill] sm:$0xff] %v28182_v8  ;;  %v28186_v18 = vadd.f32 %v24329_v49, %v24205_v59  ;;  %24730 = vmatprep.mubr.f32.mxu1 %v31718_v10  ;;  %v31724_v49 = vld [vmem:[#allocation45_spill] sm:$0xff] }
 0x182   :  { %v24208_v6 = vpop.f32.mrf.mxu0  ;;  %v1758_v1 = vpop.f32.mrf.mxu1  ;;  %24607 = vmatmul.mubr.f32.gmra.mxu0 %v31720_v55 }
 0x183   :  { %31719 = vst [vmem:[#allocation57_spill] sm:$0xff] %v28186_v18  ;;  %v28190_v63 = vadd.f32 %v1758_v1, %v1183_v20  ;;  %24609 = vmatprep.mubr.f32.mxu0 %v31722_v0  ;;  %v31726_v18 = vld [vmem:[#allocation46_spill] sm:$0xff] }
 0x184   :  { %v1203_v16 = vpop.f32.mrf.mxu0  ;;  %v24332_v28 = vpop.f32.mrf.mxu1  ;;  %24731 = vmatmul.mubr.f32.gmra.mxu1 %v31720_v55 }
 0x185   :  { %31721 = vst [vmem:[#allocation59_spill] sm:$0xff] %v28190_v63  ;;  %v28194_v8 = vadd.f32 %v24332_v28, %v24208_v6  ;;  %24733 = vmatprep.mubr.f32.mxu1 %v31722_v0  ;;  %v31728_v28 = vld [vmem:[#allocation48_spill] sm:$0xff] }
 0x186   :  { %v24211_v59 = vpop.f32.mrf.mxu0  ;;  %v1770_v31 = vpop.f32.mrf.mxu1  ;;  %24610 = vmatmul.mubr.f32.gmra.mxu0 %v31724_v49 }
 0x187   :  { %31723 = vst [vmem:[#allocation61_spill] sm:$0xff] %v28194_v8  ;;  %v28198_v10 = vadd.f32 %v1770_v31, %v1203_v16  ;;  %24612 = vmatprep.mubr.f32.mxu0 %v31726_v18  ;;  %v31730_v16 = vld [vmem:[#allocation50_spill] sm:$0xff] }
 0x188   :  { %v1223_v20 = vpop.f32.mrf.mxu0  ;;  %v24335_v1 = vpop.f32.mrf.mxu1  ;;  %24734 = vmatmul.mubr.f32.gmra.mxu1 %v31724_v49 }
 0x189   :  { %31725 = vst [vmem:[#allocation68_spill] sm:$0xff] %v28198_v10  ;;  %v28202_v63 = vadd.f32 %v24335_v1, %v24211_v59  ;;  %24736 = vmatprep.mubr.f32.mxu1 %v31726_v18 }
 0x18a   :  { %v1782_v6 = vpop.f32.mrf.mxu1  ;;  %v24342_v55 = vpop.f32.mrf.mxu0  ;;  %24613 = vmatmul.mubr.f32.gmra.mxu0 %v31728_v28 }
 0x18b   :  { %31727 = vst [vmem:[#allocation71_spill] sm:$0xff] %v28202_v63  ;;  %v28206_v0 = vadd.f32 %v1782_v6, %v1223_v20  ;;  %v1872_v8 = vadd.f32 %v24342_v55, %v27828_v43  ;;  %24615 = vmatprep.mubr.f32.mxu0 %v31730_v16  ;;  %v31731_v63 = vld [vmem:[#allocation52_spill] sm:$0xff]  ;;  %v31732_v43 = vld [vmem:[#allocation54_spill] sm:$0xff] }
 0x18c   :  { %v1864_v31 = vpop.f32.mrf.mxu0  ;;  %v24466_v10 = vpop.f32.mrf.mxu1  ;;  %24737 = vmatmul.mubr.f32.gmra.mxu1 %v31728_v28 }
 0x18d   :  { %31729 = vst [vmem:[#allocation80_spill] sm:$0xff] %v28206_v0  ;;  %v1865_v49 = vadd.f32 %v1864_v31, %v27833_v25  ;;  %v28212_v59 = vadd.f32 %v24466_v10, %v1872_v8  ;;  %24739 = vmatprep.mubr.f32.mxu1 %v31730_v16  ;;  %v31733_v16 = vld [vmem:[#allocation56_spill] sm:$0xff] }
 0x18e   :  { %v24345_v18 = vpop.f32.mrf.mxu0  ;;  %v2492_v1 = vpop.f32.mrf.mxu1  ;;  %24616 = vmatmul.mubr.f32.gmra.mxu0 %v31731_v63 }
 0x18f   :  { %v1886_v20 = vadd.f32 %v24345_v18, %v27838_v62  ;;  %v28217_v6 = vadd.f32 %v2492_v1, %v1865_v49  ;;  %24618 = vmatprep.mubr.f32.mxu0 %v31732_v43  ;;  %v31734_v49 = vld [vmem:[#allocation58_spill] sm:$0xff] }
 0x190   :  { %v1878_v55 = vpop.f32.mrf.mxu0  ;;  %v24469_v0 = vpop.f32.mrf.mxu1  ;;  %24740 = vmatmul.mubr.f32.gmra.mxu1 %v31731_v63 }
 0x191   :  { %v1879_v25 = vadd.f32 %v1878_v55, %v27843_v12  ;;  %v28222_v8 = vadd.f32 %v24469_v0, %v1886_v20  ;;  %24742 = vmatprep.mubr.f32.mxu1 %v31732_v43  ;;  %v31735_v43 = vld [vmem:[#allocation60_spill] sm:$0xff] }
 0x192   :  { %v24348_v10 = vpop.f32.mrf.mxu0  ;;  %v2508_v28 = vpop.f32.mrf.mxu1  ;;  %24619 = vmatmul.mubr.f32.gmra.mxu0 %v31733_v16 }
 0x193   :  { %v1900_v62 = vadd.f32 %v24348_v10, %v27848_v2  ;;  %v28227_v31 = vadd.f32 %v2508_v28, %v1879_v25  ;;  %24621 = vmatprep.mubr.f32.mxu0 %v31734_v49  ;;  %v31737_v25 = vld [vmem:[#allocation62_spill] sm:$0xff] }
 0x194   :  { %v1892_v18 = vpop.f32.mrf.mxu0  ;;  %v24472_v1 = vpop.f32.mrf.mxu1  ;;  %24743 = vmatmul.mubr.f32.gmra.mxu1 %v31733_v16 }
 0x195   :  { %v1893_v12 = vadd.f32 %v1892_v18, %v27853_v56  ;;  %v28232_v63 = vadd.f32 %v24472_v1, %v1900_v62  ;;  %24745 = vmatprep.mubr.f32.mxu1 %v31734_v49  ;;  %v31738_v18 = vld [vmem:[#allocation63_spill] sm:$0xff] }
 0x196   :  { %v24351_v0 = vpop.f32.mrf.mxu0  ;;  %v2524_v20 = vpop.f32.mrf.mxu1  ;;  %24622 = vmatmul.mubr.f32.gmra.mxu0 %v31735_v43 }
 0x197   :  { %v1914_v2 = vadd.f32 %v24351_v0, %v27858_v50  ;;  %v28237_v55 = vadd.f32 %v2524_v20, %v1893_v12  ;;  %24624 = vmatprep.mubr.f32.mxu0 %v31737_v25  ;;  %v31740_v12 = vld [vmem:[#allocation64_spill] sm:$0xff] }
 0x198   :  { %v1906_v10 = vpop.f32.mrf.mxu0  ;;  %v24475_v28 = vpop.f32.mrf.mxu1  ;;  %24746 = vmatmul.mubr.f32.gmra.mxu1 %v31735_v43 }
 0x199   :  { %31736 = vst [vmem:[#allocation84_spill] sm:$0xff] %v28237_v55  ;;  %v1907_v56 = vadd.f32 %v1906_v10, %v27863_v23  ;;  %v28242_v16 = vadd.f32 %v24475_v28, %v1914_v2  ;;  %24748 = vmatprep.mubr.f32.mxu1 %v31737_v25  ;;  %v31741_v10 = vld [vmem:[#allocation66_spill] sm:$0xff] }
 0x19a   :  { %v24354_v62 = vpop.f32.mrf.mxu0  ;;  %v2540_v49 = vpop.f32.mrf.mxu1  ;;  %24625 = vmatmul.mubr.f32.gmra.mxu0 %v31738_v18 }
 0x19b   :  { %v1928_v50 = vadd.f32 %v24354_v62, %v27868_v45  ;;  %v28247_v1 = vadd.f32 %v2540_v49, %v1907_v56  ;;  %24627 = vmatprep.mubr.f32.mxu0 %v31740_v12  ;;  %v31743_v56 = vld [vmem:[#allocation67_spill] sm:$0xff] }
 0x19c   :  { %v1920_v0 = vpop.f32.mrf.mxu0  ;;  %v24478_v20 = vpop.f32.mrf.mxu1  ;;  %24749 = vmatmul.mubr.f32.gmra.mxu1 %v31738_v18 }
 0x19d   :  { %31739 = vst [vmem:[#allocation85_spill] sm:$0xff] %v28247_v1  ;;  %v1921_v23 = vadd.f32 %v1920_v0, %v27873_v24  ;;  %v28252_v43 = vadd.f32 %v24478_v20, %v1928_v50  ;;  %24751 = vmatprep.mubr.f32.mxu1 %v31740_v12  ;;  %v31744_v0 = vld [vmem:[#allocation69_spill] sm:$0xff] }
 0x19e   :  { %v24357_v2 = vpop.f32.mrf.mxu0  ;;  %v2556_v25 = vpop.f32.mrf.mxu1  ;;  %24628 = vmatmul.mubr.f32.gmra.mxu0 %v31741_v10  ;;  %v31782_v1 = vld [vmem:[#allocation25_spill] sm:$0xff] }
 0x19f   :  { %v1942_v45 = vadd.f32 %v24357_v2, %v27878_v29  ;;  %v28257_v28 = vadd.f32 %v2556_v25, %v1921_v23  ;;  %24630 = vmatprep.mubr.f32.mxu0 %v31743_v56  ;;  %v31746_v23 = vld [vmem:[#allocation70_spill] sm:$0xff] }
 0x1a0   :  { %v1934_v62 = vpop.f32.mrf.mxu0  ;;  %v24481_v49 = vpop.f32.mrf.mxu1  ;;  %24752 = vmatmul.mubr.f32.gmra.mxu1 %v31741_v10 }
 0x1a1   :  { %31742 = vst [vmem:[#allocation87_spill] sm:$0xff] %v28257_v28  ;;  %v1935_v24 = vadd.f32 %v1934_v62, %v27883_v60  ;;  %v28262_v18 = vadd.f32 %v24481_v49, %v1942_v45  ;;  %24754 = vmatprep.mubr.f32.mxu1 %v31743_v56  ;;  %v31747_v62 = vld [vmem:[#allocation72_spill] sm:$0xff]  ;;  %v31772_v28 = vld [vmem:[#allocation19_spill] sm:$0xff] }
 0x1a2   :  { %v24360_v50 = vpop.f32.mrf.mxu0  ;;  %v2572_v12 = vpop.f32.mrf.mxu1  ;;  %24631 = vmatmul.mubr.f32.gmra.mxu0 %v31744_v0 }
 0x1a3   :  { %v1956_v29 = vadd.f32 %v24360_v50, %v27888_v42  ;;  %v28267_v20 = vadd.f32 %v2572_v12, %v1935_v24  ;;  %24633 = vmatprep.mubr.f32.mxu0 %v31746_v23  ;;  %v31749_v24 = vld [vmem:[#allocation73_spill] sm:$0xff] }
 0x1a4   :  { %v1948_v2 = vpop.f32.mrf.mxu0  ;;  %v24484_v25 = vpop.f32.mrf.mxu1  ;;  %24755 = vmatmul.mubr.f32.gmra.mxu1 %v31744_v0 }
 0x1a5   :  { %31745 = vst [vmem:[#allocation89_spill] sm:$0xff] %v28267_v20  ;;  %v1949_v60 = vadd.f32 %v1948_v2, %v27893_v27  ;;  %v28272_v10 = vadd.f32 %v24484_v25, %v1956_v29  ;;  %24757 = vmatprep.mubr.f32.mxu1 %v31746_v23  ;;  %v31750_v2 = vld [vmem:[#allocation74_spill] sm:$0xff] }
 0x1a6   :  { %v24363_v45 = vpop.f32.mrf.mxu0  ;;  %v2588_v56 = vpop.f32.mrf.mxu1  ;;  %24634 = vmatmul.mubr.f32.gmra.mxu0 %v31747_v62 }
 0x1a7   :  { %v1970_v42 = vadd.f32 %v24363_v45, %v27898_v33  ;;  %v28277_v49 = vadd.f32 %v2588_v56, %v1949_v60  ;;  %24636 = vmatprep.mubr.f32.mxu0 %v31749_v24  ;;  %v31752_v60 = vld [vmem:[#allocation75_spill] sm:$0xff] }
 0x1a8   :  { %v1962_v50 = vpop.f32.mrf.mxu0  ;;  %v24487_v12 = vpop.f32.mrf.mxu1  ;;  %24758 = vmatmul.mubr.f32.gmra.mxu1 %v31747_v62 }
 0x1a9   :  { %31748 = vst [vmem:[#allocation91_spill] sm:$0xff] %v28277_v49  ;;  %v1963_v27 = vadd.f32 %v1962_v50, %v27903_v13  ;;  %v28282_v0 = vadd.f32 %v24487_v12, %v1970_v42  ;;  %24760 = vmatprep.mubr.f32.mxu1 %v31749_v24  ;;  %v31753_v50 = vld [vmem:[#allocation76_spill] sm:$0xff] }
 0x1aa   :  { %v24366_v29 = vpop.f32.mrf.mxu0  ;;  %v2604_v23 = vpop.f32.mrf.mxu1  ;;  %24637 = vmatmul.mubr.f32.gmra.mxu0 %v31750_v2  ;;  %v31767_v49 = vld [vmem:[#allocation20_spill] sm:$0xff] }
 0x1ab   :  { %v1984_v33 = vadd.f32 %v24366_v29, %v27908_v32  ;;  %v28287_v25 = vadd.f32 %v2604_v23, %v1963_v27  ;;  %24639 = vmatprep.mubr.f32.mxu0 %v31752_v60  ;;  %v31754_v27 = vld [vmem:[#allocation77_spill] sm:$0xff] }
 0x1ac   :  { %v1976_v45 = vpop.f32.mrf.mxu0  ;;  %v24490_v56 = vpop.f32.mrf.mxu1  ;;  %24761 = vmatmul.mubr.f32.gmra.mxu1 %v31750_v2  ;;  %v31354_v2 = vmov 0.0  }
 0x1ad   :  { %31751 = vst [vmem:[#allocation94_spill] sm:$0xff] %v28287_v25  ;;  %v1977_v13 = vadd.f32 %v1976_v45, %v27913_v34  ;;  %v28292_v62 = vadd.f32 %v24490_v56, %v1984_v33  ;;  %24763 = vmatprep.mubr.f32.mxu1 %v31752_v60  ;;  %24832 = vmatprep.subr.mxu0 %v31354_v2  ;;  %v31755_v45 = vld [vmem:[#allocation78_spill] sm:$0xff] }
 0x1ae   :  { %v24369_v42 = vpop.f32.mrf.mxu0  ;;  %v2620_v24 = vpop.f32.mrf.mxu1  ;;  %24640 = vmatmul.mubr.f32.gmra.mxu0 %v31753_v50  ;;  %24839 = vmatprep.subr.mxu1 %v31354_v2 }
 0x1af   :  { %v1998_v32 = vadd.f32 %v24369_v42, %v27918_v57  ;;  %v28297_v12 = vadd.f32 %v2620_v24, %v1977_v13  ;;  %24642 = vmatprep.mubr.f32.mxu0 %v31754_v27  ;;  %v31757_v42 = vld [vmem:[#allocation79_spill] sm:$0xff] }
 0x1b0   :  { %v1990_v29 = vpop.f32.mrf.mxu0  ;;  %v24493_v23 = vpop.f32.mrf.mxu1  ;;  %24764 = vmatmul.mubr.f32.gmra.mxu1 %v31753_v50 }
 0x1b1   :  { %v1991_v34 = vadd.f32 %v1990_v29, %v27923_v52  ;;  %v28303_v33 = vadd.f32 %v24493_v23, %v1998_v32  ;;  %24766 = vmatprep.mubr.f32.mxu1 %v31754_v27  ;;  %v31758_v23 = vld [vmem:[#allocation81_spill] sm:$0xff] }
 0x1b2   :  { %v24372_v57 = vpop.f32.mrf.mxu0  ;;  %v2636_v60 = vpop.f32.mrf.mxu1  ;;  %24643 = vmatmul.mubr.f32.gmra.mxu0 %v31755_v45 }
 0x1b3   :  { %v2012_v56 = vadd.f32 %v24372_v57, %v27928_v46  ;;  %v28309_v13 = vadd.f32 %v2636_v60, %v1991_v34  ;;  %24645 = vmatprep.mubr.f32.mxu0 %v31757_v42  ;;  %v31760_v57 = vld [vmem:[#allocation82_spill] sm:$0xff] }
 0x1b4   :  { %v2004_v24 = vpop.f32.mrf.mxu0  ;;  %v24496_v50 = vpop.f32.mrf.mxu1  ;;  %24767 = vmatmul.mubr.f32.gmra.mxu1 %v31755_v45 }
 0x1b5   :  { %31756 = vst [vmem:[#allocation95_spill] sm:$0xff] %v28309_v13  ;;  %v2005_v52 = vadd.f32 %v2004_v24, %v27933_v9  ;;  %v28314_v32 = vadd.f32 %v24496_v50, %v2012_v56  ;;  %24769 = vmatprep.mubr.f32.mxu1 %v31757_v42  ;;  %v31761_v24 = vld [vmem:[#allocation83_spill] sm:$0xff]  ;;  %v31762_v50 = vld [vmem:[#allocation16_spill] sm:$0xff] }
 0x1b6   :  { %v24375_v27 = vpop.f32.mrf.mxu0  ;;  %v2652_v29 = vpop.f32.mrf.mxu1  ;;  %24646 = vmatmul.mubr.f32.gmra.mxu0 %v31758_v23 }
 0x1b7   :  { %v2026_v46 = vadd.f32 %v24375_v27, %v27938_v17  ;;  %v28319_v34 = vadd.f32 %v2652_v29, %v2005_v52  ;;  %24648 = vmatprep.mubr.f32.mxu0 %v31760_v57  ;;  %v31764_v27 = vld [vmem:[#allocation86_spill] sm:$0xff] }
 0x1b8   :  { %v2018_v60 = vpop.f32.mrf.mxu0  ;;  %v24499_v2 = vpop.f32.mrf.mxu1  ;;  %24770 = vmatmul.mubr.f32.gmra.mxu1 %v31758_v23  ;;  %v31765_v23 = vld [vmem:[#allocation18_spill] sm:$0xff] }
 0x1b9   :  { %31759 = vst [vmem:[#allocation98_spill] sm:$0xff] %v28319_v34  ;;  %v2019_v9 = vadd.f32 %v2018_v60, %v27943_v14  ;;  %v28324_v45 = vadd.f32 %v24499_v2, %v2026_v46  ;;  %24772 = vmatprep.mubr.f32.mxu1 %v31760_v57  ;;  %v31766_v60 = vld [vmem:[#allocation88_spill] sm:$0xff] }
 0x1ba   :  { %v24378_v56 = vpop.f32.mrf.mxu0  ;;  %v2668_v42 = vpop.f32.mrf.mxu1  ;;  %24649 = vmatmul.mubr.f32.gmra.mxu0 %v31761_v24 }
 0x1bb   :  { %v2040_v17 = vadd.f32 %v24378_v56, %v31762_v50  ;;  %v28329_v52 = vadd.f32 %v2668_v42, %v2019_v9  ;;  %24651 = vmatprep.mubr.f32.mxu0 %v31764_v27  ;;  %v31769_v42 = vld [vmem:[#allocation90_spill] sm:$0xff] }
 0x1bc   :  { %v2032_v29 = vpop.f32.mrf.mxu0  ;;  %v24502_v25 = vpop.f32.mrf.mxu1  ;;  %24773 = vmatmul.mubr.f32.gmra.mxu1 %v31761_v24  ;;  %v31770_v24 = vld [vmem:[#allocation17_spill] sm:$0xff] }
 0x1bd   :  { %31763 = vst [vmem:[#allocation99_spill] sm:$0xff] %v28329_v52  ;;  %v2033_v14 = vadd.f32 %v2032_v29, %v31765_v23  ;;  %v28334_v2 = vadd.f32 %v24502_v25, %v2040_v17  ;;  %24775 = vmatprep.mubr.f32.mxu1 %v31764_v27  ;;  %v31771_v23 = vld [vmem:[#allocation92_spill] sm:$0xff] }
 0x1be   :  { %v24381_v46 = vpop.f32.mrf.mxu0  ;;  %v2684_v57 = vpop.f32.mrf.mxu1  ;;  %24652 = vmatmul.mubr.f32.gmra.mxu0 %v31766_v60  ;;  %v31777_v52 = vld [vmem:[#allocation24_spill] sm:$0xff] }
 0x1bf   :  { %v2054_v56 = vadd.f32 %v24381_v46, %v31767_v49  ;;  %v28339_v9 = vadd.f32 %v2684_v57, %v2033_v14  ;;  %24654 = vmatprep.mubr.f32.mxu0 %v31769_v42  ;;  %v31774_v46 = vld [vmem:[#allocation93_spill] sm:$0xff] }
 0x1c0   :  { %v2046_v50 = vpop.f32.mrf.mxu0  ;;  %v24505_v20 = vpop.f32.mrf.mxu1  ;;  %24776 = vmatmul.mubr.f32.gmra.mxu1 %v31766_v60  ;;  %v31775_v60 = vld [vmem:[#allocation11_spill] sm:$0xff] }
 0x1c1   :  { %31768 = vst [vmem:[#allocation100_spill] sm:$0xff] %v28339_v9  ;;  %v2047_v29 = vadd.f32 %v2046_v50, %v31770_v24  ;;  %v28344_v25 = vadd.f32 %v24505_v20, %v2054_v56  ;;  %24778 = vmatprep.mubr.f32.mxu1 %v31769_v42  ;;  %v31776_v24 = vld [vmem:[#allocation96_spill] sm:$0xff] }
 0x1c2   :  { %v24384_v17 = vpop.f32.mrf.mxu0  ;;  %v2700_v27 = vpop.f32.mrf.mxu1  ;;  %24655 = vmatmul.mubr.f32.gmra.mxu0 %v31771_v23 }
 0x1c3   :  { %v2068_v49 = vadd.f32 %v24384_v17, %v31772_v28  ;;  %v28349_v14 = vadd.f32 %v2700_v27, %v2047_v29  ;;  %24657 = vmatprep.mubr.f32.mxu0 %v31774_v46  ;;  %v31779_v17 = vld [vmem:[#allocation97_spill] sm:$0xff] }
 0x1c4   :  { %v2060_v57 = vpop.f32.mrf.mxu0  ;;  %v24508_v9 = vpop.f32.mrf.mxu1  ;;  %24779 = vmatmul.mubr.f32.gmra.mxu1 %v31771_v23  ;;  %v31780_v23 = vld [vmem:[#allocation12_spill] sm:$0xff] }
 0x1c5   :  { %31773 = vst [vmem:[#allocation104_spill] sm:$0xff] %v28349_v14  ;;  %v2061_v50 = vadd.f32 %v2060_v57, %v31775_v60  ;;  %v28354_v20 = vadd.f32 %v24508_v9, %v2068_v49  ;;  %24781 = vmatprep.mubr.f32.mxu1 %v31774_v46  ;;  %v31781_v60 = vld [vmem:[#allocation101_spill] sm:$0xff] }
 0x1c6   :  { %v24387_v56 = vpop.f32.mrf.mxu0  ;;  %v2716_v42 = vpop.f32.mrf.mxu1  ;;  %24658 = vmatmul.mubr.f32.gmra.mxu0 %v31776_v24 }
 0x1c7   :  { %v2082_v28 = vadd.f32 %v24387_v56, %v31777_v52  ;;  %v28359_v29 = vadd.f32 %v2716_v42, %v2061_v50  ;;  %24660 = vmatprep.mubr.f32.mxu0 %v31779_v17  ;;  %v31784_v56 = vld [vmem:[#allocation102_spill] sm:$0xff] }
 0x1c8   :  { %v2074_v27 = vpop.f32.mrf.mxu0  ;;  %v24511_v14 = vpop.f32.mrf.mxu1  ;;  %24782 = vmatmul.mubr.f32.gmra.mxu1 %v31776_v24  ;;  %v31785_v24 = vld [vmem:[#allocation26_spill] sm:$0xff] }
 0x1c9   :  { %31778 = vst [vmem:[#allocation105_spill] sm:$0xff] %v28359_v29  ;;  %v2075_v57 = vadd.f32 %v2074_v27, %v31780_v23  ;;  %v28364_v9 = vadd.f32 %v24511_v14, %v2082_v28  ;;  %24784 = vmatprep.mubr.f32.mxu1 %v31779_v17  ;;  %v31786_v23 = vld [vmem:[#allocation103_spill] sm:$0xff] }
 0x1ca   :  { %v24390_v49 = vpop.f32.mrf.mxu0  ;;  %v2732_v46 = vpop.f32.mrf.mxu1  ;;  %24661 = vmatmul.mubr.f32.gmra.mxu0 %v31781_v60 }
 0x1cb   :  { %v2096_v52 = vadd.f32 %v24390_v49, %v31782_v1  ;;  %v28369_v50 = vadd.f32 %v2732_v46, %v2075_v57  ;;  %24663 = vmatprep.mubr.f32.mxu0 %v31784_v56  ;;  %v31787_v49 = vld [vmem:[#allocation106_spill] sm:$0xff] }
 0x1cc   :  { %v2088_v42 = vpop.f32.mrf.mxu0  ;;  %v24514_v29 = vpop.f32.mrf.mxu1  ;;  %24785 = vmatmul.mubr.f32.gmra.mxu1 %v31781_v60 }
 0x1cd   :  { %31783 = vst [vmem:[#allocation107_spill] sm:$0xff] %v28369_v50  ;;  %v2089_v27 = vadd.f32 %v2088_v42, %v31785_v24  ;;  %v28374_v14 = vadd.f32 %v24514_v29, %v2096_v52  ;;  %24787 = vmatprep.mubr.f32.mxu1 %v31784_v56  ;;  %v31788_v42 = vld [vmem:[#allocation108_spill] sm:$0xff] }
 0x1ce   :  { %v24393_v28 = vpop.f32.mrf.mxu0  ;;  %v2748_v17 = vpop.f32.mrf.mxu1  ;;  %24664 = vmatmul.mubr.f32.gmra.mxu0 %v31786_v23 }
 0x1cf   :  { %v2110_v1 = vadd.f32 %v24393_v28, %v27998_v37  ;;  %v28379_v57 = vadd.f32 %v2748_v17, %v2089_v27  ;;  %24666 = vmatprep.mubr.f32.mxu0 %v31787_v49  ;;  %v31790_v27 = vld [vmem:[#allocation110_spill] sm:$0xff] }
 0x1d0   :  { %v2102_v46 = vpop.f32.mrf.mxu0  ;;  %v24517_v50 = vpop.f32.mrf.mxu1  ;;  %24788 = vmatmul.mubr.f32.gmra.mxu1 %v31786_v23  ;;  %v31791_v23 = vld [vmem:[#allocation29_spill] sm:$0xff] }
 0x1d1   :  { %v2103_v60 = vadd.f32 %v2102_v46, %v28003_v61  ;;  %v28384_v29 = vadd.f32 %v24517_v50, %v2110_v1  ;;  %24790 = vmatprep.mubr.f32.mxu1 %v31787_v49  ;;  %v31792_v46 = vld [vmem:[#allocation112_spill] sm:$0xff] }
 0x1d2   :  { %v24396_v52 = vpop.f32.mrf.mxu0  ;;  %v2764_v56 = vpop.f32.mrf.mxu1  ;;  %24667 = vmatmul.mubr.f32.gmra.mxu0 %v31788_v42 }
 0x1d3   :  { %v2124_v37 = vadd.f32 %v24396_v52, %v28008_v58  ;;  %v28389_v24 = vadd.f32 %v2764_v56, %v2103_v60  ;;  %24669 = vmatprep.mubr.f32.mxu0 %v31790_v27  ;;  %v31794_v52 = vld [vmem:[#allocation114_spill] sm:$0xff] }
 0x1d4   :  { %v2116_v28 = vpop.f32.mrf.mxu0  ;;  %v24520_v17 = vpop.f32.mrf.mxu1  ;;  %24791 = vmatmul.mubr.f32.gmra.mxu1 %v31788_v42 }
 0x1d5   :  { %31789 = vst [vmem:[#allocation109_spill] sm:$0xff] %v28389_v24  ;;  %v2117_v61 = vadd.f32 %v2116_v28, %v31791_v23  ;;  %v28394_v50 = vadd.f32 %v24520_v17, %v2124_v37  ;;  %24793 = vmatprep.mubr.f32.mxu1 %v31790_v27  ;;  %v31795_v17 = vld [vmem:[#allocation115_spill] sm:$0xff] }
 0x1d6   :  { %v24399_v1 = vpop.f32.mrf.mxu0  ;;  %v2780_v49 = vpop.f32.mrf.mxu1  ;;  %24670 = vmatmul.mubr.f32.gmra.mxu0 %v31792_v46 }
 0x1d7   :  { %v2138_v58 = vadd.f32 %v24399_v1, %v28018_v48  ;;  %v28399_v60 = vadd.f32 %v2780_v49, %v2117_v61  ;;  %24672 = vmatprep.mubr.f32.mxu0 %v31794_v52  ;;  %v31797_v61 = vld [vmem:[#allocation116_spill] sm:$0xff] }
 0x1d8   :  { %v2130_v56 = vpop.f32.mrf.mxu0  ;;  %v24523_v34 = vpop.f32.mrf.mxu1  ;;  %24794 = vmatmul.mubr.f32.gmra.mxu1 %v31792_v46 }
 0x1d9   :  { %31793 = vst [vmem:[#allocation111_spill] sm:$0xff] %v28399_v60  ;;  %v2131_v42 = vadd.f32 %v2130_v56, %v28023_v26  ;;  %v28404_v37 = vadd.f32 %v24523_v34, %v2138_v58  ;;  %24796 = vmatprep.mubr.f32.mxu1 %v31794_v52  ;;  %v31798_v52 = vld [vmem:[#allocation65_spill] sm:$0xff] }
 0x1da   :  { %v24402_v27 = vpop.f32.mrf.mxu0  ;;  %v2796_v28 = vpop.f32.mrf.mxu1  ;;  %24673 = vmatmul.mubr.f32.gmra.mxu0 %v31795_v17 }
 0x1db   :  { %v2152_v48 = vadd.f32 %v24402_v27, %v28028_v38  ;;  %v28409_v23 = vadd.f32 %v2796_v28, %v2131_v42  ;;  %24675 = vmatprep.mubr.f32.mxu0 %v31797_v61  ;;  %v31800_v42 = vld [vmem:[#allocation118_spill] sm:$0xff] }
 0x1dc   :  { %v2144_v1 = vpop.f32.mrf.mxu0  ;;  %v24526_v49 = vpop.f32.mrf.mxu1  ;;  %24797 = vmatmul.mubr.f32.gmra.mxu1 %v31795_v17 }
 0x1dd   :  { %31796 = vst [vmem:[#allocation113_spill] sm:$0xff] %v28409_v23  ;;  %v2145_v26 = vadd.f32 %v2144_v1, %v28033_v53  ;;  %v28414_v34 = vadd.f32 %v24526_v49, %v2152_v48  ;;  %24799 = vmatprep.mubr.f32.mxu1 %v31797_v61  ;;  %v31801_v1 = vld [vmem:[#allocation119_spill] sm:$0xff] }
 0x1de   :  { %v24405_v46 = vpop.f32.mrf.mxu0  ;;  %v2812_v58 = vpop.f32.mrf.mxu1  ;;  %24676 = vmatmul.mubr.f32.gmra.mxu0 %v31798_v52 }
 0x1df   :  { %v2166_v38 = vadd.f32 %v24405_v46, %v28038_v11  ;;  %v28419_v56 = vadd.f32 %v2812_v58, %v2145_v26  ;;  %24678 = vmatprep.mubr.f32.mxu0 %v31800_v42  ;;  %v31803_v26 = vld [vmem:[#allocation120_spill] sm:$0xff] }
 0x1e0   :  { %v2158_v27 = vpop.f32.mrf.mxu0  ;;  %v24529_v28 = vpop.f32.mrf.mxu1  ;;  %24800 = vmatmul.mubr.f32.gmra.mxu1 %v31798_v52 }
 0x1e1   :  { %31799 = vst [vmem:[#allocation117_spill] sm:$0xff] %v28419_v56  ;;  %v2159_v53 = vadd.f32 %v2158_v27, %v28043_v22  ;;  %v28424_v17 = vadd.f32 %v24529_v28, %v2166_v38  ;;  %24802 = vmatprep.mubr.f32.mxu1 %v31800_v42  ;;  %v31804_v27 = vld [vmem:[#allocation121_spill] sm:$0xff]  ;;  %v31823_v56 = vld [vmem:[#allocation132_spill] sm:$0xff] }
 0x1e2   :  { %v24408_v48 = vpop.f32.mrf.mxu0  ;;  %v2828_v61 = vpop.f32.mrf.mxu1  ;;  %24679 = vmatmul.mubr.f32.gmra.mxu0 %v31801_v1 }
 0x1e3   :  { %v2180_v11 = vadd.f32 %v24408_v48, %v28048_v36  ;;  %v28429_v49 = vadd.f32 %v2828_v61, %v2159_v53  ;;  %24681 = vmatprep.mubr.f32.mxu0 %v31803_v26  ;;  %v31806_v53 = vld [vmem:[#allocation122_spill] sm:$0xff] }
 0x1e4   :  { %v2172_v46 = vpop.f32.mrf.mxu0  ;;  %v24532_v58 = vpop.f32.mrf.mxu1  ;;  %24803 = vmatmul.mubr.f32.gmra.mxu1 %v31801_v1 }
 0x1e5   :  { %31802 = vst [vmem:[#allocation13_spill] sm:$0xff] %v28429_v49  ;;  %v2173_v22 = vadd.f32 %v2172_v46, %v28053_v39  ;;  %v28434_v52 = vadd.f32 %v24532_v58, %v2180_v11  ;;  %24805 = vmatprep.mubr.f32.mxu1 %v31803_v26  ;;  %v31807_v46 = vld [vmem:[#allocation123_spill] sm:$0xff] }
 0x1e6   :  { %v24411_v38 = vpop.f32.mrf.mxu0  ;;  %v2844_v42 = vpop.f32.mrf.mxu1  ;;  %24682 = vmatmul.mubr.f32.gmra.mxu0 %v31804_v27 }
 0x1e7   :  { %v2194_v36 = vadd.f32 %v24411_v38, %v28058_v54  ;;  %v28439_v28 = vadd.f32 %v2844_v42, %v2173_v22  ;;  %24684 = vmatprep.mubr.f32.mxu0 %v31806_v53  ;;  %v31809_v22 = vld [vmem:[#allocation124_spill] sm:$0xff] }
 0x1e8   :  { %v2186_v48 = vpop.f32.mrf.mxu0  ;;  %v24535_v61 = vpop.f32.mrf.mxu1  ;;  %24806 = vmatmul.mubr.f32.gmra.mxu1 %v31804_v27 }
 0x1e9   :  { %31805 = vst [vmem:[#allocation14_spill] sm:$0xff] %v28439_v28  ;;  %v2187_v39 = vadd.f32 %v2186_v48, %v28063_v15  ;;  %v28444_v1 = vadd.f32 %v24535_v61, %v2194_v36  ;;  %24808 = vmatprep.mubr.f32.mxu1 %v31806_v53  ;;  %v31810_v53 = vld [vmem:[#allocation125_spill] sm:$0xff]  ;;  %v31811_v48 = vld [vmem:[#allocation126_spill] sm:$0xff] }
 0x1ea   :  { %v24414_v11 = vpop.f32.mrf.mxu0  ;;  %v2860_v26 = vpop.f32.mrf.mxu1  ;;  %24685 = vmatmul.mubr.f32.gmra.mxu0 %v31807_v46  ;;  %v31819_v28 = vld [vmem:[#allocation130_spill] sm:$0xff] }
 0x1eb   :  { %v2208_v54 = vadd.f32 %v24414_v11, %v28068_v40  ;;  %v28449_v58 = vadd.f32 %v2860_v26, %v2187_v39  ;;  %24687 = vmatprep.mubr.f32.mxu0 %v31809_v22 }
 0x1ec   :  { %v28452_v38 = vpop.f32.mrf.mxu0  ;;  %v24538_v42 = vpop.f32.mrf.mxu1  ;;  %24809 = vmatmul.mubr.f32.gmra.mxu1 %v31807_v46 }
 0x1ed   :  { %31808 = vst [vmem:[#allocation15_spill] sm:$0xff] %v28449_v58  ;;  %v28455_v15 = vadd.f32 %v24538_v42, %v2208_v54  ;;  %24811 = vmatprep.mubr.f32.mxu1 %v31809_v22  ;;  %v31814_v54 = vld [vmem:[#allocation127_spill] sm:$0xff]  ;;  %v31815_v42 = vld [vmem:[#allocation128_spill] sm:$0xff] }
 0x1ee   :  { %v24417_v27 = vpop.f32.mrf.mxu0  ;;  %v28458_v36 = vpop.f32.mrf.mxu1  ;;  %24688 = vmatmul.mubr.f32.gmra.mxu0 %v31810_v53 }
 0x1ef   :  { %v2222_v40 = vadd.f32 %v24417_v27, %v28078_v51  ;;  %24690 = vmatprep.mubr.f32.mxu0 %v31811_v48 }
 0x1f0   :  { %v28463_v61 = vpop.f32.mrf.mxu0  ;;  %v24541_v39 = vpop.f32.mrf.mxu1  ;;  %24812 = vmatmul.mubr.f32.gmra.mxu1 %v31810_v53 }
 0x1f1   :  { %31812 = vst [vmem:[#allocation21_spill] sm:$0xff] %v28463_v61  ;;  %v28466_v11 = vadd.f32 %v24541_v39, %v2222_v40  ;;  %24814 = vmatprep.mubr.f32.mxu1 %v31811_v48  ;;  %v31818_v48 = vld [vmem:[#allocation129_spill] sm:$0xff] }
 0x1f2   :  { %v24420_v26 = vpop.f32.mrf.mxu0  ;;  %v28469_v46 = vpop.f32.mrf.mxu1  ;;  %24691 = vmatmul.mubr.f32.gmra.mxu0 %v31814_v54 }
 0x1f3   :  { %31813 = vst [vmem:[#allocation22_spill] sm:$0xff] %v28469_v46  ;;  %v2236_v22 = vadd.f32 %v24420_v26, %v28088_v47  ;;  %24693 = vmatprep.mubr.f32.mxu0 %v31815_v42 }
 0x1f4   :  { %v28474_v51 = vpop.f32.mrf.mxu0  ;;  %v24544_v27 = vpop.f32.mrf.mxu1  ;;  %24815 = vmatmul.mubr.f32.gmra.mxu1 %v31814_v54 }
 0x1f5   :  { %31816 = vst [vmem:[#allocation23_spill] sm:$0xff] %v28474_v51  ;;  %v28477_v58 = vadd.f32 %v24544_v27, %v2236_v22  ;;  %24817 = vmatprep.mubr.f32.mxu1 %v31815_v42  ;;  %v31822_v42 = vld [vmem:[#allocation131_spill] sm:$0xff] }
 0x1f6   :  { %v24423_v53 = vpop.f32.mrf.mxu0  ;;  %v28480_v40 = vpop.f32.mrf.mxu1  ;;  %24694 = vmatmul.mubr.f32.gmra.mxu0 %v31818_v48 }
 0x1f7   :  { %31817 = vst [vmem:[#allocation27_spill] sm:$0xff] %v28480_v40  ;;  %v2250_v39 = vadd.f32 %v24423_v53, %v28098_v35  ;;  %24696 = vmatprep.mubr.f32.mxu0 %v31819_v28 }
 0x1f8   :  { %v28485_v47 = vpop.f32.mrf.mxu0  ;;  %v24547_v26 = vpop.f32.mrf.mxu1  ;;  %24818 = vmatmul.mubr.f32.gmra.mxu1 %v31818_v48 }
 0x1f9   :  { %31820 = vst [vmem:[#allocation28_spill] sm:$0xff] %v28485_v47  ;;  %v28488_v49 = vadd.f32 %v24547_v26, %v2250_v39  ;;  %24820 = vmatprep.mubr.f32.mxu1 %v31819_v28  ;;  %v31826_v39 = vld [vmem:[#allocation133_spill] sm:$0xff] }
 0x1fa   :  { %v24426_v54 = vpop.f32.mrf.mxu0  ;;  %v28491_v22 = vpop.f32.mrf.mxu1  ;;  %24697 = vmatmul.mubr.f32.gmra.mxu0 %v31822_v42 }
 0x1fb   :  { %31821 = vst [vmem:[#allocation31_spill] sm:$0xff] %v28491_v22  ;;  %v2264_v27 = vadd.f32 %v24426_v54, %v28108_v3  ;;  %24699 = vmatprep.mubr.f32.mxu0 %v31823_v56  ;;  %v31827_v22 = vld [vmem:[#allocation134_spill] sm:$0xff] }
 0x1fc   :  { %v28496_v35 = vpop.f32.mrf.mxu0  ;;  %v24550_v53 = vpop.f32.mrf.mxu1  ;;  %24821 = vmatmul.mubr.f32.gmra.mxu1 %v31822_v42 }
 0x1fd   :  { %31824 = vst [vmem:[#allocation32_spill] sm:$0xff] %v28496_v35  ;;  %v28499_v47 = vadd.f32 %v24550_v53, %v2264_v27  ;;  %24823 = vmatprep.mubr.f32.mxu1 %v31823_v56  ;;  %v31830_v27 = vld [vmem:[#allocation135_spill] sm:$0xff] }
 0x1fe   :  { %v24429_v48 = vpop.f32.mrf.mxu0  ;;  %v28502_v28 = vpop.f32.mrf.mxu1  ;;  %24700 = vmatmul.mubr.f32.gmra.mxu0 %v31826_v39 }
 0x1ff   :  { %31825 = vst [vmem:[#allocation33_spill] sm:$0xff] %v28502_v28  ;;  %v2278_v26 = vadd.f32 %v24429_v48, %v28118_v7  ;;  %24702 = vmatprep.mubr.f32.mxu0 %v31827_v22  ;;  %v31831_v28 = vld [vmem:[#allocation136_spill] sm:$0xff] }
 0x200   :  { %v28507_v3 = vpop.f32.mrf.mxu0  ;;  %v24553_v54 = vpop.f32.mrf.mxu1  ;;  %24824 = vmatmul.mubr.f32.gmra.mxu1 %v31826_v39 }
 0x201   :  { %31828 = vst [vmem:[#allocation37_spill] sm:$0xff] %v28507_v3  ;;  %v28510_v35 = vadd.f32 %v24553_v54, %v2278_v26  ;;  %24826 = vmatprep.mubr.f32.mxu1 %v31827_v22  ;;  %v31834_v26 = vld [vmem:[#allocation137_spill] sm:$0xff] }
 0x202   :  { %v24432_v42 = vpop.f32.mrf.mxu0  ;;  %v28513_v56 = vpop.f32.mrf.mxu1  ;;  %24703 = vmatmul.mubr.f32.gmra.mxu0 %v31830_v27 }
 0x203   :  { %31829 = vst [vmem:[#allocation38_spill] sm:$0xff] %v28513_v56  ;;  %v2292_v53 = vadd.f32 %v24432_v42, %v28128_v4  ;;  %24705 = vmatprep.mubr.f32.mxu0 %v31831_v28  ;;  %v31835_v4 = vmov 0.0  }
 0x204   :  { %v28518_v7 = vpop.f32.mrf.mxu0  ;;  %v24556_v48 = vpop.f32.mrf.mxu1  ;;  %24827 = vmatmul.mubr.f32.gmra.mxu1 %v31830_v27 }
 0x205   :  { %31832 = vst [vmem:[#allocation39_spill] sm:$0xff] %v28518_v7  ;;  %v28521_v3 = vadd.f32 %v24556_v48, %v2292_v53  ;;  %24829 = vmatprep.mubr.f32.mxu1 %v31831_v28 }
 0x206   :  { %v24435_v39 = vpop.f32.mrf.mxu0  ;;  %v28524_v22 = vpop.f32.mrf.mxu1  ;;  %24706 = vmatmul.mubr.f32.gmra.mxu0 %v31834_v26 }
 0x207   :  { %31833 = vst [vmem:[#allocation43_spill] sm:$0xff] %v28524_v22  ;;  %v2306_v54 = vadd.f32 %v24435_v39, %v28138_v30  ;;  %24836 = vmatprep.mubr.msk.f32.mxu0 %vm26638_vm1, %v31835_v4 }
 0x208   :  { %v28530_v42 = vpop.f32.mrf.mxu0  ;;  %v24559_v7 = vpop.f32.mrf.mxu1  ;;  %24830 = vmatmul.mubr.f32.gmra.mxu1 %v31834_v26 }
 0x209   :  { %31836 = vst [vmem:[#allocation45_spill] sm:$0xff] %v28530_v42  ;;  %v28533_v27 = vadd.f32 %v24559_v7, %v2306_v54  ;;  %24843 = vmatprep.mubr.msk.f32.mxu1 %vm26638_vm1, %v31835_v4 }
 0x20a   :  { %v24438_v28 = vpop.f32.mrf.mxu0  ;;  %v28537_v53 = vpop.f32.mrf.mxu1 }
 0x20b   :  { %31837 = vst [vmem:[#allocation46_spill] sm:$0xff] %v28537_v53  ;;  %v2320_v48 = vadd.f32 %v24438_v28, %v28146_v41 }
 0x20c   :  { %v28540_v30 = vpop.f32.mrf.mxu0  ;;  %v24562_v39 = vpop.f32.mrf.mxu1 }
 0x20d   :  { %v28542_v22 = vadd.f32 %v24562_v39, %v2320_v48 }
 0x20e   :  { %v24441_v56 = vpop.f32.mrf.mxu0  ;;  %v28544_v42 = vpop.f32.mrf.mxu1 }
 0x20f   :  { %v2334_v26 = vadd.f32 %v24441_v56, %v28154_v5 }
 0x210   :  { %v28547_v7 = vpop.f32.mrf.mxu0  ;;  %v24565_v54 = vpop.f32.mrf.mxu1 }
 0x211   :  { %31838 = vst [vmem:[#allocation48_spill] sm:$0xff] %v28547_v7  ;;  %v28549_v23 = vadd.f32 %v24565_v54, %v2334_v26 }
 0x212   :  { %v24444_v40 = vpop.f32.mrf.mxu0  ;;  %v28551_v51 = vpop.f32.mrf.mxu1 }
 0x213   :  { %31839 = vst [vmem:[#allocation50_spill] sm:$0xff] %v28549_v23  ;;  %31840 = vst [vmem:[#allocation52_spill] sm:$0xff] %v28551_v51  ;;  %v2348_v41 = vadd.f32 %v24444_v40, %v28162_v19  ;;  %v80_v19 = vld [vmem:[%s31069_s3] sm:$0x3f] }
 0x214   :  { %v28554_v28 = vpop.f32.mrf.mxu0  ;;  %v24568_v53 = vpop.f32.mrf.mxu1 }
 0x215   :  { %31841 = vst [vmem:[#allocation54_spill] sm:$0xff] %v28554_v28  ;;  %v28556_v48 = vadd.f32 %v24568_v53, %v2348_v41 }
 0x216   :  { %v24447_v39 = vpop.f32.mrf.mxu0  ;;  %v28558_v60 = vpop.f32.mrf.mxu1 }
 0x217   :  { %31842 = vst [vmem:[#allocation56_spill] sm:$0xff] %v28558_v60  ;;  %v2362_v5 = vadd.f32 %v24447_v39, %v28170_v21  ;;  %v4231_v21 = vsel %vm129_vm0, %v80_v19, 0 }
 0x218   :  { %v28561_v56 = vpop.f32.mrf.mxu0  ;;  %v24571_v55 = vpop.f32.mrf.mxu1  ;;  %v28581_v51 = vand.u32 4294901760, %v4231_v21 }
 0x219   :  { %31843 = vst [vmem:[#allocation58_spill] sm:$0xff] %v28561_v56  ;;  %v28563_v26 = vadd.f32 %v24571_v55, %v2362_v5  ;;  %v31848_v55 = vld [vmem:[#allocation57_spill] sm:$0xff] }
 0x21a   :  { %v24450_v54 = vpop.f32.mrf.mxu0  ;;  %v28565_v23 = vpop.f32.mrf.mxu1  ;;  %v28591_v46 = vsub.f32 %v4231_v21, %v28581_v51 }
 0x21b   :  { %31844 = vst [vmem:[#allocation60_spill] sm:$0xff] %v28565_v23  ;;  %v2376_v40 = vadd.f32 %v24450_v54, %v28178_v44 }
 0x21c   :  { %v28571_v53 = vpop.f32.mrf.mxu0  ;;  %v24574_v41 = vpop.f32.mrf.mxu1 }
 0x21d   :  { %31845 = vst [vmem:[#allocation62_spill] sm:$0xff] %v28571_v53  ;;  %v28573_v60 = vadd.f32 %v24574_v41, %v2376_v40  ;;  %v31852_v53 = vld [vmem:[#allocation61_spill] sm:$0xff] }
 0x21e   :  { %v24453_v39 = vpop.f32.mrf.mxu0  ;;  %v28576_v56 = vpop.f32.mrf.mxu1 }
 0x21f   :  { %31846 = vst [vmem:[#allocation63_spill] sm:$0xff] %v28573_v60  ;;  %31847 = vst [vmem:[#allocation64_spill] sm:$0xff] %v28576_v56  ;;  %v2390_v5 = vadd.f32 %v24453_v39, %v31848_v55 }
 0x220   :  { %v28579_v28 = vpop.f32.mrf.mxu0  ;;  %v24577_v23 = vpop.f32.mrf.mxu1 }
 0x221   :  { %31849 = vst [vmem:[#allocation66_spill] sm:$0xff] %v28579_v28  ;;  %v28583_v7 = vadd.f32 %v24577_v23, %v2390_v5  ;;  %v31856_v28 = vld [vmem:[#allocation71_spill] sm:$0xff] }
 0x222   :  { %v24456_v44 = vpop.f32.mrf.mxu0  ;;  %v28585_v54 = vpop.f32.mrf.mxu1 }
 0x223   :  { %31850 = vst [vmem:[#allocation67_spill] sm:$0xff] %v28583_v7  ;;  %31851 = vst [vmem:[#allocation69_spill] sm:$0xff] %v28585_v54  ;;  %v2404_v40 = vadd.f32 %v24456_v44, %v31852_v53  ;;  %v28601_v54 = vand.u32 4294901760, %v28591_v46 }
 0x224   :  { %v28588_v41 = vpop.f32.mrf.mxu0  ;;  %v24580_v19 = vpop.f32.mrf.mxu1 }
 0x225   :  { %31853 = vst [vmem:[#allocation70_spill] sm:$0xff] %v28588_v41  ;;  %v28593_v56 = vadd.f32 %v24580_v19, %v2404_v40 }
 0x226   :  { %v24459_v39 = vpop.f32.mrf.mxu0  ;;  %v28595_v55 = vpop.f32.mrf.mxu1 }
 0x227   :  { %31854 = vst [vmem:[#allocation72_spill] sm:$0xff] %v28593_v56  ;;  %31855 = vst [vmem:[#allocation73_spill] sm:$0xff] %v28595_v55  ;;  %v2418_v61 = vadd.f32 %v24459_v39, %v31856_v28  ;;  %v4303_v55 = vsub.f32 %v28591_v46, %v28601_v54 }
 0x228   :  { %v28598_v23 = vpop.f32.mrf.mxu0  ;;  %v24583_v5 = vpop.f32.mrf.mxu1 }
 0x229   :  { %31857 = vst [vmem:[#allocation74_spill] sm:$0xff] %v28598_v23  ;;  %v28603_v53 = vadd.f32 %v24583_v5, %v2418_v61  ;;  %v28616_v56 = vand.u32 4294901760, %v4303_v55 }
 0x22a   :  { %v28605_v44 = vpop.f32.mrf.mxu1  ;;  %v24590_v41 = vpop.f32.mrf.mxu0 }
 0x22b   :  { %31858 = vst [vmem:[#allocation75_spill] sm:$0xff] %v28603_v53  ;;  %31859 = vst [vmem:[#allocation76_spill] sm:$0xff] %v28605_v44  ;;  %v3208_v21 = vadd.f32 %v24590_v41, %v28212_v59 }
 0x22c   :  { %v3201_v40 = vpop.f32.mrf.mxu0  ;;  %v24714_v19 = vpop.f32.mrf.mxu1 }
 0x22d   :  { %v3202_v28 = vadd.f32 %v3201_v40, %v28217_v6  ;;  %v3755_v39 = vadd.f32 %v24714_v19, %v3208_v21 }
 0x22e   :  { %v24593_v23 = vpop.f32.mrf.mxu0  ;;  %v3748_v24 = vpop.f32.mrf.mxu1 }
 0x22f   :  { %v28611_v13 = vand.u32 4294901760, %v3755_v39  ;;  %v3220_v61 = vadd.f32 %v24593_v23, %v28222_v8  ;;  %v3749_v5 = vadd.f32 %v3748_v24, %v3202_v28 }
 0x230   :  { %v28614_v53 = vpop.f32.mrf.mxu0  ;;  %v24717_v44 = vpop.f32.mrf.mxu1 }
 0x231   :  { %v4340_v59 = vsub.f32 %v3755_v39, %v28611_v13  ;;  %v28619_v41 = vand.u32 4294901760, %v3749_v5  ;;  %v28621_v7 = vadd.f32 %v24717_v44, %v3220_v61  ;;  %24833 = vmatpush3.msra.mxu0 %v28611_v13 }
 0x232   :  { %v24596_v6 = vpop.f32.mrf.mxu0  ;;  %v28624_v21 = vpop.f32.mrf.mxu1  ;;  %24834 = vmatprep.subr.mxu0 %v31835_v4 }
 0x233   :  { %v4341_v8 = vand.u32 4294901760, %v4340_v59  ;;  %v4347_v24 = vsub.f32 %v3749_v5, %v28619_v41  ;;  %v3232_v23 = vadd.f32 %v24596_v6, %v28232_v63  ;;  %24835 = vmatpush3.msra.mxu0 %v28619_v41 }
 0x234   :  { %v28630_v55 = vpop.f32.mrf.mxu0  ;;  %v24720_v40 = vpop.f32.mrf.mxu1  ;;  %24846 = vmatprep.subr.mxu0 %v31835_v4  ;;  %24837 = vmatmul.mubr.f32.vlgmr.msra.gmra.mxu0 %v28616_v56 }
 0x235   :  { %31860 = vst [vmem:[#allocation77_spill] sm:$0xff] %v28630_v55  ;;  %v4342_v44 = vsub.f32 %v4340_v59, %v4341_v8  ;;  %v4348_v19 = vand.u32 4294901760, %v4347_v24  ;;  %24847 = vmatpush3.msra.mxu0 %v4340_v59  ;;  %24850 = vmatprep.mubr.msk.f32.mxu0 %vm26638_vm1, %v31835_v4  ;;  %v28636_v28 = vadd.f32 %v24720_v40, %v3232_v23 }
 0x236   :  { %v24599_v39 = vpop.f32.mrf.mxu0  ;;  %v28638_v61 = vpop.f32.mrf.mxu1  ;;  %24848 = vmatprep.subr.mxu0 %v31835_v4 }
 0x237   :  { %v3244_v63 = vadd.f32 %v24599_v39, %v28242_v16  ;;  %24849 = vmatpush3.msra.mxu0 %v4347_v24  ;;  %v4343_v5 = vand.u32 4294901760, %v4342_v44  ;;  %v4349_v59 = vsub.f32 %v4347_v24, %v4348_v19 }
 0x238   :  { %v28642_v6 = vpop.f32.mrf.mxu0  ;;  %v24723_v55 = vpop.f32.mrf.mxu1  ;;  %24860 = vmatprep.subr.mxu0 %v31835_v4  ;;  %24851 = vmatmul.mubr.f32.vlgmr.msra.gmra.mxu0 %v28591_v46 }
 0x239   :  { %v28646_v60 = vadd.f32 %v24723_v55, %v3244_v63  ;;  %24840 = vmatpush3.msra.mxu1 %v4343_v5  ;;  %24861 = vmatpush3.msra.mxu0 %v4341_v8  ;;  %v4350_v16 = vand.u32 4294901760, %v4349_v59 }
 0x23a   :  { %v24602_v23 = vpop.f32.mrf.mxu0  ;;  %v28648_v40 = vpop.f32.mrf.mxu1  ;;  %24841 = vmatprep.subr.mxu1 %v31835_v4  ;;  %24862 = vmatprep.subr.mxu0 %v31835_v4 }
 0x23b   :  { %v3256_v44 = vadd.f32 %v24602_v23, %v28252_v43  ;;  %24863 = vmatpush3.msra.mxu0 %v4348_v19  ;;  %24864 = vmatprep.mubr.msk.f32.mxu0 %vm26638_vm1, %v31835_v4 }
 0x23c   :  { %24842 = vmatpush3.msra.mxu1 %v4350_v16  ;;  %v28655_v24 = vpop.f32.mrf.mxu0  ;;  %v24726_v55 = vpop.f32.mrf.mxu1  ;;  %24874 = vmatprep.subr.mxu0 %v31835_v4 }
 0x23d   :  { %31861 = vst [vmem:[#allocation78_spill] sm:$0xff] %v28655_v24  ;;  %24853 = vmatprep.subr.mxu1 %v31835_v4  ;;  %24844 = vmatmul.mubr.f32.vlgmr.msra.gmra.mxu1 %v28581_v51  ;;  %v28660_v8 = vadd.f32 %v24726_v55, %v3256_v44 }
 0x23e   :  { %24854 = vmatpush3.msra.mxu1 %v28611_v13  ;;  %v24605_v39 = vpop.f32.mrf.mxu0  ;;  %v28663_v43 = vpop.f32.mrf.mxu1  ;;  %24857 = vmatprep.mubr.msk.f32.mxu1 %vm26638_vm1, %v31835_v4 }
 0x23f   :  { %31862 = vst [vmem:[#allocation79_spill] sm:$0xff] %v28660_v8  ;;  %31863 = vst [vmem:[#allocation81_spill] sm:$0xff] %v28663_v43  ;;  %v3268_v19 = vadd.f32 %v24605_v39, %v28262_v18  ;;  %24855 = vmatprep.subr.mxu1 %v31835_v4  ;;  %24865 = vmatmul.mubr.f32.vlgmr.msra.gmra.mxu0 %v28581_v51 }
 0x240   :  { %24856 = vmatpush3.msra.mxu1 %v28619_v41  ;;  %v28671_v63 = vpop.f32.mrf.mxu0  ;;  %v24729_v5 = vpop.f32.mrf.mxu1  ;;  %24878 = vmatprep.mubr.msk.f32.mxu0 %vm26638_vm1, %v31835_v4 }
 0x241   :  { %31864 = vst [vmem:[#allocation82_spill] sm:$0xff] %v28671_v63  ;;  %24867 = vmatprep.subr.mxu1 %v31835_v4  ;;  %24858 = vmatmul.mubr.f32.vlgmr.msra.gmra.mxu1 %v28601_v54  ;;  %v28677_v59 = vadd.f32 %v24729_v5, %v3268_v19 }
 0x242   :  { %24868 = vmatpush3.msra.mxu1 %v28611_v13  ;;  %v24608_v18 = vpop.f32.mrf.mxu0  ;;  %v28680_v23 = vpop.f32.mrf.mxu1  ;;  %24871 = vmatprep.mubr.msk.f32.mxu1 %vm26638_vm1, %v31835_v4 }
 0x243   :  { %31865 = vst [vmem:[#allocation83_spill] sm:$0xff] %v28677_v59  ;;  %31866 = vst [vmem:[#allocation16_spill] sm:$0xff] %v28680_v23  ;;  %v3280_v16 = vadd.f32 %v24608_v18, %v28272_v10  ;;  %24869 = vmatprep.subr.mxu1 %v31835_v4 }
 0x244   :  { %24870 = vmatpush3.msra.mxu1 %v28619_v41  ;;  %v28687_v44 = vpop.f32.mrf.mxu0  ;;  %v24732_v55 = vpop.f32.mrf.mxu1 }
 0x245   :  { %31867 = vst [vmem:[#allocation86_spill] sm:$0xff] %v28687_v44  ;;  %v28689_v39 = vadd.f32 %v24732_v55, %v3280_v16  ;;  %24881 = vmatprep.subr.mxu1 %v31835_v4  ;;  %24872 = vmatmul.mubr.f32.vlgmr.msra.gmra.mxu1 %v28581_v51 }
 0x246   :  { %v24611_v13 = vpop.f32.mrf.mxu0  ;;  %v28693_v19 = vpop.f32.mrf.mxu1  ;;  %24885 = vmatprep.mubr.msk.f32.mxu1 %vm26638_vm1, %v31835_v4 }
 0x247   :  { %31868 = vst [vmem:[#allocation18_spill] sm:$0xff] %v28689_v39  ;;  %31869 = vst [vmem:[#allocation88_spill] sm:$0xff] %v28693_v19  ;;  %v3292_v10 = vadd.f32 %v24611_v13, %v28282_v0 }
 0x248   :  { %v28698_v5 = vpop.f32.mrf.mxu0  ;;  %v24735_v41 = vpop.f32.mrf.mxu1 }
 0x249   :  { %31870 = vst [vmem:[#allocation20_spill] sm:$0xff] %v28698_v5  ;;  %v28700_v18 = vadd.f32 %v24735_v41, %v3292_v10 }
 0x24a   :  { %v24614_v44 = vpop.f32.mrf.mxu0  ;;  %v28702_v16 = vpop.f32.mrf.mxu1 }
 0x24b   :  { %31871 = vst [vmem:[#allocation90_spill] sm:$0xff] %v28700_v18  ;;  %31872 = vst [vmem:[#allocation17_spill] sm:$0xff] %v28702_v16  ;;  %v3304_v55 = vadd.f32 %v24614_v44, %v28292_v62 }
 0x24c   :  { %v3297_v39 = vpop.f32.mrf.mxu0  ;;  %v24738_v59 = vpop.f32.mrf.mxu1 }
 0x24d   :  { %v3298_v23 = vadd.f32 %v3297_v39, %v28297_v12  ;;  %v3851_v19 = vadd.f32 %v24738_v59, %v3304_v55 }
 0x24e   :  { %v24617_v63 = vpop.f32.mrf.mxu0  ;;  %v3844_v8 = vpop.f32.mrf.mxu1 }
 0x24f   :  { %v3316_v43 = vadd.f32 %v24617_v63, %v28303_v33  ;;  %v3845_v0 = vadd.f32 %v3844_v8, %v3298_v23  ;;  %v28707_v13 = vand.u32 4294901760, %v3851_v19 }
 0x250   :  { %v28709_v5 = vpop.f32.mrf.mxu0  ;;  %v24741_v10 = vpop.f32.mrf.mxu1 }
 0x251   :  { %v28711_v41 = vand.u32 4294901760, %v3845_v0  ;;  %v28713_v18 = vadd.f32 %v24741_v10, %v3316_v43  ;;  %v4799_v62 = vsub.f32 %v3851_v19, %v28707_v13  ;;  %24875 = vmatpush3.msra.mxu0 %v28707_v13 }
 0x252   :  { %v24620_v12 = vpop.f32.mrf.mxu0  ;;  %v28717_v59 = vpop.f32.mrf.mxu1  ;;  %24876 = vmatprep.subr.mxu0 %v31835_v4 }
 0x253   :  { %v4806_v44 = vsub.f32 %v3845_v0, %v28711_v41  ;;  %v3328_v33 = vadd.f32 %v24620_v12, %v28314_v32  ;;  %v4800_v8 = vand.u32 4294901760, %v4799_v62  ;;  %24877 = vmatpush3.msra.mxu0 %v28711_v41 }
 0x254   :  { %v28723_v63 = vpop.f32.mrf.mxu0  ;;  %v24744_v43 = vpop.f32.mrf.mxu1  ;;  %24888 = vmatprep.subr.mxu0 %v31835_v4  ;;  %24879 = vmatmul.mubr.f32.vlgmr.msra.gmra.mxu0 %v28616_v56 }
 0x255   :  { %v4807_v23 = vand.u32 4294901760, %v4806_v44  ;;  %v4801_v39 = vsub.f32 %v4799_v62, %v4800_v8  ;;  %v28727_v19 = vadd.f32 %v24744_v43, %v3328_v33  ;;  %24889 = vmatpush3.msra.mxu0 %v4799_v62  ;;  %24892 = vmatprep.mubr.msk.f32.mxu0 %vm26638_vm1, %v31835_v4 }
 0x256   :  { %v24623_v55 = vpop.f32.mrf.mxu0  ;;  %v28729_v0 = vpop.f32.mrf.mxu1  ;;  %24890 = vmatprep.subr.mxu0 %v31835_v4 }
 0x257   :  { %v3340_v32 = vadd.f32 %v24623_v55, %v28324_v45  ;;  %24891 = vmatpush3.msra.mxu0 %v4806_v44  ;;  %v4802_v16 = vand.u32 4294901760, %v4801_v39  ;;  %v4808_v24 = vsub.f32 %v4806_v44, %v4807_v23 }
 0x258   :  { %v28735_v10 = vpop.f32.mrf.mxu0  ;;  %v24747_v12 = vpop.f32.mrf.mxu1  ;;  %24902 = vmatprep.subr.mxu0 %v31835_v4  ;;  %24893 = vmatmul.mubr.f32.vlgmr.msra.gmra.mxu0 %v28591_v46 }
 0x259   :  { %31873 = vst [vmem:[#allocation92_spill] sm:$0xff] %v28735_v10  ;;  %v28739_v62 = vadd.f32 %v24747_v12, %v3340_v32  ;;  %24882 = vmatpush3.msra.mxu1 %v4802_v16  ;;  %24903 = vmatpush3.msra.mxu0 %v4800_v8  ;;  %v4809_v45 = vand.u32 4294901760, %v4808_v24 }
 0x25a   :  { %v24626_v33 = vpop.f32.mrf.mxu0  ;;  %v28741_v43 = vpop.f32.mrf.mxu1  ;;  %24883 = vmatprep.subr.mxu1 %v31835_v4  ;;  %24904 = vmatprep.subr.mxu0 %v31835_v4 }
 0x25b   :  { %v3352_v55 = vadd.f32 %v24626_v33, %v28334_v2  ;;  %24884 = vmatpush3.msra.mxu1 %v4809_v45  ;;  %24905 = vmatpush3.msra.mxu0 %v4807_v23 }
 0x25c   :  { %v28746_v44 = vpop.f32.mrf.mxu0  ;;  %v24750_v39 = vpop.f32.mrf.mxu1  ;;  %24895 = vmatprep.subr.mxu1 %v31835_v4  ;;  %24886 = vmatmul.mubr.f32.vlgmr.msra.gmra.mxu1 %v28581_v51 }
 0x25d   :  { %31874 = vst [vmem:[#allocation19_spill] sm:$0xff] %v28746_v44  ;;  %v28748_v10 = vadd.f32 %v24750_v39, %v3352_v55  ;;  %24896 = vmatpush3.msra.mxu1 %v28707_v13  ;;  %24899 = vmatprep.mubr.msk.f32.mxu1 %vm26638_vm1, %v31835_v4 }
 0x25e   :  { %v24629_v24 = vpop.f32.mrf.mxu0  ;;  %v28753_v16 = vpop.f32.mrf.mxu1  ;;  %24897 = vmatprep.subr.mxu1 %v31835_v4  ;;  %24906 = vmatprep.mubr.msk.f32.mxu0 %vm26638_vm1, %v31835_v4 }
 0x25f   :  { %31875 = vst [vmem:[#allocation93_spill] sm:$0xff] %v28748_v10  ;;  %31876 = vst [vmem:[#allocation11_spill] sm:$0xff] %v28753_v16  ;;  %v3364_v2 = vadd.f32 %v24629_v24, %v28344_v25  ;;  %24898 = vmatpush3.msra.mxu1 %v28711_v41  ;;  %24916 = vmatprep.subr.mxu0 %v31835_v4 }
 0x260   :  { %v28762_v8 = vpop.f32.mrf.mxu0  ;;  %v24753_v23 = vpop.f32.mrf.mxu1  ;;  %24909 = vmatprep.subr.mxu1 %v31835_v4  ;;  %24900 = vmatmul.mubr.f32.vlgmr.msra.gmra.mxu1 %v28601_v54 }
 0x261   :  { %31877 = vst [vmem:[#allocation96_spill] sm:$0xff] %v28762_v8  ;;  %v28767_v32 = vadd.f32 %v24753_v23, %v3364_v2  ;;  %24910 = vmatpush3.msra.mxu1 %v28707_v13  ;;  %24907 = vmatmul.mubr.f32.vlgmr.msra.gmra.mxu0 %v28581_v51 }
 0x262   :  { %v24632_v25 = vpop.f32.mrf.mxu0  ;;  %v28770_v12 = vpop.f32.mrf.mxu1  ;;  %24911 = vmatprep.subr.mxu1 %v31835_v4  ;;  %24920 = vmatprep.mubr.msk.f32.mxu0 %vm26638_vm1, %v31835_v4 }
 0x263   :  { %31878 = vst [vmem:[#allocation24_spill] sm:$0xff] %v28767_v32  ;;  %31879 = vst [vmem:[#allocation97_spill] sm:$0xff] %v28770_v12  ;;  %v3376_v33 = vadd.f32 %v24632_v25, %v28354_v20  ;;  %24912 = vmatpush3.msra.mxu1 %v28711_v41  ;;  %24913 = vmatprep.mubr.msk.f32.mxu1 %vm26638_vm1, %v31835_v4 }
 0x264   :  { %v28778_v45 = vpop.f32.mrf.mxu0  ;;  %v24756_v55 = vpop.f32.mrf.mxu1  ;;  %24923 = vmatprep.subr.mxu1 %v31835_v4  ;;  %24914 = vmatmul.mubr.f32.vlgmr.msra.gmra.mxu1 %v28581_v51 }
 0x265   :  { %31880 = vst [vmem:[#allocation12_spill] sm:$0xff] %v28778_v45  ;;  %v28784_v13 = vadd.f32 %v24756_v55, %v3376_v33  ;;  %24927 = vmatprep.mubr.msk.f32.mxu1 %vm26638_vm1, %v31835_v4 }
 0x266   :  { %v24635_v20 = vpop.f32.mrf.mxu0  ;;  %v28786_v39 = vpop.f32.mrf.mxu1 }
 0x267   :  { %31881 = vst [vmem:[#allocation101_spill] sm:$0xff] %v28784_v13  ;;  %31882 = vst [vmem:[#allocation25_spill] sm:$0xff] %v28786_v39  ;;  %v3388_v41 = vadd.f32 %v24635_v20, %v28364_v9 }
 0x268   :  { %v28791_v24 = vpop.f32.mrf.mxu0  ;;  %v24759_v2 = vpop.f32.mrf.mxu1 }
 0x269   :  { %31883 = vst [vmem:[#allocation102_spill] sm:$0xff] %v28791_v24  ;;  %v28793_v23 = vadd.f32 %v24759_v2, %v3388_v41 }
 0x26a   :  { %v24638_v25 = vpop.f32.mrf.mxu0  ;;  %v28795_v45 = vpop.f32.mrf.mxu1 }
 0x26b   :  { %31884 = vst [vmem:[#allocation26_spill] sm:$0xff] %v28793_v23  ;;  %31885 = vst [vmem:[#allocation103_spill] sm:$0xff] %v28795_v45  ;;  %v3400_v32 = vadd.f32 %v24638_v25, %v28374_v14 }
 0x26c   :  { %v3393_v33 = vpop.f32.mrf.mxu0  ;;  %v24762_v55 = vpop.f32.mrf.mxu1 }
 0x26d   :  { %v3394_v13 = vadd.f32 %v3393_v33, %v28379_v57  ;;  %v3947_v39 = vadd.f32 %v24762_v55, %v3400_v32 }
 0x26e   :  { %v24641_v12 = vpop.f32.mrf.mxu0  ;;  %v3940_v8 = vpop.f32.mrf.mxu1 }
 0x26f   :  { %v3412_v10 = vadd.f32 %v24641_v12, %v28384_v29  ;;  %v3941_v9 = vadd.f32 %v3940_v8, %v3394_v13  ;;  %v28800_v20 = vand.u32 4294901760, %v3947_v39 }
 0x270   :  { %v28802_v24 = vpop.f32.mrf.mxu0  ;;  %v24765_v41 = vpop.f32.mrf.mxu1 }
 0x271   :  { %v28804_v2 = vand.u32 4294901760, %v3941_v9  ;;  %v5258_v23 = vsub.f32 %v3947_v39, %v28800_v20  ;;  %v28807_v14 = vadd.f32 %v24765_v41, %v3412_v10  ;;  %24917 = vmatpush3.msra.mxu0 %v28800_v20 }
 0x272   :  { %v24644_v57 = vpop.f32.mrf.mxu0  ;;  %v28810_v32 = vpop.f32.mrf.mxu1  ;;  %24918 = vmatprep.subr.mxu0 %v31835_v4 }
 0x273   :  { %v5265_v25 = vsub.f32 %v3941_v9, %v28804_v2  ;;  %v3424_v29 = vadd.f32 %v24644_v57, %v28394_v50  ;;  %v5259_v8 = vand.u32 4294901760, %v5258_v23  ;;  %24919 = vmatpush3.msra.mxu0 %v28804_v2 }
 0x274   :  { %v28816_v12 = vpop.f32.mrf.mxu0  ;;  %v24768_v13 = vpop.f32.mrf.mxu1  ;;  %24930 = vmatprep.subr.mxu0 %v31835_v4  ;;  %24921 = vmatmul.mubr.f32.vlgmr.msra.gmra.mxu0 %v28616_v56 }
 0x275   :  { %v5266_v39 = vand.u32 4294901760, %v5265_v25  ;;  %v28818_v10 = vadd.f32 %v24768_v13, %v3424_v29  ;;  %v5260_v33 = vsub.f32 %v5258_v23, %v5259_v8  ;;  %24931 = vmatpush3.msra.mxu0 %v5258_v23  ;;  %24934 = vmatprep.mubr.msk.f32.mxu0 %vm26638_vm1, %v31835_v4 }
 0x276   :  { %v24647_v55 = vpop.f32.mrf.mxu0  ;;  %v28822_v9 = vpop.f32.mrf.mxu1  ;;  %24932 = vmatprep.subr.mxu0 %v31835_v4 }
 0x277   :  { %v3436_v50 = vadd.f32 %v24647_v55, %v28404_v37  ;;  %24933 = vmatpush3.msra.mxu0 %v5265_v25  ;;  %v5261_v29 = vand.u32 4294901760, %v5260_v33  ;;  %v5267_v13 = vsub.f32 %v5265_v25, %v5266_v39 }
 0x278   :  { %v28828_v41 = vpop.f32.mrf.mxu0  ;;  %v24771_v57 = vpop.f32.mrf.mxu1  ;;  %24944 = vmatprep.subr.mxu0 %v31835_v4  ;;  %24935 = vmatmul.mubr.f32.vlgmr.msra.gmra.mxu0 %v28591_v46 }
 0x279   :  { %v28832_v23 = vadd.f32 %v24771_v57, %v3436_v50  ;;  %24924 = vmatpush3.msra.mxu1 %v5261_v29  ;;  %24945 = vmatpush3.msra.mxu0 %v5259_v8  ;;  %v5268_v37 = vand.u32 4294901760, %v5267_v13 }
 0x27a   :  { %v24650_v45 = vpop.f32.mrf.mxu0  ;;  %v28834_v16 = vpop.f32.mrf.mxu1  ;;  %24925 = vmatprep.subr.mxu1 %v31835_v4  ;;  %24946 = vmatprep.subr.mxu0 %v31835_v4 }
 0x27b   :  { %v3448_v55 = vadd.f32 %v24650_v45, %v28414_v34  ;;  %24926 = vmatpush3.msra.mxu1 %v5268_v37  ;;  %24947 = vmatpush3.msra.mxu0 %v5266_v39 }
 0x27c   :  { %v28839_v25 = vpop.f32.mrf.mxu0  ;;  %v24774_v33 = vpop.f32.mrf.mxu1  ;;  %24937 = vmatprep.subr.mxu1 %v31835_v4  ;;  %24928 = vmatmul.mubr.f32.vlgmr.msra.gmra.mxu1 %v28581_v51 }
 0x27d   :  { %31886 = vst [vmem:[#allocation106_spill] sm:$0xff] %v28839_v25  ;;  %v28843_v8 = vadd.f32 %v24774_v33, %v3448_v55  ;;  %24938 = vmatpush3.msra.mxu1 %v28800_v20  ;;  %24941 = vmatprep.mubr.msk.f32.mxu1 %vm26638_vm1, %v31835_v4 }
 0x27e   :  { %v24653_v50 = vpop.f32.mrf.mxu0  ;;  %v28846_v57 = vpop.f32.mrf.mxu1  ;;  %24939 = vmatprep.subr.mxu1 %v31835_v4  ;;  %24948 = vmatprep.mubr.msk.f32.mxu0 %vm26638_vm1, %v31835_v4 }
 0x27f   :  { %31887 = vst [vmem:[#allocation108_spill] sm:$0xff] %v28843_v8  ;;  %31888 = vst [vmem:[#allocation110_spill] sm:$0xff] %v28846_v57  ;;  %v3460_v34 = vadd.f32 %v24653_v50, %v28424_v17  ;;  %24940 = vmatpush3.msra.mxu1 %v28804_v2  ;;  %24958 = vmatprep.subr.mxu0 %v31835_v4 }
 0x280   :  { %v28855_v45 = vpop.f32.mrf.mxu0  ;;  %v24777_v39 = vpop.f32.mrf.mxu1  ;;  %24951 = vmatprep.subr.mxu1 %v31835_v4  ;;  %24942 = vmatmul.mubr.f32.vlgmr.msra.gmra.mxu1 %v28601_v54 }
 0x281   :  { %31889 = vst [vmem:[#allocation29_spill] sm:$0xff] %v28855_v45  ;;  %v28858_v29 = vadd.f32 %v24777_v39, %v3460_v34  ;;  %24952 = vmatpush3.msra.mxu1 %v28800_v20  ;;  %24949 = vmatmul.mubr.f32.vlgmr.msra.gmra.mxu0 %v28581_v51  ;;  %v31895_v34 = vld [vmem:[#allocation30_spill] sm:$0xff] }
 0x282   :  { %v24656_v17 = vpop.f32.mrf.mxu0  ;;  %v28863_v13 = vpop.f32.mrf.mxu1  ;;  %24953 = vmatprep.subr.mxu1 %v31835_v4  ;;  %24962 = vmatprep.mubr.msk.f32.mxu0 %vm26638_vm1, %v31835_v4 }
 0x283   :  { %31890 = vst [vmem:[#allocation112_spill] sm:$0xff] %v28858_v29  ;;  %31891 = vst [vmem:[#allocation114_spill] sm:$0xff] %v28863_v13  ;;  %v3472_v37 = vadd.f32 %v24656_v17, %v28434_v52  ;;  %24954 = vmatpush3.msra.mxu1 %v28804_v2  ;;  %24955 = vmatprep.mubr.msk.f32.mxu1 %vm26638_vm1, %v31835_v4  ;;  %v2201_v2 = vadd.f32 %v28452_v38, %v31895_v34 }
 0x284   :  { %v28871_v55 = vpop.f32.mrf.mxu0  ;;  %v24780_v33 = vpop.f32.mrf.mxu1  ;;  %24965 = vmatprep.subr.mxu1 %v31835_v4  ;;  %24956 = vmatmul.mubr.f32.vlgmr.msra.gmra.mxu1 %v28581_v51 }
 0x285   :  { %31892 = vst [vmem:[#allocation115_spill] sm:$0xff] %v28871_v55  ;;  %v28877_v20 = vadd.f32 %v24780_v33, %v3472_v37  ;;  %24969 = vmatprep.mubr.msk.f32.mxu1 %vm26638_vm1, %v31835_v4  ;;  %v2877_v37 = vadd.f32 %v28458_v36, %v2201_v2 }
 0x286   :  { %v24659_v52 = vpop.f32.mrf.mxu0  ;;  %v28879_v50 = vpop.f32.mrf.mxu1 }
 0x287   :  { %31893 = vst [vmem:[#allocation116_spill] sm:$0xff] %v28877_v20  ;;  %31894 = vst [vmem:[#allocation65_spill] sm:$0xff] %v28879_v50  ;;  %v3484_v39 = vadd.f32 %v24659_v52, %v28444_v1 }
 0x288   :  { %v28886_v17 = vpop.f32.mrf.mxu0  ;;  %v24783_v55 = vpop.f32.mrf.mxu1 }
 0x289   :  { %31896 = vst [vmem:[#allocation118_spill] sm:$0xff] %v28886_v17  ;;  %v28888_v29 = vadd.f32 %v24783_v55, %v3484_v39 }
 0x28a   :  { %v24662_v13 = vpop.f32.mrf.mxu0  ;;  %v28890_v45 = vpop.f32.mrf.mxu1 }
 0x28b   :  { %31897 = vst [vmem:[#allocation119_spill] sm:$0xff] %v28888_v29  ;;  %31898 = vst [vmem:[#allocation120_spill] sm:$0xff] %v28890_v45  ;;  %v3496_v33 = vadd.f32 %v24662_v13, %v28455_v15 }
 0x28c   :  { %v3489_v20 = vpop.f32.mrf.mxu0  ;;  %v24786_v50 = vpop.f32.mrf.mxu1 }
 0x28d   :  { %v3490_v8 = vadd.f32 %v3489_v20, %v2877_v37  ;;  %v4043_v57 = vadd.f32 %v24786_v50, %v3496_v33 }
 0x28e   :  { %v24665_v25 = vpop.f32.mrf.mxu0  ;;  %v4036_v38 = vpop.f32.mrf.mxu1 }
 0x28f   :  { %v28894_v34 = vand.u32 4294901760, %v4043_v57  ;;  %v3508_v1 = vadd.f32 %v24665_v25, %v28466_v11  ;;  %v4037_v52 = vadd.f32 %v4036_v38, %v3490_v8 }
 0x290   :  { %v28897_v55 = vpop.f32.mrf.mxu0  ;;  %v24789_v39 = vpop.f32.mrf.mxu1 }
 0x291   :  { %v5717_v29 = vsub.f32 %v4043_v57, %v28894_v34  ;;  %v28900_v45 = vand.u32 4294901760, %v4037_v52  ;;  %24959 = vmatpush3.msra.mxu0 %v28894_v34  ;;  %v28903_v15 = vadd.f32 %v24789_v39, %v3508_v1 }
 0x292   :  { %v24668_v36 = vpop.f32.mrf.mxu0  ;;  %v28905_v13 = vpop.f32.mrf.mxu1  ;;  %24960 = vmatprep.subr.mxu0 %v31835_v4 }
 0x293   :  { %v5718_v20 = vand.u32 4294901760, %v5717_v29  ;;  %v5724_v11 = vsub.f32 %v4037_v52, %v28900_v45  ;;  %v3520_v25 = vadd.f32 %v24668_v36, %v28477_v58  ;;  %24961 = vmatpush3.msra.mxu0 %v28900_v45 }
 0x294   :  { %v28911_v8 = vpop.f32.mrf.mxu0  ;;  %v24792_v57 = vpop.f32.mrf.mxu1  ;;  %24972 = vmatprep.subr.mxu0 %v31835_v4  ;;  %24963 = vmatmul.mubr.f32.vlgmr.msra.gmra.mxu0 %v28616_v56 }
 0x295   :  { %v5719_v50 = vsub.f32 %v5717_v29, %v5718_v20  ;;  %v5725_v2 = vand.u32 4294901760, %v5724_v11  ;;  %24973 = vmatpush3.msra.mxu0 %v5717_v29  ;;  %24976 = vmatprep.mubr.msk.f32.mxu0 %vm26638_vm1, %v31835_v4  ;;  %v28917_v37 = vadd.f32 %v24792_v57, %v3520_v25 }
 0x296   :  { %v24671_v33 = vpop.f32.mrf.mxu0  ;;  %v28919_v38 = vpop.f32.mrf.mxu1  ;;  %24974 = vmatprep.subr.mxu0 %v31835_v4 }
 0x297   :  { %v3532_v58 = vadd.f32 %v24671_v33, %v28488_v49  ;;  %24975 = vmatpush3.msra.mxu0 %v5724_v11  ;;  %v5720_v1 = vand.u32 4294901760, %v5719_v50  ;;  %v5726_v29 = vsub.f32 %v5724_v11, %v5725_v2 }
 0x298   :  { %v28923_v52 = vpop.f32.mrf.mxu0  ;;  %v24795_v39 = vpop.f32.mrf.mxu1  ;;  %24986 = vmatprep.subr.mxu0 %v31835_v4  ;;  %24977 = vmatmul.mubr.f32.vlgmr.msra.gmra.mxu0 %v28591_v46 }
 0x299   :  { %v28927_v36 = vadd.f32 %v24795_v39, %v3532_v58  ;;  %24966 = vmatpush3.msra.mxu1 %v5720_v1  ;;  %24987 = vmatpush3.msra.mxu0 %v5718_v20  ;;  %v5727_v49 = vand.u32 4294901760, %v5726_v29 }
 0x29a   :  { %v24674_v25 = vpop.f32.mrf.mxu0  ;;  %v28929_v57 = vpop.f32.mrf.mxu1  ;;  %24967 = vmatprep.subr.mxu1 %v31835_v4  ;;  %24988 = vmatprep.subr.mxu0 %v31835_v4 }
 0x29b   :  { %v3544_v50 = vadd.f32 %v24674_v25, %v28499_v47  ;;  %24989 = vmatpush3.msra.mxu0 %v5725_v2  ;;  %24990 = vmatprep.mubr.msk.f32.mxu0 %vm26638_vm1, %v31835_v4 }
 0x29c   :  { %24968 = vmatpush3.msra.mxu1 %v5727_v49  ;;  %v28936_v11 = vpop.f32.mrf.mxu0  ;;  %v24798_v33 = vpop.f32.mrf.mxu1  ;;  %25000 = vmatprep.subr.mxu0 %v31835_v4 }
 0x29d   :  { %31899 = vst [vmem:[#allocation121_spill] sm:$0xff] %v28936_v11  ;;  %24979 = vmatprep.subr.mxu1 %v31835_v4  ;;  %24970 = vmatmul.mubr.f32.vlgmr.msra.gmra.mxu1 %v28581_v51  ;;  %v28941_v20 = vadd.f32 %v24798_v33, %v3544_v50  ;;  %v31913_v11 = vld [vmem:[#allocation63_spill] sm:$0xff] }
 0x29e   :  { %24980 = vmatpush3.msra.mxu1 %v28894_v34  ;;  %v24677_v58 = vpop.f32.mrf.mxu0  ;;  %v28944_v47 = vpop.f32.mrf.mxu1  ;;  %24983 = vmatprep.mubr.msk.f32.mxu1 %vm26638_vm1, %v31835_v4 }
 0x29f   :  { %31900 = vst [vmem:[#allocation122_spill] sm:$0xff] %v28941_v20  ;;  %31901 = vst [vmem:[#allocation123_spill] sm:$0xff] %v28944_v47  ;;  %v3556_v2 = vadd.f32 %v24677_v58, %v28510_v35  ;;  %24981 = vmatprep.subr.mxu1 %v31835_v4  ;;  %24991 = vmatmul.mubr.f32.vlgmr.msra.gmra.mxu0 %v28581_v51 }
 0x2a0   :  { %24982 = vmatpush3.msra.mxu1 %v28900_v45  ;;  %v28952_v1 = vpop.f32.mrf.mxu0  ;;  %v24801_v39 = vpop.f32.mrf.mxu1  ;;  %25004 = vmatprep.mubr.msk.f32.mxu0 %vm26638_vm1, %v31835_v4 }
 0x2a1   :  { %31902 = vst [vmem:[#allocation124_spill] sm:$0xff] %v28952_v1  ;;  %24993 = vmatprep.subr.mxu1 %v31835_v4  ;;  %24984 = vmatmul.mubr.f32.vlgmr.msra.gmra.mxu1 %v28601_v54  ;;  %v28958_v29 = vadd.f32 %v24801_v39, %v3556_v2 }
 0x2a2   :  { %24994 = vmatpush3.msra.mxu1 %v28894_v34  ;;  %v24680_v35 = vpop.f32.mrf.mxu0  ;;  %v28961_v25 = vpop.f32.mrf.mxu1  ;;  %24997 = vmatprep.mubr.msk.f32.mxu1 %vm26638_vm1, %v31835_v4 }
 0x2a3   :  { %31903 = vst [vmem:[#allocation125_spill] sm:$0xff] %v28958_v29  ;;  %31904 = vst [vmem:[#allocation126_spill] sm:$0xff] %v28961_v25  ;;  %v3568_v49 = vadd.f32 %v24680_v35, %v28521_v3  ;;  %24995 = vmatprep.subr.mxu1 %v31835_v4  ;;  %v31908_v3 = vld [vmem:[#allocation47_spill] sm:$0xff] }
 0x2a4   :  { %24996 = vmatpush3.msra.mxu1 %v28900_v45  ;;  %v28968_v50 = vpop.f32.mrf.mxu0  ;;  %v24804_v33 = vpop.f32.mrf.mxu1  ;;  %v2313_v39 = vadd.f32 %v28540_v30, %v31908_v3 }
 0x2a5   :  { %31905 = vst [vmem:[#allocation127_spill] sm:$0xff] %v28968_v50  ;;  %v28970_v58 = vadd.f32 %v24804_v33, %v3568_v49  ;;  %24998 = vmatmul.mubr.f32.vlgmr.msra.gmra.mxu1 %v28581_v51  ;;  %25007 = vmatprep.subr.mxu1 %v31835_v4 }
 0x2a6   :  { %v24683_v34 = vpop.f32.mrf.mxu0  ;;  %v28974_v2 = vpop.f32.mrf.mxu1  ;;  %25011 = vmatprep.mubr.msk.f32.mxu1 %vm26638_vm1, %v31835_v4  ;;  %v3005_v50 = vadd.f32 %v28544_v42, %v2313_v39 }
 0x2a7   :  { %31906 = vst [vmem:[#allocation128_spill] sm:$0xff] %v28970_v58  ;;  %31907 = vst [vmem:[#allocation129_spill] sm:$0xff] %v28974_v2  ;;  %v3580_v45 = vadd.f32 %v24683_v34, %v28533_v27 }
 0x2a8   :  { %v28981_v35 = vpop.f32.mrf.mxu0  ;;  %v24807_v17 = vpop.f32.mrf.mxu1 }
 0x2a9   :  { %31909 = vst [vmem:[#allocation130_spill] sm:$0xff] %v28981_v35  ;;  %v28983_v49 = vadd.f32 %v24807_v17, %v3580_v45 }
 0x2aa   :  { %v24686_v33 = vpop.f32.mrf.mxu0  ;;  %v28985_v58 = vpop.f32.mrf.mxu1 }
 0x2ab   :  { %31910 = vst [vmem:[#allocation131_spill] sm:$0xff] %v28983_v49  ;;  %31911 = vst [vmem:[#allocation132_spill] sm:$0xff] %v28985_v58  ;;  %v3592_v2 = vadd.f32 %v24686_v33, %v28542_v22 }
 0x2ac   :  { %v3585_v29 = vpop.f32.mrf.mxu0  ;;  %v24810_v25 = vpop.f32.mrf.mxu1 }
 0x2ad   :  { %v3586_v1 = vadd.f32 %v3585_v29, %v3005_v50  ;;  %v4139_v20 = vadd.f32 %v24810_v25, %v3592_v2  ;;  %v3214_v29 = vadd.f32 %v28614_v53, %v28227_v31 }
 0x2ae   :  { %v28989_v47 = vpop.f32.mrf.mxu0  ;;  %v4132_v30 = vpop.f32.mrf.mxu1 }
 0x2af   :  { %v4133_v27 = vadd.f32 %v4132_v30, %v3586_v1  ;;  %v28991_v34 = vand.u32 4294901760, %v4139_v20 }
 0x2b0   :  { %v28993_v3 = vpop.f32.mrf.mxu0  ;;  %v28995_v17 = vpop.f32.mrf.mxu1 }
 0x2b1   :  { %v28997_v45 = vand.u32 4294901760, %v4133_v27  ;;  %v6176_v42 = vsub.f32 %v4139_v20, %v28991_v34  ;;  %25001 = vmatpush3.msra.mxu0 %v28991_v34 }
 0x2b2   :  { %v24692_v22 = vpop.f32.mrf.mxu0  ;;  %v29001_v39 = vpop.f32.mrf.mxu1  ;;  %25002 = vmatprep.subr.mxu0 %v31835_v4 }
 0x2b3   :  { %v6183_v1 = vsub.f32 %v4133_v27, %v28997_v45  ;;  %v3616_v25 = vadd.f32 %v24692_v22, %v28556_v48  ;;  %v6177_v50 = vand.u32 4294901760, %v6176_v42  ;;  %25003 = vmatpush3.msra.mxu0 %v28997_v45  ;;  %v3761_v48 = vadd.f32 %v28624_v21, %v3214_v29 }
 0x2b4   :  { %v29009_v2 = vpop.f32.mrf.mxu0  ;;  %v24816_v20 = vpop.f32.mrf.mxu1  ;;  %25014 = vmatprep.subr.mxu0 %v31835_v4  ;;  %25005 = vmatmul.mubr.f32.vlgmr.msra.gmra.mxu0 %v28616_v56 }
 0x2b5   :  { %v6184_v33 = vand.u32 4294901760, %v6183_v1  ;;  %v6178_v30 = vsub.f32 %v6176_v42, %v6177_v50  ;;  %v29013_v49 = vadd.f32 %v24816_v20, %v3616_v25  ;;  %25015 = vmatpush3.msra.mxu0 %v6176_v42  ;;  %25018 = vmatprep.mubr.msk.f32.mxu0 %vm26638_vm1, %v31835_v4  ;;  %v29025_v42 = vand.u32 4294901760, %v28621_v7 }
 0x2b6   :  { %v24695_v31 = vpop.f32.mrf.mxu0  ;;  %v29015_v53 = vpop.f32.mrf.mxu1  ;;  %25016 = vmatprep.subr.mxu0 %v31835_v4 }
 0x2b7   :  { %v3628_v27 = vadd.f32 %v24695_v31, %v28563_v26  ;;  %25017 = vmatpush3.msra.mxu0 %v6183_v1  ;;  %v6179_v35 = vand.u32 4294901760, %v6178_v30  ;;  %v6185_v25 = vsub.f32 %v6183_v1, %v6184_v33  ;;  %v29033_v31 = vand.u32 4294901760, %v3761_v48 }
 0x2b8   :  { %v29022_v22 = vpop.f32.mrf.mxu0  ;;  %v24819_v58 = vpop.f32.mrf.mxu1  ;;  %25028 = vmatprep.subr.mxu0 %v31835_v4  ;;  %25019 = vmatmul.mubr.f32.vlgmr.msra.gmra.mxu0 %v28591_v46 }
 0x2b9   :  { %v29029_v20 = vadd.f32 %v24819_v58, %v3628_v27  ;;  %25008 = vmatpush3.msra.mxu1 %v6179_v35  ;;  %25029 = vmatpush3.msra.mxu0 %v6177_v50  ;;  %v6186_v29 = vand.u32 4294901760, %v6185_v25  ;;  %v6670_v35 = vsub.f32 %v28621_v7, %v29025_v42  ;;  %v31917_v7 = vld [vmem:[#allocation67_spill] sm:$0xff] }
 0x2ba   :  { %v24698_v26 = vpop.f32.mrf.mxu0  ;;  %v29031_v21 = vpop.f32.mrf.mxu1  ;;  %25009 = vmatprep.subr.mxu1 %v31835_v4  ;;  %25030 = vmatprep.subr.mxu0 %v31835_v4 }
 0x2bb   :  { %31912 = vst [vmem:[#allocation133_spill] sm:$0xff] %v29029_v20  ;;  %v3640_v30 = vadd.f32 %v24698_v26, %v31913_v11  ;;  %25010 = vmatpush3.msra.mxu1 %v6186_v29  ;;  %25031 = vmatpush3.msra.mxu0 %v6184_v33  ;;  %v6677_v33 = vsub.f32 %v3761_v48, %v29033_v31 }
 0x2bc   :  { %v29038_v1 = vpop.f32.mrf.mxu0  ;;  %v24822_v58 = vpop.f32.mrf.mxu1  ;;  %25012 = vmatmul.mubr.f32.vlgmr.msra.gmra.mxu1 %v28581_v51  ;;  %25021 = vmatprep.subr.mxu1 %v31835_v4 }
 0x2bd   :  { %31914 = vst [vmem:[#allocation134_spill] sm:$0xff] %v29038_v1  ;;  %v29042_v50 = vadd.f32 %v24822_v58, %v3640_v30  ;;  %25032 = vmatprep.mubr.msk.f32.mxu0 %vm26638_vm1, %v31835_v4  ;;  %25042 = vmatprep.subr.mxu0 %v31835_v4  ;;  %v6671_v30 = vand.u32 4294901760, %v6670_v35 }
 0x2be   :  { %v24701_v11 = vpop.f32.mrf.mxu0  ;;  %v29049_v27 = vpop.f32.mrf.mxu1  ;;  %25022 = vmatpush3.msra.mxu1 %v28991_v34  ;;  %25033 = vmatmul.mubr.f32.vlgmr.msra.gmra.mxu0 %v28581_v51 }
 0x2bf   :  { %31915 = vst [vmem:[#allocation135_spill] sm:$0xff] %v29042_v50  ;;  %31916 = vst [vmem:[#allocation136_spill] sm:$0xff] %v29049_v27  ;;  %v3652_v25 = vadd.f32 %v24701_v11, %v31917_v7  ;;  %25043 = vmatpush3.msra.mxu0 %v29025_v42  ;;  %25023 = vmatprep.subr.mxu1 %v31835_v4  ;;  %v6678_v7 = vand.u32 4294901760, %v6677_v33 }
 0x2c0   :  { %v29057_v26 = vpop.f32.mrf.mxu0  ;;  %v24825_v29 = vpop.f32.mrf.mxu1  ;;  %25044 = vmatprep.subr.mxu0 %v31835_v4  ;;  %25024 = vmatpush3.msra.mxu1 %v28997_v45 }
 0x2c1   :  { %31918 = vst [vmem:[#allocation137_spill] sm:$0xff] %v29057_v26  ;;  %25025 = vmatprep.mubr.msk.f32.mxu1 %vm26638_vm1, %v31835_v4  ;;  %25045 = vmatpush3.msra.mxu0 %v29033_v31  ;;  %v29064_v48 = vadd.f32 %v24825_v29, %v3652_v25  ;;  %v31921_v26 = vld [vmem:[#allocation72_spill] sm:$0xff]  ;;  %v6672_v25 = vsub.f32 %v6670_v35, %v6671_v30  ;;  %v31923_v29 = vld [vmem:[#allocation95_spill] sm:$0xff] }
 0x2c2   :  { %v24704_v58 = vpop.f32.mrf.mxu0  ;;  %v29066_v11 = vpop.f32.mrf.mxu1  ;;  %25026 = vmatmul.mubr.f32.vlgmr.msra.gmra.mxu1 %v28601_v54  ;;  %25035 = vmatprep.subr.mxu1 %v31835_v4  ;;  %v6679_v20 = vsub.f32 %v6677_v33, %v6678_v7 }
 0x2c3   :  { %31919 = vst [vmem:[#allocation57_spill] sm:$0xff] %v29064_v48  ;;  %31920 = vst [vmem:[#allocation61_spill] sm:$0xff] %v29066_v11  ;;  %v3664_v50 = vadd.f32 %v24704_v58, %v31921_v26  ;;  %25046 = vmatprep.mubr.msk.f32.mxu0 %vm26638_vm1, %v31835_v4  ;;  %25056 = vmatprep.subr.mxu0 %v31835_v4  ;;  %v3310_v48 = vadd.f32 %v28709_v5, %v31923_v29 }
 0x2c4   :  { %v29074_v27 = vpop.f32.mrf.mxu0  ;;  %v24828_v1 = vpop.f32.mrf.mxu1  ;;  %25036 = vmatpush3.msra.mxu1 %v28991_v34  ;;  %25047 = vmatmul.mubr.f32.vlgmr.msra.gmra.mxu0 %v28616_v56 }
 0x2c5   :  { %31922 = vst [vmem:[#allocation71_spill] sm:$0xff] %v29074_v27  ;;  %25057 = vmatpush3.msra.mxu0 %v6670_v35  ;;  %25037 = vmatprep.subr.mxu1 %v31835_v4  ;;  %v29081_v26 = vadd.f32 %v24828_v1, %v3664_v50  ;;  %v31924_v27 = vld [vmem:[#allocation75_spill] sm:$0xff]  ;;  %v3857_v34 = vadd.f32 %v28717_v59, %v3310_v48  ;;  %v6673_v1 = vand.u32 4294901760, %v6672_v25  ;;  %v6680_v50 = vand.u32 4294901760, %v6679_v20 }
 0x2c6   :  { %v24707_v58 = vpop.f32.mrf.mxu0  ;;  %v29083_v11 = vpop.f32.mrf.mxu1  ;;  %25058 = vmatprep.subr.mxu0 %v31835_v4  ;;  %25038 = vmatpush3.msra.mxu1 %v28997_v45  ;;  %v29099_v45 = vand.u32 4294901760, %v28713_v18 }
 0x2c7   :  { %v3676_v44 = vadd.f32 %v24707_v58, %v31924_v27  ;;  %25039 = vmatprep.mubr.msk.f32.mxu1 %vm26638_vm1, %v31835_v4  ;;  %25059 = vmatpush3.msra.mxu0 %v6677_v33  ;;  %v29103_v59 = vand.u32 4294901760, %v3857_v34  ;;  %v31926_v58 = vld [vmem:[#allocation34_spill] sm:$0xff] }
 0x2c8   :  { %v24831_v5 = vpop.f32.mrf.mxu1  ;;  %25040 = vmatmul.mubr.f32.vlgmr.msra.gmra.mxu1 %v28581_v51  ;;  %25049 = vmatprep.subr.mxu1 %v31835_v4 }
 0x2c9   :  { %v29093_v35 = vadd.f32 %v24831_v5, %v3676_v44  ;;  %25060 = vmatprep.mubr.msk.f32.mxu0 %vm26638_vm1, %v31835_v4  ;;  %25070 = vmatprep.subr.mxu0 %v31835_v4  ;;  %v7129_v44 = vsub.f32 %v28713_v18, %v29099_v45  ;;  %v7136_v20 = vsub.f32 %v3857_v34, %v29103_v59  ;;  %v31927_v5 = vld [vmem:[#allocation21_spill] sm:$0xff] }
 0x2ca   :  { %25050 = vmatpush3.msra.mxu1 %v6673_v1  ;;  %25061 = vmatmul.mubr.f32.vlgmr.msra.gmra.mxu0 %v28591_v46  ;;  %v2215_v34 = vadd.f32 %v31927_v5, %v31926_v58 }
 0x2cb   :  { %25071 = vmatpush3.msra.mxu0 %v6671_v30  ;;  %25051 = vmatprep.subr.mxu1 %v31835_v4  ;;  %v7130_v18 = vand.u32 4294901760, %v7129_v44  ;;  %v7137_v27 = vand.u32 4294901760, %v7136_v20  ;;  %v31925_v30 = vld [vmem:[#allocation109_spill] sm:$0xff] }
 0x2cc   :  { %25072 = vmatprep.subr.mxu0 %v31835_v4  ;;  %25052 = vmatpush3.msra.mxu1 %v6680_v50  ;;  %v3406_v48 = vadd.f32 %v28802_v24, %v31925_v30  ;;  %v31928_v50 = vld [vmem:[#allocation22_spill] sm:$0xff] }
 0x2cd   :  { %25053 = vmatprep.mubr.msk.f32.mxu1 %vm26638_vm1, %v31835_v4  ;;  %25073 = vmatpush3.msra.mxu0 %v6678_v7  ;;  %v7131_v33 = vsub.f32 %v7129_v44, %v7130_v18  ;;  %v7138_v7 = vsub.f32 %v7136_v20, %v7137_v27 }
 0x2ce   :  { %25054 = vmatmul.mubr.f32.vlgmr.msra.gmra.mxu1 %v28581_v51  ;;  %25063 = vmatprep.subr.mxu1 %v31835_v4  ;;  %v3953_v25 = vadd.f32 %v28810_v32, %v3406_v48 }
 0x2cf   :  { %25074 = vmatprep.mubr.msk.f32.mxu0 %vm26638_vm1, %v31835_v4  ;;  %25084 = vmatprep.subr.mxu0 %v31835_v4  ;;  %v7132_v24 = vand.u32 4294901760, %v7131_v33 }
 0x2d0   :  { %25064 = vmatpush3.msra.mxu1 %v29025_v42  ;;  %25075 = vmatmul.mubr.f32.vlgmr.msra.gmra.mxu0 %v28581_v51  ;;  %v29150_v32 = vand.u32 4294901760, %v3953_v25 }
 0x2d1   :  { %25085 = vmatpush3.msra.mxu0 %v29099_v45  ;;  %25065 = vmatprep.subr.mxu1 %v31835_v4 }
 0x2d2   :  { %25086 = vmatprep.subr.mxu0 %v31835_v4  ;;  %25066 = vmatpush3.msra.mxu1 %v29033_v31  ;;  %v7595_v1 = vsub.f32 %v3953_v25, %v29150_v32  ;;  %v31930_v25 = vld [vmem:[#allocation48_spill] sm:$0xff] }
 0x2d3   :  { %25067 = vmatprep.mubr.msk.f32.mxu1 %vm26638_vm1, %v31835_v4  ;;  %25087 = vmatpush3.msra.mxu0 %v29103_v59 }
 0x2d4   :  { %25068 = vmatmul.mubr.f32.vlgmr.msra.gmra.mxu1 %v28601_v54  ;;  %25077 = vmatprep.subr.mxu1 %v31835_v4 }
 0x2d5   :  { %25088 = vmatprep.mubr.msk.f32.mxu0 %vm26638_vm1, %v31835_v4  ;;  %25098 = vmatprep.subr.mxu0 %v31835_v4 }
 0x2d6   :  { %25078 = vmatpush3.msra.mxu1 %v29025_v42  ;;  %25089 = vmatmul.mubr.f32.vlgmr.msra.gmra.mxu0 %v28616_v56  ;;  %v29146_v42 = vand.u32 4294901760, %v28807_v14 }
 0x2d7   :  { %25099 = vmatpush3.msra.mxu0 %v7129_v44  ;;  %25079 = vmatprep.subr.mxu1 %v31835_v4  ;;  %v2893_v44 = vadd.f32 %v31928_v50, %v2215_v34  ;;  %v31932_v34 = vld [vmem:[#allocation50_spill] sm:$0xff] }
 0x2d8   :  { %25100 = vmatprep.subr.mxu0 %v31835_v4  ;;  %25080 = vmatpush3.msra.mxu1 %v29033_v31  ;;  %v7139_v31 = vand.u32 4294901760, %v7138_v7  ;;  %v7588_v29 = vsub.f32 %v28807_v14, %v29146_v42  ;;  %v31929_v7 = vld [vmem:[#allocation49_spill] sm:$0xff] }
 0x2d9   :  { %25081 = vmatprep.mubr.msk.f32.mxu1 %vm26638_vm1, %v31835_v4  ;;  %25101 = vmatpush3.msra.mxu0 %v7136_v20  ;;  %v7596_v20 = vand.u32 4294901760, %v7595_v1 }
 0x2da   :  { %25082 = vmatmul.mubr.f32.vlgmr.msra.gmra.mxu1 %v28581_v51  ;;  %25091 = vmatprep.subr.mxu1 %v31835_v4  ;;  %v7589_v14 = vand.u32 4294901760, %v7588_v29 }
 0x2db   :  { %25102 = vmatprep.mubr.msk.f32.mxu0 %vm26638_vm1, %v31835_v4  ;;  %25112 = vmatprep.subr.mxu0 %v31835_v4  ;;  %v7597_v33 = vsub.f32 %v7595_v1, %v7596_v20 }
 0x2dc   :  { %25092 = vmatpush3.msra.mxu1 %v7132_v24  ;;  %25103 = vmatmul.mubr.f32.vlgmr.msra.gmra.mxu0 %v28591_v46  ;;  %v2327_v24 = vadd.f32 %v31930_v25, %v31929_v7 }
 0x2dd   :  { %25113 = vmatpush3.msra.mxu0 %v7130_v18  ;;  %25093 = vmatprep.subr.mxu1 %v31835_v4  ;;  %v7590_v18 = vsub.f32 %v7588_v29, %v7589_v14 }
 0x2de   :  { %25114 = vmatprep.subr.mxu0 %v31835_v4  ;;  %25094 = vmatpush3.msra.mxu1 %v7139_v31 }
 0x2df   :  { %25095 = vmatprep.mubr.msk.f32.mxu1 %vm26638_vm1, %v31835_v4  ;;  %25115 = vmatpush3.msra.mxu0 %v7137_v27  ;;  %v3502_v27 = vadd.f32 %v28897_v55, %v2893_v44  ;;  %v7591_v55 = vand.u32 4294901760, %v7590_v18 }
 0x2e0   :  { %25096 = vmatmul.mubr.f32.vlgmr.msra.gmra.mxu1 %v28581_v51  ;;  %25105 = vmatprep.subr.mxu1 %v31835_v4 }
 0x2e1   :  { %25116 = vmatprep.mubr.msk.f32.mxu0 %vm26638_vm1, %v31835_v4  ;;  %25126 = vmatprep.subr.mxu0 %v31835_v4  ;;  %v4049_v30 = vadd.f32 %v28905_v13, %v3502_v27 }
 0x2e2   :  { %25106 = vmatpush3.msra.mxu1 %v29099_v45  ;;  %25117 = vmatmul.mubr.f32.vlgmr.msra.gmra.mxu0 %v28581_v51 }
 0x2e3   :  { %25127 = vmatpush3.msra.mxu0 %v29146_v42  ;;  %25107 = vmatprep.subr.mxu1 %v31835_v4  ;;  %v29199_v13 = vand.u32 4294901760, %v4049_v30 }
 0x2e4   :  { %25128 = vmatprep.subr.mxu0 %v31835_v4  ;;  %25108 = vmatpush3.msra.mxu1 %v29103_v59 }
 0x2e5   :  { %25109 = vmatprep.mubr.msk.f32.mxu1 %vm26638_vm1, %v31835_v4  ;;  %25129 = vmatpush3.msra.mxu0 %v29150_v32  ;;  %v8054_v31 = vsub.f32 %v4049_v30, %v29199_v13 }
 0x2e6   :  { %25110 = vmatmul.mubr.f32.vlgmr.msra.gmra.mxu1 %v28601_v54  ;;  %25119 = vmatprep.subr.mxu1 %v31835_v4 }
 0x2e7   :  { %25130 = vmatprep.mubr.msk.f32.mxu0 %vm26638_vm1, %v31835_v4  ;;  %25140 = vmatprep.subr.mxu0 %v31835_v4  ;;  %v8055_v5 = vand.u32 4294901760, %v8054_v31 }
 0x2e8   :  { %25120 = vmatpush3.msra.mxu1 %v29099_v45  ;;  %25131 = vmatmul.mubr.f32.vlgmr.msra.gmra.mxu0 %v28616_v56  ;;  %v29195_v45 = vand.u32 4294901760, %v28903_v15 }
 0x2e9   :  { %25141 = vmatpush3.msra.mxu0 %v7588_v29  ;;  %25121 = vmatprep.subr.mxu1 %v31835_v4  ;;  %v31931_v29 = vld [vmem:[#allocation52_spill] sm:$0xff]  ;;  %v8056_v27 = vsub.f32 %v8054_v31, %v8055_v5 }
 0x2ea   :  { %25142 = vmatprep.subr.mxu0 %v31835_v4  ;;  %25122 = vmatpush3.msra.mxu1 %v29103_v59  ;;  %v7598_v59 = vand.u32 4294901760, %v7597_v33  ;;  %v8047_v48 = vsub.f32 %v28903_v15, %v29195_v45  ;;  %v3021_v58 = vadd.f32 %v31931_v29, %v2327_v24 }
 0x2eb   :  { %25123 = vmatprep.mubr.msk.f32.mxu1 %vm26638_vm1, %v31835_v4  ;;  %25143 = vmatpush3.msra.mxu0 %v7595_v1  ;;  %v3604_v1 = vadd.f32 %v28989_v47, %v31932_v34 }
 0x2ec   :  { %25124 = vmatmul.mubr.f32.vlgmr.msra.gmra.mxu1 %v28581_v51  ;;  %25133 = vmatprep.subr.mxu1 %v31835_v4  ;;  %v8048_v15 = vand.u32 4294901760, %v8047_v48  ;;  %v3598_v44 = vadd.f32 %v28993_v3, %v3021_v58 }
 0x2ed   :  { %25144 = vmatprep.mubr.msk.f32.mxu0 %vm26638_vm1, %v31835_v4  ;;  %25154 = vmatprep.subr.mxu0 %v31835_v4  ;;  %v4151_v18 = vadd.f32 %v28995_v17, %v3604_v1 }
 0x2ee   :  { %25134 = vmatpush3.msra.mxu1 %v7591_v55  ;;  %25145 = vmatmul.mubr.f32.vlgmr.msra.gmra.mxu0 %v28591_v46  ;;  %v8049_v50 = vsub.f32 %v8047_v48, %v8048_v15  ;;  %v8057_v55 = vand.u32 4294901760, %v8056_v27 }
 0x2ef   :  { %25155 = vmatpush3.msra.mxu0 %v7589_v14  ;;  %25135 = vmatprep.subr.mxu1 %v31835_v4  ;;  %v29226_v14 = vpop.f32.mrf.mxu0 }
 0x2f0   :  { %25156 = vmatprep.subr.mxu0 %v31835_v4  ;;  %25136 = vmatpush3.msra.mxu1 %v7598_v59  ;;  %v8050_v30 = vand.u32 4294901760, %v8049_v50  ;;  %v31933_v50 = vld [vmem:[#allocation84_spill] sm:$0xff] }
 0x2f1   :  { %25137 = vmatprep.mubr.msk.f32.mxu1 %vm26638_vm1, %v31835_v4  ;;  %25157 = vmatpush3.msra.mxu0 %v7596_v20  ;;  %v29234_v20 = vpop.f32.mrf.mxu1 }
 0x2f2   :  { %25138 = vmatmul.mubr.f32.vlgmr.msra.gmra.mxu1 %v28581_v51  ;;  %25147 = vmatprep.subr.mxu1 %v31835_v4 }
 0x2f3   :  { %25158 = vmatprep.mubr.msk.f32.mxu0 %vm26638_vm1, %v31835_v4  ;;  %25168 = vmatprep.subr.mxu0 %v31835_v4 }
 0x2f4   :  { %25148 = vmatpush3.msra.mxu1 %v29146_v42  ;;  %25159 = vmatmul.mubr.f32.vlgmr.msra.gmra.mxu0 %v28581_v51  ;;  %v29238_v47 = vpop.f32.mrf.mxu0 }
 0x2f5   :  { %25169 = vmatpush3.msra.mxu0 %v29195_v45  ;;  %25149 = vmatprep.subr.mxu1 %v31835_v4 }
 0x2f6   :  { %25170 = vmatprep.subr.mxu0 %v31835_v4  ;;  %25150 = vmatpush3.msra.mxu1 %v29150_v32  ;;  %v24838_v33 = vpop.f32.mrf.mxu0 }
 0x2f7   :  { %25151 = vmatprep.mubr.msk.f32.mxu1 %vm26638_vm1, %v31835_v4  ;;  %25171 = vmatpush3.msra.mxu0 %v29199_v13 }
 0x2f8   :  { %25152 = vmatmul.mubr.f32.vlgmr.msra.gmra.mxu1 %v28601_v54  ;;  %25161 = vmatprep.subr.mxu1 %v31835_v4  ;;  %v29257_v59 = vpop.f32.mrf.mxu0 }
 0x2f9   :  { %25172 = vmatprep.mubr.msk.f32.mxu0 %vm26638_vm1, %v31835_v4  ;;  %25182 = vmatprep.subr.mxu0 %v31835_v4 }
 0x2fa   :  { %25162 = vmatpush3.msra.mxu1 %v29146_v42  ;;  %25173 = vmatmul.mubr.f32.vlgmr.msra.gmra.mxu0 %v28616_v56  ;;  %v4145_v42 = vadd.f32 %v29001_v39, %v3598_v44  ;;  %v31934_v44 = vld [vmem:[#allocation77_spill] sm:$0xff] }
 0x2fb   :  { %25183 = vmatpush3.msra.mxu0 %v8047_v48  ;;  %25163 = vmatprep.subr.mxu1 %v31835_v4  ;;  %v24852_v48 = vpop.f32.mrf.mxu0 }
 0x2fc   :  { %25184 = vmatprep.subr.mxu0 %v31835_v4  ;;  %25164 = vmatpush3.msra.mxu1 %v29150_v32  ;;  %v29254_v32 = vand.u32 4294901760, %v4151_v18  ;;  %v29260_v39 = vand.u32 4294901760, %v4145_v42 }
 0x2fd   :  { %v29244_v3 = vpop.f32.mrf.mxu1  ;;  %25165 = vmatprep.mubr.msk.f32.mxu1 %vm26638_vm1, %v31835_v4  ;;  %25185 = vmatpush3.msra.mxu0 %v8054_v31 }
 0x2fe   :  { %25166 = vmatmul.mubr.f32.vlgmr.msra.gmra.mxu1 %v28581_v51  ;;  %25175 = vmatprep.subr.mxu1 %v31835_v4  ;;  %v8506_v25 = vsub.f32 %v4151_v18, %v29254_v32  ;;  %v8513_v31 = vsub.f32 %v4145_v42, %v29260_v39  ;;  %v3226_v18 = vadd.f32 %v31934_v44, %v31933_v50  ;;  %v31935_v50 = vld [vmem:[#allocation98_spill] sm:$0xff] }
 0x2ff   :  { %v24845_v17 = vpop.f32.mrf.mxu1  ;;  %25186 = vmatprep.mubr.msk.f32.mxu0 %vm26638_vm1, %v31835_v4  ;;  %25196 = vmatprep.subr.mxu0 %v31835_v4  ;;  %v3322_v44 = vadd.f32 %v28723_v63, %v31935_v50 }
 0x300   :  { %25176 = vmatpush3.msra.mxu1 %v8050_v30  ;;  %25187 = vmatmul.mubr.f32.vlgmr.msra.gmra.mxu0 %v28591_v46  ;;  %v8507_v29 = vand.u32 4294901760, %v8506_v25  ;;  %v8514_v34 = vand.u32 4294901760, %v8513_v31  ;;  %v3773_v42 = vadd.f32 %v28638_v61, %v3226_v18  ;;  %v29308_v30 = vand.u32 4294901760, %v28636_v28 }
 0x301   :  { %25197 = vmatpush3.msra.mxu0 %v8048_v15  ;;  %25177 = vmatprep.subr.mxu1 %v31835_v4  ;;  %v29263_v7 = vpop.f32.mrf.mxu1  ;;  %v29276_v15 = vpop.f32.mrf.mxu0  ;;  %v4388_v61 = vadd.f32 %v29244_v3, %v29238_v47 }
 0x302   :  { %25198 = vmatprep.subr.mxu0 %v31835_v4  ;;  %25178 = vmatpush3.msra.mxu1 %v8057_v55  ;;  %v8508_v27 = vsub.f32 %v8506_v25, %v8507_v29  ;;  %v8515_v33 = vsub.f32 %v8513_v31, %v8514_v34  ;;  %v29314_v17 = vand.u32 4294901760, %v3773_v42  ;;  %v8998_v48 = vsub.f32 %v28636_v28, %v29308_v30 }
 0x303   :  { %25179 = vmatprep.mubr.msk.f32.mxu1 %vm26638_vm1, %v31835_v4  ;;  %25199 = vmatpush3.msra.mxu0 %v8055_v5  ;;  %v24859_v24 = vpop.f32.mrf.mxu1  ;;  %v24866_v58 = vpop.f32.mrf.mxu0  ;;  %v4464_v47 = vadd.f32 %v29257_v59, %v4388_v61 }
 0x304   :  { %25180 = vmatmul.mubr.f32.vlgmr.msra.gmra.mxu1 %v28581_v51  ;;  %25189 = vmatprep.subr.mxu1 %v31835_v4  ;;  %v9005_v3 = vsub.f32 %v3773_v42, %v29314_v17 }
 0x305   :  { %25200 = vmatprep.mubr.msk.f32.mxu0 %vm26638_vm1, %v31835_v4  ;;  %25210 = vmatprep.subr.mxu0 %v31835_v4  ;;  %v29282_v5 = vpop.f32.mrf.mxu1  ;;  %v4539_v28 = vadd.f32 %v29263_v7, %v4464_v47 }
 0x306   :  { %25190 = vmatpush3.msra.mxu1 %v29195_v45  ;;  %25201 = vmatmul.mubr.f32.vlgmr.msra.gmra.mxu0 %v28581_v51  ;;  %v9006_v59 = vand.u32 4294901760, %v9005_v3 }
 0x307   :  { %25211 = vmatpush3.msra.mxu0 %v29254_v32  ;;  %25191 = vmatprep.subr.mxu1 %v31835_v4  ;;  %v24873_v1 = vpop.f32.mrf.mxu1  ;;  %v4616_v7 = vadd.f32 %v29276_v15, %v4539_v28 }
 0x308   :  { %25212 = vmatprep.subr.mxu0 %v31835_v4  ;;  %25192 = vmatpush3.msra.mxu1 %v29199_v13  ;;  %v9007_v15 = vsub.f32 %v9005_v3, %v9006_v59 }
 0x309   :  { %25193 = vmatprep.mubr.msk.f32.mxu1 %vm26638_vm1, %v31835_v4  ;;  %25213 = vmatpush3.msra.mxu0 %v29260_v39 }
 0x30a   :  { %25194 = vmatmul.mubr.f32.vlgmr.msra.gmra.mxu1 %v28601_v54  ;;  %25203 = vmatprep.subr.mxu1 %v31835_v4 }
 0x30b   :  { %25214 = vmatprep.mubr.msk.f32.mxu0 %vm26638_vm1, %v31835_v4  ;;  %25224 = vmatprep.subr.mxu0 %v31835_v4 }
 0x30c   :  { %25204 = vmatpush3.msra.mxu1 %v29195_v45  ;;  %25215 = vmatmul.mubr.f32.vlgmr.msra.gmra.mxu0 %v28616_v56  ;;  %v8509_v45 = vand.u32 4294901760, %v8508_v27  ;;  %v4689_v27 = vadd.f32 %v29282_v5, %v4616_v7 }
 0x30d   :  { %25225 = vmatpush3.msra.mxu0 %v8506_v25  ;;  %25205 = vmatprep.subr.mxu1 %v31835_v4 }
 0x30e   :  { %25226 = vmatprep.subr.mxu0 %v31835_v4  ;;  %25206 = vmatpush3.msra.mxu1 %v29199_v13  ;;  %v8516_v13 = vand.u32 4294901760, %v8515_v33 }
 0x30f   :  { %25207 = vmatprep.mubr.msk.f32.mxu1 %vm26638_vm1, %v31835_v4  ;;  %25227 = vmatpush3.msra.mxu0 %v8513_v31  ;;  %v8999_v31 = vand.u32 4294901760, %v8998_v48 }
 0x310   :  { %25208 = vmatmul.mubr.f32.vlgmr.msra.gmra.mxu1 %v28581_v51  ;;  %25217 = vmatprep.subr.mxu1 %v31835_v4 }
 0x311   :  { %25228 = vmatprep.mubr.msk.f32.mxu0 %vm26638_vm1, %v31835_v4  ;;  %25238 = vmatprep.subr.mxu0 %v31835_v4  ;;  %v9000_v1 = vsub.f32 %v8998_v48, %v8999_v31 }
 0x312   :  { %25218 = vmatpush3.msra.mxu1 %v8509_v45  ;;  %25229 = vmatmul.mubr.f32.vlgmr.msra.gmra.mxu0 %v28591_v46  ;;  %v3869_v45 = vadd.f32 %v28729_v0, %v3322_v44  ;;  %v9008_v0 = vand.u32 4294901760, %v9007_v15 }
 0x313   :  { %25239 = vmatpush3.msra.mxu0 %v8507_v29  ;;  %25219 = vmatprep.subr.mxu1 %v31835_v4  ;;  %v9001_v5 = vand.u32 4294901760, %v9000_v1  ;;  %v31936_v1 = vld [vmem:[#allocation111_spill] sm:$0xff] }
 0x314   :  { %25240 = vmatprep.subr.mxu0 %v31835_v4  ;;  %25220 = vmatpush3.msra.mxu1 %v8516_v13  ;;  %v4765_v55 = vpop.f32.mrf.mxu0  ;;  %v3418_v50 = vadd.f32 %v28816_v12, %v31936_v1 }
 0x315   :  { %25221 = vmatprep.mubr.msk.f32.mxu1 %vm26638_vm1, %v31835_v4  ;;  %25241 = vmatpush3.msra.mxu0 %v8514_v34 }
 0x316   :  { %25222 = vmatmul.mubr.f32.vlgmr.msra.gmra.mxu1 %v28581_v51  ;;  %25231 = vmatprep.subr.mxu1 %v31835_v4  ;;  %v24880_v25 = vpop.f32.mrf.mxu0 }
 0x317   :  { %25242 = vmatprep.mubr.msk.f32.mxu0 %vm26638_vm1, %v31835_v4  ;;  %25252 = vmatprep.subr.mxu0 %v31835_v4  ;;  %v29365_v25 = vmul.f32 %v4689_v27, %v4689_v27 }
 0x318   :  { %25232 = vmatpush3.msra.mxu1 %v29254_v32  ;;  %25243 = vmatmul.mubr.f32.vlgmr.msra.gmra.mxu0 %v28581_v51  ;;  %v4922_v24 = vpop.f32.mrf.mxu0 }
 0x319   :  { %25253 = vmatpush3.msra.mxu0 %v29308_v30  ;;  %25233 = vmatprep.subr.mxu1 %v31835_v4 }
 0x31a   :  { %25254 = vmatprep.subr.mxu0 %v31835_v4  ;;  %25234 = vmatpush3.msra.mxu1 %v29260_v39  ;;  %v24894_v29 = vpop.f32.mrf.mxu0 }
 0x31b   :  { %25235 = vmatprep.mubr.msk.f32.mxu1 %vm26638_vm1, %v31835_v4  ;;  %25255 = vmatpush3.msra.mxu0 %v29314_v17 }
 0x31c   :  { %25236 = vmatmul.mubr.f32.vlgmr.msra.gmra.mxu1 %v28601_v54  ;;  %25245 = vmatprep.subr.mxu1 %v31835_v4  ;;  %v4846_v58 = vpop.f32.mrf.mxu1 }
 0x31d   :  { %25256 = vmatprep.mubr.msk.f32.mxu0 %vm26638_vm1, %v31835_v4  ;;  %25266 = vmatprep.subr.mxu0 %v31835_v4  ;;  %v4847_v34 = vadd.f32 %v4846_v58, %v4765_v55  ;;  %v29361_v55 = vand.u32 4294901760, %v28727_v19 }
 0x31e   :  { %25246 = vmatpush3.msra.mxu1 %v29254_v32  ;;  %25257 = vmatmul.mubr.f32.vlgmr.msra.gmra.mxu0 %v28616_v56  ;;  %v24887_v18 = vpop.f32.mrf.mxu1 }
 0x31f   :  { %25267 = vmatpush3.msra.mxu0 %v8998_v48  ;;  %25247 = vmatprep.subr.mxu1 %v31835_v4  ;;  %v4923_v33 = vadd.f32 %v4922_v24, %v4847_v34  ;;  %v3965_v18 = vadd.f32 %v28822_v9, %v3418_v50 }
 0x320   :  { %25268 = vmatprep.subr.mxu0 %v31835_v4  ;;  %25248 = vmatpush3.msra.mxu1 %v29260_v39  ;;  %v4997_v42 = vpop.f32.mrf.mxu1 }
 0x321   :  { %25249 = vmatprep.mubr.msk.f32.mxu1 %vm26638_vm1, %v31835_v4  ;;  %25269 = vmatpush3.msra.mxu0 %v9005_v3  ;;  %v4998_v63 = vadd.f32 %v4997_v42, %v4923_v33  ;;  %v5074_v32 = vpop.f32.mrf.mxu0  ;;  %v29367_v3 = vand.u32 4294901760, %v3869_v45  ;;  %v29422_v9 = vand.u32 4294901760, %v3965_v18 }
 0x322   :  { %25250 = vmatmul.mubr.f32.vlgmr.msra.gmra.mxu1 %v28581_v51  ;;  %25259 = vmatprep.subr.mxu1 %v31835_v4  ;;  %v24901_v13 = vpop.f32.mrf.mxu1 }
 0x323   :  { %25270 = vmatprep.mubr.msk.f32.mxu0 %vm26638_vm1, %v31835_v4  ;;  %25280 = vmatprep.subr.mxu0 %v31835_v4  ;;  %v5075_v39 = vadd.f32 %v5074_v32, %v4998_v63  ;;  %v24908_v61 = vpop.f32.mrf.mxu0  ;;  %v31937_v32 = vld [vmem:[#allocation35_spill] sm:$0xff]  ;;  %v9923_v13 = vsub.f32 %v3965_v18, %v29422_v9 }
 0x324   :  { %25260 = vmatpush3.msra.mxu1 %v9001_v5  ;;  %25271 = vmatmul.mubr.f32.vlgmr.msra.gmra.mxu0 %v28591_v46  ;;  %v5147_v48 = vpop.f32.mrf.mxu1 }
 0x325   :  { %25281 = vmatpush3.msra.mxu0 %v8999_v31  ;;  %25261 = vmatprep.subr.mxu1 %v31835_v4  ;;  %v5148_v47 = vadd.f32 %v5147_v48, %v5075_v39  ;;  %v9457_v31 = vsub.f32 %v28727_v19, %v29361_v55 }
 0x326   :  { %25282 = vmatprep.subr.mxu0 %v31835_v4  ;;  %25262 = vmatpush3.msra.mxu1 %v9008_v0  ;;  %v24915_v24 = vpop.f32.mrf.mxu1 }
 0x327   :  { %25263 = vmatprep.mubr.msk.f32.mxu1 %vm26638_vm1, %v31835_v4  ;;  %25283 = vmatpush3.msra.mxu0 %v9006_v59  ;;  %v29372_v28 = vmul.f32 %v5148_v47, %v5148_v47  ;;  %v29374_v29 = vmul.f32 %v5148_v47, %v4689_v27  ;;  %v9464_v59 = vsub.f32 %v3869_v45, %v29367_v3  ;;  %v9458_v19 = vand.u32 4294901760, %v9457_v31  ;;  %v31938_v45 = vld [vmem:[#allocation23_spill] sm:$0xff] }
 0x328   :  { %25264 = vmatmul.mubr.f32.vlgmr.msra.gmra.mxu1 %v28581_v51  ;;  %25273 = vmatprep.subr.mxu1 %v31835_v4  ;;  %v2229_v5 = vadd.f32 %v31938_v45, %v31937_v32  ;;  %v31939_v47 = vld [vmem:[#allocation27_spill] sm:$0xff]  ;;  %v31941_v45 = vld [vmem:[#allocation54_spill] sm:$0xff] }
 0x329   :  { %25284 = vmatprep.mubr.msk.f32.mxu0 %vm26638_vm1, %v31835_v4  ;;  %25294 = vmatprep.subr.mxu0 %v31835_v4  ;;  %v29385_v58 = vadd.f32 %v29372_v28, %v29365_v25  ;;  %v9465_v7 = vand.u32 4294901760, %v9464_v59  ;;  %v9459_v34 = vsub.f32 %v9457_v31, %v9458_v19  ;;  %v31940_v32 = vld [vmem:[#allocation51_spill] sm:$0xff] }
 0x32a   :  { %25274 = vmatpush3.msra.mxu1 %v29308_v30  ;;  %25285 = vmatmul.mubr.f32.vlgmr.msra.gmra.mxu0 %v28581_v51  ;;  %v2909_v24 = vadd.f32 %v31939_v47, %v2229_v5  ;;  %v2341_v5 = vadd.f32 %v31941_v45, %v31940_v32 }
 0x32b   :  { %25295 = vmatpush3.msra.mxu0 %v29361_v55  ;;  %25275 = vmatprep.subr.mxu1 %v31835_v4  ;;  %v9466_v44 = vsub.f32 %v9464_v59, %v9465_v7  ;;  %v9460_v12 = vand.u32 4294901760, %v9459_v34 }
 0x32c   :  { %25296 = vmatprep.subr.mxu0 %v31835_v4  ;;  %25276 = vmatpush3.msra.mxu1 %v29314_v17  ;;  %v3514_v1 = vadd.f32 %v28911_v8, %v2909_v24 }
 0x32d   :  { %25277 = vmatprep.mubr.msk.f32.mxu1 %vm26638_vm1, %v31835_v4  ;;  %25297 = vmatpush3.msra.mxu0 %v29367_v3  ;;  %v9467_v27 = vand.u32 4294901760, %v9466_v44 }
 0x32e   :  { %25278 = vmatmul.mubr.f32.vlgmr.msra.gmra.mxu1 %v28601_v54  ;;  %25287 = vmatprep.subr.mxu1 %v31835_v4 }
 0x32f   :  { %25298 = vmatprep.mubr.msk.f32.mxu0 %vm26638_vm1, %v31835_v4  ;;  %25308 = vmatprep.subr.mxu0 %v31835_v4 }
 0x330   :  { %25288 = vmatpush3.msra.mxu1 %v29308_v30  ;;  %25299 = vmatmul.mubr.f32.vlgmr.msra.gmra.mxu0 %v28616_v56 }
 0x331   :  { %25309 = vmatpush3.msra.mxu0 %v9457_v31  ;;  %25289 = vmatprep.subr.mxu1 %v31835_v4  ;;  %v9924_v31 = vand.u32 4294901760, %v9923_v13 }
 0x332   :  { %25310 = vmatprep.subr.mxu0 %v31835_v4  ;;  %25290 = vmatpush3.msra.mxu1 %v29314_v17  ;;  %v29418_v17 = vand.u32 4294901760, %v28818_v10 }
 0x333   :  { %25291 = vmatprep.mubr.msk.f32.mxu1 %vm26638_vm1, %v31835_v4  ;;  %25311 = vmatpush3.msra.mxu0 %v9464_v59 }
 0x334   :  { %25292 = vmatmul.mubr.f32.vlgmr.msra.gmra.mxu1 %v28581_v51  ;;  %25301 = vmatprep.subr.mxu1 %v31835_v4  ;;  %v5224_v30 = vpop.f32.mrf.mxu0  ;;  %v9916_v42 = vsub.f32 %v28818_v10, %v29418_v17 }
 0x335   :  { %25312 = vmatprep.mubr.msk.f32.mxu0 %vm26638_vm1, %v31835_v4  ;;  %25322 = vmatprep.subr.mxu0 %v31835_v4 }
 0x336   :  { %25302 = vmatpush3.msra.mxu1 %v9460_v12  ;;  %25313 = vmatmul.mubr.f32.vlgmr.msra.gmra.mxu0 %v28591_v46  ;;  %v24922_v33 = vpop.f32.mrf.mxu0  ;;  %v9917_v61 = vand.u32 4294901760, %v9916_v42  ;;  %v9925_v12 = vsub.f32 %v9923_v13, %v9924_v31 }
 0x337   :  { %25323 = vmatpush3.msra.mxu0 %v9458_v19  ;;  %25303 = vmatprep.subr.mxu1 %v31835_v4 }
 0x338   :  { %25324 = vmatprep.subr.mxu0 %v31835_v4  ;;  %25304 = vmatpush3.msra.mxu1 %v9467_v27  ;;  %v5381_v15 = vpop.f32.mrf.mxu0  ;;  %v9918_v34 = vsub.f32 %v9916_v42, %v9917_v61 }
 0x339   :  { %25305 = vmatprep.mubr.msk.f32.mxu1 %vm26638_vm1, %v31835_v4  ;;  %25325 = vmatpush3.msra.mxu0 %v9465_v7 }
 0x33a   :  { %25306 = vmatmul.mubr.f32.vlgmr.msra.gmra.mxu1 %v28581_v51  ;;  %25315 = vmatprep.subr.mxu1 %v31835_v4  ;;  %v24936_v63 = vpop.f32.mrf.mxu0  ;;  %v9919_v27 = vand.u32 4294901760, %v9918_v34 }
 0x33b   :  { %25326 = vmatprep.mubr.msk.f32.mxu0 %vm26638_vm1, %v31835_v4  ;;  %25336 = vmatprep.subr.mxu0 %v31835_v4 }
 0x33c   :  { %25316 = vmatpush3.msra.mxu1 %v29361_v55  ;;  %25327 = vmatmul.mubr.f32.vlgmr.msra.gmra.mxu0 %v28581_v51  ;;  %v5305_v10 = vpop.f32.mrf.mxu1 }
 0x33d   :  { %25337 = vmatpush3.msra.mxu0 %v29418_v17  ;;  %25317 = vmatprep.subr.mxu1 %v31835_v4  ;;  %v5306_v39 = vadd.f32 %v5305_v10, %v5224_v30  ;;  %v31942_v10 = vld [vmem:[#allocation56_spill] sm:$0xff] }
 0x33e   :  { %25338 = vmatprep.subr.mxu0 %v31835_v4  ;;  %25318 = vmatpush3.msra.mxu1 %v29367_v3  ;;  %v24929_v0 = vpop.f32.mrf.mxu1 }
 0x33f   :  { %25319 = vmatprep.mubr.msk.f32.mxu1 %vm26638_vm1, %v31835_v4  ;;  %25339 = vmatpush3.msra.mxu0 %v29422_v9  ;;  %v5382_v48 = vadd.f32 %v5381_v15, %v5306_v39  ;;  %v29471_v15 = vand.u32 4294901760, %v28917_v37  ;;  %v3037_v39 = vadd.f32 %v31942_v10, %v2341_v5 }
 0x340   :  { %25320 = vmatmul.mubr.f32.vlgmr.msra.gmra.mxu1 %v28601_v54  ;;  %25329 = vmatprep.subr.mxu1 %v31835_v4  ;;  %v5456_v59 = vpop.f32.mrf.mxu1 }
 0x341   :  { %25340 = vmatprep.mubr.msk.f32.mxu0 %vm26638_vm1, %v31835_v4  ;;  %25350 = vmatprep.subr.mxu0 %v31835_v4  ;;  %v5457_v19 = vadd.f32 %v5456_v59, %v5382_v48  ;;  %v5533_v7 = vpop.f32.mrf.mxu0  ;;  %v10375_v63 = vsub.f32 %v28917_v37, %v29471_v15  ;;  %v3610_v47 = vadd.f32 %v29009_v2, %v3037_v39 }
 0x342   :  { %25330 = vmatpush3.msra.mxu1 %v29361_v55  ;;  %25341 = vmatmul.mubr.f32.vlgmr.msra.gmra.mxu0 %v28616_v56  ;;  %v24943_v50 = vpop.f32.mrf.mxu1  ;;  %v4061_v55 = vadd.f32 %v28919_v38, %v3514_v1  ;;  %v9926_v38 = vand.u32 4294901760, %v9925_v12 }
 0x343   :  { %25351 = vmatpush3.msra.mxu0 %v9916_v42  ;;  %25331 = vmatprep.subr.mxu1 %v31835_v4  ;;  %v5534_v44 = vadd.f32 %v5533_v7, %v5457_v19  ;;  %v24950_v18 = vpop.f32.mrf.mxu0  ;;  %v10376_v37 = vand.u32 4294901760, %v10375_v63  ;;  %v4157_v2 = vadd.f32 %v29015_v53, %v3610_v47  ;;  %v29572_v47 = vand.u32 4294901760, %v28646_v60 }
 0x344   :  { %25352 = vmatprep.subr.mxu0 %v31835_v4  ;;  %25332 = vmatpush3.msra.mxu1 %v29367_v3  ;;  %v5606_v30 = vpop.f32.mrf.mxu1  ;;  %v29475_v42 = vand.u32 4294901760, %v4061_v55 }
 0x345   :  { %25333 = vmatprep.mubr.msk.f32.mxu1 %vm26638_vm1, %v31835_v4  ;;  %25353 = vmatpush3.msra.mxu0 %v9923_v13  ;;  %v29460_v8 = vadd.f32 %v5606_v30, %v5534_v44  ;;  %v10377_v48 = vsub.f32 %v10375_v63, %v10376_v37  ;;  %v29524_v53 = vand.u32 4294901760, %v4157_v2 }
 0x346   :  { %25334 = vmatmul.mubr.f32.vlgmr.msra.gmra.mxu1 %v28581_v51  ;;  %25343 = vmatprep.subr.mxu1 %v31835_v4  ;;  %v24957_v33 = vpop.f32.mrf.mxu1  ;;  %v10382_v13 = vsub.f32 %v4061_v55, %v29475_v42 }
 0x347   :  { %25354 = vmatprep.mubr.msk.f32.mxu0 %vm26638_vm1, %v31835_v4  ;;  %25364 = vmatprep.subr.mxu0 %v31835_v4  ;;  %v6531_v3 = vsub.f32 %v29460_v8, %v29365_v25  ;;  %v10841_v30 = vsub.f32 %v4157_v2, %v29524_v53 }
 0x348   :  { %25344 = vmatpush3.msra.mxu1 %v9919_v27  ;;  %25355 = vmatmul.mubr.f32.vlgmr.msra.gmra.mxu0 %v28591_v46 }
 0x349   :  { %25365 = vmatpush3.msra.mxu0 %v9917_v61  ;;  %25345 = vmatprep.subr.mxu1 %v31835_v4  ;;  %v10383_v61 = vand.u32 4294901760, %v10382_v13  ;;  %v10842_v32 = vand.u32 4294901760, %v10841_v30 }
 0x34a   :  { %25366 = vmatprep.subr.mxu0 %v31835_v4  ;;  %25346 = vmatpush3.msra.mxu1 %v9926_v38 }
 0x34b   :  { %25347 = vmatprep.mubr.msk.f32.mxu1 %vm26638_vm1, %v31835_v4  ;;  %25367 = vmatpush3.msra.mxu0 %v9924_v31  ;;  %v10384_v31 = vsub.f32 %v10382_v13, %v10383_v61 }
 0x34c   :  { %25348 = vmatmul.mubr.f32.vlgmr.msra.gmra.mxu1 %v28581_v51  ;;  %25357 = vmatprep.subr.mxu1 %v31835_v4 }
 0x34d   :  { %25368 = vmatprep.mubr.msk.f32.mxu0 %vm26638_vm1, %v31835_v4  ;;  %25378 = vmatprep.subr.mxu0 %v31835_v4  ;;  %v10385_v7 = vand.u32 4294901760, %v10384_v31 }
 0x34e   :  { %25358 = vmatpush3.msra.mxu1 %v29418_v17  ;;  %25369 = vmatmul.mubr.f32.vlgmr.msra.gmra.mxu0 %v28581_v51 }
 0x34f   :  { %25379 = vmatpush3.msra.mxu0 %v29471_v15  ;;  %25359 = vmatprep.subr.mxu1 %v31835_v4 }
 0x350   :  { %25380 = vmatprep.subr.mxu0 %v31835_v4  ;;  %25360 = vmatpush3.msra.mxu1 %v29422_v9 }
 0x351   :  { %25361 = vmatprep.mubr.msk.f32.mxu1 %vm26638_vm1, %v31835_v4  ;;  %25381 = vmatpush3.msra.mxu0 %v29475_v42 }
 0x352   :  { %25362 = vmatmul.mubr.f32.vlgmr.msra.gmra.mxu1 %v28601_v54  ;;  %25371 = vmatprep.subr.mxu1 %v31835_v4 }
 0x353   :  { %25382 = vmatprep.mubr.msk.f32.mxu0 %vm26638_vm1, %v31835_v4  ;;  %25392 = vmatprep.subr.mxu0 %v31835_v4 }
 0x354   :  { %v5683_v0 = vpop.f32.mrf.mxu0  ;;  %25372 = vmatpush3.msra.mxu1 %v29418_v17  ;;  %25383 = vmatmul.mubr.f32.vlgmr.msra.gmra.mxu0 %v28616_v56  ;;  %v10378_v17 = vand.u32 4294901760, %v10377_v48 }
 0x355   :  { %25393 = vmatpush3.msra.mxu0 %v10375_v63  ;;  %25373 = vmatprep.subr.mxu1 %v31835_v4 }
 0x356   :  { %v24964_v24 = vpop.f32.mrf.mxu0  ;;  %25394 = vmatprep.subr.mxu0 %v31835_v4  ;;  %25374 = vmatpush3.msra.mxu1 %v29422_v9  ;;  %v29520_v9 = vand.u32 4294901760, %v29013_v49 }
 0x357   :  { %25375 = vmatprep.mubr.msk.f32.mxu1 %vm26638_vm1, %v31835_v4  ;;  %25395 = vmatpush3.msra.mxu0 %v10382_v13  ;;  %v31943_v13 = vld [vmem:[#allocation85_spill] sm:$0xff] }
 0x358   :  { %v5840_v59 = vpop.f32.mrf.mxu0  ;;  %25376 = vmatmul.mubr.f32.vlgmr.msra.gmra.mxu1 %v28581_v51  ;;  %25385 = vmatprep.subr.mxu1 %v31835_v4  ;;  %v10834_v50 = vsub.f32 %v29013_v49, %v29520_v9 }
 0x359   :  { %25396 = vmatprep.mubr.msk.f32.mxu0 %vm26638_vm1, %v31835_v4  ;;  %25406 = vmatprep.subr.mxu0 %v31835_v4 }
 0x35a   :  { %v24978_v19 = vpop.f32.mrf.mxu0  ;;  %25386 = vmatpush3.msra.mxu1 %v10378_v17  ;;  %25397 = vmatmul.mubr.f32.vlgmr.msra.gmra.mxu0 %v28591_v46  ;;  %v10835_v33 = vand.u32 4294901760, %v10834_v50  ;;  %v31944_v17 = vld [vmem:[#allocation99_spill] sm:$0xff] }
 0x35b   :  { %25407 = vmatpush3.msra.mxu0 %v10376_v37  ;;  %25387 = vmatprep.subr.mxu1 %v31835_v4  ;;  %v3238_v37 = vadd.f32 %v28642_v6, %v31943_v13  ;;  %v31945_v19 = vld [vmem:[#allocation92_spill] sm:$0xff] }
 0x35c   :  { %25408 = vmatprep.subr.mxu0 %v31835_v4  ;;  %25388 = vmatpush3.msra.mxu1 %v10385_v7  ;;  %v10836_v10 = vsub.f32 %v10834_v50, %v10835_v33  ;;  %v3334_v7 = vadd.f32 %v31945_v19, %v31944_v17 }
 0x35d   :  { %v5764_v34 = vpop.f32.mrf.mxu1  ;;  %25389 = vmatprep.mubr.msk.f32.mxu1 %vm26638_vm1, %v31835_v4  ;;  %25409 = vmatpush3.msra.mxu0 %v10383_v61 }
 0x35e   :  { %v5765_v1 = vadd.f32 %v5764_v34, %v5683_v0  ;;  %25390 = vmatmul.mubr.f32.vlgmr.msra.gmra.mxu1 %v28581_v51  ;;  %25399 = vmatprep.subr.mxu1 %v31835_v4  ;;  %v10843_v0 = vsub.f32 %v10841_v30, %v10842_v32 }
 0x35f   :  { %v24971_v44 = vpop.f32.mrf.mxu1  ;;  %v5992_v18 = vpop.f32.mrf.mxu0  ;;  %25410 = vmatprep.mubr.msk.f32.mxu0 %vm26638_vm1, %v31835_v4  ;;  %25420 = vmatprep.subr.mxu0 %v31835_v4 }
 0x360   :  { %v5841_v12 = vadd.f32 %v5840_v59, %v5765_v1  ;;  %25400 = vmatpush3.msra.mxu1 %v29471_v15  ;;  %25411 = vmatmul.mubr.f32.vlgmr.msra.gmra.mxu0 %v28581_v51  ;;  %v3881_v44 = vadd.f32 %v28741_v43, %v3334_v7 }
 0x361   :  { %v5915_v55 = vpop.f32.mrf.mxu1  ;;  %v24992_v49 = vpop.f32.mrf.mxu0  ;;  %25421 = vmatpush3.msra.mxu0 %v29520_v9  ;;  %25401 = vmatprep.subr.mxu1 %v31835_v4 }
 0x362   :  { %v5916_v27 = vadd.f32 %v5915_v55, %v5841_v12  ;;  %25422 = vmatprep.subr.mxu0 %v31835_v4  ;;  %25402 = vmatpush3.msra.mxu1 %v29475_v42  ;;  %v29621_v12 = vand.u32 4294901760, %v28739_v62 }
 0x363   :  { %v24985_v38 = vpop.f32.mrf.mxu1  ;;  %25403 = vmatprep.mubr.msk.f32.mxu1 %vm26638_vm1, %v31835_v4  ;;  %25423 = vmatpush3.msra.mxu0 %v29524_v53 }
 0x364   :  { %v5993_v63 = vadd.f32 %v5992_v18, %v5916_v27  ;;  %25404 = vmatmul.mubr.f32.vlgmr.msra.gmra.mxu1 %v28601_v54  ;;  %25413 = vmatprep.subr.mxu1 %v31835_v4  ;;  %v29625_v27 = vand.u32 4294901760, %v3881_v44  ;;  %v11785_v38 = vsub.f32 %v28739_v62, %v29621_v12 }
 0x365   :  { %v6065_v45 = vpop.f32.mrf.mxu1  ;;  %25424 = vmatprep.mubr.msk.f32.mxu0 %vm26638_vm1, %v31835_v4  ;;  %25434 = vmatprep.subr.mxu0 %v31835_v4 }
 0x366   :  { %v6066_v5 = vadd.f32 %v6065_v45, %v5993_v63  ;;  %25414 = vmatpush3.msra.mxu1 %v29471_v15  ;;  %25425 = vmatmul.mubr.f32.vlgmr.msra.gmra.mxu0 %v28616_v56  ;;  %v3785_v15 = vadd.f32 %v28648_v40, %v3238_v37  ;;  %v10844_v40 = vand.u32 4294901760, %v10843_v0  ;;  %v29638_v45 = vsub.f32 %v3881_v44, %v29625_v27 }
 0x367   :  { %v24999_v39 = vpop.f32.mrf.mxu1  ;;  %25435 = vmatpush3.msra.mxu0 %v10834_v50  ;;  %25415 = vmatprep.subr.mxu1 %v31835_v4  ;;  %v11786_v37 = vand.u32 4294901760, %v11785_v38 }
 0x368   :  { %v6532_v61 = vsub.f32 %v6066_v5, %v29372_v28  ;;  %25436 = vmatprep.subr.mxu0 %v31835_v4  ;;  %25416 = vmatpush3.msra.mxu1 %v29475_v42  ;;  %v10837_v28 = vand.u32 4294901760, %v10836_v10  ;;  %v6540_v42 = vadd.f32 0.0001, %v29385_v58  ;;  %v29578_v8 = vand.u32 4294901760, %v3785_v15 }
 0x369   :  { %25417 = vmatprep.mubr.msk.f32.mxu1 %vm26638_vm1, %v31835_v4  ;;  %25437 = vmatpush3.msra.mxu0 %v10841_v30  ;;  %v11326_v58 = vsub.f32 %v28646_v60, %v29572_v47  ;;  %v11793_v39 = vand.u32 4294901760, %v29638_v45 }
 0x36a   :  { %v6541_v6 = vadd.f32 %v6532_v61, %v6531_v3  ;;  %25418 = vmatmul.mubr.f32.vlgmr.msra.gmra.mxu1 %v28581_v51  ;;  %25427 = vmatprep.subr.mxu1 %v31835_v4  ;;  %v11333_v3 = vsub.f32 %v3785_v15, %v29578_v8  ;;  %v31946_v15 = vld [vmem:[#allocation113_spill] sm:$0xff] }
 0x36b   :  { %25438 = vmatprep.mubr.msk.f32.mxu0 %vm26638_vm1, %v31835_v4  ;;  %25448 = vmatprep.subr.mxu0 %v31835_v4  ;;  %v11327_v60 = vand.u32 4294901760, %v11326_v58 }
 0x36c   :  { %v6542_v48 = vadd.f32 0.0009, %v6541_v6  ;;  %25428 = vmatpush3.msra.mxu1 %v10837_v28  ;;  %25439 = vmatmul.mubr.f32.vlgmr.msra.gmra.mxu0 %v28591_v46  ;;  %v11334_v31 = vand.u32 4294901760, %v11333_v3  ;;  %v11787_v6 = vsub.f32 %v11785_v38, %v11786_v37  ;;  %v3430_v28 = vadd.f32 %v28828_v41, %v31946_v15 }
 0x36d   :  { %25449 = vmatpush3.msra.mxu0 %v10835_v33  ;;  %25429 = vmatprep.subr.mxu1 %v31835_v4  ;;  %v11328_v2 = vsub.f32 %v11326_v58, %v11327_v60 }
 0x36e   :  { %v29576_v25 = vmul.f32 %v6542_v48, %v6540_v42  ;;  %25450 = vmatprep.subr.mxu0 %v31835_v4  ;;  %25430 = vmatpush3.msra.mxu1 %v10844_v40  ;;  %v11335_v1 = vsub.f32 %v11333_v3, %v11334_v31  ;;  %v6534_v40 = vmul.f32 2.0, %v29374_v29 }
 0x36f   :  { %25431 = vmatprep.mubr.msk.f32.mxu1 %vm26638_vm1, %v31835_v4  ;;  %25451 = vmatpush3.msra.mxu0 %v10842_v32 }
 0x370   :  { %25432 = vmatmul.mubr.f32.vlgmr.msra.gmra.mxu1 %v28581_v51  ;;  %25441 = vmatprep.subr.mxu1 %v31835_v4  ;;  %v11336_v30 = vand.u32 4294901760, %v11335_v1  ;;  %26535 = vrcp.f32 %v29576_v25 }
 0x371   :  { %25452 = vmatprep.mubr.msk.f32.mxu0 %vm26638_vm1, %v31835_v4  ;;  %25462 = vmatprep.subr.mxu0 %v31835_v4 }
 0x372   :  { %25442 = vmatpush3.msra.mxu1 %v29520_v9  ;;  %25453 = vmatmul.mubr.f32.vlgmr.msra.gmra.mxu0 %v28581_v51 }
 0x373   :  { %25463 = vmatpush3.msra.mxu0 %v29572_v47  ;;  %25443 = vmatprep.subr.mxu1 %v31835_v4 }
 0x374   :  { %25464 = vmatprep.subr.mxu0 %v31835_v4  ;;  %25444 = vmatpush3.msra.mxu1 %v29524_v53  ;;  %v6142_v24 = vpop.f32.mrf.mxu0 }
 0x375   :  { %25445 = vmatprep.mubr.msk.f32.mxu1 %vm26638_vm1, %v31835_v4  ;;  %25465 = vmatpush3.msra.mxu0 %v29578_v8 }
 0x376   :  { %25446 = vmatmul.mubr.f32.vlgmr.msra.gmra.mxu1 %v28601_v54  ;;  %25455 = vmatprep.subr.mxu1 %v31835_v4  ;;  %v25006_v59 = vpop.f32.mrf.mxu0 }
 0x377   :  { %25466 = vmatprep.mubr.msk.f32.mxu0 %vm26638_vm1, %v31835_v4  ;;  %25476 = vmatprep.subr.mxu0 %v31835_v4  ;;  %v29676_v59 = vand.u32 4294901760, %v28832_v23 }
 0x378   :  { %25456 = vmatpush3.msra.mxu1 %v29520_v9  ;;  %25467 = vmatmul.mubr.f32.vlgmr.msra.gmra.mxu0 %v28616_v56  ;;  %v6299_v34 = vpop.f32.mrf.mxu0  ;;  %v11329_v9 = vand.u32 4294901760, %v11328_v2 }
 0x379   :  { %25477 = vmatpush3.msra.mxu0 %v11326_v58  ;;  %25457 = vmatprep.subr.mxu1 %v31835_v4  ;;  %v11794_v58 = vsub.f32 %v29638_v45, %v11793_v39 }
 0x37a   :  { %25478 = vmatprep.subr.mxu0 %v31835_v4  ;;  %25458 = vmatpush3.msra.mxu1 %v29524_v53  ;;  %v25020_v50 = vpop.f32.mrf.mxu0 }
 0x37b   :  { %25459 = vmatprep.mubr.msk.f32.mxu1 %vm26638_vm1, %v31835_v4  ;;  %25479 = vmatpush3.msra.mxu0 %v11333_v3  ;;  %v3977_v3 = vadd.f32 %v28834_v16, %v3430_v28  ;;  %v11795_v16 = vand.u32 4294901760, %v11794_v58 }
 0x37c   :  { %25460 = vmatmul.mubr.f32.vlgmr.msra.gmra.mxu1 %v28581_v51  ;;  %25469 = vmatprep.subr.mxu1 %v31835_v4  ;;  %v6223_v18 = vpop.f32.mrf.mxu1 }
 0x37d   :  { %25480 = vmatprep.mubr.msk.f32.mxu0 %vm26638_vm1, %v31835_v4  ;;  %25490 = vmatprep.subr.mxu0 %v31835_v4  ;;  %v6224_v53 = vadd.f32 %v6223_v18, %v6142_v24  ;;  %v29680_v1 = vand.u32 4294901760, %v3977_v3 }
 0x37e   :  { %25470 = vmatpush3.msra.mxu1 %v11329_v9  ;;  %25481 = vmatmul.mubr.f32.vlgmr.msra.gmra.mxu0 %v28591_v46  ;;  %v25013_v43 = vpop.f32.mrf.mxu1  ;;  %v6451_v55 = vpop.f32.mrf.mxu0  ;;  %v12244_v9 = vsub.f32 %v28832_v23, %v29676_v59 }
 0x37f   :  { %25491 = vmatpush3.msra.mxu0 %v11327_v60  ;;  %25471 = vmatprep.subr.mxu1 %v31835_v4  ;;  %v6300_v49 = vadd.f32 %v6299_v34, %v6224_v53  ;;  %v26536_v34 = vpop.eup %26535  ;;  %v31948_v43 = vld [vmem:[#allocation28_spill] sm:$0xff] }
 0x380   :  { %25492 = vmatprep.subr.mxu0 %v31835_v4  ;;  %25472 = vmatpush3.msra.mxu1 %v11336_v30  ;;  %v25034_v33 = vpop.f32.mrf.mxu0  ;;  %v31947_v30 = vld [vmem:[#allocation36_spill] sm:$0xff] }
 0x381   :  { %25473 = vmatprep.mubr.msk.f32.mxu1 %vm26638_vm1, %v31835_v4  ;;  %25493 = vmatpush3.msra.mxu0 %v11334_v31 }
 0x382   :  { %25474 = vmatmul.mubr.f32.vlgmr.msra.gmra.mxu1 %v28581_v51  ;;  %25483 = vmatprep.subr.mxu1 %v31835_v4  ;;  %v6374_v63 = vpop.f32.mrf.mxu1 }
 0x383   :  { %25494 = vmatprep.mubr.msk.f32.mxu0 %vm26638_vm1, %v31835_v4  ;;  %25504 = vmatprep.subr.mxu0 %v31835_v4  ;;  %v6375_v32 = vadd.f32 %v6374_v63, %v6300_v49  ;;  %v12251_v49 = vsub.f32 %v3977_v3, %v29680_v1  ;;  %v12245_v63 = vand.u32 4294901760, %v12244_v9 }
 0x384   :  { %25484 = vmatpush3.msra.mxu1 %v29572_v47  ;;  %25495 = vmatmul.mubr.f32.vlgmr.msra.gmra.mxu0 %v28581_v51  ;;  %v25027_v5 = vpop.f32.mrf.mxu1  ;;  %v6636_v62 = vpop.f32.mrf.mxu0 }
 0x385   :  { %25505 = vmatpush3.msra.mxu0 %v29621_v12  ;;  %25485 = vmatprep.subr.mxu1 %v31835_v4  ;;  %v6452_v13 = vadd.f32 %v6451_v55, %v6375_v32  ;;  %v2243_v55 = vadd.f32 %v31948_v43, %v31947_v30 }
 0x386   :  { %25506 = vmatprep.subr.mxu0 %v31835_v4  ;;  %25486 = vmatpush3.msra.mxu1 %v29578_v8  ;;  %v25048_v10 = vpop.f32.mrf.mxu0 }
 0x387   :  { %25487 = vmatprep.mubr.msk.f32.mxu1 %vm26638_vm1, %v31835_v4  ;;  %25507 = vmatpush3.msra.mxu0 %v29625_v27  ;;  %v12246_v10 = vsub.f32 %v12244_v9, %v12245_v63 }
 0x388   :  { %25488 = vmatmul.mubr.f32.vlgmr.msra.gmra.mxu1 %v28601_v54  ;;  %25497 = vmatprep.subr.mxu1 %v31835_v4  ;;  %v6524_v61 = vpop.f32.mrf.mxu1 }
 0x389   :  { %25508 = vmatprep.mubr.msk.f32.mxu0 %vm26638_vm1, %v31835_v4  ;;  %25518 = vmatprep.subr.mxu0 %v31835_v4  ;;  %v6525_v0 = vadd.f32 %v6524_v61, %v6452_v13 }
 0x38a   :  { %25498 = vmatpush3.msra.mxu1 %v29572_v47  ;;  %25509 = vmatmul.mubr.f32.vlgmr.msra.gmra.mxu0 %v28616_v56  ;;  %v25041_v42 = vpop.f32.mrf.mxu1  ;;  %v6793_v48 = vpop.f32.mrf.mxu0 }
 0x38b   :  { %25519 = vmatpush3.msra.mxu0 %v11785_v38  ;;  %25499 = vmatprep.subr.mxu1 %v31835_v4  ;;  %v6533_v25 = vsub.f32 %v6525_v0, %v29374_v29  ;;  %v11788_v29 = vand.u32 4294901760, %v11787_v6  ;;  %v29729_v42 = vand.u32 4294901760, %v28927_v36 }
 0x38c   :  { %25520 = vmatprep.subr.mxu0 %v31835_v4  ;;  %25500 = vmatpush3.msra.mxu1 %v29578_v8  ;;  %v25062_v41 = vpop.f32.mrf.mxu0  ;;  %v6535_v8 = vadd.f32 0.0001, %v6534_v40 }
 0x38d   :  { %25501 = vmatprep.mubr.msk.f32.mxu1 %vm26638_vm1, %v31835_v4  ;;  %25521 = vmatpush3.msra.mxu0 %v29638_v45  ;;  %v6536_v47 = vmul.f32 2.0, %v6533_v25  ;;  %v31949_v45 = vld [vmem:[#allocation31_spill] sm:$0xff] }
 0x38e   :  { %25502 = vmatmul.mubr.f32.vlgmr.msra.gmra.mxu1 %v28581_v51  ;;  %25511 = vmatprep.subr.mxu1 %v31835_v4  ;;  %v6717_v60 = vpop.f32.mrf.mxu1  ;;  %v2925_v5 = vadd.f32 %v31949_v45, %v2243_v55 }
 0x38f   :  { %25522 = vmatprep.mubr.msk.f32.mxu0 %vm26638_vm1, %v31835_v4  ;;  %25532 = vmatprep.subr.mxu0 %v31835_v4  ;;  %v6537_v24 = vadd.f32 0.0009, %v6536_v47  ;;  %v6718_v31 = vadd.f32 %v6717_v60, %v6636_v62  ;;  %v12252_v62 = vand.u32 4294901760, %v12251_v49  ;;  %v12703_v47 = vsub.f32 %v28927_v36, %v29729_v42  ;;  %v31950_v60 = vld [vmem:[#allocation53_spill] sm:$0xff] }
 0x390   :  { %25512 = vmatpush3.msra.mxu1 %v11788_v29  ;;  %25523 = vmatmul.mubr.f32.vlgmr.msra.gmra.mxu0 %v28591_v46  ;;  %v25055_v2 = vpop.f32.mrf.mxu1  ;;  %v6945_v17 = vpop.f32.mrf.mxu0 }
 0x391   :  { %25533 = vmatpush3.msra.mxu0 %v11786_v37  ;;  %25513 = vmatprep.subr.mxu1 %v31835_v4  ;;  %v6794_v19 = vadd.f32 %v6793_v48, %v6718_v31  ;;  %v6538_v7 = vmul.f32 %v6537_v24, %v6535_v8  ;;  %v12253_v6 = vsub.f32 %v12251_v49, %v12252_v62  ;;  %v31951_v8 = vld [vmem:[#allocation58_spill] sm:$0xff] }
 0x392   :  { %25534 = vmatprep.subr.mxu0 %v31835_v4  ;;  %25514 = vmatpush3.msra.mxu1 %v11795_v16  ;;  %v25076_v50 = vpop.f32.mrf.mxu0  ;;  %v2355_v24 = vadd.f32 %v31951_v8, %v31950_v60 }
 0x393   :  { %25515 = vmatprep.mubr.msk.f32.mxu1 %vm26638_vm1, %v31835_v4  ;;  %25535 = vmatpush3.msra.mxu0 %v11793_v39  ;;  %v29685_v44 = vmul.f32 %v26536_v34, %v6538_v7  ;;  %v3526_v39 = vadd.f32 %v28923_v52, %v2925_v5  ;;  %v12254_v48 = vand.u32 4294901760, %v12253_v6  ;;  %v31952_v7 = vld [vmem:[#allocation60_spill] sm:$0xff]  ;;  %v31953_v5 = vld [vmem:[#allocation133_spill] sm:$0xff] }
 0x394   :  { %25516 = vmatmul.mubr.f32.vlgmr.msra.gmra.mxu1 %v28581_v51  ;;  %25525 = vmatprep.subr.mxu1 %v31835_v4  ;;  %v6868_v18 = vpop.f32.mrf.mxu1  ;;  %v3053_v34 = vadd.f32 %v31952_v7, %v2355_v24  ;;  %v31957_v7 = vld [vmem:[#allocation79_spill] sm:$0xff] }
 0x395   :  { %25536 = vmatprep.mubr.msk.f32.mxu0 %vm26638_vm1, %v31835_v4  ;;  %25546 = vmatprep.subr.mxu0 %v31835_v4  ;;  %v6869_v53 = vadd.f32 %v6868_v18, %v6794_v19  ;;  %v4073_v52 = vadd.f32 %v28929_v57, %v3526_v39 }
 0x396   :  { %25526 = vmatpush3.msra.mxu1 %v29621_v12  ;;  %25537 = vmatmul.mubr.f32.vlgmr.msra.gmra.mxu0 %v28581_v51  ;;  %v25069_v23 = vpop.f32.mrf.mxu1  ;;  %v7095_v33 = vpop.f32.mrf.mxu0  ;;  %v3622_v30 = vadd.f32 %v29022_v22, %v3053_v34  ;;  %v29842_v34 = vand.u32 4294901760, %v31957_v7 }
 0x397   :  { %25547 = vmatpush3.msra.mxu0 %v29676_v59  ;;  %25527 = vmatprep.subr.mxu1 %v31835_v4  ;;  %v6946_v38 = vadd.f32 %v6945_v17, %v6869_v53  ;;  %v29733_v58 = vand.u32 4294901760, %v4073_v52  ;;  %v12704_v17 = vand.u32 4294901760, %v12703_v47 }
 0x398   :  { %25548 = vmatprep.subr.mxu0 %v31835_v4  ;;  %25528 = vmatpush3.msra.mxu1 %v29625_v27  ;;  %v25090_v32 = vpop.f32.mrf.mxu0 }
 0x399   :  { %25529 = vmatprep.mubr.msk.f32.mxu1 %vm26638_vm1, %v31835_v4  ;;  %25549 = vmatpush3.msra.mxu0 %v29680_v1  ;;  %v12710_v31 = vsub.f32 %v4073_v52, %v29733_v58  ;;  %v12705_v53 = vsub.f32 %v12703_v47, %v12704_v17 }
 0x39a   :  { %25530 = vmatmul.mubr.f32.vlgmr.msra.gmra.mxu1 %v28601_v54  ;;  %25539 = vmatprep.subr.mxu1 %v31835_v4  ;;  %v7018_v13 = vpop.f32.mrf.mxu1 }
 0x39b   :  { %25550 = vmatprep.mubr.msk.f32.mxu0 %vm26638_vm1, %v31835_v4  ;;  %25560 = vmatprep.subr.mxu0 %v31835_v4  ;;  %v29712_v37 = vadd.f32 %v7018_v13, %v6946_v38  ;;  %v12711_v50 = vand.u32 4294901760, %v12710_v31  ;;  %v12706_v32 = vand.u32 4294901760, %v12705_v53 }
 0x39c   :  { %25540 = vmatpush3.msra.mxu1 %v29621_v12  ;;  %25551 = vmatmul.mubr.f32.vlgmr.msra.gmra.mxu0 %v28616_v56  ;;  %v25083_v61 = vpop.f32.mrf.mxu1  ;;  %v7252_v0 = vpop.f32.mrf.mxu0  ;;  %v12247_v12 = vand.u32 4294901760, %v12246_v10 }
 0x39d   :  { %25561 = vmatpush3.msra.mxu0 %v12244_v9  ;;  %25541 = vmatprep.subr.mxu1 %v31835_v4  ;;  %v12712_v22 = vsub.f32 %v12710_v31, %v12711_v50 }
 0x39e   :  { %25562 = vmatprep.subr.mxu0 %v31835_v4  ;;  %25542 = vmatpush3.msra.mxu1 %v29625_v27  ;;  %v25104_v15 = vpop.f32.mrf.mxu0 }
 0x39f   :  { %25543 = vmatprep.mubr.msk.f32.mxu1 %vm26638_vm1, %v31835_v4  ;;  %25563 = vmatpush3.msra.mxu0 %v12251_v49  ;;  %v29769_v49 = vmul.f32 %v29712_v37, %v29712_v37  ;;  %v12713_v13 = vand.u32 4294901760, %v12712_v22 }
 0x3a0   :  { %25544 = vmatmul.mubr.f32.vlgmr.msra.gmra.mxu1 %v28581_v51  ;;  %25553 = vmatprep.subr.mxu1 %v31835_v4  ;;  %v7176_v28 = vpop.f32.mrf.mxu1 }
 0x3a1   :  { %25564 = vmatprep.mubr.msk.f32.mxu0 %vm26638_vm1, %v31835_v4  ;;  %25574 = vmatprep.subr.mxu0 %v31835_v4  ;;  %v7177_v27 = vadd.f32 %v7176_v28, %v7095_v33 }
 0x3a2   :  { %25554 = vmatpush3.msra.mxu1 %v12247_v12  ;;  %25565 = vmatmul.mubr.f32.vlgmr.msra.gmra.mxu0 %v28591_v46  ;;  %v25097_v57 = vpop.f32.mrf.mxu1  ;;  %v7404_v40 = vpop.f32.mrf.mxu0 }
 0x3a3   :  { %25575 = vmatpush3.msra.mxu0 %v12245_v63  ;;  %25555 = vmatprep.subr.mxu1 %v31835_v4  ;;  %v7253_v25 = vadd.f32 %v7252_v0, %v7177_v27  ;;  %v4169_v63 = vadd.f32 %v29031_v21, %v3622_v30 }
 0x3a4   :  { %25576 = vmatprep.subr.mxu0 %v31835_v4  ;;  %25556 = vmatpush3.msra.mxu1 %v12254_v48  ;;  %v25118_v41 = vpop.f32.mrf.mxu0 }
 0x3a5   :  { %25557 = vmatprep.mubr.msk.f32.mxu1 %vm26638_vm1, %v31835_v4  ;;  %25577 = vmatpush3.msra.mxu0 %v12252_v62  ;;  %v29791_v62 = vand.u32 4294901760, %v31953_v5  ;;  %v29795_v39 = vand.u32 4294901760, %v4169_v63 }
 0x3a6   :  { %25558 = vmatmul.mubr.f32.vlgmr.msra.gmra.mxu1 %v28581_v51  ;;  %25567 = vmatprep.subr.mxu1 %v31835_v4  ;;  %v7327_v3 = vpop.f32.mrf.mxu1 }
 0x3a7   :  { %25578 = vmatprep.mubr.msk.f32.mxu0 %vm26638_vm1, %v31835_v4  ;;  %25588 = vmatprep.subr.mxu0 %v31835_v4  ;;  %v7328_v29 = vadd.f32 %v7327_v3, %v7253_v25  ;;  %v13162_v0 = vsub.f32 %v31953_v5, %v29791_v62  ;;  %v13169_v52 = vsub.f32 %v4169_v63, %v29795_v39  ;;  %v31955_v3 = vld [vmem:[#allocation78_spill] sm:$0xff] }
 0x3a8   :  { %25568 = vmatpush3.msra.mxu1 %v29676_v59  ;;  %25579 = vmatmul.mubr.f32.vlgmr.msra.gmra.mxu0 %v28581_v51  ;;  %v25111_v36 = vpop.f32.mrf.mxu1  ;;  %v7554_v16 = vpop.f32.mrf.mxu0 }
 0x3a9   :  { %25589 = vmatpush3.msra.mxu0 %v29729_v42  ;;  %25569 = vmatprep.subr.mxu1 %v31835_v4  ;;  %v7405_v2 = vadd.f32 %v7404_v40, %v7328_v29  ;;  %v13163_v48 = vand.u32 4294901760, %v13162_v0  ;;  %v13170_v40 = vand.u32 4294901760, %v13169_v52 }
 0x3aa   :  { %25590 = vmatprep.subr.mxu0 %v31835_v4  ;;  %25570 = vmatpush3.msra.mxu1 %v29680_v1  ;;  %v25132_v19 = vpop.f32.mrf.mxu0 }
 0x3ab   :  { %25571 = vmatprep.mubr.msk.f32.mxu1 %vm26638_vm1, %v31835_v4  ;;  %25591 = vmatpush3.msra.mxu0 %v29733_v58  ;;  %v13164_v60 = vsub.f32 %v13162_v0, %v13163_v48  ;;  %v13171_v36 = vsub.f32 %v13169_v52, %v13170_v40 }
 0x3ac   :  { %25572 = vmatmul.mubr.f32.vlgmr.msra.gmra.mxu1 %v28601_v54  ;;  %25581 = vmatprep.subr.mxu1 %v31835_v4  ;;  %v7477_v9 = vpop.f32.mrf.mxu1 }
 0x3ad   :  { %25592 = vmatprep.mubr.msk.f32.mxu0 %vm26638_vm1, %v31835_v4  ;;  %25602 = vmatprep.subr.mxu0 %v31835_v4  ;;  %v7478_v18 = vadd.f32 %v7477_v9, %v7405_v2 }
 0x3ae   :  { %25582 = vmatpush3.msra.mxu1 %v29676_v59  ;;  %25593 = vmatmul.mubr.f32.vlgmr.msra.gmra.mxu0 %v28616_v56  ;;  %v25125_v43 = vpop.f32.mrf.mxu1  ;;  %v7711_v55 = vpop.f32.mrf.mxu0 }
 0x3af   :  { %25603 = vmatpush3.msra.mxu0 %v12703_v47  ;;  %25583 = vmatprep.subr.mxu1 %v31835_v4  ;;  %v29771_v23 = vmul.f32 %v7478_v18, %v7478_v18  ;;  %v29774_v33 = vmul.f32 %v7478_v18, %v29712_v37  ;;  %v31954_v47 = vld [vmem:[#allocation87_spill] sm:$0xff] }
 0x3b0   :  { %25604 = vmatprep.subr.mxu0 %v31835_v4  ;;  %25584 = vmatpush3.msra.mxu1 %v29680_v1  ;;  %v25146_v59 = vpop.f32.mrf.mxu0  ;;  %v3250_v29 = vadd.f32 %v31955_v3, %v31954_v47 }
 0x3b1   :  { %25585 = vmatprep.mubr.msk.f32.mxu1 %vm26638_vm1, %v31835_v4  ;;  %25605 = vmatpush3.msra.mxu0 %v12710_v31  ;;  %v29782_v38 = vadd.f32 %v29771_v23, %v29769_v49 }
 0x3b2   :  { %25586 = vmatmul.mubr.f32.vlgmr.msra.gmra.mxu1 %v28581_v51  ;;  %25595 = vmatprep.subr.mxu1 %v31835_v4  ;;  %v7635_v45 = vpop.f32.mrf.mxu1 }
 0x3b3   :  { %25606 = vmatprep.mubr.msk.f32.mxu0 %vm26638_vm1, %v31835_v4  ;;  %25616 = vmatprep.subr.mxu0 %v31835_v4  ;;  %v7636_v1 = vadd.f32 %v7635_v45, %v7554_v16 }
 0x3b4   :  { %25596 = vmatpush3.msra.mxu1 %v12706_v32  ;;  %25607 = vmatmul.mubr.f32.vlgmr.msra.gmra.mxu0 %v28591_v46  ;;  %v25139_v21 = vpop.f32.mrf.mxu1  ;;  %v7863_v37 = vpop.f32.mrf.mxu0 }
 0x3b5   :  { %25617 = vmatpush3.msra.mxu0 %v12704_v17  ;;  %25597 = vmatprep.subr.mxu1 %v31835_v4  ;;  %v7712_v10 = vadd.f32 %v7711_v55, %v7636_v1  ;;  %v13165_v17 = vand.u32 4294901760, %v13164_v60  ;;  %v13654_v55 = vsub.f32 %v31957_v7, %v29842_v34 }
 0x3b6   :  { %25618 = vmatprep.subr.mxu0 %v31835_v4  ;;  %25598 = vmatpush3.msra.mxu1 %v12713_v13  ;;  %v25160_v61 = vpop.f32.mrf.mxu0 }
 0x3b7   :  { %25599 = vmatprep.mubr.msk.f32.mxu1 %vm26638_vm1, %v31835_v4  ;;  %25619 = vmatpush3.msra.mxu0 %v12711_v50  ;;  %v13172_v50 = vand.u32 4294901760, %v13171_v36  ;;  %v13655_v5 = vand.u32 4294901760, %v13654_v55 }
 0x3b8   :  { %25600 = vmatmul.mubr.f32.vlgmr.msra.gmra.mxu1 %v28581_v51  ;;  %25609 = vmatprep.subr.mxu1 %v31835_v4  ;;  %v7786_v6 = vpop.f32.mrf.mxu1 }
 0x3b9   :  { %25620 = vmatprep.mubr.msk.f32.mxu0 %vm26638_vm1, %v31835_v4  ;;  %25630 = vmatprep.subr.mxu0 %v31835_v4  ;;  %v7787_v15 = vadd.f32 %v7786_v6, %v7712_v10  ;;  %v13656_v61 = vsub.f32 %v13654_v55, %v13655_v5  ;;  %v31959_v6 = vld [vmem:[#allocation19_spill] sm:$0xff] }
 0x3ba   :  { %25610 = vmatpush3.msra.mxu1 %v29729_v42  ;;  %25621 = vmatmul.mubr.f32.vlgmr.msra.gmra.mxu0 %v28581_v51  ;;  %v25153_v12 = vpop.f32.mrf.mxu1  ;;  %v8013_v28 = vpop.f32.mrf.mxu0 }
 0x3bb   :  { %25631 = vmatpush3.msra.mxu0 %v29791_v62  ;;  %25611 = vmatprep.subr.mxu1 %v31835_v4  ;;  %v7864_v27 = vadd.f32 %v7863_v37, %v7787_v15 }
 0x3bc   :  { %25632 = vmatprep.subr.mxu0 %v31835_v4  ;;  %25612 = vmatpush3.msra.mxu1 %v29733_v58  ;;  %v25174_v57 = vpop.f32.mrf.mxu0 }
 0x3bd   :  { %25613 = vmatprep.mubr.msk.f32.mxu1 %vm26638_vm1, %v31835_v4  ;;  %25633 = vmatpush3.msra.mxu0 %v29795_v39  ;;  %v31960_v57 = vld [vmem:[#allocation11_spill] sm:$0xff] }
 0x3be   :  { %25614 = vmatmul.mubr.f32.vlgmr.msra.gmra.mxu1 %v28601_v54  ;;  %25623 = vmatprep.subr.mxu1 %v31835_v4  ;;  %v7936_v25 = vpop.f32.mrf.mxu1 }
 0x3bf   :  { %25634 = vmatprep.mubr.msk.f32.mxu0 %vm26638_vm1, %v31835_v4  ;;  %25644 = vmatprep.subr.mxu0 %v31835_v4  ;;  %v29822_v41 = vadd.f32 %v7936_v25, %v7864_v27 }
 0x3c0   :  { %25624 = vmatpush3.msra.mxu1 %v29729_v42  ;;  %25635 = vmatmul.mubr.f32.vlgmr.msra.gmra.mxu0 %v28616_v56  ;;  %v25167_v8 = vpop.f32.mrf.mxu1  ;;  %v8170_v24 = vpop.f32.mrf.mxu0  ;;  %v31956_v42 = vld [vmem:[#allocation81_spill] sm:$0xff] }
 0x3c1   :  { %25645 = vmatpush3.msra.mxu0 %v13162_v0  ;;  %25625 = vmatprep.subr.mxu1 %v31835_v4  ;;  %v8861_v31 = vsub.f32 %v29822_v41, %v29769_v49  ;;  %v3797_v2 = vadd.f32 %v31956_v42, %v3250_v29  ;;  %v31958_v0 = vld [vmem:[#allocation100_spill] sm:$0xff]  ;;  %v31961_v29 = vld [vmem:[#allocation93_spill] sm:$0xff] }
 0x3c2   :  { %25646 = vmatprep.subr.mxu0 %v31835_v4  ;;  %25626 = vmatpush3.msra.mxu1 %v29733_v58  ;;  %v25188_v16 = vpop.f32.mrf.mxu0  ;;  %v3346_v15 = vadd.f32 %v31959_v6, %v31958_v0  ;;  %v29894_v49 = vand.u32 4294901760, %v31961_v29 }
 0x3c3   :  { %25627 = vmatprep.mubr.msk.f32.mxu1 %vm26638_vm1, %v31835_v4  ;;  %25647 = vmatpush3.msra.mxu0 %v13169_v52  ;;  %v29846_v30 = vand.u32 4294901760, %v3797_v2 }
 0x3c4   :  { %25628 = vmatmul.mubr.f32.vlgmr.msra.gmra.mxu1 %v28581_v51  ;;  %25637 = vmatprep.subr.mxu1 %v31835_v4  ;;  %v8094_v19 = vpop.f32.mrf.mxu1  ;;  %v29905_v16 = vsub.f32 %v31961_v29, %v29894_v49  ;;  %v31966_v29 = vld [vmem:[#allocation40_spill] sm:$0xff] }
 0x3c5   :  { %25648 = vmatprep.mubr.msk.f32.mxu0 %vm26638_vm1, %v31835_v4  ;;  %25658 = vmatprep.subr.mxu0 %v31835_v4  ;;  %v8095_v58 = vadd.f32 %v8094_v19, %v8013_v28  ;;  %v13661_v63 = vsub.f32 %v3797_v2, %v29846_v30 }
 0x3c6   :  { %25638 = vmatpush3.msra.mxu1 %v13165_v17  ;;  %25649 = vmatmul.mubr.f32.vlgmr.msra.gmra.mxu0 %v28591_v46  ;;  %v25181_v9 = vpop.f32.mrf.mxu1  ;;  %v8322_v18 = vpop.f32.mrf.mxu0 }
 0x3c7   :  { %25659 = vmatpush3.msra.mxu0 %v13163_v48  ;;  %25639 = vmatprep.subr.mxu1 %v31835_v4  ;;  %v8171_v53 = vadd.f32 %v8170_v24, %v8095_v58  ;;  %v13662_v21 = vand.u32 4294901760, %v13661_v63 }
 0x3c8   :  { %25660 = vmatprep.subr.mxu0 %v31835_v4  ;;  %25640 = vmatpush3.msra.mxu1 %v13172_v50  ;;  %v25202_v43 = vpop.f32.mrf.mxu0  ;;  %v14114_v50 = vand.u32 4294901760, %v29905_v16 }
 0x3c9   :  { %25641 = vmatprep.mubr.msk.f32.mxu1 %vm26638_vm1, %v31835_v4  ;;  %25661 = vmatpush3.msra.mxu0 %v13170_v40  ;;  %v13663_v27 = vsub.f32 %v13661_v63, %v13662_v21  ;;  %v3893_v40 = vadd.f32 %v31960_v57, %v3346_v15 }
 0x3ca   :  { %25642 = vmatmul.mubr.f32.vlgmr.msra.gmra.mxu1 %v28581_v51  ;;  %25651 = vmatprep.subr.mxu1 %v31835_v4  ;;  %v8245_v22 = vpop.f32.mrf.mxu1 }
 0x3cb   :  { %25662 = vmatprep.mubr.msk.f32.mxu0 %vm26638_vm1, %v31835_v4  ;;  %25672 = vmatprep.subr.mxu0 %v31835_v4  ;;  %v8246_v59 = vadd.f32 %v8245_v22, %v8171_v53  ;;  %v13664_v41 = vand.u32 4294901760, %v13663_v27  ;;  %v29898_v36 = vand.u32 4294901760, %v3893_v40  ;;  %v31962_v22 = vld [vmem:[#allocation117_spill] sm:$0xff] }
 0x3cc   :  { %25652 = vmatpush3.msra.mxu1 %v29791_v62  ;;  %25663 = vmatmul.mubr.f32.vlgmr.msra.gmra.mxu0 %v28581_v51  ;;  %v25195_v32 = vpop.f32.mrf.mxu1  ;;  %v8472_v45 = vpop.f32.mrf.mxu0 }
 0x3cd   :  { %25673 = vmatpush3.msra.mxu0 %v29842_v34  ;;  %25653 = vmatprep.subr.mxu1 %v31835_v4  ;;  %v8323_v1 = vadd.f32 %v8322_v18, %v8246_v59  ;;  %v29913_v17 = vsub.f32 %v3893_v40, %v29898_v36  ;;  %v31963_v59 = vld [vmem:[#allocation106_spill] sm:$0xff] }
 0x3ce   :  { %25674 = vmatprep.subr.mxu0 %v31835_v4  ;;  %25654 = vmatpush3.msra.mxu1 %v29795_v39  ;;  %v25216_v13 = vpop.f32.mrf.mxu0 }
 0x3cf   :  { %25655 = vmatprep.mubr.msk.f32.mxu1 %vm26638_vm1, %v31835_v4  ;;  %25675 = vmatpush3.msra.mxu0 %v29846_v30  ;;  %v14121_v18 = vand.u32 4294901760, %v29913_v17 }
 0x3d0   :  { %25656 = vmatmul.mubr.f32.vlgmr.msra.gmra.mxu1 %v28601_v54  ;;  %25665 = vmatprep.subr.mxu1 %v31835_v4  ;;  %v8395_v37 = vpop.f32.mrf.mxu1 }
 0x3d1   :  { %25676 = vmatprep.mubr.msk.f32.mxu0 %vm26638_vm1, %v31835_v4  ;;  %25686 = vmatprep.subr.mxu0 %v31835_v4  ;;  %v8396_v10 = vadd.f32 %v8395_v37, %v8323_v1  ;;  %v8864_v1 = vmul.f32 2.0, %v29774_v33  ;;  %v14122_v13 = vsub.f32 %v29913_v17, %v14121_v18  ;;  %v31964_v37 = vld [vmem:[#allocation110_spill] sm:$0xff] }
 0x3d2   :  { %25666 = vmatpush3.msra.mxu1 %v29791_v62  ;;  %25677 = vmatmul.mubr.f32.vlgmr.msra.gmra.mxu0 %v28616_v56  ;;  %v25209_v52 = vpop.f32.mrf.mxu1  ;;  %v8629_v12 = vpop.f32.mrf.mxu0 }
 0x3d3   :  { %25687 = vmatpush3.msra.mxu0 %v13654_v55  ;;  %25667 = vmatprep.subr.mxu1 %v31835_v4  ;;  %v8862_v28 = vsub.f32 %v8396_v10, %v29771_v23  ;;  %v13657_v23 = vand.u32 4294901760, %v13656_v61  ;;  %v14115_v55 = vsub.f32 %v29905_v16, %v14114_v50  ;;  %v31965_v52 = vld [vmem:[#allocation108_spill] sm:$0xff] }
 0x3d4   :  { %25688 = vmatprep.subr.mxu0 %v31835_v4  ;;  %25668 = vmatpush3.msra.mxu1 %v29795_v39  ;;  %v25230_v48 = vpop.f32.mrf.mxu0  ;;  %v8870_v39 = vadd.f32 0.0001, %v29782_v38 }
 0x3d5   :  { %25669 = vmatprep.mubr.msk.f32.mxu1 %vm26638_vm1, %v31835_v4  ;;  %25689 = vmatpush3.msra.mxu0 %v13661_v63  ;;  %v8871_v62 = vadd.f32 %v8862_v28, %v8861_v31  ;;  %v3442_v63 = vadd.f32 %v31963_v59, %v31962_v22  ;;  %v14123_v28 = vand.u32 4294901760, %v14122_v13  ;;  %v31970_v59 = vld [vmem:[#allocation123_spill] sm:$0xff] }
 0x3d6   :  { %25670 = vmatmul.mubr.f32.vlgmr.msra.gmra.mxu1 %v28581_v51  ;;  %25679 = vmatprep.subr.mxu1 %v31835_v4  ;;  %v8553_v25 = vpop.f32.mrf.mxu1 }
 0x3d7   :  { %25690 = vmatprep.mubr.msk.f32.mxu0 %vm26638_vm1, %v31835_v4  ;;  %25700 = vmatprep.subr.mxu0 %v31835_v4  ;;  %v8872_v47 = vadd.f32 0.0009, %v8871_v62  ;;  %v8554_v3 = vadd.f32 %v8553_v25, %v8472_v45  ;;  %v3989_v10 = vadd.f32 %v31964_v37, %v3442_v63 }
 0x3d8   :  { %25680 = vmatpush3.msra.mxu1 %v13657_v23  ;;  %25691 = vmatmul.mubr.f32.vlgmr.msra.gmra.mxu0 %v28591_v46  ;;  %v25223_v60 = vpop.f32.mrf.mxu1  ;;  %v8781_v8 = vpop.f32.mrf.mxu0 }
 0x3d9   :  { %25701 = vmatpush3.msra.mxu0 %v13655_v5  ;;  %25681 = vmatprep.subr.mxu1 %v31835_v4  ;;  %v8873_v24 = vmul.f32 %v8872_v47, %v8870_v39  ;;  %v8630_v31 = vadd.f32 %v8629_v12, %v8554_v3  ;;  %v29953_v12 = vand.u32 4294901760, %v31965_v52  ;;  %v29957_v40 = vand.u32 4294901760, %v3989_v10 }
 0x3da   :  { %25702 = vmatprep.subr.mxu0 %v31835_v4  ;;  %25682 = vmatpush3.msra.mxu1 %v13664_v41  ;;  %v25244_v38 = vpop.f32.mrf.mxu0  ;;  %v31967_v41 = vld [vmem:[#allocation32_spill] sm:$0xff] }
 0x3db   :  { %25683 = vmatprep.mubr.msk.f32.mxu1 %vm26638_vm1, %v31835_v4  ;;  %25703 = vmatpush3.msra.mxu0 %v13662_v21  ;;  %26537 = vrcp.f32 %v8873_v24  ;;  %v14572_v39 = vsub.f32 %v31965_v52, %v29953_v12  ;;  %v2257_v60 = vadd.f32 %v31967_v41, %v31966_v29 }
 0x3dc   :  { %25684 = vmatmul.mubr.f32.vlgmr.msra.gmra.mxu1 %v28581_v51  ;;  %25693 = vmatprep.subr.mxu1 %v31835_v4  ;;  %v8704_v42 = vpop.f32.mrf.mxu1 }
 0x3dd   :  { %25704 = vmatprep.mubr.msk.f32.mxu0 %vm26638_vm1, %v31835_v4  ;;  %25714 = vmatprep.subr.mxu0 %v31835_v4  ;;  %v8705_v2 = vadd.f32 %v8704_v42, %v8630_v31 }
 0x3de   :  { %25694 = vmatpush3.msra.mxu1 %v29842_v34  ;;  %25705 = vmatmul.mubr.f32.vlgmr.msra.gmra.mxu0 %v28581_v51  ;;  %v25237_v19 = vpop.f32.mrf.mxu1  ;;  %v8964_v58 = vpop.f32.mrf.mxu0 }
 0x3df   :  { %25715 = vmatpush3.msra.mxu0 %v29894_v49  ;;  %25695 = vmatprep.subr.mxu1 %v31835_v4  ;;  %v8782_v7 = vadd.f32 %v8781_v8, %v8705_v2  ;;  %v14579_v8 = vsub.f32 %v3989_v10, %v29957_v40  ;;  %v31968_v2 = vld [vmem:[#allocation33_spill] sm:$0xff] }
 0x3e0   :  { %25716 = vmatprep.subr.mxu0 %v31835_v4  ;;  %25696 = vmatpush3.msra.mxu1 %v29846_v30  ;;  %v25258_v9 = vpop.f32.mrf.mxu0 }
 0x3e1   :  { %25697 = vmatprep.mubr.msk.f32.mxu1 %vm26638_vm1, %v31835_v4  ;;  %25717 = vmatpush3.msra.mxu0 %v29898_v36  ;;  %v14580_v19 = vand.u32 4294901760, %v14579_v8  ;;  %v31969_v9 = vld [vmem:[#allocation121_spill] sm:$0xff] }
 0x3e2   :  { %25698 = vmatmul.mubr.f32.vlgmr.msra.gmra.mxu1 %v28601_v54  ;;  %25707 = vmatprep.subr.mxu1 %v31835_v4  ;;  %v8854_v53 = vpop.f32.mrf.mxu1 }
 0x3e3   :  { %25718 = vmatprep.mubr.msk.f32.mxu0 %vm26638_vm1, %v31835_v4  ;;  %25728 = vmatprep.subr.mxu0 %v31835_v4  ;;  %v8855_v43 = vadd.f32 %v8854_v53, %v8782_v7 }
 0x3e4   :  { %25708 = vmatpush3.msra.mxu1 %v29842_v34  ;;  %25719 = vmatmul.mubr.f32.vlgmr.msra.gmra.mxu0 %v28616_v56  ;;  %v25251_v32 = vpop.f32.mrf.mxu1  ;;  %v9121_v45 = vpop.f32.mrf.mxu0 }
 0x3e5   :  { %25729 = vmatpush3.msra.mxu0 %v29905_v16  ;;  %25709 = vmatprep.subr.mxu1 %v31835_v4  ;;  %v8863_v5 = vsub.f32 %v8855_v43, %v29774_v33  ;;  %v14116_v33 = vand.u32 4294901760, %v14115_v55  ;;  %v14573_v16 = vand.u32 4294901760, %v14572_v39  ;;  %v14581_v55 = vsub.f32 %v14579_v8, %v14580_v19 }
 0x3e6   :  { %25730 = vmatprep.subr.mxu0 %v31835_v4  ;;  %25710 = vmatpush3.msra.mxu1 %v29846_v30  ;;  %v25272_v21 = vpop.f32.mrf.mxu0  ;;  %v8865_v30 = vadd.f32 0.0001, %v8864_v1 }
 0x3e7   :  { %25711 = vmatprep.mubr.msk.f32.mxu1 %vm26638_vm1, %v31835_v4  ;;  %25731 = vmatpush3.msra.mxu0 %v29913_v17  ;;  %v8866_v34 = vmul.f32 2.0, %v8863_v5  ;;  %v2941_v17 = vadd.f32 %v31968_v2, %v2257_v60  ;;  %v14582_v5 = vand.u32 4294901760, %v14581_v55  ;;  %v31975_v60 = vld [vmem:[#allocation134_spill] sm:$0xff] }
 0x3e8   :  { %25712 = vmatmul.mubr.f32.vlgmr.msra.gmra.mxu1 %v28581_v51  ;;  %25721 = vmatprep.subr.mxu1 %v31835_v4  ;;  %v9045_v61 = vpop.f32.mrf.mxu1  ;;  %v26538_v15 = vpop.eup %26537 }
 0x3e9   :  { %25732 = vmatprep.mubr.msk.f32.mxu0 %vm26638_vm1, %v31835_v4  ;;  %25742 = vmatprep.subr.mxu0 %v31835_v4  ;;  %v8867_v0 = vadd.f32 0.0009, %v8866_v34  ;;  %v9046_v6 = vadd.f32 %v9045_v61, %v8964_v58 }
 0x3ea   :  { %25722 = vmatpush3.msra.mxu1 %v14116_v33  ;;  %25733 = vmatmul.mubr.f32.vlgmr.msra.gmra.mxu0 %v28591_v46  ;;  %v25265_v27 = vpop.f32.mrf.mxu1  ;;  %v9273_v48 = vpop.f32.mrf.mxu0 }
 0x3eb   :  { %25743 = vmatpush3.msra.mxu0 %v14114_v50  ;;  %25723 = vmatprep.subr.mxu1 %v31835_v4  ;;  %v9122_v62 = vadd.f32 %v9121_v45, %v9046_v6  ;;  %v8868_v57 = vmul.f32 %v8867_v0, %v8865_v30  ;;  %v14574_v50 = vsub.f32 %v14572_v39, %v14573_v16  ;;  %v31971_v45 = vld [vmem:[#allocation122_spill] sm:$0xff]  ;;  %v31972_v0 = vld [vmem:[#allocation55_spill] sm:$0xff] }
 0x3ec   :  { %25744 = vmatprep.subr.mxu0 %v31835_v4  ;;  %25724 = vmatpush3.msra.mxu1 %v14123_v28  ;;  %v25286_v23 = vpop.f32.mrf.mxu0  ;;  %v30006_v1 = vand.u32 4294901760, %v31971_v45  ;;  %v31973_v6 = vld [vmem:[#allocation62_spill] sm:$0xff] }
 0x3ed   :  { %25725 = vmatprep.mubr.msk.f32.mxu1 %vm26638_vm1, %v31835_v4  ;;  %25745 = vmatpush3.msra.mxu0 %v14121_v18  ;;  %v29962_v25 = vmul.f32 %v26538_v15, %v8868_v57  ;;  %v3538_v18 = vadd.f32 %v31969_v9, %v2941_v17  ;;  %v2369_v15 = vadd.f32 %v31973_v6, %v31972_v0  ;;  %v31974_v23 = vld [vmem:[#allocation64_spill] sm:$0xff]  ;;  %v31977_v9 = vld [vmem:[#allocation135_spill] sm:$0xff]  ;;  %v31978_v0 = vld [vmem:[#allocation89_spill] sm:$0xff] }
 0x3ee   :  { %25726 = vmatmul.mubr.f32.vlgmr.msra.gmra.mxu1 %v28581_v51  ;;  %25735 = vmatprep.subr.mxu1 %v31835_v4  ;;  %v9196_v47 = vpop.f32.mrf.mxu1  ;;  %v15031_v33 = vsub.f32 %v31971_v45, %v30006_v1  ;;  %v31979_v6 = vld [vmem:[#allocation82_spill] sm:$0xff] }
 0x3ef   :  { %25746 = vmatprep.mubr.msk.f32.mxu0 %vm26638_vm1, %v31835_v4  ;;  %25756 = vmatprep.subr.mxu0 %v31835_v4  ;;  %v9197_v3 = vadd.f32 %v9196_v47, %v9122_v62  ;;  %v4085_v63 = vadd.f32 %v31970_v59, %v3538_v18  ;;  %v30068_v18 = vand.u32 4294901760, %v31977_v9 }
 0x3f0   :  { %25736 = vmatpush3.msra.mxu1 %v29894_v49  ;;  %25747 = vmatmul.mubr.f32.vlgmr.msra.gmra.mxu0 %v28581_v51  ;;  %v25279_v24 = vpop.f32.mrf.mxu1  ;;  %v9423_v31 = vpop.f32.mrf.mxu0  ;;  %v15032_v62 = vand.u32 4294901760, %v15031_v33 }
 0x3f1   :  { %25757 = vmatpush3.msra.mxu0 %v29953_v12  ;;  %25737 = vmatprep.subr.mxu1 %v31835_v4  ;;  %v9274_v38 = vadd.f32 %v9273_v48, %v9197_v3  ;;  %v30010_v37 = vand.u32 4294901760, %v4085_v63 }
 0x3f2   :  { %25758 = vmatprep.subr.mxu0 %v31835_v4  ;;  %25738 = vmatpush3.msra.mxu1 %v29898_v36  ;;  %v25300_v42 = vpop.f32.mrf.mxu0  ;;  %v15033_v41 = vsub.f32 %v15031_v33, %v15032_v62 }
 0x3f3   :  { %25739 = vmatprep.mubr.msk.f32.mxu1 %vm26638_vm1, %v31835_v4  ;;  %25759 = vmatpush3.msra.mxu0 %v29957_v40  ;;  %v15038_v52 = vsub.f32 %v4085_v63, %v30010_v37 }
 0x3f4   :  { %25740 = vmatmul.mubr.f32.vlgmr.msra.gmra.mxu1 %v28601_v54  ;;  %25749 = vmatprep.subr.mxu1 %v31835_v4  ;;  %v9346_v58 = vpop.f32.mrf.mxu1 }
 0x3f5   :  { %25760 = vmatprep.mubr.msk.f32.mxu0 %vm26638_vm1, %v31835_v4  ;;  %25770 = vmatprep.subr.mxu0 %v31835_v4  ;;  %v29989_v7 = vadd.f32 %v9346_v58, %v9274_v38  ;;  %v15039_v47 = vand.u32 4294901760, %v15038_v52 }
 0x3f6   :  { %25750 = vmatpush3.msra.mxu1 %v29894_v49  ;;  %25761 = vmatmul.mubr.f32.vlgmr.msra.gmra.mxu0 %v28616_v56  ;;  %v25293_v53 = vpop.f32.mrf.mxu1  ;;  %v9580_v43 = vpop.f32.mrf.mxu0  ;;  %v14575_v49 = vand.u32 4294901760, %v14574_v50 }
 0x3f7   :  { %25771 = vmatpush3.msra.mxu0 %v14572_v39  ;;  %25751 = vmatprep.subr.mxu1 %v31835_v4  ;;  %v3069_v39 = vadd.f32 %v31974_v23, %v2369_v15  ;;  %v30046_v38 = vmul.f32 %v29989_v7, %v29989_v7  ;;  %v3262_v15 = vadd.f32 %v31979_v6, %v31978_v0 }
 0x3f8   :  { %25772 = vmatprep.subr.mxu0 %v31835_v4  ;;  %25752 = vmatpush3.msra.mxu1 %v29898_v36  ;;  %v25314_v22 = vpop.f32.mrf.mxu0 }
 0x3f9   :  { %25753 = vmatprep.mubr.msk.f32.mxu1 %vm26638_vm1, %v31835_v4  ;;  %25773 = vmatpush3.msra.mxu0 %v14579_v8  ;;  %v3634_v8 = vadd.f32 %v31975_v60, %v3069_v39 }
 0x3fa   :  { %25754 = vmatmul.mubr.f32.vlgmr.msra.gmra.mxu1 %v28581_v51  ;;  %25763 = vmatprep.subr.mxu1 %v31835_v4  ;;  %v9504_v32 = vpop.f32.mrf.mxu1 }
 0x3fb   :  { %25774 = vmatprep.mubr.msk.f32.mxu0 %vm26638_vm1, %v31835_v4  ;;  %25784 = vmatprep.subr.mxu0 %v31835_v4  ;;  %v9505_v36 = vadd.f32 %v9504_v32, %v9423_v31 }
 0x3fc   :  { %25764 = vmatpush3.msra.mxu1 %v14575_v49  ;;  %25775 = vmatmul.mubr.f32.vlgmr.msra.gmra.mxu0 %v28591_v46  ;;  %v25307_v13 = vpop.f32.mrf.mxu1  ;;  %v9732_v21 = vpop.f32.mrf.mxu0  ;;  %v30079_v49 = vsub.f32 %v31977_v9, %v30068_v18 }
 0x3fd   :  { %25785 = vmatpush3.msra.mxu0 %v14573_v16  ;;  %25765 = vmatprep.subr.mxu1 %v31835_v4  ;;  %v9581_v34 = vadd.f32 %v9580_v43, %v9505_v36 }
 0x3fe   :  { %25786 = vmatprep.subr.mxu0 %v31835_v4  ;;  %25766 = vmatpush3.msra.mxu1 %v14582_v5  ;;  %v25328_v10 = vpop.f32.mrf.mxu0 }
 0x3ff   :  { %25767 = vmatprep.mubr.msk.f32.mxu1 %vm26638_vm1, %v31835_v4  ;;  %25787 = vmatpush3.msra.mxu0 %v14580_v19  ;;  %v31976_v19 = vld [vmem:[#allocation136_spill] sm:$0xff] }
 0x400   :  { %25768 = vmatmul.mubr.f32.vlgmr.msra.gmra.mxu1 %v28581_v51  ;;  %25777 = vmatprep.subr.mxu1 %v31835_v4  ;;  %v9655_v61 = vpop.f32.mrf.mxu1  ;;  %v4181_v58 = vadd.f32 %v31976_v19, %v3634_v8 }
 0x401   :  { %25788 = vmatprep.mubr.msk.f32.mxu0 %vm26638_vm1, %v31835_v4  ;;  %25798 = vmatprep.subr.mxu0 %v31835_v4  ;;  %v9656_v30 = vadd.f32 %v9655_v61, %v9581_v34  ;;  %v15491_v34 = vand.u32 4294901760, %v30079_v49 }
 0x402   :  { %25778 = vmatpush3.msra.mxu1 %v29953_v12  ;;  %25789 = vmatmul.mubr.f32.vlgmr.msra.gmra.mxu0 %v28581_v51  ;;  %v25321_v28 = vpop.f32.mrf.mxu1  ;;  %v9882_v27 = vpop.f32.mrf.mxu0  ;;  %v30072_v59 = vand.u32 4294901760, %v4181_v58 }
 0x403   :  { %25799 = vmatpush3.msra.mxu0 %v30006_v1  ;;  %25779 = vmatprep.subr.mxu1 %v31835_v4  ;;  %v9733_v48 = vadd.f32 %v9732_v21, %v9656_v30  ;;  %v6547_v28 = vsel %vm6546_vm2, %v29685_v44, 0.0  ;;  %v31980_v44 = vld [vmem:[#allocation16_spill] sm:$0xff] }
 0x404   :  { %25800 = vmatprep.subr.mxu0 %v31835_v4  ;;  %25780 = vmatpush3.msra.mxu1 %v29957_v40  ;;  %v25342_v57 = vpop.f32.mrf.mxu0  ;;  %v15497_v45 = vsub.f32 %v4181_v58, %v30072_v59  ;;  %v3809_v23 = vadd.f32 %v31980_v44, %v3262_v15 }
 0x405   :  { %25781 = vmatprep.mubr.msk.f32.mxu1 %vm26638_vm1, %v31835_v4  ;;  %25801 = vmatpush3.msra.mxu0 %v30010_v37 }
 0x406   :  { %25782 = vmatmul.mubr.f32.vlgmr.msra.gmra.mxu1 %v28601_v54  ;;  %25791 = vmatprep.subr.mxu1 %v31835_v4  ;;  %v9805_v3 = vpop.f32.mrf.mxu1 }
 0x407   :  { %25802 = vmatprep.mubr.msk.f32.mxu0 %vm26638_vm1, %v31835_v4  ;;  %25812 = vmatprep.subr.mxu0 %v31835_v4  ;;  %v9806_v29 = vadd.f32 %v9805_v3, %v9733_v48 }
 0x408   :  { %25792 = vmatpush3.msra.mxu1 %v29953_v12  ;;  %25803 = vmatmul.mubr.f32.vlgmr.msra.gmra.mxu0 %v28616_v56  ;;  %v25335_v24 = vpop.f32.mrf.mxu1  ;;  %v10039_v31 = vpop.f32.mrf.mxu0  ;;  %v15040_v12 = vsub.f32 %v15038_v52, %v15039_v47 }
 0x409   :  { %25813 = vmatpush3.msra.mxu0 %v15031_v33  ;;  %25793 = vmatprep.subr.mxu1 %v31835_v4  ;;  %v30048_v16 = vmul.f32 %v9806_v29, %v9806_v29  ;;  %v30051_v42 = vmul.f32 %v9806_v29, %v29989_v7  ;;  %v15034_v7 = vand.u32 4294901760, %v15033_v41  ;;  %v15498_v33 = vand.u32 4294901760, %v15497_v45 }
 0x40a   :  { %25814 = vmatprep.subr.mxu0 %v31835_v4  ;;  %25794 = vmatpush3.msra.mxu1 %v29957_v40  ;;  %v25356_v2 = vpop.f32.mrf.mxu0  ;;  %v15041_v53 = vand.u32 4294901760, %v15040_v12 }
 0x40b   :  { %25795 = vmatprep.mubr.msk.f32.mxu1 %vm26638_vm1, %v31835_v4  ;;  %25815 = vmatpush3.msra.mxu0 %v15038_v52  ;;  %v30059_v17 = vadd.f32 %v30048_v16, %v30046_v38  ;;  %v15492_v52 = vsub.f32 %v30079_v49, %v15491_v34  ;;  %v15499_v57 = vsub.f32 %v15497_v45, %v15498_v33 }
 0x40c   :  { %25796 = vmatmul.mubr.f32.vlgmr.msra.gmra.mxu1 %v28581_v51  ;;  %25805 = vmatprep.subr.mxu1 %v31835_v4  ;;  %v9963_v50 = vpop.f32.mrf.mxu1 }
 0x40d   :  { %25816 = vmatprep.mubr.msk.f32.mxu0 %vm26638_vm1, %v31835_v4  ;;  %25826 = vmatprep.subr.mxu0 %v31835_v4  ;;  %v9964_v40 = vadd.f32 %v9963_v50, %v9882_v27  ;;  %v15493_v39 = vand.u32 4294901760, %v15492_v52  ;;  %v15500_v41 = vand.u32 4294901760, %v15499_v57  ;;  %v11198_v0 = vadd.f32 0.0001, %v30059_v17  ;;  %v31985_v52 = vld [vmem:[#allocation24_spill] sm:$0xff] }
 0x40e   :  { %25806 = vmatpush3.msra.mxu1 %v15034_v7  ;;  %25817 = vmatmul.mubr.f32.vlgmr.msra.gmra.mxu0 %v28591_v46  ;;  %v25349_v43 = vpop.f32.mrf.mxu1  ;;  %v10191_v55 = vpop.f32.mrf.mxu0 }
 0x40f   :  { %25827 = vmatpush3.msra.mxu0 %v15032_v62  ;;  %25807 = vmatprep.subr.mxu1 %v31835_v4  ;;  %v10040_v22 = vadd.f32 %v10039_v31, %v9964_v40  ;;  %v30130_v31 = vand.u32 4294901760, %v3809_v23 }
 0x410   :  { %25828 = vmatprep.subr.mxu0 %v31835_v4  ;;  %25808 = vmatpush3.msra.mxu1 %v15041_v53  ;;  %v25370_v63 = vpop.f32.mrf.mxu0 }
 0x411   :  { %25809 = vmatprep.mubr.msk.f32.mxu1 %vm26638_vm1, %v31835_v4  ;;  %25829 = vmatpush3.msra.mxu0 %v15039_v47  ;;  %v30144_v7 = vsub.f32 %v3809_v23, %v30130_v31 }
 0x412   :  { %25810 = vmatmul.mubr.f32.vlgmr.msra.gmra.mxu1 %v28581_v51  ;;  %25819 = vmatprep.subr.mxu1 %v31835_v4  ;;  %v10114_v32 = vpop.f32.mrf.mxu1 }
 0x413   :  { %25830 = vmatprep.mubr.msk.f32.mxu0 %vm26638_vm1, %v31835_v4  ;;  %25840 = vmatprep.subr.mxu0 %v31835_v4  ;;  %v10115_v36 = vadd.f32 %v10114_v32, %v10040_v22  ;;  %v31982_v32 = vld [vmem:[#allocation104_spill] sm:$0xff] }
 0x414   :  { %25820 = vmatpush3.msra.mxu1 %v30006_v1  ;;  %25831 = vmatmul.mubr.f32.vlgmr.msra.gmra.mxu0 %v28581_v51  ;;  %v25363_v5 = vpop.f32.mrf.mxu1  ;;  %v10341_v13 = vpop.f32.mrf.mxu0 }
 0x415   :  { %25841 = vmatpush3.msra.mxu0 %v30068_v18  ;;  %25821 = vmatprep.subr.mxu1 %v31835_v4  ;;  %v10192_v21 = vadd.f32 %v10191_v55, %v10115_v36  ;;  %v15990_v55 = vand.u32 4294901760, %v30144_v7  ;;  %v31983_v36 = vld [vmem:[#allocation96_spill] sm:$0xff] }
 0x416   :  { %25842 = vmatprep.subr.mxu0 %v31835_v4  ;;  %25822 = vmatpush3.msra.mxu1 %v30010_v37  ;;  %v25384_v10 = vpop.f32.mrf.mxu0 }
 0x417   :  { %25823 = vmatprep.mubr.msk.f32.mxu1 %vm26638_vm1, %v31835_v4  ;;  %25843 = vmatpush3.msra.mxu0 %v30072_v59 }
 0x418   :  { %25824 = vmatmul.mubr.f32.vlgmr.msra.gmra.mxu1 %v28601_v54  ;;  %25833 = vmatprep.subr.mxu1 %v31835_v4  ;;  %v10264_v61 = vpop.f32.mrf.mxu1 }
 0x419   :  { %25844 = vmatprep.mubr.msk.f32.mxu0 %vm26638_vm1, %v31835_v4  ;;  %25854 = vmatprep.subr.mxu0 %v31835_v4  ;;  %v30102_v30 = vadd.f32 %v10264_v61, %v10192_v21 }
 0x41a   :  { %25834 = vmatpush3.msra.mxu1 %v30006_v1  ;;  %25845 = vmatmul.mubr.f32.vlgmr.msra.gmra.mxu0 %v28616_v56  ;;  %v25377_v27 = vpop.f32.mrf.mxu1  ;;  %v10498_v48 = vpop.f32.mrf.mxu0 }
 0x41b   :  { %25855 = vmatpush3.msra.mxu0 %v30079_v49  ;;  %25835 = vmatprep.subr.mxu1 %v31835_v4  ;;  %v11189_v62 = vsub.f32 %v30102_v30, %v30046_v38  ;;  %v30187_v38 = vand.u32 4294901760, %v31985_v52 }
 0x41c   :  { %25856 = vmatprep.subr.mxu0 %v31835_v4  ;;  %25836 = vmatpush3.msra.mxu1 %v30010_v37  ;;  %v25398_v1 = vpop.f32.mrf.mxu0  ;;  %v31981_v37 = vld [vmem:[#allocation83_spill] sm:$0xff] }
 0x41d   :  { %25837 = vmatprep.mubr.msk.f32.mxu1 %vm26638_vm1, %v31835_v4  ;;  %6548 = vadd.xlane.f32.xlu0 %v6547_v28  ;;  %v30125_v29 = vand.u32 4294901760, %v31981_v37  ;;  %v30199_v1 = vsub.f32 %v31985_v52, %v30187_v38 }
 0x41e   :  { %25857 = vmatpush3.msra.mxu0 %v15497_v45  ;;  %25838 = vmatmul.mubr.f32.vlgmr.msra.gmra.mxu1 %v28581_v51  ;;  %v10422_v47 = vpop.f32.mrf.mxu1  ;;  %v3358_v45 = vadd.f32 %v31983_v36, %v31982_v32 }
 0x41f   :  { %25847 = vmatprep.subr.mxu1 %v31835_v4  ;;  %25858 = vmatprep.mubr.msk.f32.mxu0 %vm26638_vm1, %v31835_v4  ;;  %v10423_v3 = vadd.f32 %v10422_v47, %v10341_v13  ;;  %v30137_v2 = vsub.f32 %v31981_v37, %v30125_v29 }
 0x420   :  { %25868 = vmatprep.subr.mxu0 %v31835_v4  ;;  %25848 = vmatpush3.msra.mxu1 %v15493_v39  ;;  %v25391_v60 = vpop.f32.mrf.mxu1  ;;  %v10650_v8 = vpop.f32.mrf.mxu0 }
 0x421   :  { %25859 = vmatmul.mubr.f32.vlgmr.msra.gmra.mxu0 %v28591_v46  ;;  %25849 = vmatprep.subr.mxu1 %v31835_v4  ;;  %v10499_v24 = vadd.f32 %v10498_v48, %v10423_v3  ;;  %v15983_v53 = vand.u32 4294901760, %v30137_v2 }
 0x422   :  { %25869 = vmatpush3.msra.mxu0 %v15491_v34  ;;  %25850 = vmatpush3.msra.mxu1 %v15500_v41  ;;  %v25412_v12 = vpop.f32.mrf.mxu0  ;;  %v15991_v34 = vsub.f32 %v30144_v7, %v15990_v55  ;;  %v16442_v41 = vand.u32 4294901760, %v30199_v1 }
 0x423   :  { %25870 = vmatprep.subr.mxu0 %v31835_v4  ;;  %25851 = vmatprep.mubr.msk.f32.mxu1 %vm26638_vm1, %v31835_v4  ;;  %v15984_v49 = vsub.f32 %v30137_v2, %v15983_v53 }
 0x424   :  { %25871 = vmatpush3.msra.mxu0 %v15498_v33  ;;  %25852 = vmatmul.mubr.f32.vlgmr.msra.gmra.mxu1 %v28581_v51  ;;  %v10573_v19 = vpop.f32.mrf.mxu1  ;;  %v31984_v33 = vld [vmem:[#allocation97_spill] sm:$0xff]  ;;  %v15992_v30 = vand.u32 4294901760, %v15991_v34 }
 0x425   :  { %25861 = vmatprep.subr.mxu1 %v31835_v4  ;;  %25872 = vmatprep.mubr.msk.f32.mxu0 %vm26638_vm1, %v31835_v4  ;;  %v10574_v58 = vadd.f32 %v10573_v19, %v10499_v24  ;;  %v3905_v61 = vadd.f32 %v31984_v33, %v3358_v45  ;;  %v31986_v19 = vld [vmem:[#allocation13_spill] sm:$0xff] }
 0x426   :  { %25882 = vmatprep.subr.mxu0 %v31835_v4  ;;  %25862 = vmatpush3.msra.mxu1 %v30068_v18  ;;  %v25405_v50 = vpop.f32.mrf.mxu1  ;;  %v10800_v40 = vpop.f32.mrf.mxu0 }
 0x427   :  { %25873 = vmatmul.mubr.f32.vlgmr.msra.gmra.mxu0 %v28581_v51  ;;  %25863 = vmatprep.subr.mxu1 %v31835_v4  ;;  %v10651_v9 = vadd.f32 %v10650_v8, %v10574_v58  ;;  %v30192_v57 = vand.u32 4294901760, %v3905_v61  ;;  %v31987_v58 = vld [vmem:[#allocation29_spill] sm:$0xff] }
 0x428   :  { %25883 = vmatpush3.msra.mxu0 %v30125_v29  ;;  %25864 = vmatpush3.msra.mxu1 %v30072_v59  ;;  %v25426_v43 = vpop.f32.mrf.mxu0 }
 0x429   :  { %25884 = vmatprep.subr.mxu0 %v31835_v4  ;;  %25865 = vmatprep.mubr.msk.f32.mxu1 %vm26638_vm1, %v31835_v4  ;;  %v30206_v39 = vsub.f32 %v3905_v61, %v30192_v57 }
 0x42a   :  { %25885 = vmatpush3.msra.mxu0 %v30130_v31  ;;  %25866 = vmatmul.mubr.f32.vlgmr.msra.gmra.mxu1 %v28601_v54  ;;  %v10723_v22 = vpop.f32.mrf.mxu1 }
 0x42b   :  { %25875 = vmatprep.subr.mxu1 %v31835_v4  ;;  %25886 = vmatprep.mubr.msk.f32.mxu0 %vm26638_vm1, %v31835_v4  ;;  %v10724_v63 = vadd.f32 %v10723_v22, %v10651_v9  ;;  %v16449_v8 = vand.u32 4294901760, %v30206_v39  ;;  %v11192_v9 = vmul.f32 2.0, %v30051_v42  ;;  %v31988_v22 = vld [vmem:[#allocation114_spill] sm:$0xff] }
 0x42c   :  { %25896 = vmatprep.subr.mxu0 %v31835_v4  ;;  %25876 = vmatpush3.msra.mxu1 %v30068_v18  ;;  %v25419_v5 = vpop.f32.mrf.mxu1  ;;  %v10957_v13 = vpop.f32.mrf.mxu0 }
 0x42d   :  { %25887 = vmatmul.mubr.f32.vlgmr.msra.gmra.mxu0 %v28616_v56  ;;  %25877 = vmatprep.subr.mxu1 %v31835_v4  ;;  %v11190_v21 = vsub.f32 %v10724_v63, %v30048_v16  ;;  %v15985_v16 = vand.u32 4294901760, %v15984_v49  ;;  %v16450_v43 = vsub.f32 %v30206_v39, %v16449_v8  ;;  %v31989_v5 = vld [vmem:[#allocation112_spill] sm:$0xff] }
 0x42e   :  { %25897 = vmatpush3.msra.mxu0 %v30137_v2  ;;  %25878 = vmatpush3.msra.mxu1 %v30072_v59  ;;  %v25440_v10 = vpop.f32.mrf.mxu0  ;;  %v16443_v2 = vsub.f32 %v30199_v1, %v16442_v41 }
 0x42f   :  { %25898 = vmatprep.subr.mxu0 %v31835_v4  ;;  %25879 = vmatprep.mubr.msk.f32.mxu1 %vm26638_vm1, %v31835_v4  ;;  %v11199_v18 = vadd.f32 %v11190_v21, %v11189_v62  ;;  %v16451_v21 = vand.u32 4294901760, %v16450_v43 }
 0x430   :  { %25899 = vmatpush3.msra.mxu0 %v30144_v7  ;;  %25880 = vmatmul.mubr.f32.vlgmr.msra.gmra.mxu1 %v28581_v51  ;;  %v10881_v59 = vpop.f32.mrf.mxu1  ;;  %v3454_v7 = vadd.f32 %v31987_v58, %v31986_v19 }
 0x431   :  { %25889 = vmatprep.subr.mxu1 %v31835_v4  ;;  %25900 = vmatprep.mubr.msk.f32.mxu0 %vm26638_vm1, %v31835_v4  ;;  %v11200_v6 = vadd.f32 0.0009, %v11199_v18  ;;  %v10882_v15 = vadd.f32 %v10881_v59, %v10800_v40 }
 0x432   :  { %25910 = vmatprep.subr.mxu0 %v31835_v4  ;;  %25890 = vmatpush3.msra.mxu1 %v15985_v16  ;;  %v25433_v28 = vpop.f32.mrf.mxu1  ;;  %v11109_v27 = vpop.f32.mrf.mxu0  ;;  %v4001_v63 = vadd.f32 %v31988_v22, %v3454_v7  ;;  %v31994_v7 = vld [vmem:[#allocation126_spill] sm:$0xff] }
 0x433   :  { %25901 = vmatmul.mubr.f32.vlgmr.msra.gmra.mxu0 %v28591_v46  ;;  %25891 = vmatprep.subr.mxu1 %v31835_v4  ;;  %v11201_v48 = vmul.f32 %v11200_v6, %v11198_v0  ;;  %v10958_v62 = vadd.f32 %v10957_v13, %v10882_v15  ;;  %v30246_v13 = vand.u32 4294901760, %v31989_v5 }
 0x434   :  { %25911 = vmatpush3.msra.mxu0 %v15983_v53  ;;  %25892 = vmatpush3.msra.mxu1 %v15992_v30  ;;  %v25454_v17 = vpop.f32.mrf.mxu0  ;;  %v30251_v61 = vand.u32 4294901760, %v4001_v63 }
 0x435   :  { %25912 = vmatprep.subr.mxu0 %v31835_v4  ;;  %25893 = vmatprep.mubr.msk.f32.mxu1 %vm26638_vm1, %v31835_v4  ;;  %26539 = vrcp.f32 %v11201_v48  ;;  %v16900_v0 = vsub.f32 %v31989_v5, %v30246_v13  ;;  %v31991_v48 = vld [vmem:[#allocation37_spill] sm:$0xff] }
 0x436   :  { %25913 = vmatpush3.msra.mxu0 %v15990_v55  ;;  %25894 = vmatmul.mubr.f32.vlgmr.msra.gmra.mxu1 %v28581_v51  ;;  %v11032_v44 = vpop.f32.mrf.mxu1  ;;  %v16907_v52 = vsub.f32 %v4001_v63, %v30251_v61 }
 0x437   :  { %25903 = vmatprep.subr.mxu1 %v31835_v4  ;;  %25914 = vmatprep.mubr.msk.f32.mxu0 %vm26638_vm1, %v31835_v4  ;;  %v11033_v23 = vadd.f32 %v11032_v44, %v10958_v62 }
 0x438   :  { %25924 = vmatprep.subr.mxu0 %v31835_v4  ;;  %25904 = vmatpush3.msra.mxu1 %v30125_v29  ;;  %v25447_v47 = vpop.f32.mrf.mxu1  ;;  %v11292_v3 = vpop.f32.mrf.mxu0 }
 0x439   :  { %25915 = vmatmul.mubr.f32.vlgmr.msra.gmra.mxu0 %v28581_v51  ;;  %25905 = vmatprep.subr.mxu1 %v31835_v4  ;;  %v11110_v37 = vadd.f32 %v11109_v27, %v11033_v23  ;;  %v31990_v27 = vld [vmem:[#allocation41_spill] sm:$0xff]  ;;  %v16908_v23 = vand.u32 4294901760, %v16907_v52  ;;  %v31992_v47 = vld [vmem:[#allocation38_spill] sm:$0xff] }
 0x43a   :  { %25925 = vmatpush3.msra.mxu0 %v30187_v38  ;;  %25906 = vmatpush3.msra.mxu1 %v30130_v31  ;;  %v25468_v60 = vpop.f32.mrf.mxu0  ;;  %v2271_v62 = vadd.f32 %v31991_v48, %v31990_v27 }
 0x43b   :  { %25926 = vmatprep.subr.mxu0 %v31835_v4  ;;  %25907 = vmatprep.mubr.msk.f32.mxu1 %vm26638_vm1, %v31835_v4 }
 0x43c   :  { %25927 = vmatpush3.msra.mxu0 %v30192_v57  ;;  %25908 = vmatmul.mubr.f32.vlgmr.msra.gmra.mxu1 %v28601_v54  ;;  %v11182_v24 = vpop.f32.mrf.mxu1 }
 0x43d   :  { %25917 = vmatprep.subr.mxu1 %v31835_v4  ;;  %25928 = vmatprep.mubr.msk.f32.mxu0 %vm26638_vm1, %v31835_v4  ;;  %v11183_v12 = vadd.f32 %v11182_v24, %v11110_v37  ;;  %v31993_v24 = vld [vmem:[#allocation124_spill] sm:$0xff] }
 0x43e   :  { %25938 = vmatprep.subr.mxu0 %v31835_v4  ;;  %25918 = vmatpush3.msra.mxu1 %v30125_v29  ;;  %v25461_v50 = vpop.f32.mrf.mxu1  ;;  %v11449_v40 = vpop.f32.mrf.mxu0 }
 0x43f   :  { %25929 = vmatmul.mubr.f32.vlgmr.msra.gmra.mxu0 %v28616_v56  ;;  %25919 = vmatprep.subr.mxu1 %v31835_v4  ;;  %v11191_v53 = vsub.f32 %v11183_v12, %v30051_v42  ;;  %v16444_v42 = vand.u32 4294901760, %v16443_v2  ;;  %v16909_v2 = vsub.f32 %v16907_v52, %v16908_v23 }
 0x440   :  { %25939 = vmatpush3.msra.mxu0 %v30199_v1  ;;  %25920 = vmatpush3.msra.mxu1 %v30130_v31  ;;  %v25482_v55 = vpop.f32.mrf.mxu0  ;;  %v11193_v31 = vadd.f32 0.0001, %v11192_v9  ;;  %v16901_v1 = vand.u32 4294901760, %v16900_v0 }
 0x441   :  { %25940 = vmatprep.subr.mxu0 %v31835_v4  ;;  %25921 = vmatprep.mubr.msk.f32.mxu1 %vm26638_vm1, %v31835_v4  ;;  %v11194_v29 = vmul.f32 2.0, %v11191_v53  ;;  %v16910_v53 = vand.u32 4294901760, %v16909_v2 }
 0x442   :  { %25941 = vmatpush3.msra.mxu0 %v30206_v39  ;;  %25922 = vmatmul.mubr.f32.vlgmr.msra.gmra.mxu1 %v28581_v51  ;;  %v11373_v49 = vpop.f32.mrf.mxu1  ;;  %v26540_v45 = vpop.eup %26539 }
 0x443   :  { %25931 = vmatprep.subr.mxu1 %v31835_v4  ;;  %25942 = vmatprep.mubr.msk.f32.mxu0 %vm26638_vm1, %v31835_v4  ;;  %v11195_v32 = vadd.f32 0.0009, %v11194_v29  ;;  %v11374_v36 = vadd.f32 %v11373_v49, %v11292_v3  ;;  %v2957_v3 = vadd.f32 %v31992_v47, %v2271_v62 }
 0x444   :  { %25952 = vmatprep.subr.mxu0 %v31835_v4  ;;  %25932 = vmatpush3.msra.mxu1 %v16444_v42  ;;  %v25475_v34 = vpop.f32.mrf.mxu1  ;;  %v11601_v10 = vpop.f32.mrf.mxu0  ;;  %v8876_v42 = vsel %vm6546_vm2, %v29962_v25, 0.0 }
 0x445   :  { %25943 = vmatmul.mubr.f32.vlgmr.msra.gmra.mxu0 %v28591_v46  ;;  %25933 = vmatprep.subr.mxu1 %v31835_v4  ;;  %v11450_v18 = vadd.f32 %v11449_v40, %v11374_v36  ;;  %v11196_v33 = vmul.f32 %v11195_v32, %v11193_v31  ;;  %v3550_v12 = vadd.f32 %v31993_v24, %v2957_v3  ;;  %v31995_v40 = vld [vmem:[#allocation125_spill] sm:$0xff]  ;;  %v31996_v36 = vld [vmem:[#allocation59_spill] sm:$0xff] }
 0x446   :  { %25953 = vmatpush3.msra.mxu0 %v16442_v41  ;;  %25934 = vmatpush3.msra.mxu1 %v16451_v21  ;;  %v25496_v16 = vpop.f32.mrf.mxu0  ;;  %v16902_v41 = vsub.f32 %v16900_v0, %v16901_v1  ;;  %v30299_v9 = vand.u32 4294901760, %v31995_v40  ;;  %v32000_v3 = vld [vmem:[#allocation61_spill] sm:$0xff] }
 0x447   :  { %25954 = vmatprep.subr.mxu0 %v31835_v4  ;;  %25935 = vmatprep.mubr.msk.f32.mxu1 %vm26638_vm1, %v31835_v4  ;;  %v30256_v59 = vmul.f32 %v26540_v45, %v11196_v33  ;;  %v4097_v50 = vadd.f32 %v31994_v7, %v3550_v12  ;;  %v31997_v45 = vld [vmem:[#allocation66_spill] sm:$0xff]  ;;  %v31998_v16 = vld [vmem:[#allocation69_spill] sm:$0xff] }
 0x448   :  { %25955 = vmatpush3.msra.mxu0 %v16449_v8  ;;  %25936 = vmatmul.mubr.f32.vlgmr.msra.gmra.mxu1 %v28581_v51  ;;  %v11524_v6 = vpop.f32.mrf.mxu1  ;;  %v30313_v49 = vsub.f32 %v31995_v40, %v30299_v9  ;;  %v2383_v5 = vadd.f32 %v31997_v45, %v31996_v36  ;;  %v32001_v24 = vld [vmem:[#allocation57_spill] sm:$0xff]  ;;  %v32002_v45 = vld [vmem:[#allocation91_spill] sm:$0xff] }
 0x449   :  { %25945 = vmatprep.subr.mxu1 %v31835_v4  ;;  %25956 = vmatprep.mubr.msk.f32.mxu0 %vm26638_vm1, %v31835_v4  ;;  %v11525_v15 = vadd.f32 %v11524_v6, %v11450_v18  ;;  %v30304_v63 = vand.u32 4294901760, %v4097_v50  ;;  %v30369_v12 = vand.u32 4294901760, %v32001_v24 }
 0x44a   :  { %25966 = vmatprep.subr.mxu0 %v31835_v4  ;;  %25946 = vmatpush3.msra.mxu1 %v30187_v38  ;;  %v25489_v30 = vpop.f32.mrf.mxu1  ;;  %v11751_v28 = vpop.f32.mrf.mxu0  ;;  %v17360_v18 = vand.u32 4294901760, %v30313_v49 }
 0x44b   :  { %25957 = vmatmul.mubr.f32.vlgmr.msra.gmra.mxu0 %v28581_v51  ;;  %25947 = vmatprep.subr.mxu1 %v31835_v4  ;;  %v11602_v17 = vadd.f32 %v11601_v10, %v11525_v15  ;;  %v17366_v34 = vsub.f32 %v4097_v50, %v30304_v63  ;;  %v17818_v50 = vsub.f32 %v32001_v24, %v30369_v12 }
 0x44c   :  { %25967 = vmatpush3.msra.mxu0 %v30246_v13  ;;  %25948 = vmatpush3.msra.mxu1 %v30192_v57  ;;  %v25510_v44 = vpop.f32.mrf.mxu0  ;;  %v17361_v30 = vsub.f32 %v30313_v49, %v17360_v18 }
 0x44d   :  { %25968 = vmatprep.subr.mxu0 %v31835_v4  ;;  %25949 = vmatprep.mubr.msk.f32.mxu1 %vm26638_vm1, %v31835_v4  ;;  %v17367_v15 = vand.u32 4294901760, %v17366_v34 }
 0x44e   :  { %25969 = vmatpush3.msra.mxu0 %v30251_v61  ;;  %25950 = vmatmul.mubr.f32.vlgmr.msra.gmra.mxu1 %v28601_v54  ;;  %v11674_v39 = vpop.f32.mrf.mxu1 }
 0x44f   :  { %25959 = vmatprep.subr.mxu1 %v31835_v4  ;;  %25970 = vmatprep.mubr.msk.f32.mxu0 %vm26638_vm1, %v31835_v4  ;;  %v30282_v37 = vadd.f32 %v11674_v39, %v11602_v17 }
 0x450   :  { %25980 = vmatprep.subr.mxu0 %v31835_v4  ;;  %25960 = vmatpush3.msra.mxu1 %v30187_v38  ;;  %v25503_v60 = vpop.f32.mrf.mxu1  ;;  %v11908_v8 = vpop.f32.mrf.mxu0  ;;  %v16903_v38 = vand.u32 4294901760, %v16902_v41  ;;  %v17362_v41 = vand.u32 4294901760, %v17361_v30 }
 0x451   :  { %25971 = vmatmul.mubr.f32.vlgmr.msra.gmra.mxu0 %v28616_v56  ;;  %25961 = vmatprep.subr.mxu1 %v31835_v4  ;;  %v30345_v17 = vmul.f32 %v30282_v37, %v30282_v37 }
 0x452   :  { %25981 = vmatpush3.msra.mxu0 %v16900_v0  ;;  %25962 = vmatpush3.msra.mxu1 %v30192_v57  ;;  %v25524_v19 = vpop.f32.mrf.mxu0  ;;  %v3085_v0 = vadd.f32 %v31998_v16, %v2383_v5  ;;  %v32003_v5 = vld [vmem:[#allocation86_spill] sm:$0xff] }
 0x453   :  { %25982 = vmatprep.subr.mxu0 %v31835_v4  ;;  %25963 = vmatprep.mubr.msk.f32.mxu1 %vm26638_vm1, %v31835_v4 }
 0x454   :  { %25983 = vmatpush3.msra.mxu0 %v16907_v52  ;;  %25964 = vmatmul.mubr.f32.vlgmr.msra.gmra.mxu1 %v28581_v51  ;;  %v11832_v58 = vpop.f32.mrf.mxu1 }
 0x455   :  { %25973 = vmatprep.subr.mxu1 %v31835_v4  ;;  %25984 = vmatprep.mubr.msk.f32.mxu0 %vm26638_vm1, %v31835_v4  ;;  %v11833_v57 = vadd.f32 %v11832_v58, %v11751_v28  ;;  %v31999_v28 = vld [vmem:[#allocation137_spill] sm:$0xff] }
 0x456   :  { %25994 = vmatprep.subr.mxu0 %v31835_v4  ;;  %25974 = vmatpush3.msra.mxu1 %v16903_v38  ;;  %v25517_v43 = vpop.f32.mrf.mxu1  ;;  %v12060_v55 = vpop.f32.mrf.mxu0  ;;  %v3646_v27 = vadd.f32 %v31999_v28, %v3085_v0 }
 0x457   :  { %25985 = vmatmul.mubr.f32.vlgmr.msra.gmra.mxu0 %v28591_v46  ;;  %25975 = vmatprep.subr.mxu1 %v31835_v4  ;;  %v11909_v29 = vadd.f32 %v11908_v8, %v11833_v57 }
 0x458   :  { %25995 = vmatpush3.msra.mxu0 %v16901_v1  ;;  %25976 = vmatpush3.msra.mxu1 %v16910_v53  ;;  %v25538_v22 = vpop.f32.mrf.mxu0 }
 0x459   :  { %25996 = vmatprep.subr.mxu0 %v31835_v4  ;;  %25977 = vmatprep.mubr.msk.f32.mxu1 %vm26638_vm1, %v31835_v4  ;;  %v17819_v22 = vand.u32 4294901760, %v17818_v50 }
 0x45a   :  { %25997 = vmatpush3.msra.mxu0 %v16908_v23  ;;  %25978 = vmatmul.mubr.f32.vlgmr.msra.gmra.mxu1 %v28581_v51  ;;  %v11983_v31 = vpop.f32.mrf.mxu1 }
 0x45b   :  { %25987 = vmatprep.subr.mxu1 %v31835_v4  ;;  %25998 = vmatprep.mubr.msk.f32.mxu0 %vm26638_vm1, %v31835_v4  ;;  %v11984_v32 = vadd.f32 %v11983_v31, %v11909_v29 }
 0x45c   :  { %26008 = vmatprep.subr.mxu0 %v31835_v4  ;;  %8877 = vadd.xlane.f32.xlu0 %v8876_v42  ;;  %v25531_v25 = vpop.f32.mrf.mxu1  ;;  %v12210_v21 = vpop.f32.mrf.mxu0 }
 0x45d   :  { %25988 = vmatpush3.msra.mxu1 %v30246_v13  ;;  %25999 = vmatmul.mubr.f32.vlgmr.msra.gmra.mxu0 %v28581_v51  ;;  %v12061_v10 = vadd.f32 %v12060_v55, %v11984_v32  ;;  %v3274_v25 = vadd.f32 %v32003_v5, %v32002_v45  ;;  %v32009_v45 = vld [vmem:[#allocation101_spill] sm:$0xff] }
 0x45e   :  { %26009 = vmatpush3.msra.mxu0 %v30299_v9  ;;  %25989 = vmatprep.subr.mxu1 %v31835_v4  ;;  %v25552_v33 = vpop.f32.mrf.mxu0  ;;  %v30472_v5 = vand.u32 4294901760, %v32009_v45 }
 0x45f   :  { %26010 = vmatprep.subr.mxu0 %v31835_v4  ;;  %25990 = vmatpush3.msra.mxu1 %v30251_v61 }
 0x460   :  { %25991 = vmatprep.mubr.msk.f32.mxu1 %vm26638_vm1, %v31835_v4  ;;  %26011 = vmatpush3.msra.mxu0 %v30304_v63  ;;  %v12133_v6 = vpop.f32.mrf.mxu1 }
 0x461   :  { %25992 = vmatmul.mubr.f32.vlgmr.msra.gmra.mxu1 %v28601_v54  ;;  %26001 = vmatprep.subr.mxu1 %v31835_v4  ;;  %v12134_v52 = vadd.f32 %v12133_v6, %v12061_v10 }
 0x462   :  { %26012 = vmatprep.mubr.msk.f32.mxu0 %vm26638_vm1, %v31835_v4  ;;  %26022 = vmatprep.subr.mxu0 %v31835_v4  ;;  %v25545_v48 = vpop.f32.mrf.mxu1  ;;  %v12367_v62 = vpop.f32.mrf.mxu0 }
 0x463   :  { %26002 = vmatpush3.msra.mxu1 %v30246_v13  ;;  %26013 = vmatmul.mubr.f32.vlgmr.msra.gmra.mxu0 %v28616_v56  ;;  %v30347_v1 = vmul.f32 %v12134_v52, %v12134_v52  ;;  %v30350_v44 = vmul.f32 %v12134_v52, %v30282_v37  ;;  %v17368_v13 = vsub.f32 %v17366_v34, %v17367_v15  ;;  %v32005_v52 = vld [vmem:[#allocation18_spill] sm:$0xff] }
 0x464   :  { %26023 = vmatpush3.msra.mxu0 %v30313_v49  ;;  %26003 = vmatprep.subr.mxu1 %v31835_v4  ;;  %v25566_v23 = vpop.f32.mrf.mxu0  ;;  %v4193_v37 = vadd.f32 %v32000_v3, %v3646_v27  ;;  %v30420_v30 = vand.u32 4294901760, %v32005_v52 }
 0x465   :  { %26024 = vmatprep.subr.mxu0 %v31835_v4  ;;  %26004 = vmatpush3.msra.mxu1 %v30251_v61  ;;  %v30358_v39 = vadd.f32 %v30347_v1, %v30345_v17  ;;  %v17369_v2 = vand.u32 4294901760, %v17368_v13 }
 0x466   :  { %26005 = vmatprep.mubr.msk.f32.mxu1 %vm26638_vm1, %v31835_v4  ;;  %26025 = vmatpush3.msra.mxu0 %v17366_v34  ;;  %v12291_v47 = vpop.f32.mrf.mxu1  ;;  %v30373_v58 = vand.u32 4294901760, %v4193_v37  ;;  %v18310_v13 = vsub.f32 %v32005_v52, %v30420_v30 }
 0x467   :  { %26006 = vmatmul.mubr.f32.vlgmr.msra.gmra.mxu1 %v28581_v51  ;;  %26015 = vmatprep.subr.mxu1 %v31835_v4  ;;  %v12292_v60 = vadd.f32 %v12291_v47, %v12210_v21  ;;  %v17820_v21 = vsub.f32 %v17818_v50, %v17819_v22 }
 0x468   :  { %26026 = vmatprep.mubr.msk.f32.mxu0 %vm26638_vm1, %v31835_v4  ;;  %26036 = vmatprep.subr.mxu0 %v31835_v4  ;;  %v25559_v61 = vpop.f32.mrf.mxu1  ;;  %v12519_v8 = vpop.f32.mrf.mxu0  ;;  %v17825_v43 = vsub.f32 %v4193_v37, %v30373_v58 }
 0x469   :  { %26016 = vmatpush3.msra.mxu1 %v17362_v41  ;;  %26027 = vmatmul.mubr.f32.vlgmr.msra.gmra.mxu0 %v28591_v46  ;;  %v12368_v19 = vadd.f32 %v12367_v62, %v12292_v60  ;;  %v17821_v0 = vand.u32 4294901760, %v17820_v21 }
 0x46a   :  { %26037 = vmatpush3.msra.mxu0 %v17360_v18  ;;  %26017 = vmatprep.subr.mxu1 %v31835_v4  ;;  %v25580_v38 = vpop.f32.mrf.mxu0  ;;  %v17826_v49 = vand.u32 4294901760, %v17825_v43 }
 0x46b   :  { %26038 = vmatprep.subr.mxu0 %v31835_v4  ;;  %26018 = vmatpush3.msra.mxu1 %v17369_v2  ;;  %v32006_v38 = vld [vmem:[#allocation105_spill] sm:$0xff] }
 0x46c   :  { %26019 = vmatprep.mubr.msk.f32.mxu1 %vm26638_vm1, %v31835_v4  ;;  %26039 = vmatpush3.msra.mxu0 %v17367_v15  ;;  %v12442_v7 = vpop.f32.mrf.mxu1  ;;  %v17827_v18 = vsub.f32 %v17825_v43, %v17826_v49 }
 0x46d   :  { %26020 = vmatmul.mubr.f32.vlgmr.msra.gmra.mxu1 %v28581_v51  ;;  %26029 = vmatprep.subr.mxu1 %v31835_v4  ;;  %v12443_v57 = vadd.f32 %v12442_v7, %v12368_v19  ;;  %v32007_v7 = vld [vmem:[#allocation12_spill] sm:$0xff] }
 0x46e   :  { %26040 = vmatprep.mubr.msk.f32.mxu0 %vm26638_vm1, %v31835_v4  ;;  %26050 = vmatprep.subr.mxu0 %v31835_v4  ;;  %v25573_v40 = vpop.f32.mrf.mxu1  ;;  %v12669_v53 = vpop.f32.mrf.mxu0  ;;  %v17828_v28 = vand.u32 4294901760, %v17827_v18 }
 0x46f   :  { %26030 = vmatpush3.msra.mxu1 %v30299_v9  ;;  %26041 = vmatmul.mubr.f32.vlgmr.msra.gmra.mxu0 %v28581_v51  ;;  %v12520_v55 = vadd.f32 %v12519_v8, %v12443_v57  ;;  %v18311_v8 = vand.u32 4294901760, %v18310_v13 }
 0x470   :  { %26051 = vmatpush3.msra.mxu0 %v30369_v12  ;;  %26031 = vmatprep.subr.mxu1 %v31835_v4  ;;  %v25594_v29 = vpop.f32.mrf.mxu0 }
 0x471   :  { %26052 = vmatprep.subr.mxu0 %v31835_v4  ;;  %26032 = vmatpush3.msra.mxu1 %v30304_v63 }
 0x472   :  { %26033 = vmatprep.mubr.msk.f32.mxu1 %vm26638_vm1, %v31835_v4  ;;  %26053 = vmatpush3.msra.mxu0 %v30373_v58  ;;  %v12592_v42 = vpop.f32.mrf.mxu1 }
 0x473   :  { %26034 = vmatmul.mubr.f32.vlgmr.msra.gmra.mxu1 %v28601_v54  ;;  %26043 = vmatprep.subr.mxu1 %v31835_v4  ;;  %v30397_v31 = vadd.f32 %v12592_v42, %v12520_v55  ;;  %v32008_v42 = vld [vmem:[#allocation25_spill] sm:$0xff] }
 0x474   :  { %26054 = vmatprep.mubr.msk.f32.mxu0 %vm26638_vm1, %v31835_v4  ;;  %26064 = vmatprep.subr.mxu0 %v31835_v4  ;;  %v25587_v32 = vpop.f32.mrf.mxu1  ;;  %v12826_v36 = vpop.f32.mrf.mxu0 }
 0x475   :  { %26044 = vmatpush3.msra.mxu1 %v30299_v9  ;;  %26055 = vmatmul.mubr.f32.vlgmr.msra.gmra.mxu0 %v28616_v56  ;;  %v13517_v34 = vsub.f32 %v30397_v31, %v30345_v17  ;;  %v32004_v9 = vld [vmem:[#allocation88_spill] sm:$0xff]  ;;  %v13526_v32 = vadd.f32 0.0001, %v30358_v39 }
 0x476   :  { %26065 = vmatpush3.msra.mxu0 %v17818_v50  ;;  %26045 = vmatprep.subr.mxu1 %v31835_v4  ;;  %v25608_v10 = vpop.f32.mrf.mxu0  ;;  %v3821_v16 = vadd.f32 %v32004_v9, %v3274_v25  ;;  %v3370_v50 = vadd.f32 %v32007_v7, %v32006_v38 }
 0x477   :  { %26066 = vmatprep.subr.mxu0 %v31835_v4  ;;  %26046 = vmatpush3.msra.mxu1 %v30304_v63 }
 0x478   :  { %26047 = vmatprep.mubr.msk.f32.mxu1 %vm26638_vm1, %v31835_v4  ;;  %26067 = vmatpush3.msra.mxu0 %v17825_v43  ;;  %v12750_v33 = vpop.f32.mrf.mxu1  ;;  %v30424_v62 = vand.u32 4294901760, %v3821_v16 }
 0x479   :  { %26048 = vmatmul.mubr.f32.vlgmr.msra.gmra.mxu1 %v28581_v51  ;;  %26057 = vmatprep.subr.mxu1 %v31835_v4  ;;  %v12751_v6 = vadd.f32 %v12750_v33, %v12669_v53  ;;  %v18312_v53 = vsub.f32 %v18310_v13, %v18311_v8  ;;  %v30483_v33 = vsub.f32 %v32009_v45, %v30472_v5  ;;  %v32014_v45 = vld [vmem:[#allocation42_spill] sm:$0xff] }
 0x47a   :  { %26068 = vmatprep.mubr.msk.f32.mxu0 %vm26638_vm1, %v31835_v4  ;;  %26078 = vmatprep.subr.mxu0 %v31835_v4  ;;  %v25601_v63 = vpop.f32.mrf.mxu1  ;;  %v12978_v15 = vpop.f32.mrf.mxu0  ;;  %v18317_v41 = vsub.f32 %v3821_v16, %v30424_v62 }
 0x47b   :  { %26058 = vmatpush3.msra.mxu1 %v17821_v0  ;;  %26069 = vmatmul.mubr.f32.vlgmr.msra.gmra.mxu0 %v28591_v46  ;;  %v12827_v27 = vadd.f32 %v12826_v36, %v12751_v6  ;;  %v18770_v52 = vand.u32 4294901760, %v30483_v33 }
 0x47c   :  { %26079 = vmatpush3.msra.mxu0 %v17819_v22  ;;  %26059 = vmatprep.subr.mxu1 %v31835_v4  ;;  %v25622_v48 = vpop.f32.mrf.mxu0  ;;  %v18318_v2 = vand.u32 4294901760, %v18317_v41 }
 0x47d   :  { %26080 = vmatprep.subr.mxu0 %v31835_v4  ;;  %26060 = vmatpush3.msra.mxu1 %v17828_v28 }
 0x47e   :  { %26061 = vmatprep.mubr.msk.f32.mxu1 %vm26638_vm1, %v31835_v4  ;;  %26081 = vmatpush3.msra.mxu0 %v17826_v49  ;;  %v12901_v23 = vpop.f32.mrf.mxu1  ;;  %v18319_v29 = vsub.f32 %v18317_v41, %v18318_v2  ;;  %v3917_v49 = vadd.f32 %v32008_v42, %v3370_v50 }
 0x47f   :  { %26062 = vmatmul.mubr.f32.vlgmr.msra.gmra.mxu1 %v28581_v51  ;;  %26071 = vmatprep.subr.mxu1 %v31835_v4  ;;  %v12902_v47 = vadd.f32 %v12901_v23, %v12827_v27  ;;  %v32010_v23 = vld [vmem:[#allocation14_spill] sm:$0xff] }
 0x480   :  { %26082 = vmatprep.mubr.msk.f32.mxu0 %vm26638_vm1, %v31835_v4  ;;  %26092 = vmatprep.subr.mxu0 %v31835_v4  ;;  %v25615_v3 = vpop.f32.mrf.mxu1  ;;  %v13128_v37 = vpop.f32.mrf.mxu0  ;;  %v18320_v25 = vand.u32 4294901760, %v18319_v29  ;;  %v30476_v10 = vand.u32 4294901760, %v3917_v49 }
 0x481   :  { %26072 = vmatpush3.msra.mxu1 %v30369_v12  ;;  %26083 = vmatmul.mubr.f32.vlgmr.msra.gmra.mxu0 %v28581_v51  ;;  %v12979_v60 = vadd.f32 %v12978_v15, %v12902_v47 }
 0x482   :  { %26093 = vmatpush3.msra.mxu0 %v30420_v30  ;;  %26073 = vmatprep.subr.mxu1 %v31835_v4  ;;  %v25636_v61 = vpop.f32.mrf.mxu0  ;;  %v30491_v6 = vsub.f32 %v3917_v49, %v30476_v10 }
 0x483   :  { %26094 = vmatprep.subr.mxu0 %v31835_v4  ;;  %26074 = vmatpush3.msra.mxu1 %v30373_v58 }
 0x484   :  { %26075 = vmatprep.mubr.msk.f32.mxu1 %vm26638_vm1, %v31835_v4  ;;  %26095 = vmatpush3.msra.mxu0 %v30424_v62  ;;  %v13051_v24 = vpop.f32.mrf.mxu1  ;;  %v18777_v27 = vand.u32 4294901760, %v30491_v6 }
 0x485   :  { %26076 = vmatmul.mubr.f32.vlgmr.msra.gmra.mxu1 %v28601_v54  ;;  %26085 = vmatprep.subr.mxu1 %v31835_v4  ;;  %v13052_v19 = vadd.f32 %v13051_v24, %v12979_v60  ;;  %v13520_v60 = vmul.f32 2.0, %v30350_v44 }
 0x486   :  { %26096 = vmatprep.mubr.msk.f32.mxu0 %vm26638_vm1, %v31835_v4  ;;  %26106 = vmatprep.subr.mxu0 %v31835_v4  ;;  %v25629_v57 = vpop.f32.mrf.mxu1  ;;  %v13285_v40 = vpop.f32.mrf.mxu0  ;;  %v18778_v24 = vsub.f32 %v30491_v6, %v18777_v27 }
 0x487   :  { %26086 = vmatpush3.msra.mxu1 %v30369_v12  ;;  %26097 = vmatmul.mubr.f32.vlgmr.msra.gmra.mxu0 %v28616_v56  ;;  %v13518_v43 = vsub.f32 %v13052_v19, %v30347_v1  ;;  %v18313_v12 = vand.u32 4294901760, %v18312_v53  ;;  %v32012_v19 = vld [vmem:[#allocation65_spill] sm:$0xff]  ;;  %v13521_v7 = vadd.f32 0.0001, %v13520_v60 }
 0x488   :  { %26107 = vmatpush3.msra.mxu0 %v18310_v13  ;;  %26087 = vmatprep.subr.mxu1 %v31835_v4  ;;  %v25650_v55 = vpop.f32.mrf.mxu0  ;;  %v32011_v13 = vld [vmem:[#allocation115_spill] sm:$0xff]  ;;  %v18779_v29 = vand.u32 4294901760, %v18778_v24 }
 0x489   :  { %26108 = vmatprep.subr.mxu0 %v31835_v4  ;;  %26088 = vmatpush3.msra.mxu1 %v30373_v58  ;;  %v13527_v22 = vadd.f32 %v13518_v43, %v13517_v34  ;;  %v3466_v47 = vadd.f32 %v32011_v13, %v32010_v23  ;;  %v32013_v43 = vld [vmem:[#allocation116_spill] sm:$0xff]  ;;  %v32017_v13 = vld [vmem:[#allocation127_spill] sm:$0xff] }
 0x48a   :  { %26089 = vmatprep.mubr.msk.f32.mxu1 %vm26638_vm1, %v31835_v4  ;;  %26109 = vmatpush3.msra.mxu0 %v18317_v41  ;;  %v13209_v1 = vpop.f32.mrf.mxu1  ;;  %v18771_v41 = vsub.f32 %v30483_v33, %v18770_v52  ;;  %v30531_v55 = vand.u32 4294901760, %v32013_v43 }
 0x48b   :  { %26090 = vmatmul.mubr.f32.vlgmr.msra.gmra.mxu1 %v28581_v51  ;;  %26099 = vmatprep.subr.mxu1 %v31835_v4  ;;  %v13528_v58 = vadd.f32 0.0009, %v13527_v22  ;;  %v13210_v36 = vadd.f32 %v13209_v1, %v13128_v37 }
 0x48c   :  { %26110 = vmatprep.mubr.msk.f32.mxu0 %vm26638_vm1, %v31835_v4  ;;  %26120 = vmatprep.subr.mxu0 %v31835_v4  ;;  %v25643_v17 = vpop.f32.mrf.mxu1  ;;  %v13437_v31 = vpop.f32.mrf.mxu0  ;;  %v18772_v38 = vand.u32 4294901760, %v18771_v41 }
 0x48d   :  { %26100 = vmatpush3.msra.mxu1 %v18313_v12  ;;  %26111 = vmatmul.mubr.f32.vlgmr.msra.gmra.mxu0 %v28591_v46  ;;  %v13529_v21 = vmul.f32 %v13528_v58, %v13526_v32  ;;  %v13286_v34 = vadd.f32 %v13285_v40, %v13210_v36  ;;  %v30544_v58 = vsub.f32 %v32013_v43, %v30531_v55  ;;  %v11204_v43 = vsel %vm6546_vm2, %v30256_v59, 0.0 }
 0x48e   :  { %26121 = vmatpush3.msra.mxu0 %v18311_v8  ;;  %26101 = vmatprep.subr.mxu1 %v31835_v4  ;;  %v25664_v39 = vpop.f32.mrf.mxu0 }
 0x48f   :  { %26122 = vmatprep.subr.mxu0 %v31835_v4  ;;  %26102 = vmatpush3.msra.mxu1 %v18320_v25  ;;  %26541 = vrcp.f32 %v13529_v21  ;;  %v32015_v25 = vld [vmem:[#allocation39_spill] sm:$0xff] }
 0x490   :  { %26103 = vmatprep.mubr.msk.f32.mxu1 %vm26638_vm1, %v31835_v4  ;;  %26123 = vmatpush3.msra.mxu0 %v18318_v2  ;;  %v13360_v18 = vpop.f32.mrf.mxu1  ;;  %v2285_v21 = vadd.f32 %v32015_v25, %v32014_v45  ;;  %v32022_v25 = vld [vmem:[#allocation73_spill] sm:$0xff] }
 0x491   :  { %26104 = vmatmul.mubr.f32.vlgmr.msra.gmra.mxu1 %v28581_v51  ;;  %26113 = vmatprep.subr.mxu1 %v31835_v4  ;;  %v13361_v9 = vadd.f32 %v13360_v18, %v13286_v34 }
 0x492   :  { %26124 = vmatprep.mubr.msk.f32.mxu0 %vm26638_vm1, %v31835_v4  ;;  %26134 = vmatprep.subr.mxu0 %v31835_v4  ;;  %v25657_v16 = vpop.f32.mrf.mxu1  ;;  %v13620_v0 = vpop.f32.mrf.mxu0 }
 0x493   :  { %26114 = vmatpush3.msra.mxu1 %v30420_v30  ;;  %26125 = vmatmul.mubr.f32.vlgmr.msra.gmra.mxu0 %v28581_v51  ;;  %v13438_v63 = vadd.f32 %v13437_v31, %v13361_v9  ;;  %v19229_v9 = vand.u32 4294901760, %v30544_v58 }
 0x494   :  { %26135 = vmatpush3.msra.mxu0 %v30472_v5  ;;  %26115 = vmatprep.subr.mxu1 %v31835_v4  ;;  %v25678_v15 = vpop.f32.mrf.mxu0 }
 0x495   :  { %26136 = vmatprep.subr.mxu0 %v31835_v4  ;;  %26116 = vmatpush3.msra.mxu1 %v30424_v62  ;;  %v19230_v23 = vsub.f32 %v30544_v58, %v19229_v9 }
 0x496   :  { %26117 = vmatprep.mubr.msk.f32.mxu1 %vm26638_vm1, %v31835_v4  ;;  %26137 = vmatpush3.msra.mxu0 %v30476_v10  ;;  %v13510_v28 = vpop.f32.mrf.mxu1 }
 0x497   :  { %26118 = vmatmul.mubr.f32.vlgmr.msra.gmra.mxu1 %v28601_v54  ;;  %26127 = vmatprep.subr.mxu1 %v31835_v4  ;;  %v13511_v48 = vadd.f32 %v13510_v28, %v13438_v63  ;;  %v19231_v24 = vand.u32 4294901760, %v19230_v23 }
 0x498   :  { %26138 = vmatprep.mubr.msk.f32.mxu0 %vm26638_vm1, %v31835_v4  ;;  %26148 = vmatprep.subr.mxu0 %v31835_v4  ;;  %v25671_v3 = vpop.f32.mrf.mxu1  ;;  %v13777_v37 = vpop.f32.mrf.mxu0 }
 0x499   :  { %26128 = vmatpush3.msra.mxu1 %v30420_v30  ;;  %26139 = vmatmul.mubr.f32.vlgmr.msra.gmra.mxu0 %v28616_v56  ;;  %v13519_v61 = vsub.f32 %v13511_v48, %v30350_v44  ;;  %v4013_v30 = vadd.f32 %v32012_v19, %v3466_v47 }
 0x49a   :  { %26149 = vmatpush3.msra.mxu0 %v30483_v33  ;;  %26129 = vmatprep.subr.mxu1 %v31835_v4  ;;  %v25692_v8 = vpop.f32.mrf.mxu0 }
 0x49b   :  { %26150 = vmatprep.subr.mxu0 %v31835_v4  ;;  %26130 = vmatpush3.msra.mxu1 %v30424_v62  ;;  %v13522_v2 = vmul.f32 2.0, %v13519_v61  ;;  %v30535_v1 = vand.u32 4294901760, %v4013_v30  ;;  %v32018_v61 = vld [vmem:[#allocation129_spill] sm:$0xff] }
 0x49c   :  { %26131 = vmatprep.mubr.msk.f32.mxu1 %vm26638_vm1, %v31835_v4  ;;  %26151 = vmatpush3.msra.mxu0 %v30491_v6  ;;  %v13701_v44 = vpop.f32.mrf.mxu1  ;;  %v26542_v62 = vpop.eup %26541  ;;  %v32016_v6 = vld [vmem:[#allocation43_spill] sm:$0xff] }
 0x49d   :  { %26132 = vmatmul.mubr.f32.vlgmr.msra.gmra.mxu1 %v28581_v51  ;;  %26141 = vmatprep.subr.mxu1 %v31835_v4  ;;  %v13523_v50 = vadd.f32 0.0009, %v13522_v2  ;;  %v13702_v57 = vadd.f32 %v13701_v44, %v13620_v0  ;;  %v30554_v34 = vsub.f32 %v4013_v30, %v30535_v1  ;;  %v2973_v63 = vadd.f32 %v32016_v6, %v2285_v21  ;;  %v32019_v30 = vld [vmem:[#allocation128_spill] sm:$0xff] }
 0x49e   :  { %26152 = vmatprep.mubr.msk.f32.mxu0 %vm26638_vm1, %v31835_v4  ;;  %26162 = vmatprep.subr.mxu0 %v31835_v4  ;;  %v25685_v40 = vpop.f32.mrf.mxu1  ;;  %v13929_v53 = vpop.f32.mrf.mxu0 }
 0x49f   :  { %26142 = vmatpush3.msra.mxu1 %v18772_v38  ;;  %26153 = vmatmul.mubr.f32.vlgmr.msra.gmra.mxu0 %v28591_v46  ;;  %v13778_v22 = vadd.f32 %v13777_v37, %v13702_v57  ;;  %v13524_v42 = vmul.f32 %v13523_v50, %v13521_v7  ;;  %v19236_v15 = vand.u32 4294901760, %v30554_v34  ;;  %v3562_v47 = vadd.f32 %v32017_v13, %v2973_v63 }
 0x4a0   :  { %26163 = vmatpush3.msra.mxu0 %v18770_v52  ;;  %26143 = vmatprep.subr.mxu1 %v31835_v4  ;;  %v25706_v49 = vpop.f32.mrf.mxu0 }
 0x4a1   :  { %26164 = vmatprep.subr.mxu0 %v31835_v4  ;;  %26144 = vmatpush3.msra.mxu1 %v18779_v29  ;;  %v30538_v12 = vmul.f32 %v26542_v62, %v13524_v42  ;;  %v19237_v41 = vsub.f32 %v30554_v34, %v19236_v15  ;;  %v4109_v8 = vadd.f32 %v32018_v61, %v3562_v47  ;;  %v32020_v42 = vld [vmem:[#allocation68_spill] sm:$0xff]  ;;  %v32021_v49 = vld [vmem:[#allocation70_spill] sm:$0xff] }
 0x4a2   :  { %26145 = vmatprep.mubr.msk.f32.mxu1 %vm26638_vm1, %v31835_v4  ;;  %26165 = vmatpush3.msra.mxu0 %v18777_v27  ;;  %v13852_v32 = vpop.f32.mrf.mxu1 }
 0x4a3   :  { %26146 = vmatmul.mubr.f32.vlgmr.msra.gmra.mxu1 %v28581_v51  ;;  %26155 = vmatprep.subr.mxu1 %v31835_v4  ;;  %v13853_v36 = vadd.f32 %v13852_v32, %v13778_v22  ;;  %v19238_v7 = vand.u32 4294901760, %v19237_v41  ;;  %v30598_v40 = vand.u32 4294901760, %v4109_v8  ;;  %v2397_v32 = vadd.f32 %v32021_v49, %v32020_v42 }
 0x4a4   :  { %26166 = vmatprep.mubr.msk.f32.mxu0 %vm26638_vm1, %v31835_v4  ;;  %26176 = vmatprep.subr.mxu0 %v31835_v4  ;;  %v25699_v17 = vpop.f32.mrf.mxu1  ;;  %v14079_v31 = vpop.f32.mrf.mxu0 }
 0x4a5   :  { %26156 = vmatpush3.msra.mxu1 %v30472_v5  ;;  %26167 = vmatmul.mubr.f32.vlgmr.msra.gmra.mxu0 %v28581_v51  ;;  %v13930_v39 = vadd.f32 %v13929_v53, %v13853_v36  ;;  %v30617_v17 = vsub.f32 %v4109_v8, %v30598_v40  ;;  %v3101_v21 = vadd.f32 %v32022_v25, %v2397_v32  ;;  %v32027_v25 = vld [vmem:[#allocation90_spill] sm:$0xff] }
 0x4a6   :  { %26177 = vmatpush3.msra.mxu0 %v30531_v55  ;;  %26157 = vmatprep.subr.mxu1 %v31835_v4  ;;  %v6549_v18 = vpop.xlane.xlu0 %6548  ;;  %v25720_v33 = vpop.f32.mrf.mxu0 }
 0x4a7   :  { %26178 = vmatprep.subr.mxu0 %v31835_v4  ;;  %26158 = vmatpush3.msra.mxu1 %v30476_v10  ;;  %v6550_v16 = vrot.slane %v6549_v18, 4 }
 0x4a8   :  { %26159 = vmatprep.mubr.msk.f32.mxu1 %vm26638_vm1, %v31835_v4  ;;  %26179 = vmatpush3.msra.mxu0 %v30535_v1  ;;  %v14002_v0 = vpop.f32.mrf.mxu1 }
 0x4a9   :  { %26160 = vmatmul.mubr.f32.vlgmr.msra.gmra.mxu1 %v28601_v54  ;;  %26169 = vmatprep.subr.mxu1 %v31835_v4  ;;  %v6551_v52 = vadd.f32 %v6550_v16, %v6549_v18  ;;  %v30570_v28 = vadd.f32 %v14002_v0, %v13930_v39  ;;  %v19695_v39 = vand.u32 4294901760, %v30617_v17 }
 0x4aa   :  { %26180 = vmatprep.mubr.msk.f32.mxu0 %vm26638_vm1, %v31835_v4  ;;  %26190 = vmatprep.subr.mxu0 %v31835_v4  ;;  %v25713_v27 = vpop.f32.mrf.mxu1  ;;  %v14236_v48 = vpop.f32.mrf.mxu0 }
 0x4ab   :  { %26170 = vmatpush3.msra.mxu1 %v30472_v5  ;;  %26181 = vmatmul.mubr.f32.vlgmr.msra.gmra.mxu0 %v28616_v56  ;;  %v6552_v3 = vrot.slane %v6551_v52, 2  ;;  %v30641_v63 = vmul.f32 %v30570_v28, %v30570_v28 }
 0x4ac   :  { %26191 = vmatpush3.msra.mxu0 %v30544_v58  ;;  %26171 = vmatprep.subr.mxu1 %v31835_v4  ;;  %v25734_v37 = vpop.f32.mrf.mxu0 }
 0x4ad   :  { %26192 = vmatprep.subr.mxu0 %v31835_v4  ;;  %26172 = vmatpush3.msra.mxu1 %v30476_v10  ;;  %v6553_v60 = vadd.f32 %v6552_v3, %v6551_v52  ;;  %v30591_v10 = vand.u32 4294901760, %v32019_v30  ;;  %v30667_v37 = vand.u32 4294901760, %v29081_v26 }
 0x4ae   :  { %26173 = vmatprep.mubr.msk.f32.mxu1 %vm26638_vm1, %v31835_v4  ;;  %26193 = vmatpush3.msra.mxu0 %v30554_v34  ;;  %v14160_v5 = vpop.f32.mrf.mxu1 }
 0x4af   :  { %26174 = vmatmul.mubr.f32.vlgmr.msra.gmra.mxu1 %v28581_v51  ;;  %26183 = vmatprep.subr.mxu1 %v31835_v4  ;;  %v6554_v2 = vrot.slane %v6553_v60, 1  ;;  %v14161_v19 = vadd.f32 %v14160_v5, %v14079_v31  ;;  %v30603_v53 = vsub.f32 %v32019_v30, %v30591_v10  ;;  %v20146_v8 = vsub.f32 %v29081_v26, %v30667_v37 }
 0x4b0   :  { %26194 = vmatprep.mubr.msk.f32.mxu0 %vm26638_vm1, %v31835_v4  ;;  %26204 = vmatprep.subr.mxu0 %v31835_v4  ;;  %v25727_v44 = vpop.f32.mrf.mxu1  ;;  %v14388_v38 = vpop.f32.mrf.mxu0 }
 0x4b1   :  { %26184 = vmatpush3.msra.mxu1 %v19231_v24  ;;  %26195 = vmatmul.mubr.f32.vlgmr.msra.gmra.mxu0 %v28591_v46  ;;  %v6555_v50 = vadd.f32 %v6554_v2, %v6553_v60  ;;  %v14237_v57 = vadd.f32 %v14236_v48, %v14161_v19  ;;  %v19688_v31 = vand.u32 4294901760, %v30603_v53 }
 0x4b2   :  { %26205 = vmatpush3.msra.mxu0 %v19229_v9  ;;  %26185 = vmatprep.subr.mxu1 %v31835_v4  ;;  %v25748_v62 = vpop.f32.mrf.mxu0  ;;  %v32023_v9 = vld [vmem:[#allocation71_spill] sm:$0xff] }
 0x4b3   :  { %26206 = vmatprep.subr.mxu0 %v31835_v4  ;;  %26186 = vmatpush3.msra.mxu1 %v19238_v7  ;;  %26512 = vpush %v6555_v50  ;;  %v19689_v33 = vsub.f32 %v30603_v53, %v19688_v31  ;;  %v3658_v16 = vadd.f32 %v32023_v9, %v3101_v21  ;;  %v30718_v21 = vand.u32 4294901760, %v32027_v25 }
 0x4b4   :  { %26187 = vmatprep.mubr.msk.f32.mxu1 %vm26638_vm1, %v31835_v4  ;;  %26207 = vmatpush3.msra.mxu0 %v19236_v15  ;;  %v14311_v29 = vpop.f32.mrf.mxu1 }
 0x4b5   :  { %26188 = vmatmul.mubr.f32.vlgmr.msra.gmra.mxu1 %v28581_v51  ;;  %26197 = vmatprep.subr.mxu1 %v31835_v4  ;;  %v14312_v22 = vadd.f32 %v14311_v29, %v14237_v57  ;;  %v4205_v23 = vadd.f32 %v29083_v11, %v3658_v16  ;;  %v19690_v13 = vand.u32 4294901760, %v19689_v33  ;;  %v32025_v29 = vld [vmem:[#allocation20_spill] sm:$0xff]  ;;  %v30730_v16 = vsub.f32 %v32027_v25, %v30718_v21 }
 0x4b6   :  { %26208 = vmatprep.mubr.msk.f32.mxu0 %vm26638_vm1, %v31835_v4  ;;  %26218 = vmatprep.subr.mxu0 %v31835_v4  ;;  %v25741_v58 = vpop.f32.mrf.mxu1  ;;  %v14538_v36 = vpop.f32.mrf.mxu0 }
 0x4b7   :  { %11205 = vadd.xlane.f32.xlu1 %v11204_v43  ;;  %26198 = vmatpush3.msra.mxu1 %v30531_v55  ;;  %v14389_v59 = vadd.f32 %v14388_v38, %v14312_v22  ;;  %v30672_v5 = vand.u32 4294901760, %v4205_v23  ;;  %v20147_v38 = vand.u32 4294901760, %v20146_v8  ;;  %v32024_v43 = vld [vmem:[#allocation94_spill] sm:$0xff] }
 0x4b8   :  { %26209 = vmatmul.mubr.f32.vlgmr.msra.gmra.mxu0 %v28581_v51  ;;  %26199 = vmatprep.subr.mxu1 %v31835_v4  ;;  %v25762_v45 = vpop.f32.mrf.mxu0  ;;  %v3286_v22 = vadd.f32 %v32025_v29, %v32024_v43 }
 0x4b9   :  { %26219 = vmatpush3.msra.mxu0 %v30591_v10  ;;  %26200 = vmatpush3.msra.mxu1 %v30535_v1  ;;  %v20153_v30 = vsub.f32 %v4205_v23, %v30672_v5  ;;  %v20148_v42 = vsub.f32 %v20146_v8, %v20147_v38 }
 0x4ba   :  { %26220 = vmatprep.subr.mxu0 %v31835_v4  ;;  %26201 = vmatprep.mubr.msk.f32.mxu1 %vm26638_vm1, %v31835_v4  ;;  %v14461_v34 = vpop.f32.mrf.mxu1 }
 0x4bb   :  { %26221 = vmatpush3.msra.mxu0 %v30598_v40  ;;  %26202 = vmatmul.mubr.f32.vlgmr.msra.gmra.mxu1 %v28601_v54  ;;  %v14462_v18 = vadd.f32 %v14461_v34, %v14389_v59  ;;  %v20154_v50 = vand.u32 4294901760, %v20153_v30  ;;  %v20149_v59 = vand.u32 4294901760, %v20148_v42 }
 0x4bc   :  { %26211 = vmatprep.subr.mxu1 %v31835_v4  ;;  %26222 = vmatprep.mubr.msk.f32.mxu0 %vm26638_vm1, %v31835_v4  ;;  %v25755_v0 = vpop.f32.mrf.mxu1  ;;  %v14695_v6 = vpop.f32.mrf.mxu0 }
 0x4bd   :  { %26232 = vmatprep.subr.mxu0 %v31835_v4  ;;  %26212 = vmatpush3.msra.mxu1 %v30531_v55  ;;  %v30643_v15 = vmul.f32 %v14462_v18, %v14462_v18  ;;  %v30646_v52 = vmul.f32 %v14462_v18, %v30570_v28  ;;  %v19696_v55 = vsub.f32 %v30617_v17, %v19695_v39 }
 0x4be   :  { %26223 = vmatmul.mubr.f32.vlgmr.msra.gmra.mxu0 %v28616_v56  ;;  %26213 = vmatprep.subr.mxu1 %v31835_v4  ;;  %v25776_v27 = vpop.f32.mrf.mxu0  ;;  %v20155_v58 = vsub.f32 %v20153_v30, %v20154_v50 }
 0x4bf   :  { %26233 = vmatpush3.msra.mxu0 %v30603_v53  ;;  %26214 = vmatpush3.msra.mxu1 %v30535_v1  ;;  %v30655_v48 = vadd.f32 %v30643_v15, %v30641_v63  ;;  %v19697_v11 = vand.u32 4294901760, %v19696_v55 }
 0x4c0   :  { %26234 = vmatprep.subr.mxu0 %v31835_v4  ;;  %26215 = vmatprep.mubr.msk.f32.mxu1 %vm26638_vm1, %v31835_v4  ;;  %v14619_v28 = vpop.f32.mrf.mxu1  ;;  %v20156_v34 = vand.u32 4294901760, %v20155_v58 }
 0x4c1   :  { %26235 = vmatpush3.msra.mxu0 %v30617_v17  ;;  %26216 = vmatmul.mubr.f32.vlgmr.msra.gmra.mxu1 %v28581_v51  ;;  %v14620_v1 = vadd.f32 %v14619_v28, %v14538_v36  ;;  %v32026_v17 = vld [vmem:[#allocation17_spill] sm:$0xff] }
 0x4c2   :  { %26225 = vmatprep.subr.mxu1 %v31835_v4  ;;  %26236 = vmatprep.mubr.msk.f32.mxu0 %vm26638_vm1, %v31835_v4  ;;  %v25769_v47 = vpop.f32.mrf.mxu1  ;;  %v14847_v3 = vpop.f32.mrf.mxu0 }
 0x4c3   :  { %26246 = vmatprep.subr.mxu0 %v31835_v4  ;;  %26226 = vmatpush3.msra.mxu1 %v19690_v13  ;;  %v14696_v41 = vadd.f32 %v14695_v6, %v14620_v1  ;;  %v20639_v13 = vand.u32 4294901760, %v30730_v16 }
 0x4c4   :  { %26237 = vmatmul.mubr.f32.vlgmr.msra.gmra.mxu0 %v28591_v46  ;;  %26227 = vmatprep.subr.mxu1 %v31835_v4  ;;  %v25790_v60 = vpop.f32.mrf.mxu0 }
 0x4c5   :  { %26247 = vmatpush3.msra.mxu0 %v19688_v31  ;;  %26228 = vmatpush3.msra.mxu1 %v19697_v11  ;;  %v32028_v11 = vld [vmem:[#allocation107_spill] sm:$0xff] }
 0x4c6   :  { %26248 = vmatprep.subr.mxu0 %v31835_v4  ;;  %26229 = vmatprep.mubr.msk.f32.mxu1 %vm26638_vm1, %v31835_v4  ;;  %v14770_v61 = vpop.f32.mrf.mxu1 }
 0x4c7   :  { %26249 = vmatpush3.msra.mxu0 %v19695_v39  ;;  %26230 = vmatmul.mubr.f32.vlgmr.msra.gmra.mxu1 %v28581_v51  ;;  %v14771_v24 = vadd.f32 %v14770_v61, %v14696_v41  ;;  %v32029_v41 = vld [vmem:[#allocation102_spill] sm:$0xff] }
 0x4c8   :  { %26239 = vmatprep.subr.mxu1 %v31835_v4  ;;  %26250 = vmatprep.mubr.msk.f32.mxu0 %vm26638_vm1, %v31835_v4  ;;  %v25783_v2 = vpop.f32.mrf.mxu1  ;;  %v14997_v19 = vpop.f32.mrf.mxu0  ;;  %v3382_v60 = vadd.f32 %v32029_v41, %v32028_v11 }
 0x4c9   :  { %26260 = vmatprep.subr.mxu0 %v31835_v4  ;;  %26240 = vmatpush3.msra.mxu1 %v30591_v10  ;;  %v14848_v44 = vadd.f32 %v14847_v3, %v14771_v24 }
 0x4ca   :  { %26251 = vmatmul.mubr.f32.vlgmr.msra.gmra.mxu0 %v28581_v51  ;;  %26241 = vmatprep.subr.mxu1 %v31835_v4  ;;  %v25804_v26 = vpop.f32.mrf.mxu0 }
 0x4cb   :  { %26261 = vmatpush3.msra.mxu0 %v30667_v37  ;;  %26242 = vmatpush3.msra.mxu1 %v30598_v40  ;;  %v32030_v26 = vld [vmem:[#allocation103_spill] sm:$0xff] }
 0x4cc   :  { %26262 = vmatprep.subr.mxu0 %v31835_v4  ;;  %26243 = vmatprep.mubr.msk.f32.mxu1 %vm26638_vm1, %v31835_v4  ;;  %v14920_v7 = vpop.f32.mrf.mxu1 }
 0x4cd   :  { %26263 = vmatpush3.msra.mxu0 %v30672_v5  ;;  %26244 = vmatmul.mubr.f32.vlgmr.msra.gmra.mxu1 %v28601_v54  ;;  %v30695_v57 = vadd.f32 %v14920_v7, %v14848_v44 }
 0x4ce   :  { %26253 = vmatprep.subr.mxu1 %v31835_v4  ;;  %26264 = vmatprep.mubr.msk.f32.mxu0 %vm26638_vm1, %v31835_v4  ;;  %v25797_v62 = vpop.f32.mrf.mxu1  ;;  %v15154_v53 = vpop.f32.mrf.mxu0 }
 0x4cf   :  { %26274 = vmatprep.subr.mxu0 %v31835_v4  ;;  %26254 = vmatpush3.msra.mxu1 %v30591_v10  ;;  %v15845_v49 = vsub.f32 %v30695_v57, %v30641_v63  ;;  %v3833_v10 = vadd.f32 %v32026_v17, %v3286_v22 }
 0x4d0   :  { %26265 = vmatmul.mubr.f32.vlgmr.msra.gmra.mxu0 %v28616_v56  ;;  %26255 = vmatprep.subr.mxu1 %v31835_v4  ;;  %v25818_v32 = vpop.f32.mrf.mxu0 }
 0x4d1   :  { %26275 = vmatpush3.msra.mxu0 %v20146_v8  ;;  %26256 = vmatpush3.msra.mxu1 %v30598_v40  ;;  %v30723_v33 = vand.u32 4294901760, %v3833_v10  ;;  %v20640_v8 = vsub.f32 %v30730_v16, %v20639_v13 }
 0x4d2   :  { %26276 = vmatprep.subr.mxu0 %v31835_v4  ;;  %26257 = vmatprep.mubr.msk.f32.mxu1 %vm26638_vm1, %v31835_v4  ;;  %v15078_v36 = vpop.f32.mrf.mxu1 }
 0x4d3   :  { %26277 = vmatpush3.msra.mxu0 %v20153_v30  ;;  %26258 = vmatmul.mubr.f32.vlgmr.msra.gmra.mxu1 %v28581_v51  ;;  %v15079_v31 = vadd.f32 %v15078_v36, %v14997_v19  ;;  %v30737_v55 = vsub.f32 %v3833_v10, %v30723_v33 }
 0x4d4   :  { %26267 = vmatprep.subr.mxu1 %v31835_v4  ;;  %26278 = vmatprep.mubr.msk.f32.mxu0 %vm26638_vm1, %v31835_v4  ;;  %v25811_v40 = vpop.f32.mrf.mxu1  ;;  %v15306_v45 = vpop.f32.mrf.mxu0 }
 0x4d5   :  { %26288 = vmatprep.subr.mxu0 %v31835_v4  ;;  %26268 = vmatpush3.msra.mxu1 %v20149_v59  ;;  %v15155_v39 = vadd.f32 %v15154_v53, %v15079_v31  ;;  %v20646_v47 = vand.u32 4294901760, %v30737_v55  ;;  %v32031_v53 = vld [vmem:[#allocation26_spill] sm:$0xff] }
 0x4d6   :  { %26279 = vmatmul.mubr.f32.vlgmr.msra.gmra.mxu0 %v28591_v46  ;;  %26269 = vmatprep.subr.mxu1 %v31835_v4  ;;  %v25832_v18 = vpop.f32.mrf.mxu0  ;;  %v30780_v43 = vand.u32 4294901760, %v32031_v53 }
 0x4d7   :  { %26289 = vmatpush3.msra.mxu0 %v20147_v38  ;;  %26270 = vmatpush3.msra.mxu1 %v20156_v34  ;;  %v20647_v19 = vsub.f32 %v30737_v55, %v20646_v47  ;;  %v15854_v38 = vadd.f32 0.0001, %v30655_v48 }
 0x4d8   :  { %26290 = vmatprep.subr.mxu0 %v31835_v4  ;;  %26271 = vmatprep.mubr.msk.f32.mxu1 %vm26638_vm1, %v31835_v4  ;;  %v15229_v9 = vpop.f32.mrf.mxu1  ;;  %v30792_v10 = vsub.f32 %v32031_v53, %v30780_v43 }
 0x4d9   :  { %26291 = vmatpush3.msra.mxu0 %v20154_v50  ;;  %26272 = vmatmul.mubr.f32.vlgmr.msra.gmra.mxu1 %v28581_v51  ;;  %v15230_v0 = vadd.f32 %v15229_v9, %v15155_v39  ;;  %v20648_v29 = vand.u32 4294901760, %v20647_v19 }
 0x4da   :  { %26281 = vmatprep.subr.mxu1 %v31835_v4  ;;  %26292 = vmatprep.mubr.msk.f32.mxu0 %vm26638_vm1, %v31835_v4  ;;  %v25825_v6 = vpop.f32.mrf.mxu1  ;;  %v15456_v27 = vpop.f32.mrf.mxu0  ;;  %v21098_v18 = vand.u32 4294901760, %v30792_v10 }
 0x4db   :  { %26302 = vmatprep.subr.mxu0 %v31835_v4  ;;  %26282 = vmatpush3.msra.mxu1 %v30667_v37  ;;  %v15307_v28 = vadd.f32 %v15306_v45, %v15230_v0 }
 0x4dc   :  { %26293 = vmatmul.mubr.f32.vlgmr.msra.gmra.mxu0 %v28581_v51  ;;  %26283 = vmatprep.subr.mxu1 %v31835_v4  ;;  %v25846_v23 = vpop.f32.mrf.mxu0 }
 0x4dd   :  { %26303 = vmatpush3.msra.mxu0 %v30718_v21  ;;  %26284 = vmatpush3.msra.mxu1 %v30672_v5 }
 0x4de   :  { %26304 = vmatprep.subr.mxu0 %v31835_v4  ;;  %26285 = vmatprep.mubr.msk.f32.mxu1 %vm26638_vm1, %v31835_v4  ;;  %v15379_v1 = vpop.f32.mrf.mxu1 }
 0x4df   :  { %26305 = vmatpush3.msra.mxu0 %v30723_v33  ;;  %26286 = vmatmul.mubr.f32.vlgmr.msra.gmra.mxu1 %v28601_v54  ;;  %v15380_v3 = vadd.f32 %v15379_v1, %v15307_v28  ;;  %v32033_v28 = vld [vmem:[#allocation118_spill] sm:$0xff]  ;;  %v21099_v1 = vsub.f32 %v30792_v10, %v21098_v18 }
 0x4e0   :  { %26295 = vmatprep.subr.mxu1 %v31835_v4  ;;  %26306 = vmatprep.mubr.msk.f32.mxu0 %vm26638_vm1, %v31835_v4  ;;  %v25839_v61 = vpop.f32.mrf.mxu1 }
 0x4e1   :  { %26316 = vmatprep.subr.mxu0 %v31835_v4  ;;  %26296 = vmatpush3.msra.mxu1 %v30667_v37  ;;  %v15846_v24 = vsub.f32 %v15380_v3, %v30643_v15  ;;  %v15613_v2 = vpop.f32.mrf.mxu0  ;;  %v3929_v37 = vadd.f32 %v32030_v26, %v3382_v60  ;;  %v32035_v26 = vld [vmem:[#allocation119_spill] sm:$0xff] }
 0x4e2   :  { %26307 = vmatmul.mubr.f32.vlgmr.msra.gmra.mxu0 %v28616_v56  ;;  %26297 = vmatprep.subr.mxu1 %v31835_v4 }
 0x4e3   :  { %26317 = vmatpush3.msra.mxu0 %v30730_v16  ;;  %26298 = vmatpush3.msra.mxu1 %v30672_v5  ;;  %v15855_v30 = vadd.f32 %v15846_v24, %v15845_v49  ;;  %v25860_v44 = vpop.f32.mrf.mxu0  ;;  %v20641_v5 = vand.u32 4294901760, %v20640_v8  ;;  %v30785_v32 = vand.u32 4294901760, %v3929_v37  ;;  %v32034_v8 = vld [vmem:[#allocation120_spill] sm:$0xff] }
 0x4e4   :  { %26318 = vmatprep.subr.mxu0 %v31835_v4  ;;  %26299 = vmatprep.mubr.msk.f32.mxu1 %vm26638_vm1, %v31835_v4  ;;  %v15537_v15 = vpop.f32.mrf.mxu1  ;;  %s26513_s3 = spop %26512 }
 0x4e5   :  { %26319 = vmatpush3.msra.mxu0 %v30737_v55  ;;  %26300 = vmatmul.mubr.f32.vlgmr.msra.gmra.mxu1 %v28581_v51  ;;  %v8878_v7 = vpop.xlane.xlu0 %8877  ;;  %v15856_v50 = vadd.f32 0.0009, %v15855_v30  ;;  %v15538_v63 = vadd.f32 %v15537_v15, %v15456_v27  ;;  %v30799_v45 = vsub.f32 %v3929_v37, %v30785_v32  ;;  %v32032_v55 = vld [vmem:[#allocation15_spill] sm:$0xff]  ;;  %v30839_v37 = vand.u32 4294901760, %v32035_v26 }
 0x4e6   :  { %26309 = vmatprep.subr.mxu1 %v31835_v4  ;;  %26320 = vmatprep.mubr.msk.f32.mxu0 %vm26638_vm1, %v31835_v4  ;;  %v8879_v57 = vrot.slane %v8878_v7, 4  ;;  %v25853_v62 = vpop.f32.mrf.mxu1  ;;  %v3478_v23 = vadd.f32 %v32033_v28, %v32032_v55  ;;  %v32040_v55 = vld [vmem:[#allocation132_spill] sm:$0xff] }
 0x4e7   :  { %26330 = vmatprep.subr.mxu0 %v31835_v4  ;;  %26310 = vmatpush3.msra.mxu1 %v20641_v5  ;;  %v15857_v22 = vmul.f32 %v15856_v50, %v15854_v38  ;;  %v15614_v42 = vadd.f32 %v15613_v2, %v15538_v63  ;;  %v15765_v48 = vpop.f32.mrf.mxu0  ;;  %v21105_v6 = vand.u32 4294901760, %v30799_v45  ;;  %v21556_v53 = vsub.f32 %v32035_v26, %v30839_v37 }
 0x4e8   :  { %26321 = vmatmul.mubr.f32.vlgmr.msra.gmra.mxu0 %v28591_v46  ;;  %26311 = vmatprep.subr.mxu1 %v31835_v4  ;;  %v8880_v49 = vadd.f32 %v8879_v57, %v8878_v7  ;;  %v4025_v24 = vadd.f32 %v32034_v8, %v3478_v23 }
 0x4e9   :  { %26331 = vmatpush3.msra.mxu0 %v20639_v13  ;;  %26312 = vmatpush3.msra.mxu1 %v20648_v29  ;;  %v25874_v58 = vpop.f32.mrf.mxu0  ;;  %26543 = vrcp.f32 %v15857_v22  ;;  %v21106_v41 = vsub.f32 %v30799_v45, %v21105_v6 }
 0x4ea   :  { %26332 = vmatprep.subr.mxu0 %v31835_v4  ;;  %26313 = vmatprep.mubr.msk.f32.mxu1 %vm26638_vm1, %v31835_v4  ;;  %v8881_v36 = vrot.slane %v8880_v49, 2  ;;  %v15688_v17 = vpop.f32.mrf.mxu1  ;;  %v30844_v50 = vand.u32 4294901760, %v4025_v24  ;;  %v32036_v58 = vld [vmem:[#allocation44_spill] sm:$0xff] }
 0x4eb   :  { %26333 = vmatpush3.msra.mxu0 %v20646_v47  ;;  %26314 = vmatmul.mubr.f32.vlgmr.msra.gmra.mxu1 %v28581_v51  ;;  %v15689_v59 = vadd.f32 %v15688_v17, %v15614_v42  ;;  %v15848_v47 = vmul.f32 2.0, %v30646_v52  ;;  %v21107_v15 = vand.u32 4294901760, %v21106_v41  ;;  %v13532_v41 = vsel %vm6546_vm2, %v30538_v12, 0.0  ;;  %v32042_v12 = vld [vmem:[#allocation80_spill] sm:$0xff] }
 0x4ec   :  { %26323 = vmatprep.subr.mxu1 %v31835_v4  ;;  %26334 = vmatprep.mubr.msk.f32.mxu0 %vm26638_vm1, %v31835_v4  ;;  %v8882_v31 = vadd.f32 %v8881_v36, %v8880_v49  ;;  %v25867_v40 = vpop.f32.mrf.mxu1  ;;  %v21563_v42 = vsub.f32 %v4025_v24, %v30844_v50  ;;  %v32037_v36 = vld [vmem:[#allocation45_spill] sm:$0xff] }
 0x4ed   :  { %26344 = vmatprep.subr.mxu0 %v31835_v4  ;;  %26324 = vmatpush3.msra.mxu1 %v30718_v21  ;;  %v15766_v25 = vadd.f32 %v15765_v48, %v15689_v59  ;;  %v15948_v34 = vpop.f32.mrf.mxu0  ;;  %v15849_v2 = vadd.f32 0.0001, %v15848_v47  ;;  %v2299_v17 = vadd.f32 %v32037_v36, %v32036_v58 }
 0x4ee   :  { %26335 = vmatmul.mubr.f32.vlgmr.msra.gmra.mxu0 %v28581_v51  ;;  %26325 = vmatprep.subr.mxu1 %v31835_v4  ;;  %v8883_v39 = vrot.slane %v8882_v31, 1  ;;  %v21564_v40 = vand.u32 4294901760, %v21563_v42 }
 0x4ef   :  { %26345 = vmatpush3.msra.mxu0 %v30780_v43  ;;  %26326 = vmatpush3.msra.mxu1 %v30723_v33  ;;  %v25888_v9 = vpop.f32.mrf.mxu0 }
 0x4f0   :  { %26346 = vmatprep.subr.mxu0 %v31835_v4  ;;  %26327 = vmatprep.mubr.msk.f32.mxu1 %vm26638_vm1, %v31835_v4  ;;  %v8884_v16 = vadd.f32 %v8883_v39, %v8882_v31  ;;  %v15838_v0 = vpop.f32.mrf.mxu1  ;;  %v32039_v9 = vld [vmem:[#allocation130_spill] sm:$0xff] }
 0x4f1   :  { %26347 = vmatpush3.msra.mxu0 %v30785_v32  ;;  %26328 = vmatmul.mubr.f32.vlgmr.msra.gmra.mxu1 %v28601_v54  ;;  %v15839_v27 = vadd.f32 %v15838_v0, %v15766_v25  ;;  %v21565_v0 = vsub.f32 %v21563_v42, %v21564_v40 }
 0x4f2   :  { %26337 = vmatprep.subr.mxu1 %v31835_v4  ;;  %26348 = vmatprep.mubr.msk.f32.mxu0 %vm26638_vm1, %v31835_v4  ;;  %26514 = vpush %v8884_v16  ;;  %v25881_v13 = vpop.f32.mrf.mxu1 }
 0x4f3   :  { %26358 = vmatprep.subr.mxu0 %v31835_v4  ;;  %26338 = vmatpush3.msra.mxu1 %v30718_v21  ;;  %v15847_v3 = vsub.f32 %v15839_v27, %v30646_v52  ;;  %v16105_v11 = vpop.f32.mrf.mxu0  ;;  %v21100_v21 = vand.u32 4294901760, %v21099_v1  ;;  %v21566_v23 = vand.u32 4294901760, %v21565_v0  ;;  %v32041_v1 = vld [vmem:[#allocation131_spill] sm:$0xff] }
 0x4f4   :  { %26349 = vmatmul.mubr.f32.vlgmr.msra.gmra.mxu0 %v28616_v56  ;;  %26339 = vmatprep.subr.mxu1 %v31835_v4  ;;  %v30903_v47 = vand.u32 4294901760, %v32041_v1 }
 0x4f5   :  { %26359 = vmatpush3.msra.mxu0 %v30792_v10  ;;  %26340 = vmatpush3.msra.mxu1 %v30723_v33  ;;  %v15850_v60 = vmul.f32 2.0, %v15847_v3  ;;  %v25902_v61 = vpop.f32.mrf.mxu0  ;;  %v21557_v10 = vand.u32 4294901760, %v21556_v53 }
 0x4f6   :  { %26360 = vmatprep.subr.mxu0 %v31835_v4  ;;  %26341 = vmatprep.mubr.msk.f32.mxu1 %vm26638_vm1, %v31835_v4  ;;  %v16029_v52 = vpop.f32.mrf.mxu1  ;;  %v26544_v30 = vpop.eup %26543  ;;  %v22015_v61 = vsub.f32 %v32041_v1, %v30903_v47 }
 0x4f7   :  { %26361 = vmatpush3.msra.mxu0 %v30799_v45  ;;  %26342 = vmatmul.mubr.f32.vlgmr.msra.gmra.mxu1 %v28581_v51  ;;  %v15851_v19 = vadd.f32 0.0009, %v15850_v60  ;;  %v16030_v33 = vadd.f32 %v16029_v52, %v15948_v34  ;;  %v32038_v45 = vld [vmem:[#allocation46_spill] sm:$0xff]  ;;  %v21558_v39 = vsub.f32 %v21556_v53, %v21557_v10 }
 0x4f8   :  { %26351 = vmatprep.subr.mxu1 %v31835_v4  ;;  %26362 = vmatprep.mubr.msk.f32.mxu0 %vm26638_vm1, %v31835_v4  ;;  %v25895_v44 = vpop.f32.mrf.mxu1  ;;  %v2989_v25 = vadd.f32 %v32038_v45, %v2299_v17  ;;  %v32043_v52 = vld [vmem:[#allocation74_spill] sm:$0xff] }
 0x4f9   :  { %26372 = vmatprep.subr.mxu0 %v31835_v4  ;;  %26352 = vmatpush3.msra.mxu1 %v21100_v21  ;;  %v16106_v5 = vadd.f32 %v16105_v11, %v16030_v33  ;;  %v16257_v38 = vpop.f32.mrf.mxu0  ;;  %v15852_v7 = vmul.f32 %v15851_v19, %v15849_v2  ;;  %v2411_v21 = vadd.f32 %v32043_v52, %v32042_v12  ;;  %v22016_v33 = vand.u32 4294901760, %v22015_v61  ;;  %v32044_v44 = vld [vmem:[#allocation76_spill] sm:$0xff] }
 0x4fa   :  { %26363 = vmatmul.mubr.f32.vlgmr.msra.gmra.mxu0 %v28591_v46  ;;  %26353 = vmatprep.subr.mxu1 %v31835_v4  ;;  %v3574_v16 = vadd.f32 %v32039_v9, %v2989_v25 }
 0x4fb   :  { %26373 = vmatpush3.msra.mxu0 %v21098_v18  ;;  %26354 = vmatpush3.msra.mxu1 %v21107_v15  ;;  %v25916_v63 = vpop.f32.mrf.mxu0  ;;  %v30846_v57 = vmul.f32 %v26544_v30, %v15852_v7  ;;  %v3117_v26 = vadd.f32 %v32044_v44, %v2411_v21  ;;  %v22017_v7 = vsub.f32 %v22015_v61, %v22016_v33 }
 0x4fc   :  { %26374 = vmatprep.subr.mxu0 %v31835_v4  ;;  %26355 = vmatprep.mubr.msk.f32.mxu1 %vm26638_vm1, %v31835_v4  ;;  %v16180_v62 = vpop.f32.mrf.mxu1  ;;  %v4121_v28 = vadd.f32 %v32040_v55, %v3574_v16 }
 0x4fd   :  { %26375 = vmatpush3.msra.mxu0 %v21105_v6  ;;  %26356 = vmatmul.mubr.f32.vlgmr.msra.gmra.mxu1 %v28581_v51  ;;  %v16181_v29 = vadd.f32 %v16180_v62, %v16106_v5  ;;  %v3670_v63 = vadd.f32 %v29226_v14, %v3117_v26 }
 0x4fe   :  { %26365 = vmatprep.subr.mxu1 %v31835_v4  ;;  %26376 = vmatprep.mubr.msk.f32.mxu0 %vm26638_vm1, %v31835_v4  ;;  %v25909_v22 = vpop.f32.mrf.mxu1  ;;  %v30907_v11 = vand.u32 4294901760, %v4121_v28 }
 0x4ff   :  { %26386 = vmatprep.subr.mxu0 %v31835_v4  ;;  %26366 = vmatpush3.msra.mxu1 %v30780_v43  ;;  %v30860_v48 = vadd.f32 %v16257_v38, %v16181_v29  ;;  %v30862_v49 = vpop.f32.mrf.mxu0  ;;  %v4217_v14 = vadd.f32 %v29234_v20, %v3670_v63 }
 0x500   :  { %26377 = vmatmul.mubr.f32.vlgmr.msra.gmra.mxu0 %v28581_v51  ;;  %26367 = vmatprep.subr.mxu1 %v31835_v4  ;;  %v22022_v2 = vsub.f32 %v4121_v28, %v30907_v11 }
 0x501   :  { %26387 = vmatpush3.msra.mxu0 %v30839_v37  ;;  %26368 = vmatpush3.msra.mxu1 %v30785_v32  ;;  %v25930_v59 = vpop.f32.mrf.mxu0  ;;  %v30968_v36 = vand.u32 4294901760, %v4217_v14 }
 0x502   :  { %26388 = vmatprep.subr.mxu0 %v31835_v4  ;;  %26369 = vmatprep.mubr.msk.f32.mxu1 %vm26638_vm1, %v31835_v4  ;;  %v30873_v31 = vpop.f32.mrf.mxu1  ;;  %v22023_v15 = vand.u32 4294901760, %v22022_v2 }
 0x503   :  { %26389 = vmatpush3.msra.mxu0 %v30844_v50  ;;  %26370 = vmatmul.mubr.f32.vlgmr.msra.gmra.mxu1 %v28601_v54  ;;  %v22481_v45 = vsub.f32 %v4217_v14, %v30968_v36  ;;  %v16331_v21 = vadd.f32 %v30873_v31, %v30860_v48 }
 0x504   :  { %26379 = vmatprep.subr.mxu1 %v31835_v4  ;;  %26390 = vmatprep.mubr.msk.f32.mxu0 %vm26638_vm1, %v31835_v4  ;;  %v25923_v34 = vpop.f32.mrf.mxu1 }
 0x505   :  { %26400 = vmatprep.subr.mxu0 %v31835_v4  ;;  %26380 = vmatpush3.msra.mxu1 %v30780_v43  ;;  %v30883_v18 = vpop.f32.mrf.mxu0  ;;  %v21559_v43 = vand.u32 4294901760, %v21558_v39  ;;  %v22482_v9 = vand.u32 4294901760, %v22481_v45  ;;  %v18170_v31 = vmul.f32 %v16331_v21, %v16331_v21 }
 0x506   :  { %26391 = vmatmul.mubr.f32.vlgmr.msra.gmra.mxu0 %v28616_v56  ;;  %26381 = vmatprep.subr.mxu1 %v31835_v4 }
 0x507   :  { %26401 = vmatpush3.msra.mxu0 %v21556_v53  ;;  %26382 = vmatpush3.msra.mxu1 %v30785_v32  ;;  %v25944_v6 = vpop.f32.mrf.mxu0  ;;  %v22024_v53 = vsub.f32 %v22022_v2, %v22023_v15 }
 0x508   :  { %26402 = vmatprep.subr.mxu0 %v31835_v4  ;;  %26383 = vmatprep.mubr.msk.f32.mxu1 %vm26638_vm1, %v31835_v4  ;;  %v30892_v27 = vpop.f32.mrf.mxu1 }
 0x509   :  { %26403 = vmatpush3.msra.mxu0 %v21563_v42  ;;  %26384 = vmatmul.mubr.f32.vlgmr.msra.gmra.mxu1 %v28581_v51  ;;  %v30964_v42 = vand.u32 4294901760, %v29093_v35  ;;  %v22025_v20 = vand.u32 4294901760, %v22024_v53 }
 0x50a   :  { %26393 = vmatprep.subr.mxu1 %v31835_v4  ;;  %26404 = vmatprep.mubr.msk.f32.mxu0 %vm26638_vm1, %v31835_v4  ;;  %v25937_v32 = vpop.f32.mrf.mxu1 }
 0x50b   :  { %26414 = vmatprep.subr.mxu0 %v31835_v4  ;;  %26394 = vmatpush3.msra.mxu1 %v21559_v43  ;;  %v30900_v13 = vpop.f32.mrf.mxu0 }
 0x50c   :  { %26405 = vmatmul.mubr.f32.vlgmr.msra.gmra.mxu0 %v28591_v46  ;;  %26395 = vmatprep.subr.mxu1 %v31835_v4 }
 0x50d   :  { %26415 = vmatpush3.msra.mxu0 %v21557_v10  ;;  %26396 = vmatpush3.msra.mxu1 %v21566_v23  ;;  %v25958_v3 = vpop.f32.mrf.mxu0  ;;  %v22474_v10 = vsub.f32 %v29093_v35, %v30964_v42  ;;  %v16489_v35 = vadd.f32 %v30892_v27, %v30862_v49 }
 0x50e   :  { %26416 = vmatprep.subr.mxu0 %v31835_v4  ;;  %26397 = vmatprep.mubr.msk.f32.mxu1 %vm26638_vm1, %v31835_v4  ;;  %v30914_v60 = vpop.f32.mrf.mxu1 }
 0x50f   :  { %26417 = vmatpush3.msra.mxu0 %v21564_v40  ;;  %26398 = vmatmul.mubr.f32.vlgmr.msra.gmra.mxu1 %v28581_v51  ;;  %v22475_v34 = vand.u32 4294901760, %v22474_v10  ;;  %v16565_v49 = vadd.f32 %v30883_v18, %v16489_v35  ;;  %v22483_v18 = vsub.f32 %v22481_v45, %v22482_v9 }
 0x510   :  { %26407 = vmatprep.subr.mxu1 %v31835_v4  ;;  %26418 = vmatprep.mubr.msk.f32.mxu0 %vm26638_vm1, %v31835_v4  ;;  %v25951_v8 = vpop.f32.mrf.mxu1 }
 0x511   :  { %26428 = vmatprep.subr.mxu0 %v31835_v4  ;;  %13533 = vadd.xlane.f32.xlu1 %v13532_v41  ;;  %v30923_v24 = vpop.f32.mrf.mxu0  ;;  %v22476_v27 = vsub.f32 %v22474_v10, %v22475_v34  ;;  %v16640_v55 = vadd.f32 %v30914_v60, %v16565_v49  ;;  %v22484_v3 = vand.u32 4294901760, %v22483_v18 }
 0x512   :  { %26408 = vmatpush3.msra.mxu1 %v30839_v37  ;;  %26419 = vmatmul.mubr.f32.vlgmr.msra.gmra.mxu0 %v28581_v51 }
 0x513   :  { %26429 = vmatpush3.msra.mxu0 %v30903_v47  ;;  %26409 = vmatprep.subr.mxu1 %v31835_v4  ;;  %v25972_v19 = vpop.f32.mrf.mxu0 }
 0x514   :  { %26430 = vmatprep.subr.mxu0 %v31835_v4  ;;  %26410 = vmatpush3.msra.mxu1 %v30844_v50  ;;  %v30934_v30 = vpop.f32.mrf.mxu1  ;;  %v15860_v19 = vsel %vm6546_vm2, %v30846_v57, 0.0 }
 0x515   :  { %26411 = vmatprep.mubr.msk.f32.mxu1 %vm26638_vm1, %v31835_v4  ;;  %26431 = vmatpush3.msra.mxu0 %v30907_v11 }
 0x516   :  { %26412 = vmatmul.mubr.f32.vlgmr.msra.gmra.mxu1 %v28601_v54  ;;  %26421 = vmatprep.subr.mxu1 %v31835_v4  ;;  %v25965_v5 = vpop.f32.mrf.mxu1 }
 0x517   :  { %26432 = vmatprep.mubr.msk.f32.mxu0 %vm26638_vm1, %v31835_v4  ;;  %26442 = vmatprep.subr.mxu0 %v31835_v4  ;;  %v30945_v38 = vpop.f32.mrf.mxu0 }
 0x518   :  { %26422 = vmatpush3.msra.mxu1 %v30839_v37  ;;  %26433 = vmatmul.mubr.f32.vlgmr.msra.gmra.mxu0 %v28616_v56  ;;  %v22018_v37 = vand.u32 4294901760, %v22017_v7 }
 0x519   :  { %26443 = vmatpush3.msra.mxu0 %v22015_v61  ;;  %26423 = vmatprep.subr.mxu1 %v31835_v4  ;;  %v25986_v62 = vpop.f32.mrf.mxu0 }
 0x51a   :  { %26444 = vmatprep.subr.mxu0 %v31835_v4  ;;  %26424 = vmatpush3.msra.mxu1 %v30844_v50  ;;  %v16947_v29 = vpop.f32.mrf.mxu1 }
 0x51b   :  { %26425 = vmatprep.mubr.msk.f32.mxu1 %vm26638_vm1, %v31835_v4  ;;  %26445 = vmatpush3.msra.mxu0 %v22022_v2  ;;  %v16948_v16 = vadd.f32 %v16947_v29, %v30923_v24 }
 0x51c   :  { %26426 = vmatmul.mubr.f32.vlgmr.msra.gmra.mxu1 %v28581_v51  ;;  %26435 = vmatprep.subr.mxu1 %v31835_v4  ;;  %v25979_v22 = vpop.f32.mrf.mxu1 }
 0x51d   :  { %26446 = vmatprep.mubr.msk.f32.mxu0 %vm26638_vm1, %v31835_v4  ;;  %26456 = vmatprep.subr.mxu0 %v31835_v4  ;;  %v30961_v50 = vpop.f32.mrf.mxu0  ;;  %v17024_v28 = vadd.f32 %v30945_v38, %v16948_v16 }
 0x51e   :  { %26436 = vmatpush3.msra.mxu1 %v22018_v37  ;;  %26447 = vmatmul.mubr.f32.vlgmr.msra.gmra.mxu0 %v28591_v46 }
 0x51f   :  { %26457 = vmatpush3.msra.mxu0 %v22016_v33  ;;  %26437 = vmatprep.subr.mxu1 %v31835_v4  ;;  %v26000_v58 = vpop.f32.mrf.mxu0 }
 0x520   :  { %26458 = vmatprep.subr.mxu0 %v31835_v4  ;;  %26438 = vmatpush3.msra.mxu1 %v22025_v20 }
 0x521   :  { %26439 = vmatprep.mubr.msk.f32.mxu1 %vm26638_vm1, %v31835_v4  ;;  %26459 = vmatpush3.msra.mxu0 %v22023_v15  ;;  %v17098_v17 = vpop.f32.mrf.mxu1 }
 0x522   :  { %26440 = vmatmul.mubr.f32.vlgmr.msra.gmra.mxu1 %v28581_v51  ;;  %26449 = vmatprep.subr.mxu1 %v31835_v4  ;;  %v17099_v41 = vadd.f32 %v17098_v17, %v17024_v28 }
 0x523   :  { %26460 = vmatprep.mubr.msk.f32.mxu0 %vm26638_vm1, %v31835_v4  ;;  %26470 = vmatprep.subr.mxu0 %v31835_v4  ;;  %v25993_v59 = vpop.f32.mrf.mxu1  ;;  %v17325_v40 = vpop.f32.mrf.mxu0  ;;  %s26515_s30 = spop %26514 }
 0x524   :  { %26450 = vmatpush3.msra.mxu1 %v30903_v47  ;;  %26461 = vmatmul.mubr.f32.vlgmr.msra.gmra.mxu0 %v28581_v51 }
 0x525   :  { %26471 = vmatpush3.msra.mxu0 %v30964_v42  ;;  %26451 = vmatprep.subr.mxu1 %v31835_v4  ;;  %v26014_v25 = vpop.f32.mrf.mxu0 }
 0x526   :  { %26472 = vmatprep.subr.mxu0 %v31835_v4  ;;  %26452 = vmatpush3.msra.mxu1 %v30907_v11 }
 0x527   :  { %26453 = vmatprep.mubr.msk.f32.mxu1 %vm26638_vm1, %v31835_v4  ;;  %26473 = vmatpush3.msra.mxu0 %v30968_v36  ;;  %v30992_v39 = vpop.f32.mrf.mxu1 }
 0x528   :  { %26454 = vmatmul.mubr.f32.vlgmr.msra.gmra.mxu1 %v28601_v54  ;;  %26463 = vmatprep.subr.mxu1 %v31835_v4 }
 0x529   :  { %26474 = vmatprep.mubr.msk.f32.mxu0 %vm26638_vm1, %v31835_v4  ;;  %26484 = vmatprep.subr.mxu0 %v31835_v4  ;;  %v26007_v0 = vpop.f32.mrf.mxu1  ;;  %v17482_v6 = vpop.f32.mrf.mxu0 }
 0x52a   :  { %26464 = vmatpush3.msra.mxu1 %v30903_v47  ;;  %26475 = vmatmul.mubr.f32.vlgmr.msra.gmra.mxu0 %v28616_v56  ;;  %v22477_v56 = vand.u32 4294901760, %v22476_v27 }
 0x52b   :  { %26485 = vmatpush3.msra.mxu0 %v22474_v10  ;;  %26465 = vmatprep.subr.mxu1 %v31835_v4  ;;  %v26028_v43 = vpop.f32.mrf.mxu0 }
 0x52c   :  { %26486 = vmatprep.subr.mxu0 %v31835_v4  ;;  %26466 = vmatpush3.msra.mxu1 %v30907_v11  ;;  %v16717_v11 = vadd.f32 %v30900_v13, %v16640_v55  ;;  %v17176_v13 = vadd.f32 %v30961_v50, %v17099_v41 }
 0x52d   :  { %26467 = vmatprep.mubr.msk.f32.mxu1 %vm26638_vm1, %v31835_v4  ;;  %26487 = vmatpush3.msra.mxu0 %v22481_v45  ;;  %v17406_v32 = vpop.f32.mrf.mxu1 }
 0x52e   :  { %26468 = vmatmul.mubr.f32.vlgmr.msra.gmra.mxu1 %v28581_v51  ;;  %26477 = vmatprep.subr.mxu1 %v31835_v4  ;;  %v17407_v23 = vadd.f32 %v17406_v32, %v17325_v40  ;;  %v17249_v44 = vadd.f32 %v30992_v39, %v17176_v13 }
 0x52f   :  { %26488 = vmatprep.mubr.msk.f32.mxu0 %vm26638_vm1, %v31835_v4  ;;  %26498 = vmatprep.subr.mxu0 %v31835_v4  ;;  %v26021_v1 = vpop.f32.mrf.mxu1  ;;  %v17634_v47 = vpop.f32.mrf.mxu0 }
 0x530   :  { %26478 = vmatpush3.msra.mxu1 %v22477_v56  ;;  %26489 = vmatmul.mubr.f32.vlgmr.msra.gmra.mxu0 %v28591_v46  ;;  %v17483_v60 = vadd.f32 %v17482_v6, %v17407_v23  ;;  %v16790_v46 = vadd.f32 %v30934_v30, %v16717_v11  ;;  %v18173_v5 = vsub.f32 %v17249_v44, %v18170_v31 }
 0x531   :  { %26499 = vmatpush3.msra.mxu0 %v22475_v34  ;;  %26479 = vmatprep.subr.mxu1 %v31835_v4  ;;  %v26042_v61 = vpop.f32.mrf.mxu0 }
 0x532   :  { %26500 = vmatprep.subr.mxu0 %v31835_v4  ;;  %26480 = vmatpush3.msra.mxu1 %v22484_v3  ;;  %v18171_v30 = vmul.f32 %v16790_v46, %v16790_v46  ;;  %v18172_v39 = vmul.f32 %v16790_v46, %v16331_v21 }
 0x533   :  { %26501 = vmatpush3.msra.mxu0 %v22482_v9  ;;  %26481 = vmatprep.mubr.msk.f32.mxu1 %vm26638_vm1, %v31835_v4  ;;  %v17557_v8 = vpop.f32.mrf.mxu1 }
 0x534   :  { %26491 = vmatprep.subr.mxu1 %v31835_v4  ;;  %26482 = vmatmul.mubr.f32.vlgmr.msra.gmra.mxu1 %v28581_v51  ;;  %v17558_v24 = vadd.f32 %v17557_v8, %v17483_v60  ;;  %v18176_v27 = vmul.f32 2.0, %v18172_v39 }
 0x535   :  { %26492 = vmatpush3.msra.mxu1 %v30964_v42  ;;  %26495 = vmatprep.mubr.msk.f32.mxu1 %vm26638_vm1, %v31835_v4  ;;  %v26035_v12 = vpop.f32.mrf.mxu1  ;;  %v17784_v52 = vpop.f32.mrf.mxu0 }
 0x536   :  { %26493 = vmatprep.subr.mxu1 %v31835_v4  ;;  %26502 = vmatprep.mubr.msk.f32.mxu0 %vm26638_vm1, %v31835_v4  ;;  %v17635_v2 = vadd.f32 %v17634_v47, %v17558_v24  ;;  %v18177_v32 = vadd.f32 0.0001, %v18176_v27 }
 0x537   :  { %26494 = vmatpush3.msra.mxu1 %v30968_v36  ;;  %26503 = vmatmul.mubr.f32.vlgmr.msra.gmra.mxu0 %v28581_v51  ;;  %v26056_v33 = vpop.f32.mrf.mxu0 }
 0x538   :  { %26505 = vmatprep.subr.mxu1 %v31835_v4  ;;  %26496 = vmatmul.mubr.f32.vlgmr.msra.gmra.mxu1 %v28601_v54  ;;  %v18181_v54 = vadd.f32 %v18171_v30, %v18170_v31 }
 0x539   :  { %26506 = vmatpush3.msra.mxu1 %v30964_v42  ;;  %26509 = vmatprep.mubr.msk.f32.mxu1 %vm26638_vm1, %v31835_v4  ;;  %v17707_v48 = vpop.f32.mrf.mxu1 }
 0x53a   :  { %26507 = vmatprep.subr.mxu1 %v31835_v4  ;;  %15861 = vadd.xlane.f32.xlu0 %v15860_v19  ;;  %v17708_v26 = vadd.f32 %v17707_v48, %v17635_v2  ;;  %v18182_v53 = vadd.f32 0.0001, %v18181_v54 }
 0x53b   :  { %26508 = vmatpush3.msra.mxu1 %v30968_v36  ;;  %v26049_v57 = vpop.f32.mrf.mxu1  ;;  %v17941_v15 = vpop.f32.mrf.mxu0 }
 0x53c   :  { %26510 = vmatmul.mubr.f32.vlgmr.msra.gmra.mxu1 %v28581_v51  ;;  %v18174_v38 = vsub.f32 %v17708_v26, %v18171_v30 }
 0x53d   :  { %v26070_v7 = vpop.f32.mrf.mxu0 }
 0x53e   :  { %v18183_v63 = vadd.f32 %v18174_v38, %v18173_v5 }
 0x53f   :  { %v17865_v62 = vpop.f32.mrf.mxu1 }
 0x540   :  { %v11206_v29 = vpop.xlane.xlu1 %11205  ;;  %v18184_v14 = vadd.f32 0.0009, %v18183_v63  ;;  %v17866_v37 = vadd.f32 %v17865_v62, %v17784_v52 }
 0x541   :  { %v11207_v4 = vrot.slane %v11206_v29, 4  ;;  %v26063_v22 = vpop.f32.mrf.mxu1  ;;  %v18093_v50 = vpop.f32.mrf.mxu0 }
 0x542   :  { %v18185_v42 = vmul.f32 %v18184_v14, %v18182_v53  ;;  %v17942_v20 = vadd.f32 %v17941_v15, %v17866_v37 }
 0x543   :  { %v11208_v58 = vadd.f32 %v11207_v4, %v11206_v29  ;;  %v26084_v36 = vpop.f32.mrf.mxu0 }
 0x544   :  { %26545 = vrcp.f32 %v18185_v42 }
 0x545   :  { %v11209_v17 = vrot.slane %v11208_v58, 2  ;;  %v18016_v10 = vpop.f32.mrf.mxu1 }
 0x546   :  { %v18017_v51 = vadd.f32 %v18016_v10, %v17942_v20 }
 0x547   :  { %v11210_v59 = vadd.f32 %v11209_v17, %v11208_v58  ;;  %v26077_v40 = vpop.f32.mrf.mxu1  ;;  %v18276_v45 = vpop.f32.mrf.mxu0 }
 0x548   :  { %v18094_v35 = vadd.f32 %v18093_v50, %v18017_v51 }
 0x549   :  { %v11211_v25 = vrot.slane %v11210_v59, 1  ;;  %v26098_v34 = vpop.f32.mrf.mxu0 }
 0x54b   :  { %v11212_v9 = vadd.f32 %v11211_v25, %v11210_v59  ;;  %v18166_v49 = vpop.f32.mrf.mxu1 }
 0x54c   :  { %v18167_v16 = vadd.f32 %v18166_v49, %v18094_v35 }
 0x54d   :  { %26516 = vpush %v11212_v9  ;;  %v26091_v0 = vpop.f32.mrf.mxu1  ;;  %v18433_v6 = vpop.f32.mrf.mxu0 }
 0x54e   :  { %v18175_v43 = vsub.f32 %v18167_v16, %v18172_v39 }
 0x54f   :  { %v26112_v18 = vpop.f32.mrf.mxu0 }
 0x550   :  { %v18178_v55 = vmul.f32 2.0, %v18175_v43 }
 0x551   :  { %v18357_v28 = vpop.f32.mrf.mxu1  ;;  %v26546_v1 = vpop.eup %26545 }
 0x552   :  { %v18179_v56 = vadd.f32 0.0009, %v18178_v55  ;;  %v18358_v23 = vadd.f32 %v18357_v28, %v18276_v45 }
 0x553   :  { %v26105_v47 = vpop.f32.mrf.mxu1  ;;  %v18585_v3 = vpop.f32.mrf.mxu0 }
 0x554   :  { %v18434_v11 = vadd.f32 %v18433_v6, %v18358_v23  ;;  %v18180_v41 = vmul.f32 %v18179_v56, %v18177_v32 }
 0x555   :  { %v26126_v60 = vpop.f32.mrf.mxu0 }
 0x556   :  { %v18187_v61 = vmul.f32 %v26546_v1, %v18180_v41 }
 0x557   :  { %v18508_v8 = vpop.f32.mrf.mxu1 }
 0x558   :  { %v18509_v46 = vadd.f32 %v18508_v8, %v18434_v11  ;;  %v18188_v13 = vsel %vm6546_vm2, %v18187_v61, 0.0 }
 0x559   :  { %v26119_v24 = vpop.f32.mrf.mxu1  ;;  %v18735_v12 = vpop.f32.mrf.mxu0  ;;  %18189 = vadd.xlane.f32.xlu1 %v18188_v13 }
 0x55a   :  { %v18586_v52 = vadd.f32 %v18585_v3, %v18509_v46 }
 0x55b   :  { %v26140_v21 = vpop.f32.mrf.mxu0 }
 0x55d   :  { %v18658_v2 = vpop.f32.mrf.mxu1 }
 0x55e   :  { %v18659_v28 = vadd.f32 %v18658_v2, %v18586_v52 }
 0x55f   :  { %v26133_v19 = vpop.f32.mrf.mxu1  ;;  %v18892_v33 = vpop.f32.mrf.mxu0 }
 0x560   :  { %v20498_v11 = vmul.f32 %v18659_v28, %v18659_v28 }
 0x561   :  { %v26154_v30 = vpop.f32.mrf.mxu0 }
 0x563   :  { %v18816_v44 = vpop.f32.mrf.mxu1 }
 0x564   :  { %v18817_v50 = vadd.f32 %v18816_v44, %v18735_v12 }
 0x565   :  { %v26147_v48 = vpop.f32.mrf.mxu1  ;;  %v19044_v31 = vpop.f32.mrf.mxu0 }
 0x566   :  { %v18893_v36 = vadd.f32 %v18892_v33, %v18817_v50 }
 0x567   :  { %v26168_v26 = vpop.f32.mrf.mxu0 }
 0x569   :  { %v18967_v57 = vpop.f32.mrf.mxu1 }
 0x56a   :  { %v18968_v59 = vadd.f32 %v18967_v57, %v18893_v36 }
 0x56b   :  { %v26161_v15 = vpop.f32.mrf.mxu1  ;;  %v19194_v54 = vpop.f32.mrf.mxu0 }
 0x56c   :  { %v19045_v39 = vadd.f32 %v19044_v31, %v18968_v59 }
 0x56d   :  { %v26182_v5 = vpop.f32.mrf.mxu0 }
 0x56f   :  { %v19117_v38 = vpop.f32.mrf.mxu1 }
 0x570   :  { %v19118_v27 = vadd.f32 %v19117_v38, %v19045_v39 }
 0x571   :  { %v26175_v7 = vpop.f32.mrf.mxu1  ;;  %v19351_v63 = vpop.f32.mrf.mxu0 }
 0x572   :  { %v20499_v23 = vmul.f32 %v19118_v27, %v19118_v27 }
 0x573   :  { %v26196_v62 = vpop.f32.mrf.mxu0 }
 0x574   :  { %v20509_v61 = vadd.f32 %v20499_v23, %v20498_v11 }
 0x575   :  { %v19275_v53 = vpop.f32.mrf.mxu1 }
 0x576   :  { %v19276_v17 = vadd.f32 %v19275_v53, %v19194_v54  ;;  %v20510_v19 = vadd.f32 0.0001, %v20509_v61 }
 0x577   :  { %v26189_v29 = vpop.f32.mrf.mxu1 }
 0x578   :  { %v19503_v14 = vpop.f32.mrf.mxu0  ;;  %v19352_v40 = vadd.f32 %v19351_v63, %v19276_v17 }
 0x57a   :  { %v26210_v37 = vpop.f32.mrf.mxu0 }
 0x57b   :  { %v19426_v4 = vpop.f32.mrf.mxu1 }
 0x57c   :  { %v19427_v9 = vadd.f32 %v19426_v4, %v19352_v40 }
 0x57d   :  { %v26203_v22 = vpop.f32.mrf.mxu1 }
 0x57e   :  { %v19653_v42 = vpop.f32.mrf.mxu0  ;;  %v19504_v43 = vadd.f32 %v19503_v14, %v19427_v9  ;;  %v20500_v14 = vmul.f32 %v19118_v27, %v18659_v28  ;;  %s26517_s5 = spop %26516 }
 0x580   :  { %v26224_v20 = vpop.f32.mrf.mxu0 }
 0x581   :  { %v19576_v58 = vpop.f32.mrf.mxu1  ;;  %v20504_v20 = vmul.f32 2.0, %v20500_v14 }
 0x582   :  { %v19577_v1 = vadd.f32 %v19576_v58, %v19504_v43 }
 0x583   :  { %v26217_v10 = vpop.f32.mrf.mxu1  ;;  %v20505_v59 = vadd.f32 0.0001, %v20504_v20 }
 0x584   :  { %v19810_v51 = vpop.f32.mrf.mxu0  ;;  %v20501_v8 = vsub.f32 %v19577_v1, %v20498_v11 }
 0x586   :  { %v26238_v45 = vpop.f32.mrf.mxu0 }
 0x587   :  { %v19734_v35 = vpop.f32.mrf.mxu1 }
 0x588   :  { %v19735_v25 = vadd.f32 %v19734_v35, %v19653_v42 }
 0x589   :  { %v26231_v34 = vpop.f32.mrf.mxu1 }
 0x58a   :  { %v19811_v49 = vadd.f32 %v19810_v51, %v19735_v25  ;;  %v19962_v16 = vpop.f32.mrf.mxu0 }
 0x58c   :  { %v26252_v0 = vpop.f32.mrf.mxu0 }
 0x58d   :  { %v19885_v6 = vpop.f32.mrf.mxu1 }
 0x58e   :  { %v19886_v18 = vadd.f32 %v19885_v6, %v19811_v49 }
 0x58f   :  { %v26245_v55 = vpop.f32.mrf.mxu1 }
 0x590   :  { %v19963_v32 = vadd.f32 %v19962_v16, %v19886_v18  ;;  %v20112_v56 = vpop.f32.mrf.mxu0 }
 0x592   :  { %v26266_v47 = vpop.f32.mrf.mxu0 }
 0x593   :  { %v20035_v3 = vpop.f32.mrf.mxu1 }
 0x594   :  { %v20036_v41 = vadd.f32 %v20035_v3, %v19963_v32 }
 0x595   :  { %v26259_v60 = vpop.f32.mrf.mxu1 }
 0x596   :  { %v20502_v46 = vsub.f32 %v20036_v41, %v20499_v23  ;;  %v20269_v13 = vpop.f32.mrf.mxu0 }
 0x598   :  { %v20511_v24 = vadd.f32 %v20502_v46, %v20501_v8  ;;  %v26280_v12 = vpop.f32.mrf.mxu0 }
 0x599   :  { %v20193_v21 = vpop.f32.mrf.mxu1 }
 0x59a   :  { %v13534_v33 = vpop.xlane.xlu1 %13533  ;;  %v20512_v30 = vadd.f32 0.0009, %v20511_v24  ;;  %v20194_v52 = vadd.f32 %v20193_v21, %v20112_v56 }
 0x59b   :  { %v13535_v2 = vrot.slane %v13534_v33, 4  ;;  %v26273_v44 = vpop.f32.mrf.mxu1 }
 0x59c   :  { %v20513_v48 = vmul.f32 %v20512_v30, %v20510_v19  ;;  %v20270_v31 = vadd.f32 %v20269_v13, %v20194_v52  ;;  %v20421_v26 = vpop.f32.mrf.mxu0 }
 0x59d   :  { %v13536_v57 = vadd.f32 %v13535_v2, %v13534_v33 }
 0x59e   :  { %v26294_v15 = vpop.f32.mrf.mxu0  ;;  %26547 = vrcp.f32 %v20513_v48 }
 0x59f   :  { %v13537_v54 = vrot.slane %v13536_v57, 2  ;;  %v20344_v5 = vpop.f32.mrf.mxu1 }
 0x5a0   :  { %v20345_v38 = vadd.f32 %v20344_v5, %v20270_v31 }
 0x5a1   :  { %v13538_v7 = vadd.f32 %v13537_v54, %v13536_v57  ;;  %v26287_v63 = vpop.f32.mrf.mxu1 }
 0x5a2   :  { %v20422_v62 = vadd.f32 %v20421_v26, %v20345_v38  ;;  %v20604_v53 = vpop.f32.mrf.mxu0 }
 0x5a3   :  { %v13539_v29 = vrot.slane %v13538_v7, 1 }
 0x5a4   :  { %v26308_v37 = vpop.f32.mrf.mxu0 }
 0x5a5   :  { %v13540_v4 = vadd.f32 %v13539_v29, %v13538_v7  ;;  %v20494_v22 = vpop.f32.mrf.mxu1 }
 0x5a6   :  { %v20495_v50 = vadd.f32 %v20494_v22, %v20422_v62 }
 0x5a7   :  { %26518 = vpush %v13540_v4  ;;  %v26301_v42 = vpop.f32.mrf.mxu1 }
 0x5a8   :  { %v20503_v58 = vsub.f32 %v20495_v50, %v20500_v14  ;;  %v20761_v36 = vpop.f32.mrf.mxu0 }
 0x5aa   :  { %v20506_v17 = vmul.f32 2.0, %v20503_v58  ;;  %v26322_v10 = vpop.f32.mrf.mxu0 }
 0x5ab   :  { %v20685_v51 = vpop.f32.mrf.mxu1  ;;  %v26548_v45 = vpop.eup %26547 }
 0x5ac   :  { %v20507_v40 = vadd.f32 0.0009, %v20506_v17  ;;  %v20686_v5 = vadd.f32 %v20685_v51, %v20604_v53 }
 0x5ad   :  { %v26315_v35 = vpop.f32.mrf.mxu1 }
 0x5ae   :  { %v31047_v25 = vpop.f32.mrf.mxu0  ;;  %v20508_v34 = vmul.f32 %v20507_v40, %v20505_v59  ;;  %v20762_v14 = vadd.f32 %v20761_v36, %v20686_v5 }
 0x5b0   :  { %v26336_v39 = vpop.f32.mrf.mxu0  ;;  %v20515_v9 = vmul.f32 %v26548_v45, %v20508_v34 }
 0x5b1   :  { %v20836_v49 = vpop.f32.mrf.mxu1 }
 0x5b2   :  { %v20516_v16 = vsel %vm6546_vm2, %v20515_v9, 0.0  ;;  %v20837_v20 = vadd.f32 %v20836_v49, %v20762_v14 }
 0x5b3   :  { %v26329_v0 = vpop.f32.mrf.mxu1  ;;  %20517 = vadd.xlane.f32.xlu0 %v20516_v16 }
 0x5b4   :  { %v21063_v6 = vpop.f32.mrf.mxu0  ;;  %v20914_v34 = vadd.f32 %v31047_v25, %v20837_v20 }
 0x5b6   :  { %v26350_v27 = vpop.f32.mrf.mxu0 }
 0x5b7   :  { %v31050_v43 = vpop.f32.mrf.mxu1 }
 0x5b8   :  { %v20987_v49 = vadd.f32 %v31050_v43, %v20914_v34 }
 0x5b9   :  { %v26343_v18 = vpop.f32.mrf.mxu1 }
 0x5ba   :  { %v21220_v55 = vpop.f32.mrf.mxu0 }
 0x5bc   :  { %v26364_v28 = vpop.f32.mrf.mxu0 }
 0x5bd   :  { %v21144_v32 = vpop.f32.mrf.mxu1 }
 0x5be   :  { %v21145_v15 = vadd.f32 %v21144_v32, %v21063_v6 }
 0x5bf   :  { %v26357_v56 = vpop.f32.mrf.mxu1 }
 0x5c0   :  { %v21372_v23 = vpop.f32.mrf.mxu0  ;;  %v21221_v7 = vadd.f32 %v21220_v55, %v21145_v15 }
 0x5c2   :  { %v26378_v1 = vpop.f32.mrf.mxu0 }
 0x5c3   :  { %v21295_v47 = vpop.f32.mrf.mxu1  ;;  %v15862_v3 = vpop.xlane.xlu0 %15861 }
 0x5c4   :  { %v15863_v11 = vrot.slane %v15862_v3, 4  ;;  %v21296_v4 = vadd.f32 %v21295_v47, %v21221_v7 }
 0x5c5   :  { %v26371_v41 = vpop.f32.mrf.mxu1 }
 0x5c6   :  { %v21522_v60 = vpop.f32.mrf.mxu0  ;;  %v15864_v61 = vadd.f32 %v15863_v11, %v15862_v3  ;;  %v21373_v40 = vadd.f32 %v21372_v23, %v21296_v4  ;;  %v22826_v3 = vmul.f32 %v20987_v49, %v20987_v49 }
 0x5c8   :  { %v26392_v8 = vpop.f32.mrf.mxu0  ;;  %v15865_v46 = vrot.slane %v15864_v61, 2 }
 0x5c9   :  { %v21445_v13 = vpop.f32.mrf.mxu1 }
 0x5ca   :  { %v15866_v24 = vadd.f32 %v15865_v46, %v15864_v61  ;;  %v21446_v36 = vadd.f32 %v21445_v13, %v21373_v40 }
 0x5cb   :  { %v26385_v12 = vpop.f32.mrf.mxu1 }
 0x5cc   :  { %v21679_v21 = vpop.f32.mrf.mxu0  ;;  %v15867_v19 = vrot.slane %v15866_v24, 1  ;;  %v22827_v56 = vmul.f32 %v21446_v36, %v21446_v36 }
 0x5ce   :  { %v26406_v33 = vpop.f32.mrf.mxu0  ;;  %v15868_v30 = vadd.f32 %v15867_v19, %v15866_v24 }
 0x5cf   :  { %v21603_v52 = vpop.f32.mrf.mxu1 }
 0x5d0   :  { %26520 = vpush %v15868_v30  ;;  %v21604_v63 = vadd.f32 %v21603_v52, %v21522_v60  ;;  %v22837_v60 = vadd.f32 %v22827_v56, %v22826_v3 }
 0x5d1   :  { %v26399_v2 = vpop.f32.mrf.mxu1 }
 0x5d2   :  { %v21831_v44 = vpop.f32.mrf.mxu0  ;;  %v21680_v22 = vadd.f32 %v21679_v21, %v21604_v63  ;;  %v22838_v12 = vadd.f32 0.0001, %v22837_v60 }
 0x5d4   :  { %v26420_v48 = vpop.f32.mrf.mxu0 }
 0x5d6   :  { %v21754_v31 = vpop.f32.mrf.mxu1 }
 0x5d7   :  { %v21755_v45 = vadd.f32 %v21754_v31, %v21680_v22 }
 0x5d8   :  { %v26413_v26 = vpop.f32.mrf.mxu1  ;;  %v21981_v57 = vpop.f32.mrf.mxu0  ;;  %s26519_s6 = spop %26518 }
 0x5d9   :  { %v21832_v16 = vadd.f32 %v21831_v44, %v21755_v45  ;;  %v22828_v26 = vmul.f32 %v21446_v36, %v20987_v49  ;;  %v13544_v49 = vstv %s26519_s6 }
 0x5da   :  { %v26434_v54 = vpop.f32.mrf.mxu0 }
 0x5dc   :  { %v21904_v38 = vpop.f32.mrf.mxu1 }
 0x5dd   :  { %v21905_v23 = vadd.f32 %v21904_v38, %v21832_v16  ;;  %v22832_v38 = vmul.f32 2.0, %v22828_v26 }
 0x5de   :  { %v26427_v62 = vpop.f32.mrf.mxu1  ;;  %v22138_v29 = vpop.f32.mrf.mxu0 }
 0x5df   :  { %v22829_v61 = vsub.f32 %v21905_v23, %v22826_v3  ;;  %v22833_v62 = vadd.f32 0.0001, %v22832_v38 }
 0x5e0   :  { %v26448_v37 = vpop.f32.mrf.mxu0 }
 0x5e2   :  { %v22062_v50 = vpop.f32.mrf.mxu1  ;;  %v18190_v42 = vpop.xlane.xlu1 %18189 }
 0x5e3   :  { %v22063_v58 = vadd.f32 %v22062_v50, %v21981_v57  ;;  %v18191_v17 = vrot.slane %v18190_v42, 4 }
 0x5e4   :  { %v26441_v10 = vpop.f32.mrf.mxu1  ;;  %v22290_v59 = vpop.f32.mrf.mxu0 }
 0x5e5   :  { %v22139_v35 = vadd.f32 %v22138_v29, %v22063_v58  ;;  %v18192_v53 = vadd.f32 %v18191_v17, %v18190_v42 }
 0x5e6   :  { %v26462_v51 = vpop.f32.mrf.mxu0 }
 0x5e7   :  { %v18193_v39 = vrot.slane %v18192_v53, 2 }
 0x5e8   :  { %v22213_v9 = vpop.f32.mrf.mxu1 }
 0x5e9   :  { %v22214_v0 = vadd.f32 %v22213_v9, %v22139_v35  ;;  %v18194_v6 = vadd.f32 %v18193_v39, %v18192_v53  ;;  %v4226_v9 = vlaneseq }
 0x5ea   :  { %v26455_v27 = vpop.f32.mrf.mxu1  ;;  %v22440_v18 = vpop.f32.mrf.mxu0 }
 0x5eb   :  { %v22291_v55 = vadd.f32 %v22290_v59, %v22214_v0  ;;  %v18195_v28 = vrot.slane %v18194_v6, 1  ;;  %v4227_v36 = vshrl.u32 %v4226_v9, 7  ;;  %v4229_v16 = vand.u32 127, %v4226_v9 }
 0x5ec   :  { %v26476_v32 = vpop.f32.mrf.mxu0  ;;  %v8888_v0 = vstv %s26515_s30  ;;  %v11216_v27 = vstv %s26517_s5 }
 0x5ed   :  { %v18196_v1 = vadd.f32 %v18195_v28, %v18194_v6  ;;  %vm8886_vm3 = vcmp.eq.s32.totalorder %v4229_v16, 1  ;;  %vm6557_vm4 = vcmp.eq.s32.totalorder %v4227_v36, 0  ;;  %vm6558_vm5 = vcmp.eq.s32.totalorder %v4229_v16, 0 }
 0x5ee   :  { %v22363_v47 = vpop.f32.mrf.mxu1  ;;  %vm11214_vm6 = vcmp.eq.s32.totalorder %v4229_v16, 2  ;;  %vm8887_vm7 = vmand %vm6557_vm4, %vm8886_vm3  ;;  %vm13542_vm9 = vcmp.eq.s32.totalorder %v4229_v16, 3  ;;  %v6560_v6 = vstv %s26513_s3  ;;  %vm15870_vm11 = vcmp.eq.s32.totalorder %v4229_v16, 4 }
 0x5ef   :  { %v22364_v11 = vadd.f32 %v22363_v47, %v22291_v55  ;;  %26522 = vpush %v18196_v1  ;;  %vm6559_vm8 = vmand %vm6557_vm4, %vm6558_vm5  ;;  %vm18198_vm13 = vcmp.eq.s32.totalorder %v4229_v16, 5  ;;  %vm20526_vm15 = vcmp.eq.s32.totalorder %v4229_v16, 6 }
 0x5f0   :  { %v26469_v25 = vpop.f32.mrf.mxu1  ;;  %v22597_v41 = vpop.f32.mrf.mxu0  ;;  %vm11215_vm10 = vmand %vm6557_vm4, %vm11214_vm6  ;;  %v6561_v55 = vsel %vm6559_vm8, %v6560_v6, 0.0 }
 0x5f1   :  { %v22830_v8 = vsub.f32 %v22364_v11, %v22827_v56  ;;  %vm13543_vm12 = vmand %vm6557_vm4, %vm13542_vm9  ;;  %v11217_v28 = vsel %vm11215_vm10, %v11216_v27, 0.0 }
 0x5f2   :  { %v26490_v46 = vpop.f32.mrf.mxu0  ;;  %vm15871_vm14 = vmand %vm6557_vm4, %vm15870_vm11  ;;  %v13545_v23 = vsel %vm13543_vm12, %v13544_v49, 0.0 }
 0x5f3   :  { %v22839_v13 = vadd.f32 %v22830_v8, %v22829_v61  ;;  %vm18199_vm0 = vmand %vm6557_vm4, %vm18198_vm13 }
 0x5f4   :  { %v22521_v24 = vpop.f32.mrf.mxu1  ;;  %vm20527_vm1 = vmand %vm6557_vm4, %vm20526_vm15 }
 0x5f5   :  { %v22840_v43 = vadd.f32 0.0009, %v22839_v13  ;;  %v22522_v21 = vadd.f32 %v22521_v24, %v22440_v18  ;;  %v8889_v18 = vsel %vm8887_vm7, %v8888_v0, 0.0 }
 0x5f6   :  { %v26483_v19 = vpop.f32.mrf.mxu1  ;;  %v8890_v32 = vadd.f32 %v8889_v18, %v6561_v55 }
 0x5f7   :  { %v22841_v33 = vmul.f32 %v22840_v43, %v22838_v12  ;;  %v22598_v30 = vadd.f32 %v22597_v41, %v22522_v21  ;;  %v22749_v52 = vpop.f32.mrf.mxu0 }
 0x5f8   :  { %v22672_v2 = vpop.f32.mrf.mxu1  ;;  %v11218_v1 = vadd.f32 %v11217_v28, %v8890_v32 }
 0x5f9   :  { %26549 = vrcp.f32 %v22841_v33  ;;  %v22673_v44 = vadd.f32 %v22672_v2, %v22598_v30  ;;  %v26504_v48 = vpop.f32.mrf.mxu0 }
 0x5fa   :  { %v26497_v31 = vpop.f32.mrf.mxu1  ;;  %v13546_v11 = vadd.f32 %v13545_v23, %v11218_v1 }
 0x5fb   :  { %v22750_v57 = vadd.f32 %v22749_v52, %v22673_v44 }
 0x5fc   :  { %v22822_v15 = vpop.f32.mrf.mxu1 }
 0x5fd   :  { %v22823_v54 = vadd.f32 %v22822_v15, %v22750_v57 }
 0x5fe   :  { %v26511_v5 = vpop.f32.mrf.mxu1 }
 0x5ff   :  { %v22831_v7 = vsub.f32 %v22823_v54, %v22828_v26 }
 0x601   :  { %v22834_v63 = vmul.f32 2.0, %v22831_v7  ;;  %s26521_s7 = spop %26520 }
 0x602   :  { %v15872_v56 = vstv %s26521_s7 }
 0x603   :  { %v22835_v29 = vadd.f32 0.0009, %v22834_v63  ;;  %v15873_v3 = vsel %vm15871_vm14, %v15872_v56, 0.0 }
 0x604   :  { %v15874_v60 = vadd.f32 %v15873_v3, %v13546_v11 }
 0x605   :  { %v22836_v14 = vmul.f32 %v22835_v29, %v22833_v62 }
 0x606   :  { %v26550_v37 = vpop.eup %26549 }
 0x607   :  { %v22843_v4 = vmul.f32 %v26550_v37, %v22836_v14 }
 0x609   :  { %v22844_v22 = vsel %vm6546_vm2, %v22843_v4, 0.0  ;;  %vm22854_vm2 = vcmp.eq.s32.totalorder %v4229_v16, 7 }
 0x60a   :  { %22845 = vadd.xlane.f32.xlu1 %v22844_v22  ;;  %vm22855_vm3 = vmand %vm6557_vm4, %vm22854_vm2 }
 0x620   :  { %s26523_s8 = spop %26522 }
 0x621   :  { %v18200_v47 = vstv %s26523_s8 }
 0x622   :  { %v18201_v41 = vsel %vm18199_vm0, %v18200_v47, 0.0 }
 0x623   :  { %v18202_v8 = vadd.f32 %v18201_v41, %v15874_v60 }
 0x63c   :  { %v20518_v50 = vpop.xlane.xlu0 %20517 }
 0x63d   :  { %v20519_v42 = vrot.slane %v20518_v50, 4 }
 0x63f   :  { %v20520_v20 = vadd.f32 %v20519_v42, %v20518_v50 }
 0x641   :  { %v20521_v58 = vrot.slane %v20520_v20, 2 }
 0x643   :  { %v20522_v17 = vadd.f32 %v20521_v58, %v20520_v20 }
 0x645   :  { %v20523_v10 = vrot.slane %v20522_v17, 1 }
 0x647   :  { %v20524_v59 = vadd.f32 %v20523_v10, %v20522_v17 }
 0x649   :  { %26524 = vpush %v20524_v59 }
 0x67a   :  { %s26525_s9 = spop %26524 }
 0x67b   :  { %v20528_v25 = vstv %s26525_s9 }
 0x67c   :  { %v20529_v61 = vsel %vm20527_vm1, %v20528_v25, 0.0 }
 0x67d   :  { %v20530_v46 = vadd.f32 %v20529_v61, %v18202_v8 }
 0x693   :  { %v22846_v40 = vpop.xlane.xlu1 %22845 }
 0x694   :  { %v22847_v45 = vrot.slane %v22846_v40, 4 }
 0x696   :  { %v22848_v35 = vadd.f32 %v22847_v45, %v22846_v40 }
 0x698   :  { %v22849_v53 = vrot.slane %v22848_v35, 2 }
 0x69a   :  { %v22850_v51 = vadd.f32 %v22849_v53, %v22848_v35 }
 0x69c   :  { %v22851_v34 = vrot.slane %v22850_v51, 1 }
 0x69e   :  { %v22852_v39 = vadd.f32 %v22851_v34, %v22850_v51 }
 0x6a0   :  { %26526 = vpush %v22852_v39 }
 0x6d1   :  { %s26527_s10 = spop %26526 }
 0x6d2   :  { %v22856_v13 = vstv %s26527_s10 }
 0x6d3   :  { %v22857_v24 = vsel %vm22855_vm3, %v22856_v13, 0.0 }
 0x6d4   :  { %v22858_v12 = vadd.f32 %v22857_v24, %v20530_v46 }
 0x6d6   :  { %22859 = vst [vmem:[#allocation7] sm:$0xff] %v22858_v12 }
 0x6d7   :  { %26618 = shalt.err (!%p26615_p0)
}
 0x6d8   :  { %22869 = dma.vmem_to_hbm [thread:$0]  %s22867_s12, 128, %s31070_s4, [#allocation4]  }
 0x6d9   :  { %26631 = dma.done.wait [#allocation4], 128  }
 0x6da   :  { %26632 = vsyncadd [#allocation4], 4294967168 }
 0x6db   :  { %22873 = vsyncpa [#allocation3], 1 }
 0x6dc   :  { %22874 = vsyncpa [#allocation6], 1 }
 0x6dd   :  { %22875 = vsyncpa [#allocation4], 1 }

</bundles_post_ra>
